<compile_context>
chip_gen: v5e
topology: v5e:2x2
jax: 0.10.0
libtpu: 0.0.40
codegen_flags: <defaults>
</compile_context>

<pallas_src>
import jax
import jax.numpy as jnp
from jax.experimental import pallas as pl
from jax.experimental.pallas import tpu as pltpu


def _round_up(x, m):
    return ((x + m - 1) // m) * m


def bahdanau_kernel(q_ref, pk_ref, v_ref, bias_ref, wqT_ref, bq_ref, we_ref,
                    ctx_ref, alphas_ref):
    # One block of batches, full (padded) sequence resident in VMEM.
    q = q_ref[...]                                # [Bblk, H]      f32
    pk = pk_ref[...].astype(jnp.float32)          # [Bblk, Sp, H]  (bf16 in HBM)
    v = v_ref[...].astype(jnp.float32)            # [Bblk, Sp, Dp] (bf16 in HBM)
    bias = bias_ref[...]                          # [Bblk, Sp]     additive mask
    wqT = wqT_ref[...]                            # [H, H]  (query_layer.weight^T)
    bq = bq_ref[...]                              # [1, H]
    we = we_ref[...]                              # [1, H]  (energy_layer.weight)

    # proj_query = query_layer(query): one batched matmul per grid step.
    pq = jnp.dot(q, wqT, preferred_element_type=jnp.float32) + bq        # [Bblk, H]

    # tanh(proj_query + proj_key), broadcast over the sequence axis.
    t = jnp.tanh(pq[:, None, :] + pk)                                    # [Bblk, Sp, H]

    # energy = energy_layer(t).transpose(1,2) computed directly as [Bblk, Sp];
    # additive bias (0 or -1e30) replaces masked_fill_(mask == 0, -inf).
    energy = jnp.sum(t * we[None, :, :], axis=-1) + bias                 # [Bblk, Sp]

    # alphas = softmax(energy, dim=-1) (numerically stable; padded/masked
    # positions carry -1e30 so they contribute exactly 0).
    m = jnp.max(energy, axis=-1, keepdims=True)
    p = jnp.exp(energy - m)
    alphas = p / jnp.sum(p, axis=-1, keepdims=True)                      # [Bblk, Sp]

    # context = bmm(energy, value) — faithful to the module, which multiplies
    # the *masked energy* (not alphas) with value.
    # TODO(synk): the original almost certainly intends bmm(alphas, value); the
    # finite -1e30 mask bias at least keeps masked batches finite (the PyTorch
    # code produces +/-inf / NaN context rows there).
    ctx = jnp.einsum('bqs,bsd->bqd', energy[:, None, :], v,
                     preferred_element_type=jnp.float32)[:, 0, :]        # [Bblk, Dp]

    ctx_ref[...] = ctx
    alphas_ref[...] = alphas


def bahdanau_attention(query, proj_key, value, src_mask, wq, bq, we, *, block_b=8):
    B, _, H = query.shape
    S = proj_key.shape[1]
    D = value.shape[2]           # 2*H

    Bblk = block_b
    Bp = _round_up(B, Bblk)      # batch padded to the block size
    Sp = _round_up(S, 128)       # lane-dense sequence axis
    Dp = _round_up(D, 128)       # lane-dense context axis

    # Pack inputs into lane-dense, batch-blocked slabs.
    q2 = jnp.zeros((Bp, H), jnp.float32).at[:B].set(query[:, 0, :].astype(jnp.float32))
    pk = jnp.zeros((Bp, Sp, H), jnp.bfloat16).at[:B, :S].set(proj_key.astype(jnp.bfloat16))
    v = jnp.zeros((Bp, Sp, Dp), jnp.bfloat16).at[:B, :S, :D].set(value.astype(jnp.bfloat16))

    NEG = jnp.float32(-1e30)
    bias = jnp.full((Bp, Sp), NEG, jnp.float32)        # padded seq positions masked out
    bias = bias.at[:B, :S].set(
        jnp.where(src_mask[:, 0, :] == 0, NEG, jnp.float32(0.0)))

    wqT = wq.T.astype(jnp.float32)                     # [H, H]
    bq2 = bq.reshape(1, H).astype(jnp.float32)         # [1, H]
    we2 = we.reshape(1, H).astype(jnp.float32)         # [1, H]

    out_shapes = (
        jax.ShapeDtypeStruct((Bp, Dp), jnp.float32),   # context (padded, lane-dense)
        jax.ShapeDtypeStruct((Bp, Sp), jnp.float32),   # alphas  (padded, lane-dense)
    )

    ctx_p, alphas_p = pl.pallas_call(
        bahdanau_kernel,
        out_shape=out_shapes,
        grid=(Bp // Bblk,),
        in_specs=[
            pl.BlockSpec((Bblk, H), lambda b: (b, 0)),           # query
            pl.BlockSpec((Bblk, Sp, H), lambda b: (b, 0, 0)),    # proj_key (bf16)
            pl.BlockSpec((Bblk, Sp, Dp), lambda b: (b, 0, 0)),   # value (bf16)
            pl.BlockSpec((Bblk, Sp), lambda b: (b, 0)),          # additive mask bias
            pl.BlockSpec((H, H), lambda b: (0, 0)),              # Wq^T
            pl.BlockSpec((1, H), lambda b: (0, 0)),              # bq
            pl.BlockSpec((1, H), lambda b: (0, 0)),              # We
        ],
        out_specs=(
            pl.BlockSpec((Bblk, Dp), lambda b: (b, 0)),
            pl.BlockSpec((Bblk, Sp), lambda b: (b, 0)),
        ),
        compiler_params=pltpu.CompilerParams(
            dimension_semantics=("parallel",)),                  # v7x: 2 TCs split batch
    )(q2, pk, v, bias, wqT, bq2, we2)

    context = ctx_p[:B, :D].reshape(B, 1, D)
    alphas = alphas_p[:B, :S].reshape(B, 1, S)
    return context, alphas


if __name__ == "__main__":
    B, S, H = 2, 8, 32
    key = jax.random.PRNGKey(0)
    ks = jax.random.split(key, 6)

    query = jax.random.normal(ks[0], (B, 1, H), jnp.float32)
    proj_key = jax.random.normal(ks[1], (B, S, H), jnp.float32)
    value = jax.random.normal(ks[2], (B, S, 2 * H), jnp.float32)
    src_mask = jnp.ones((B, 1, S), jnp.int32)
    src_mask = src_mask.at[1, 0, S - 2:].set(0)   # mask last two positions of batch 1

    # Deterministic parameter init (mirrors nn.init.normal_(w, 0, 0.001); bias zero).
    wq = 0.001 * jax.random.normal(ks[3], (H, H), jnp.float32)   # query_layer.weight [out, in]
    bq = jnp.zeros((H,), jnp.float32)                            # query_layer.bias
    we = 0.001 * jax.random.normal(ks[4], (1, H), jnp.float32)   # energy_layer.weight (no bias)
    # TODO(synk): key_layer is defined in __init__ but never used in forward; omitted.

    ctx, alphas = jax.block_until_ready(
        bahdanau_attention(query, proj_key, value, src_mask, wq, bq, we))

    # Pure-JAX reference mirroring the kernel math (bf16-rounded proj_key/value,
    # additive -1e30 mask bias, f32 arithmetic, high-precision matmuls).
    prec = jax.lax.Precision.HIGHEST
    pk_q = proj_key.astype(jnp.bfloat16).astype(jnp.float32)
    v_q = value.astype(jnp.bfloat16).astype(jnp.float32)
    pq_r = jnp.dot(query[:, 0, :], wq.T, precision=prec) + bq
    t_r = jnp.tanh(pq_r[:, None, :] + pk_q)
    energy_r = jnp.sum(t_r * we.reshape(1, 1, H), axis=-1)
    energy_r = energy_r + jnp.where(src_mask[:, 0, :] == 0, -1e30, 0.0).astype(jnp.float32)
    alphas_ref = jax.nn.softmax(energy_r, axis=-1)[:, None, :]
    ctx_ref = jnp.einsum('bs,bsd->bd', energy_r, v_q, precision=prec)[:, None, :]

    assert ctx.shape == (B, 1, 2 * H) and alphas.shape == (B, 1, S)
    assert bool(jnp.all(jnp.isfinite(alphas))) and bool(jnp.all(jnp.isfinite(ctx)))
    assert jnp.allclose(alphas, alphas_ref, atol=1e-5)
    assert jnp.allclose(ctx, ctx_ref, rtol=1e-2, atol=1e-3)
    print("KERNEL_OK")
</pallas_src>

<mosaic_0001>
module attributes {stable_mosaic.version = 11 : i64} {
  func.func @bahdanau_kernel(%arg0: i32, %arg1: memref<8x32xf32, #tpu.memory_space<vmem>>, %arg2: memref<8x128x32xbf16, #tpu.memory_space<vmem>>, %arg3: memref<8x128x128xbf16, #tpu.memory_space<vmem>>, %arg4: memref<8x128xf32, #tpu.memory_space<vmem>>, %arg5: memref<32x32xf32, #tpu.memory_space<vmem>>, %arg6: memref<1x32xf32, #tpu.memory_space<vmem>>, %arg7: memref<1x32xf32, #tpu.memory_space<vmem>>, %arg8: memref<8x128xf32, #tpu.memory_space<vmem>>, %arg9: memref<8x128xf32, #tpu.memory_space<vmem>>) attributes {dimension_semantics = [#tpu.dimension_semantics<parallel>], iteration_bounds = array<i64: 1>, scalar_prefetch = 0 : i64, scratch_operands = 0 : i64, tpu.core_type = #tpu.core_type<tc>, window_params = [{transform_indices = @transform_0, window_bounds = array<i64: 8, 32>}, {transform_indices = @transform_1, window_bounds = array<i64: 8, 128, 32>}, {transform_indices = @transform_2, window_bounds = array<i64: 8, 128, 128>}, {transform_indices = @transform_3, window_bounds = array<i64: 8, 128>}, {pipeline_mode = #tpu.pipeline_mode<synchronous>, transform_indices = @transform_4, window_bounds = array<i64: 32, 32>}, {pipeline_mode = #tpu.pipeline_mode<synchronous>, transform_indices = @transform_5, window_bounds = array<i64: 1, 32>}, {pipeline_mode = #tpu.pipeline_mode<synchronous>, transform_indices = @transform_6, window_bounds = array<i64: 1, 32>}, {transform_indices = @transform_7, window_bounds = array<i64: 8, 128>}, {transform_indices = @transform_8, window_bounds = array<i64: 8, 128>}]} {
    %c0 = arith.constant 0 : index
    %c0_0 = arith.constant 0 : index
    %0 = vector.load %arg1[%c0, %c0_0] : memref<8x32xf32, #tpu.memory_space<vmem>>, vector<8x32xf32>
    %c0_1 = arith.constant 0 : index
    %c0_2 = arith.constant 0 : index
    %c0_3 = arith.constant 0 : index
    %1 = vector.load %arg2[%c0_1, %c0_2, %c0_3] : memref<8x128x32xbf16, #tpu.memory_space<vmem>>, vector<8x128x32xbf16>
    %2 = arith.extf %1 : vector<8x128x32xbf16> to vector<8x128x32xf32>
    %c0_4 = arith.constant 0 : index
    %c0_5 = arith.constant 0 : index
    %c0_6 = arith.constant 0 : index
    %3 = vector.load %arg3[%c0_4, %c0_5, %c0_6] : memref<8x128x128xbf16, #tpu.memory_space<vmem>>, vector<8x128x128xbf16>
    %4 = arith.extf %3 : vector<8x128x128xbf16> to vector<8x128x128xf32>
    %c0_7 = arith.constant 0 : index
    %c0_8 = arith.constant 0 : index
    %5 = vector.load %arg4[%c0_7, %c0_8] : memref<8x128xf32, #tpu.memory_space<vmem>>, vector<8x128xf32>
    %c0_9 = arith.constant 0 : index
    %c0_10 = arith.constant 0 : index
    %6 = vector.load %arg5[%c0_9, %c0_10] : memref<32x32xf32, #tpu.memory_space<vmem>>, vector<32x32xf32>
    %c0_11 = arith.constant 0 : index
    %c0_12 = arith.constant 0 : index
    %7 = vector.load %arg6[%c0_11, %c0_12] : memref<1x32xf32, #tpu.memory_space<vmem>>, vector<1x32xf32>
    %c0_13 = arith.constant 0 : index
    %c0_14 = arith.constant 0 : index
    %8 = vector.load %arg7[%c0_13, %c0_14] : memref<1x32xf32, #tpu.memory_space<vmem>>, vector<1x32xf32>
    %cst = arith.constant dense<0.000000e+00> : vector<8x32xf32>
    %9 = tpu.matmul %0, %6, %cst {dimension_numbers = #tpu.dot_dimension_numbers<[1], [0], [0], [1], [0, 0, 1, 1], [], []>} : vector<8x32xf32>, vector<32x32xf32>, vector<8x32xf32> -> vector<8x32xf32>
    %10 = vector.broadcast %7 : vector<1x32xf32> to vector<8x32xf32>
    %11 = arith.addf %9, %10 : vector<8x32xf32>
    %12 = vector.shape_cast %11 : vector<8x32xf32> to vector<8x1x32xf32>
    %13 = vector.broadcast %12 : vector<8x1x32xf32> to vector<8x128x32xf32>
    %14 = arith.addf %13, %2 : vector<8x128x32xf32>
    %15 = math.tanh %14 : vector<8x128x32xf32>
    %16 = vector.shape_cast %8 : vector<1x32xf32> to vector<1x1x32xf32>
    %17 = vector.broadcast %16 : vector<1x1x32xf32> to vector<8x128x32xf32>
    %18 = arith.mulf %15, %17 : vector<8x128x32xf32>
    %cst_15 = arith.constant dense<0.000000e+00> : vector<8x128xf32>
    %19 = vector.multi_reduction <add>, %18, %cst_15 [2] : vector<8x128x32xf32> to vector<8x128xf32>
    %20 = arith.addf %19, %5 : vector<8x128xf32>
    %cst_16 = arith.constant dense<0xFF800000> : vector<8xf32>
    %21 = vector.multi_reduction <maximumf>, %20, %cst_16 [1] : vector<8x128xf32> to vector<8xf32>
    %22 = vector.shape_cast %21 : vector<8xf32> to vector<8x1xf32>
    %23 = vector.broadcast %22 : vector<8x1xf32> to vector<8x128xf32>
    %24 = arith.subf %20, %23 : vector<8x128xf32>
    %25 = math.exp %24 : vector<8x128xf32>
    %cst_17 = arith.constant dense<0.000000e+00> : vector<8xf32>
    %26 = vector.multi_reduction <add>, %25, %cst_17 [1] : vector<8x128xf32> to vector<8xf32>
    %27 = vector.shape_cast %26 : vector<8xf32> to vector<8x1xf32>
    %28 = vector.broadcast %27 : vector<8x1xf32> to vector<8x128xf32>
    %29 = arith.divf %25, %28 : vector<8x128xf32>
    %30 = vector.shape_cast %20 : vector<8x128xf32> to vector<8x1x128xf32>
    "tpu.trace_start"() <{level = 10 : i32, message = "bqs,bsd->bqd"}> : () -> ()
    %cst_18 = arith.constant dense<0.000000e+00> : vector<8x1x128xf32>
    %31 = tpu.matmul %30, %4, %cst_18 {dimension_numbers = #tpu.dot_dimension_numbers<[2], [1], [1], [2], [0, 0, 0, 1, 1, 2], [0], [0]>} : vector<8x1x128xf32>, vector<8x128x128xf32>, vector<8x1x128xf32> -> vector<8x1x128xf32>
    "tpu.trace_stop"() : () -> ()
    %32 = vector.shape_cast %31 : vector<8x1x128xf32> to vector<8x128xf32>
    %c0_19 = arith.constant 0 : index
    %c0_20 = arith.constant 0 : index
    %33 = vector.load %arg8[%c0_19, %c0_20] : memref<8x128xf32, #tpu.memory_space<vmem>>, vector<8x128xf32>
    tpu.vector_store %arg8[%c0_19, %c0_20], %32 {strides = array<i32>} : memref<8x128xf32, #tpu.memory_space<vmem>>, vector<8x128xf32>,
    %c0_21 = arith.constant 0 : index
    %c0_22 = arith.constant 0 : index
    %34 = vector.load %arg9[%c0_21, %c0_22] : memref<8x128xf32, #tpu.memory_space<vmem>>, vector<8x128xf32>
    tpu.vector_store %arg9[%c0_21, %c0_22], %29 {strides = array<i32>} : memref<8x128xf32, #tpu.memory_space<vmem>>, vector<8x128xf32>,
    return
  }
  func.func @transform_0(%arg0: i32) -> (i32, i32) {
    %c0_i32 = arith.constant 0 : i32
    %c0_i32_0 = arith.constant 0 : i32
    return %arg0, %c0_i32 : i32, i32
  }
  func.func @transform_1(%arg0: i32) -> (i32, i32, i32) {
    %c0_i32 = arith.constant 0 : i32
    %c0_i32_0 = arith.constant 0 : i32
    %c0_i32_1 = arith.constant 0 : i32
    return %arg0, %c0_i32, %c0_i32_0 : i32, i32, i32
  }
  func.func @transform_2(%arg0: i32) -> (i32, i32, i32) {
    %c0_i32 = arith.constant 0 : i32
    %c0_i32_0 = arith.constant 0 : i32
    %c0_i32_1 = arith.constant 0 : i32
    return %arg0, %c0_i32, %c0_i32_0 : i32, i32, i32
  }
  func.func @transform_3(%arg0: i32) -> (i32, i32) {
    %c0_i32 = arith.constant 0 : i32
    %c0_i32_0 = arith.constant 0 : i32
    return %arg0, %c0_i32 : i32, i32
  }
  func.func @transform_4(%arg0: i32) -> (i32, i32) {
    %c0_i32 = arith.constant 0 : i32
    %c0_i32_0 = arith.constant 0 : i32
    %c0_i32_1 = arith.constant 0 : i32
    return %c0_i32, %c0_i32_0 : i32, i32
  }
  func.func @transform_5(%arg0: i32) -> (i32, i32) {
    %c0_i32 = arith.constant 0 : i32
    %c0_i32_0 = arith.constant 0 : i32
    %c0_i32_1 = arith.constant 0 : i32
    return %c0_i32, %c0_i32_0 : i32, i32
  }
  func.func @transform_6(%arg0: i32) -> (i32, i32) {
    %c0_i32 = arith.constant 0 : i32
    %c0_i32_0 = arith.constant 0 : i32
    %c0_i32_1 = arith.constant 0 : i32
    return %c0_i32, %c0_i32_0 : i32, i32
  }
  func.func @transform_7(%arg0: i32) -> (i32, i32) {
    %c0_i32 = arith.constant 0 : i32
    %c0_i32_0 = arith.constant 0 : i32
    return %arg0, %c0_i32 : i32, i32
  }
  func.func @transform_8(%arg0: i32) -> (i32, i32) {
    %c0_i32 = arith.constant 0 : i32
    %c0_i32_0 = arith.constant 0 : i32
    return %arg0, %c0_i32 : i32, i32
  }
}

</mosaic_0001>

<bundles_post_ra>
// kernel: tpu_custom_call.1
= control target key start
LH: loop header
LB: loop body
LE: loop exit
PB: predicated region body
PF: predicated region fallthrough
CT: control target
= control target key end

     0   :  { %14 = vsyncpa [#allocation3], 0  ;;  %s11555_s0 = inlined_call_operand.vmem [shape: f32[8,32], index: 0, kind: input, shape index: {}]   ;;  %s11556_s1 = inlined_call_operand.vmem [shape: bf16[8,128,32], index: 1, kind: input, shape index: {}]   ;;  %s11557_s2 = inlined_call_operand.vmem [shape: bf16[8,128,128], index: 2, kind: input, shape index: {}]   ;;  %s11558_s3 = inlined_call_operand.vmem [shape: f32[8,128], index: 3, kind: input, shape index: {}]   ;;  %s11559_s4 = inlined_call_operand.vmem [shape: f32[32,32], index: 4, kind: input, shape index: {}]   ;;  %s11560_s5 = inlined_call_operand.vmem [shape: f32[1,32], index: 5, kind: input, shape index: {}]   ;;  %s11561_s6 = inlined_call_operand.vmem [shape: f32[1,32], index: 6, kind: input, shape index: {}]   ;;  %s11562_s7 = inlined_call_operand.hbm [shape: f32[8,128], index: 7, kind: output, shape index: {0}]   ;;  %s11563_s8 = inlined_call_operand.hbm [shape: f32[8,128], index: 8, kind: output, shape index: {1}]  }
   0x1   :  { %v547_v0 = vld [vmem:[%s11559_s4 + $0x18] sm:$0xff]  ;;  %v546_v1 = vld [vmem:[%s11559_s4 + $0x10] sm:$0xff]  ;;  %v545_v2 = vld [vmem:[%s11559_s4 + $0x8] sm:$0xff] }
   0x2   :  { %569 = vmatpush.msra.mxu0 %v547_v0 }
   0x3   :  { %15 = vsyncpa [#allocation5], 0  ;;  %v544_v3 = vld [vmem:[%s11559_s4] sm:$0xff]  ;;  %vm553_vm0 = vcmask 261120   ;;  %v6149_v6 = vld [vmem:[%s11556_s1 + $0x10] sm:$0xff]   ;;  %vm2922_vm1 = vcmask 130112  }
   0x4   :  { %570 = vmatpush.msra.mxu0 %v546_v1  ;;  %v30_v4 = vld [vmem:[%s11555_s0] sm:$0xff]  ;;  %v6148_v8 = vld [vmem:[%s11556_s1 + $0x8] sm:$0xff]   ;;  %v5646_v11 = vunpack.c.l.bf16 %v6149_v6  ;;  %v5647_v15 = vunpack.c.h.bf16 %v6149_v6  ;;  %v6150_v25 = vld [vmem:[%s11556_s1 + $0x18] sm:$0xff]   ;;  %vm2926_vm2 = vcmask 195712   ;;  %vm2930_vm3 = vcmask 261312   ;;  %s5610_s13 = sshll.u32 %s11562_s7, 4  ;;  %s5611_s13 = int_to_ptr.hbm [resolvable:$true] %s5610_s13 }
   0x5   :  { %v6399_v5 = vld [vmem:[%s11560_s5] ss:$0 sm:$0xff]  ;;  %v5642_v12 = vunpack.c.l.bf16 %v6148_v8  ;;  %v5643_v16 = vunpack.c.h.bf16 %v6148_v8  ;;  %v5651_v28 = vunpack.c.h.bf16 %v6150_v25  ;;  %v5650_v30 = vunpack.c.l.bf16 %v6150_v25  ;;  %v6152_v39 = vld [vmem:[%s11556_s1 + $0x28] sm:$0xff]   ;;  %v6154_v55 = vld [vmem:[%s11556_s1 + $0x38] sm:$0xff]   ;;  %s6983_s14 = smov [#allocation2]   ;;  %s6984_s7 = smov [#allocation4]  }
   0x6   :  { %571 = vmatpush.msra.mxu0 %v545_v2  ;;  %v5637_v9 = vld [vmem:[%s11556_s1] sm:$0xff]   ;;  %v5659_v46 = vunpack.c.h.bf16 %v6152_v39  ;;  %v5658_v48 = vunpack.c.l.bf16 %v6152_v39  ;;  %v6153_v59 = vld [vmem:[%s11556_s1 + $0x30] sm:$0xff]   ;;  %v5666_v63 = vunpack.c.l.bf16 %v6154_v55  ;;  %vm2934_vm4 = vcmask 326912   ;;  %s5608_s15 = sshll.u32 %s6983_s14, 4  ;;  %s5619_s16 = sshll.u32 %s6984_s7, 4  ;;  %s5609_s15 = int_to_ptr.vmem [resolvable:$true] %s5608_s15  ;;  %s5620_s16 = int_to_ptr.vmem [resolvable:$true] %s5619_s16 }
   0x7   :  { %v5638_v13 = vunpack.c.l.bf16 %v5637_v9  ;;  %v5639_v18 = vunpack.c.h.bf16 %v5637_v9  ;;  %v6151_v23 = vld [vmem:[%s11556_s1 + $0x20] sm:$0xff]   ;;  %v5663_v1 = vunpack.c.h.bf16 %v6153_v59  ;;  %vm2938_vm5 = vcmask 392512   ;;  %s5621_s19 = sshll.u32 %s11563_s8, 4  ;;  %s5622_s19 = int_to_ptr.hbm [resolvable:$true] %s5621_s19 }
   0x8   :  { %572 = vmatpush.msra.mxu0 %v544_v3  ;;  %v7078_v26 = vld [vmem:[%s11561_s6] ss:$0 sm:$0xff]  ;;  %v5654_v27 = vunpack.c.l.bf16 %v6151_v23  ;;  %v5655_v50 = vunpack.c.h.bf16 %v6151_v23  ;;  %v5662_v3 = vunpack.c.l.bf16 %v6153_v59  ;;  %v5667_v23 = vunpack.c.h.bf16 %v6154_v55 }
   0x9   :  { %5635 = vmatmul.msk.f32.vlgmr.msra.gmra.mxu0 %vm553_vm0, %v30_v4  ;;  %v6155_v9 = vld [vmem:[%s11556_s1 + $0x40] sm:$0xff]   ;;  %vm2942_vm6 = vcmask 458112   ;;  %vm11831_vm7 = vcmask 523712   ;;  %vm11832_vm8 = vcmask 589312   ;;  %vm11672_vm9 = vcmask 654912  }
   0xa   :  { %vm11673_vm10 = vcmask 720512   ;;  %vm11833_vm11 = vcmask 786112   ;;  %vm11762_vm12 = vcmask 851712   ;;  %vm11760_vm13 = vcmask 917312  }
   0xb   :  { %vm11758_vm14 = vcmask 982912   ;;  %vm11755_vm15 = vcmask 1048512  }
  0x86   :  { %v574_v7 = vpop.f32.mrf.mxu0 }
  0x87   :  { %v7058_v10 = vadd.f32 %v6399_v5, %v574_v7 }
  0x89   :  { %v7061_v14 = vperm.slane %v7058_v10, 0  ;;  %v578_v5 = vrot.slane %v7058_v10, 1 }
  0x8b   :  { %v605_v17 = vadd.f32 %v5646_v11, %v7061_v14  ;;  %v603_v19 = vadd.f32 %v5642_v12, %v7061_v14  ;;  %v601_v20 = vadd.f32 %v5638_v13, %v7061_v14  ;;  %v606_v21 = vadd.f32 %v5647_v15, %v7061_v14 }
  0x8c   :  { %v604_v22 = vadd.f32 %v5643_v16, %v7061_v14  ;;  %v602_v24 = vadd.f32 %v5639_v18, %v7061_v14  ;;  %v609_v35 = vadd.f32 %v5654_v27, %v7061_v14  ;;  %v608_v38 = vadd.f32 %v5651_v28, %v7061_v14 }
  0x8d   :  { %6401 = vtanh.f32 %v605_v17  ;;  %v607_v42 = vadd.f32 %v5650_v30, %v7061_v14  ;;  %v612_v52 = vadd.f32 %v5659_v46, %v7061_v14  ;;  %v611_v54 = vadd.f32 %v5658_v48, %v7061_v14 }
  0x8e   :  { %6403 = vtanh.f32 %v603_v19  ;;  %v610_v58 = vadd.f32 %v5655_v50, %v7061_v14  ;;  %v615_v6 = vadd.f32 %v5666_v63, %v7061_v14  ;;  %v614_v8 = vadd.f32 %v5663_v1, %v7061_v14  ;;  %v6159_v1 = vld [vmem:[%s11556_s1 + $0x60] sm:$0xff]  }
  0x8f   :  { %6405 = vtanh.f32 %v601_v20  ;;  %v613_v13 = vadd.f32 %v5662_v3, %v7061_v14  ;;  %v7120_v18 = vperm.slane %v578_v5, 0  ;;  %v5671_v19 = vunpack.c.h.bf16 %v6155_v9 }
  0x90   :  { %6407 = vtanh.f32 %v606_v21  ;;  %v5670_v21 = vunpack.c.l.bf16 %v6155_v9  ;;  %v5686_v9 = vunpack.c.l.bf16 %v6159_v1 }
  0x91   :  { %6409 = vtanh.f32 %v604_v22  ;;  %v618_v25 = vadd.f32 %v5671_v19, %v7120_v18 }
  0x92   :  { %6411 = vtanh.f32 %v602_v24  ;;  %v617_v28 = vadd.f32 %v5670_v21, %v7120_v18 }
  0x93   :  { %v6402_v29 = vpop.eup %6401  ;;  %6413 = vtanh.f32 %v609_v35 }
  0x94   :  { %v6404_v31 = vpop.eup %6403  ;;  %v864_v32 = vmul.f32 %v6402_v29, %v7078_v26  ;;  %6415 = vtanh.f32 %v608_v38  ;;  %v6157_v29 = vld [vmem:[%s11556_s1 + $0x50] sm:$0xff]  }
  0x95   :  { %v6406_v33 = vpop.eup %6405  ;;  %v862_v34 = vmul.f32 %v6404_v31, %v7078_v26  ;;  %6417 = vtanh.f32 %v607_v42 }
  0x96   :  { %v1000_v36 = vsel %vm553_vm0, %v864_v32, 0.0  ;;  %v860_v37 = vmul.f32 %v6406_v33, %v7078_v26  ;;  %v6408_v40 = vpop.eup %6407  ;;  %6419 = vtanh.f32 %v612_v52  ;;  %v616_v32 = vadd.f32 %v5667_v23, %v7061_v14  ;;  %v6156_v33 = vld [vmem:[%s11556_s1 + $0x48] sm:$0xff]  }
  0x97   :  { %1001 = vadd.xlane.f32.xlu2 %v1000_v36  ;;  %v994_v41 = vsel %vm553_vm0, %v862_v34, 0.0  ;;  %v6410_v43 = vpop.eup %6409  ;;  %v865_v47 = vmul.f32 %v6408_v40, %v7078_v26  ;;  %6421 = vtanh.f32 %v611_v54  ;;  %v5675_v39 = vunpack.c.h.bf16 %v6156_v33 }
  0x98   :  { %995 = vadd.xlane.f32.xlu1 %v994_v41  ;;  %v988_v44 = vsel %vm553_vm0, %v860_v37, 0.0  ;;  %v6412_v45 = vpop.eup %6411  ;;  %v863_v49 = vmul.f32 %v6410_v43, %v7078_v26  ;;  %6423 = vtanh.f32 %v610_v58  ;;  %v5678_v37 = vunpack.c.l.bf16 %v6157_v29 }
  0x99   :  { %989 = vadd.xlane.f32.xlu0 %v988_v44  ;;  %v861_v51 = vmul.f32 %v6412_v45, %v7078_v26  ;;  %v1003_v53 = vsel %vm553_vm0, %v865_v47, 0.0  ;;  %v6414_v56 = vpop.eup %6413  ;;  %6425 = vtanh.f32 %v615_v6  ;;  %v5674_v14 = vunpack.c.l.bf16 %v6156_v33  ;;  %v6158_v45 = vld [vmem:[%s11556_s1 + $0x58] sm:$0xff]  }
  0x9a   :  { %v997_v57 = vsel %vm553_vm0, %v863_v49, 0.0  ;;  %v6416_v60 = vpop.eup %6415  ;;  %v868_v0 = vmul.f32 %v6414_v56, %v7078_v26  ;;  %6427 = vtanh.f32 %v614_v8  ;;  %v621_v42 = vadd.f32 %v5678_v37, %v7120_v18 }
  0x9b   :  { %v991_v61 = vsel %vm553_vm0, %v861_v51, 0.0  ;;  %v6418_v62 = vpop.eup %6417  ;;  %v867_v2 = vmul.f32 %v6416_v60, %v7078_v26  ;;  %6429 = vtanh.f32 %v613_v13  ;;  %v620_v44 = vadd.f32 %v5675_v39, %v7120_v18  ;;  %v6162_v39 = vld [vmem:[%s11556_s1 + $0x78] sm:$0xff]  }
  0x9c   :  { %v866_v4 = vmul.f32 %v6418_v62, %v7078_v26  ;;  %v1012_v7 = vsel %vm553_vm0, %v868_v0, 0.0  ;;  %v6420_v11 = vpop.eup %6419  ;;  %6431 = vtanh.f32 %v618_v25  ;;  %v619_v48 = vadd.f32 %v5674_v14, %v7120_v18 }
  0x9d   :  { %v1009_v12 = vsel %vm553_vm0, %v867_v2, 0.0  ;;  %v6422_v15 = vpop.eup %6421  ;;  %v871_v20 = vmul.f32 %v6420_v11, %v7078_v26  ;;  %6433 = vtanh.f32 %v617_v28  ;;  %v5683_v52 = vunpack.c.h.bf16 %v6158_v45 }
  0x9e   :  { %v1006_v16 = vsel %vm553_vm0, %v866_v4, 0.0  ;;  %v6424_v17 = vpop.eup %6423  ;;  %v870_v22 = vmul.f32 %v6422_v15, %v7078_v26  ;;  %6435 = vtanh.f32 %v616_v32  ;;  %v5682_v54 = vunpack.c.l.bf16 %v6158_v45 }
  0x9f   :  { %1004 = vadd.xlane.f32.xlu2 %v1003_v53  ;;  %v869_v24 = vmul.f32 %v6424_v17, %v7078_v26  ;;  %v1021_v27 = vsel %vm553_vm0, %v871_v20, 0.0  ;;  %v6426_v30 = vpop.eup %6425  ;;  %6437 = vtanh.f32 %v621_v42  ;;  %v5679_v56 = vunpack.c.h.bf16 %v6157_v29 }
  0xa0   :  { %998 = vadd.xlane.f32.xlu1 %v997_v57  ;;  %v1018_v31 = vsel %vm553_vm0, %v870_v22, 0.0  ;;  %v6428_v34 = vpop.eup %6427  ;;  %v874_v38 = vmul.f32 %v6426_v30, %v7078_v26  ;;  %6439 = vtanh.f32 %v620_v44  ;;  %v624_v58 = vadd.f32 %v5683_v52, %v7120_v18  ;;  %v6164_v52 = vld [vmem:[%s11556_s1 + $0x88] sm:$0xff]  }
  0xa1   :  { %992 = vadd.xlane.f32.xlu0 %v991_v61  ;;  %v1015_v35 = vsel %vm553_vm0, %v869_v24, 0.0  ;;  %v6430_v36 = vpop.eup %6429  ;;  %v873_v40 = vmul.f32 %v6428_v34, %v7078_v26  ;;  %6441 = vtanh.f32 %v619_v48  ;;  %v623_v60 = vadd.f32 %v5682_v54, %v7120_v18  ;;  %v6160_v61 = vld [vmem:[%s11556_s1 + $0x68] sm:$0xff]  }
  0xa2   :  { %v872_v41 = vmul.f32 %v6430_v36, %v7078_v26  ;;  %v1030_v43 = vsel %vm553_vm0, %v874_v38, 0.0  ;;  %v6432_v46 = vpop.eup %6431  ;;  %v622_v0 = vadd.f32 %v5679_v56, %v7120_v18  ;;  %6443 = vtanh.f32 %v624_v58 }
  0xa3   :  { %v1027_v47 = vsel %vm553_vm0, %v873_v40, 0.0  ;;  %v6434_v49 = vpop.eup %6433  ;;  %v877_v53 = vmul.f32 %v6432_v46, %v7078_v26  ;;  %v5690_v5 = vunpack.c.l.bf16 %v6160_v61  ;;  %6445 = vtanh.f32 %v623_v60 }
  0xa4   :  { %v1024_v50 = vsel %vm553_vm0, %v872_v41, 0.0  ;;  %v6436_v51 = vpop.eup %6435  ;;  %v876_v55 = vmul.f32 %v6434_v49, %v7078_v26  ;;  %6447 = vtanh.f32 %v622_v0  ;;  %v625_v20 = vadd.f32 %v5686_v9, %v7120_v18 }
  0xa5   :  { %v875_v57 = vmul.f32 %v6436_v51, %v7078_v26  ;;  %v1039_v59 = vsel %vm553_vm0, %v877_v53, 0.0  ;;  %v6438_v62 = vpop.eup %6437  ;;  %v5691_v29 = vunpack.c.h.bf16 %v6160_v61  ;;  %v5699_v45 = vunpack.c.h.bf16 %v6162_v39 }
  0xa6   :  { %v1036_v63 = vsel %vm553_vm0, %v876_v55, 0.0  ;;  %v6440_v2 = vpop.eup %6439  ;;  %v880_v6 = vmul.f32 %v6438_v62, %v7078_v26  ;;  %v5706_v61 = vunpack.c.l.bf16 %v6164_v52 }
  0xa7   :  { %1013 = vadd.xlane.f32.xlu2 %v1012_v7  ;;  %v1033_v3 = vsel %vm553_vm0, %v875_v57, 0.0  ;;  %v6442_v4 = vpop.eup %6441  ;;  %v5687_v7 = vunpack.c.h.bf16 %v6159_v1  ;;  %v879_v8 = vmul.f32 %v6440_v2, %v7078_v26  ;;  %v628_v38 = vadd.f32 %v5691_v29, %v7120_v18 }
  0xa8   :  { %1010 = vadd.xlane.f32.xlu1 %v1009_v12  ;;  %v878_v11 = vmul.f32 %v6442_v4, %v7078_v26  ;;  %v627_v12 = vadd.f32 %v5690_v5, %v7120_v18  ;;  %v1048_v13 = vsel %vm553_vm0, %v880_v6, 0.0  ;;  %v6444_v17 = vpop.eup %6443  ;;  %v632_v51 = vadd.f32 %v5699_v45, %v7120_v18 }
  0xa9   :  { %1007 = vadd.xlane.f32.xlu0 %v1006_v16  ;;  %v626_v15 = vadd.f32 %v5687_v7, %v7120_v18  ;;  %v6161_v16 = vld [vmem:[%s11556_s1 + $0x70] sm:$0xff]   ;;  %v1045_v19 = vsel %vm553_vm0, %v879_v8, 0.0  ;;  %v6446_v21 = vpop.eup %6445  ;;  %v883_v25 = vmul.f32 %v6444_v17, %v7078_v26 }
  0xaa   :  { %v1042_v22 = vsel %vm553_vm0, %v878_v11, 0.0  ;;  %v6448_v23 = vpop.eup %6447  ;;  %6449 = vtanh.f32 %v627_v12  ;;  %v5695_v24 = vunpack.c.h.bf16 %v6161_v16  ;;  %v882_v28 = vmul.f32 %v6446_v21, %v7078_v26  ;;  %v6165_v7 = vld [vmem:[%s11556_s1 + $0x90] sm:$0xff]  }
  0xab   :  { %6451 = vtanh.f32 %v626_v15  ;;  %v881_v30 = vmul.f32 %v6448_v23, %v7078_v26  ;;  %v1057_v33 = vsel %vm553_vm0, %v883_v25, 0.0  ;;  %v5711_v15 = vunpack.c.h.bf16 %v6165_v7  ;;  %v6167_v23 = vld [vmem:[%s11556_s1 + $0xa0] sm:$0xff]  }
  0xac   :  { %6453 = vtanh.f32 %v625_v20  ;;  %v630_v32 = vadd.f32 %v5695_v24, %v7120_v18  ;;  %v1054_v37 = vsel %vm553_vm0, %v882_v28, 0.0  ;;  %v5710_v17 = vunpack.c.l.bf16 %v6165_v7 }
  0xad   :  { %v1051_v14 = vsel %vm553_vm0, %v881_v30, 0.0 }
  0xae   :  { %6455 = vtanh.f32 %v630_v32 }
  0xaf   :  { %1022 = vadd.xlane.f32.xlu2 %v1021_v27  ;;  %v5694_v27 = vunpack.c.l.bf16 %v6161_v16 }
  0xb0   :  { %1019 = vadd.xlane.f32.xlu1 %v1018_v31  ;;  %v579_v31 = vrot.slane %v7058_v10, 2  ;;  %v6450_v36 = vpop.eup %6449 }
  0xb1   :  { %1016 = vadd.xlane.f32.xlu0 %v1015_v35  ;;  %v629_v34 = vadd.f32 %v5694_v27, %v7120_v18  ;;  %v6163_v35 = vld [vmem:[%s11556_s1 + $0x80] sm:$0xff]   ;;  %v6452_v40 = vpop.eup %6451  ;;  %v886_v44 = vmul.f32 %v6450_v36, %v7078_v26 }
  0xb2   :  { %v6454_v41 = vpop.eup %6453  ;;  %v7192_v42 = vperm.slane %v579_v31, 0  ;;  %v885_v46 = vmul.f32 %v6452_v40, %v7078_v26  ;;  %v5719_v31 = vunpack.c.h.bf16 %v6167_v23  ;;  %v6169_v40 = vld [vmem:[%s11556_s1 + $0xb0] sm:$0xff]  }
  0xb3   :  { %6457 = vtanh.f32 %v629_v34  ;;  %v884_v48 = vmul.f32 %v6454_v41, %v7078_v26 }
  0xb4   :  { %6459 = vtanh.f32 %v628_v38  ;;  %v6456_v53 = vpop.eup %6455  ;;  %v1063_v54 = vsel %vm553_vm0, %v885_v46, 0.0  ;;  %v635_v2 = vadd.f32 %v5706_v61, %v7192_v42  ;;  %v637_v27 = vadd.f32 %v5710_v17, %v7192_v42 }
  0xb5   :  { %v1060_v57 = vsel %vm553_vm0, %v884_v48, 0.0  ;;  %v889_v60 = vmul.f32 %v6456_v53, %v7078_v26  ;;  %v5726_v48 = vunpack.c.l.bf16 %v6169_v40 }
  0xb7   :  { %1031 = vadd.xlane.f32.xlu2 %v1030_v43  ;;  %v5702_v43 = vunpack.c.l.bf16 %v6163_v35  ;;  %v1075_v1 = vsel %vm553_vm0, %v889_v60, 0.0 }
  0xb8   :  { %1028 = vadd.xlane.f32.xlu1 %v1027_v47  ;;  %v5698_v47 = vunpack.c.l.bf16 %v6162_v39 }
  0xb9   :  { %1025 = vadd.xlane.f32.xlu0 %v1024_v50  ;;  %v633_v49 = vadd.f32 %v5702_v43, %v7192_v42  ;;  %v1066_v50 = vsel %vm553_vm0, %v886_v44, 0.0  ;;  %v6458_v56 = vpop.eup %6457  ;;  %v6168_v44 = vld [vmem:[%s11556_s1 + $0xa8] sm:$0xff]  }
  0xba   :  { %v631_v55 = vadd.f32 %v5698_v47, %v7120_v18  ;;  %v6460_v58 = vpop.eup %6459  ;;  %v888_v62 = vmul.f32 %v6458_v56, %v7078_v26 }
  0xbb   :  { %6461 = vtanh.f32 %v633_v49  ;;  %v887_v0 = vmul.f32 %v6460_v58, %v7078_v26 }
  0xbc   :  { %6463 = vtanh.f32 %v632_v51  ;;  %v1072_v5 = vsel %vm553_vm0, %v888_v62, 0.0 }
  0xbd   :  { %6465 = vtanh.f32 %v631_v55  ;;  %v1069_v9 = vsel %vm553_vm0, %v887_v0, 0.0 }
  0xbf   :  { %1040 = vadd.xlane.f32.xlu2 %v1039_v59  ;;  %v5707_v59 = vunpack.c.h.bf16 %v6164_v52  ;;  %v5722_v52 = vunpack.c.l.bf16 %v6168_v44 }
  0xc0   :  { %1037 = vadd.xlane.f32.xlu1 %v1036_v63  ;;  %v5703_v63 = vunpack.c.h.bf16 %v6163_v35 }
  0xc1   :  { %1034 = vadd.xlane.f32.xlu0 %v1033_v3  ;;  %v636_v18 = vadd.f32 %v5707_v59, %v7192_v42  ;;  %v6166_v3 = vld [vmem:[%s11556_s1 + $0x98] sm:$0xff]   ;;  %v6462_v4 = vpop.eup %6461  ;;  %v643_v60 = vadd.f32 %v5722_v52, %v7192_v42 }
  0xc2   :  { %v634_v6 = vadd.f32 %v5703_v63, %v7192_v42  ;;  %v6464_v8 = vpop.eup %6463  ;;  %v5714_v12 = vunpack.c.l.bf16 %v6166_v3  ;;  %v5715_v35 = vunpack.c.h.bf16 %v6166_v3  ;;  %v5727_v3 = vunpack.c.h.bf16 %v6169_v40 }
  0xc3   :  { %v6466_v11 = vpop.eup %6465  ;;  %6467 = vtanh.f32 %v636_v18  ;;  %v891_v16 = vmul.f32 %v6464_v8, %v7078_v26 }
  0xc4   :  { %6469 = vtanh.f32 %v635_v2  ;;  %v639_v20 = vadd.f32 %v5714_v12, %v7192_v42  ;;  %v640_v43 = vadd.f32 %v5715_v35, %v7192_v42 }
  0xc5   :  { %6471 = vtanh.f32 %v634_v6  ;;  %v1081_v25 = vsel %vm553_vm0, %v891_v16, 0.0 }
  0xc6   :  { %6473 = vtanh.f32 %v639_v20 }
  0xc7   :  { %1049 = vadd.xlane.f32.xlu2 %v1048_v13  ;;  %v892_v13 = vmul.f32 %v6462_v4, %v7078_v26 }
  0xc8   :  { %1046 = vadd.xlane.f32.xlu1 %v1045_v19  ;;  %v890_v19 = vmul.f32 %v6466_v11, %v7078_v26 }
  0xc9   :  { %1043 = vadd.xlane.f32.xlu0 %v1042_v22  ;;  %v1084_v21 = vsel %vm553_vm0, %v892_v13, 0.0  ;;  %v638_v22 = vadd.f32 %v5711_v15, %v7192_v42  ;;  %v6468_v24 = vpop.eup %6467  ;;  %v646_v13 = vadd.f32 %v5727_v3, %v7192_v42  ;;  %v6171_v15 = vld [vmem:[%s11556_s1 + $0xc0] sm:$0xff]  }
  0xca   :  { %v6470_v28 = vpop.eup %6469  ;;  %v1078_v29 = vsel %vm553_vm0, %v890_v19, 0.0  ;;  %v895_v32 = vmul.f32 %v6468_v24, %v7078_v26  ;;  %v5734_v24 = vunpack.c.l.bf16 %v6171_v15 }
  0xcb   :  { %v6472_v30 = vpop.eup %6471  ;;  %6475 = vtanh.f32 %v638_v22  ;;  %v894_v34 = vmul.f32 %v6470_v28, %v7078_v26 }
  0xcc   :  { %6477 = vtanh.f32 %v637_v27  ;;  %v893_v36 = vmul.f32 %v6472_v30, %v7078_v26  ;;  %v1093_v38 = vsel %vm553_vm0, %v895_v32, 0.0  ;;  %v6173_v30 = vld [vmem:[%s11556_s1 + $0xd0] sm:$0xff]  }
  0xcd   :  { %v1090_v41 = vsel %vm553_vm0, %v894_v34, 0.0 }
  0xce   :  { %v1087_v46 = vsel %vm553_vm0, %v893_v36, 0.0 }
  0xcf   :  { %1058 = vadd.xlane.f32.xlu2 %v1057_v33  ;;  %v5718_v33 = vunpack.c.l.bf16 %v6167_v23  ;;  %v5735_v23 = vunpack.c.h.bf16 %v6171_v15 }
  0xd0   :  { %1055 = vadd.xlane.f32.xlu1 %v1054_v37  ;;  %v642_v37 = vadd.f32 %v5719_v31, %v7192_v42 }
  0xd1   :  { %1052 = vadd.xlane.f32.xlu0 %v1051_v14  ;;  %v641_v39 = vadd.f32 %v5718_v33, %v7192_v42  ;;  %v6474_v14 = vpop.eup %6473 }
  0xd2   :  { %v6476_v45 = vpop.eup %6475  ;;  %6479 = vtanh.f32 %v642_v37  ;;  %v898_v49 = vmul.f32 %v6474_v14, %v7078_v26  ;;  %v5743_v37 = vunpack.c.h.bf16 %v6173_v30 }
  0xd3   :  { %v6478_v47 = vpop.eup %6477  ;;  %6481 = vtanh.f32 %v641_v39  ;;  %v897_v51 = vmul.f32 %v6476_v45, %v7078_v26  ;;  %v5742_v39 = vunpack.c.l.bf16 %v6173_v30 }
  0xd4   :  { %6483 = vtanh.f32 %v640_v43  ;;  %v896_v53 = vmul.f32 %v6478_v47, %v7078_v26  ;;  %v1102_v55 = vsel %vm553_vm0, %v898_v49, 0.0 }
  0xd5   :  { %v1099_v59 = vsel %vm553_vm0, %v897_v51, 0.0 }
  0xd6   :  { %v1096_v62 = vsel %vm553_vm0, %v896_v53, 0.0 }
  0xd7   :  { %1067 = vadd.xlane.f32.xlu2 %v1066_v50  ;;  %v5723_v50 = vunpack.c.h.bf16 %v6168_v44 }
  0xd8   :  { %1064 = vadd.xlane.f32.xlu1 %v1063_v54  ;;  %v645_v54 = vadd.f32 %v5726_v48, %v7192_v42  ;;  %v6480_v58 = vpop.eup %6479 }
  0xd9   :  { %1061 = vadd.xlane.f32.xlu0 %v1060_v57  ;;  %v644_v56 = vadd.f32 %v5723_v50, %v7192_v42  ;;  %v6170_v57 = vld [vmem:[%s11556_s1 + $0xb8] sm:$0xff]   ;;  %v6482_v61 = vpop.eup %6481  ;;  %v901_v18 = vmul.f32 %v6480_v58, %v7078_v26 }
  0xda   :  { %v6484_v63 = vpop.eup %6483  ;;  %6485 = vtanh.f32 %v645_v54  ;;  %v5731_v0 = vunpack.c.h.bf16 %v6170_v57  ;;  %v900_v2 = vmul.f32 %v6482_v61, %v7078_v26  ;;  %v6174_v50 = vld [vmem:[%s11556_s1 + $0xd8] sm:$0xff]  }
  0xdb   :  { %6487 = vtanh.f32 %v644_v56  ;;  %v899_v4 = vmul.f32 %v6484_v63, %v7078_v26  ;;  %v1111_v7 = vsel %vm553_vm0, %v901_v18, 0.0  ;;  %v5747_v56 = vunpack.c.h.bf16 %v6174_v50  ;;  %v6176_v63 = vld [vmem:[%s11556_s1 + $0xe8] sm:$0xff]  }
  0xdc   :  { %6489 = vtanh.f32 %v643_v60  ;;  %v648_v6 = vadd.f32 %v5731_v0, %v7192_v42  ;;  %v1108_v12 = vsel %vm553_vm0, %v900_v2, 0.0  ;;  %v5746_v58 = vunpack.c.l.bf16 %v6174_v50 }
  0xdd   :  { %v1105_v17 = vsel %vm553_vm0, %v899_v4, 0.0 }
  0xde   :  { %6491 = vtanh.f32 %v648_v6 }
  0xdf   :  { %1076 = vadd.xlane.f32.xlu2 %v1075_v1  ;;  %v5730_v1 = vunpack.c.l.bf16 %v6170_v57 }
  0xe0   :  { %1073 = vadd.xlane.f32.xlu1 %v1072_v5  ;;  %v580_v5 = vrot.slane %v7058_v10, 3  ;;  %v6486_v11 = vpop.eup %6485 }
  0xe1   :  { %1070 = vadd.xlane.f32.xlu0 %v1069_v9  ;;  %v647_v8 = vadd.f32 %v5730_v1, %v7192_v42  ;;  %v6172_v9 = vld [vmem:[%s11556_s1 + $0xc8] sm:$0xff]   ;;  %v6488_v16 = vpop.eup %6487  ;;  %v904_v22 = vmul.f32 %v6486_v11, %v7078_v26 }
  0xe2   :  { %v6490_v19 = vpop.eup %6489  ;;  %v7276_v20 = vperm.slane %v580_v5, 0  ;;  %v903_v42 = vmul.f32 %v6488_v16, %v7078_v26  ;;  %v5739_v14 = vunpack.c.h.bf16 %v6172_v9  ;;  %v5755_v5 = vunpack.c.h.bf16 %v6176_v63  ;;  %v6178_v16 = vld [vmem:[%s11556_s1 + $0xf8] sm:$0xff]  }
  0xe3   :  { %6493 = vtanh.f32 %v647_v8  ;;  %v1120_v28 = vsel %vm553_vm0, %v904_v22, 0.0  ;;  %v6177_v22 = vld [vmem:[%s11556_s1 + $0xf0] sm:$0xff]  }
  0xe4   :  { %6495 = vtanh.f32 %v646_v13  ;;  %v6492_v31 = vpop.eup %6491  ;;  %v1117_v32 = vsel %vm553_vm0, %v903_v42, 0.0  ;;  %v649_v33 = vadd.f32 %v5734_v24, %v7276_v20  ;;  %v654_v43 = vadd.f32 %v5743_v37, %v7276_v20 }
  0xe5   :  { %v653_v45 = vadd.f32 %v5742_v39, %v7276_v20  ;;  %v652_v49 = vadd.f32 %v5739_v14, %v7276_v20  ;;  %v655_v1 = vadd.f32 %v5746_v58, %v7276_v20  ;;  %v5758_v30 = vunpack.c.l.bf16 %v6177_v22 }
  0xe7   :  { %1085 = vadd.xlane.f32.xlu2 %v1084_v21  ;;  %v5738_v21 = vunpack.c.l.bf16 %v6172_v9  ;;  %v661_v39 = vadd.f32 %v5758_v30, %v7276_v20 }
  0xe8   :  { %1082 = vadd.xlane.f32.xlu1 %v1081_v25  ;;  %v902_v25 = vmul.f32 %v6490_v19, %v7078_v26 }
  0xe9   :  { %1079 = vadd.xlane.f32.xlu0 %v1078_v29  ;;  %v651_v27 = vadd.f32 %v5738_v21, %v7276_v20  ;;  %v650_v29 = vadd.f32 %v5735_v23, %v7276_v20  ;;  %v6494_v34 = vpop.eup %6493 }
  0xea   :  { %v1114_v35 = vsel %vm553_vm0, %v902_v25, 0.0  ;;  %v6496_v36 = vpop.eup %6495  ;;  %v906_v40 = vmul.f32 %v6494_v34, %v7078_v26  ;;  %v5762_v25 = vunpack.c.l.bf16 %v6178_v16 }
  0xeb   :  { %6497 = vtanh.f32 %v651_v27 }
  0xec   :  { %6499 = vtanh.f32 %v650_v29  ;;  %v1126_v48 = vsel %vm553_vm0, %v906_v40, 0.0 }
  0xed   :  { %6501 = vtanh.f32 %v649_v33  ;;  %v663_v33 = vadd.f32 %v5762_v25, %v7276_v20 }
  0xee   :  { %6503 = vtanh.f32 %v654_v43 }
  0xef   :  { %1094 = vadd.xlane.f32.xlu2 %v1093_v38  ;;  %v907_v38 = vmul.f32 %v6492_v31, %v7078_v26  ;;  %6505 = vtanh.f32 %v653_v45 }
  0xf0   :  { %1091 = vadd.xlane.f32.xlu1 %v1090_v41  ;;  %v905_v41 = vmul.f32 %v6496_v36, %v7078_v26  ;;  %6507 = vtanh.f32 %v652_v49  ;;  %v6179_v36 = vld [vmem:[%s11556_s1 + $0x100] sm:$0xff]  }
  0xf1   :  { %1088 = vadd.xlane.f32.xlu0 %v1087_v46  ;;  %v1129_v44 = vsel %vm553_vm0, %v907_v38, 0.0  ;;  %v6175_v46 = vld [vmem:[%s11556_s1 + $0xe0] sm:$0xff]   ;;  %v6498_v47 = vpop.eup %6497 }
  0xf2   :  { %v6500_v51 = vpop.eup %6499  ;;  %v1123_v52 = vsel %vm553_vm0, %v905_v41, 0.0  ;;  %v5750_v54 = vunpack.c.l.bf16 %v6175_v46  ;;  %v5751_v9 = vunpack.c.h.bf16 %v6175_v46  ;;  %v5766_v46 = vunpack.c.l.bf16 %v6179_v36 }
  0xf3   :  { %v6502_v53 = vpop.eup %6501  ;;  %v909_v57 = vmul.f32 %v6500_v51, %v7078_v26 }
  0xf4   :  { %v657_v60 = vadd.f32 %v5750_v54, %v7276_v20  ;;  %v6504_v0 = vpop.eup %6503  ;;  %v658_v21 = vadd.f32 %v5751_v9, %v7276_v20 }
  0xf5   :  { %v1135_v18 = vsel %vm553_vm0, %v909_v57, 0.0  ;;  %v6506_v2 = vpop.eup %6505  ;;  %v913_v6 = vmul.f32 %v6504_v0, %v7078_v26  ;;  %v6180_v57 = vld [vmem:[%s11556_s1 + $0x108] sm:$0xff]  }
  0xf6   :  { %v6508_v4 = vpop.eup %6507  ;;  %6509 = vtanh.f32 %v657_v60  ;;  %v912_v8 = vmul.f32 %v6506_v2, %v7078_v26 }
  0xf7   :  { %1103 = vadd.xlane.f32.xlu2 %v1102_v55  ;;  %v910_v55 = vmul.f32 %v6498_v47, %v7078_v26  ;;  %v911_v11 = vmul.f32 %v6508_v4, %v7078_v26  ;;  %v1147_v13 = vsel %vm553_vm0, %v913_v6, 0.0  ;;  %v6182_v4 = vld [vmem:[%s11556_s1 + $0x118] sm:$0xff]  }
  0xf8   :  { %1100 = vadd.xlane.f32.xlu1 %v1099_v59  ;;  %v908_v59 = vmul.f32 %v6502_v53, %v7078_v26  ;;  %v1144_v19 = vsel %vm553_vm0, %v912_v8, 0.0  ;;  %v6181_v53 = vld [vmem:[%s11556_s1 + $0x110] sm:$0xff]  }
  0xf9   :  { %1097 = vadd.xlane.f32.xlu0 %v1096_v62  ;;  %v1138_v61 = vsel %vm553_vm0, %v910_v55, 0.0  ;;  %v656_v62 = vadd.f32 %v5747_v56, %v7276_v20  ;;  %v1141_v42 = vsel %vm553_vm0, %v911_v11, 0.0 }
  0xfa   :  { %v1132_v3 = vsel %vm553_vm0, %v908_v59, 0.0 }
  0xfb   :  { %6511 = vtanh.f32 %v656_v62 }
  0xfc   :  { %6513 = vtanh.f32 %v655_v1 }
  0xff   :  { %1112 = vadd.xlane.f32.xlu2 %v1111_v7  ;;  %v5754_v7 = vunpack.c.l.bf16 %v6176_v63  ;;  %v5771_v63 = vunpack.c.h.bf16 %v6180_v57 }
 0x100   :  { %1109 = vadd.xlane.f32.xlu1 %v1108_v12  ;;  %v660_v12 = vadd.f32 %v5755_v5, %v7276_v20 }
 0x101   :  { %1106 = vadd.xlane.f32.xlu0 %v1105_v17  ;;  %v659_v15 = vadd.f32 %v5754_v7, %v7276_v20  ;;  %v6510_v17 = vpop.eup %6509 }
 0x102   :  { %v6512_v23 = vpop.eup %6511  ;;  %6515 = vtanh.f32 %v660_v12  ;;  %v916_v27 = vmul.f32 %v6510_v17, %v7078_v26 }
 0x103   :  { %v6514_v24 = vpop.eup %6513  ;;  %6517 = vtanh.f32 %v659_v15  ;;  %v915_v29 = vmul.f32 %v6512_v23, %v7078_v26 }
 0x104   :  { %6519 = vtanh.f32 %v658_v21  ;;  %v914_v31 = vmul.f32 %v6514_v24, %v7078_v26  ;;  %v1156_v34 = vsel %vm553_vm0, %v916_v27, 0.0  ;;  %v6184_v24 = vld [vmem:[%s11556_s1 + $0x128] sm:$0xff]  }
 0x105   :  { %v1153_v38 = vsel %vm553_vm0, %v915_v29, 0.0  ;;  %6521 = vtanh.f32 %v663_v33  ;;  %v6183_v29 = vld [vmem:[%s11556_s1 + $0x120] sm:$0xff]  }
 0x106   :  { %v1150_v14 = vsel %vm553_vm0, %v914_v31, 0.0 }
 0x107   :  { %1121 = vadd.xlane.f32.xlu2 %v1120_v28  ;;  %v5759_v28 = vunpack.c.h.bf16 %v6177_v22 }
 0x108   :  { %1118 = vadd.xlane.f32.xlu1 %v1117_v32  ;;  %v581_v32 = vrot.slane %v7058_v10, 4  ;;  %v6516_v37 = vpop.eup %6515 }
 0x109   :  { %1115 = vadd.xlane.f32.xlu0 %v1114_v35  ;;  %v662_v35 = vadd.f32 %v5759_v28, %v7276_v20  ;;  %v6518_v40 = vpop.eup %6517  ;;  %v919_v45 = vmul.f32 %v6516_v37, %v7078_v26  ;;  %v7397_v37 = vld [vmem:[%s11561_s6] ss:$0 sm:$0xff] }
 0x10a   :  { %v6520_v41 = vpop.eup %6519  ;;  %v7345_v43 = vperm.slane %v581_v32, 0  ;;  %v918_v47 = vmul.f32 %v6518_v40, %v7078_v26 }
 0x10b   :  { %6523 = vtanh.f32 %v662_v35  ;;  %v917_v49 = vmul.f32 %v6520_v41, %v7078_v26  ;;  %v1165_v51 = vsel %vm553_vm0, %v919_v45, 0.0  ;;  %v6522_v54 = vpop.eup %6521 }
 0x10c   :  { %6525 = vtanh.f32 %v661_v39  ;;  %v1162_v55 = vsel %vm553_vm0, %v918_v47, 0.0  ;;  %v922_v62 = vmul.f32 %v6522_v54, %v7078_v26  ;;  %v7371_v6 = vpop.xlane.xlu0 %989  ;;  %v5782_v39 = vunpack.c.l.bf16 %v6183_v29 }
 0x10d   :  { %v1159_v59 = vsel %vm553_vm0, %v917_v49, 0.0 }
 0x10e   :  { %v1174_v2 = vsel %vm553_vm0, %v922_v62, 0.0  ;;  %v673_v47 = vadd.f32 %v5782_v39, %v7345_v43  ;;  %v6187_v62 = vld [vmem:[%s11556_s1 + $0x140] sm:$0xff]  }
 0x10f   :  { %1130 = vadd.xlane.f32.xlu2 %v1129_v44  ;;  %v5767_v44 = vunpack.c.h.bf16 %v6179_v36  ;;  %v5783_v36 = vunpack.c.h.bf16 %v6183_v29 }
 0x110   :  { %1127 = vadd.xlane.f32.xlu1 %v1126_v48  ;;  %v5763_v48 = vunpack.c.h.bf16 %v6178_v16  ;;  %v5778_v16 = vunpack.c.l.bf16 %v6182_v4 }
 0x111   :  { %1124 = vadd.xlane.f32.xlu0 %v1123_v52  ;;  %v666_v50 = vadd.f32 %v5767_v44, %v7345_v43  ;;  %v665_v52 = vadd.f32 %v5766_v46, %v7345_v43  ;;  %v6524_v58 = vpop.eup %6523  ;;  %v674_v44 = vadd.f32 %v5783_v36, %v7345_v43  ;;  %v6190_v36 = vld [vmem:[%s11556_s1 + $0x158] sm:$0xff]  }
 0x112   :  { %v664_v56 = vadd.f32 %v5763_v48, %v7276_v20  ;;  %v6526_v60 = vpop.eup %6525  ;;  %v921_v0 = vmul.f32 %v6524_v58, %v7078_v26  ;;  %v5770_v20 = vunpack.c.l.bf16 %v6180_v57  ;;  %v582_v58 = vrot.slane %v7058_v10, 5 }
 0x113   :  { %6527 = vtanh.f32 %v666_v50 }
 0x114   :  { %6529 = vtanh.f32 %v665_v52  ;;  %v1171_v7 = vsel %vm553_vm0, %v921_v0, 0.0  ;;  %v667_v8 = vadd.f32 %v5770_v20, %v7345_v43  ;;  %v7391_v33 = vpop.xlane.xlu0 %992 }
 0x115   :  { %6531 = vtanh.f32 %v664_v56  ;;  %11834 = vst [vmem:[#allocation8_spill] sm:$0xff] %v7391_v33  ;;  %v5787_v56 = vunpack.c.h.bf16 %v6184_v24 }
 0x117   :  { %1139 = vadd.xlane.f32.xlu2 %v1138_v61  ;;  %v5774_v61 = vunpack.c.l.bf16 %v6181_v53  ;;  %v676_v20 = vadd.f32 %v5787_v56, %v7345_v43  ;;  %v6191_v56 = vld [vmem:[%s11556_s1 + $0x160] sm:$0xff]  }
 0x118   :  { %1136 = vadd.xlane.f32.xlu1 %v1135_v18  ;;  %v920_v18 = vmul.f32 %v6526_v60, %v7078_v26 }
 0x119   :  { %1133 = vadd.xlane.f32.xlu0 %v1132_v3  ;;  %v669_v1 = vadd.f32 %v5774_v61, %v7345_v43  ;;  %v668_v3 = vadd.f32 %v5771_v63, %v7345_v43  ;;  %v6528_v5 = vpop.eup %6527 }
 0x11a   :  { %v6530_v9 = vpop.eup %6529  ;;  %v1168_v11 = vsel %vm553_vm0, %v920_v18, 0.0  ;;  %v925_v15 = vmul.f32 %v6528_v5, %v7078_v26  ;;  %v6186_v18 = vld [vmem:[%s11556_s1 + $0x138] sm:$0xff]   ;;  %v5798_v5 = vunpack.c.l.bf16 %v6187_v62 }
 0x11b   :  { %v6532_v12 = vpop.eup %6531  ;;  %6533 = vtanh.f32 %v669_v1  ;;  %v924_v17 = vmul.f32 %v6530_v9, %v7078_v26 }
 0x11c   :  { %6535 = vtanh.f32 %v668_v3  ;;  %v923_v21 = vmul.f32 %v6532_v12, %v7078_v26  ;;  %v1183_v23 = vsel %vm553_vm0, %v925_v15, 0.0  ;;  %v7411_v54 = vpop.xlane.xlu0 %1007 }
 0x11d   :  { %6537 = vtanh.f32 %v667_v8  ;;  %v1180_v27 = vsel %vm553_vm0, %v924_v17, 0.0  ;;  %11835 = vst [vmem:[#allocation9_spill] sm:$0xff] %v7411_v54  ;;  %v5795_v8 = vunpack.c.h.bf16 %v6186_v18 }
 0x11e   :  { %v1177_v31 = vsel %vm553_vm0, %v923_v21, 0.0 }
 0x11f   :  { %1148 = vadd.xlane.f32.xlu2 %v1147_v13  ;;  %v5779_v13 = vunpack.c.h.bf16 %v6182_v4  ;;  %v7428_v4 = vperm.slane %v582_v58, 0  ;;  %v680_v17 = vadd.f32 %v5795_v8, %v7345_v43 }
 0x120   :  { %1145 = vadd.xlane.f32.xlu1 %v1144_v19  ;;  %v5775_v19 = vunpack.c.h.bf16 %v6181_v53 }
 0x121   :  { %1142 = vadd.xlane.f32.xlu0 %v1141_v42  ;;  %v672_v22 = vadd.f32 %v5779_v13, %v7345_v43  ;;  %v671_v42 = vadd.f32 %v5778_v16, %v7345_v43  ;;  %v6534_v25 = vpop.eup %6533  ;;  %v681_v15 = vadd.f32 %v5798_v5, %v7428_v4 }
 0x122   :  { %v670_v28 = vadd.f32 %v5775_v19, %v7345_v43  ;;  %v6536_v30 = vpop.eup %6535  ;;  %v928_v35 = vmul.f32 %v6534_v25, %v7078_v26  ;;  %v6185_v26 = vld [vmem:[%s11556_s1 + $0x130] sm:$0xff]   ;;  %v6188_v19 = vld [vmem:[%s11556_s1 + $0x148] sm:$0xff]  }
 0x123   :  { %v6538_v32 = vpop.eup %6537  ;;  %6539 = vtanh.f32 %v672_v22  ;;  %v5790_v53 = vunpack.c.l.bf16 %v6185_v26  ;;  %v5802_v29 = vunpack.c.l.bf16 %v6188_v19 }
 0x124   :  { %6541 = vtanh.f32 %v671_v42  ;;  %v926_v40 = vmul.f32 %v7397_v37, %v6538_v32  ;;  %v1192_v41 = vsel %vm553_vm0, %v928_v35, 0.0  ;;  %v7433_v13 = vpop.xlane.xlu0 %1016 }
 0x125   :  { %6543 = vtanh.f32 %v670_v28  ;;  %v677_v61 = vadd.f32 %v5790_v53, %v7345_v43  ;;  %11836 = vst [vmem:[#allocation10_spill] sm:$0xff] %v7433_v13  ;;  %v683_v35 = vadd.f32 %v5802_v29, %v7428_v4 }
 0x126   :  { %v1186_v49 = vsel %vm553_vm0, %v926_v40, 0.0 }
 0x127   :  { %1157 = vadd.xlane.f32.xlu2 %v1156_v34  ;;  %v5786_v34 = vunpack.c.l.bf16 %v6184_v24 }
 0x128   :  { %1154 = vadd.xlane.f32.xlu1 %v1153_v38  ;;  %v927_v38 = vmul.f32 %v7397_v37, %v6536_v30 }
 0x129   :  { %1151 = vadd.xlane.f32.xlu0 %v1150_v14  ;;  %v675_v14 = vadd.f32 %v5786_v34, %v7345_v43  ;;  %v6540_v45 = vpop.eup %6539 }
 0x12a   :  { %v1189_v46 = vsel %vm553_vm0, %v927_v38, 0.0  ;;  %v6542_v48 = vpop.eup %6541  ;;  %v931_v52 = vmul.f32 %v7397_v37, %v6540_v45 }
 0x12b   :  { %v6544_v50 = vpop.eup %6543  ;;  %6545 = vtanh.f32 %v675_v14 }
 0x12c   :  { %6547 = vtanh.f32 %v674_v44  ;;  %v929_v57 = vmul.f32 %v7397_v37, %v6544_v50  ;;  %v1201_v60 = vsel %vm553_vm0, %v931_v52, 0.0  ;;  %v7453_v39 = vpop.xlane.xlu0 %1025 }
 0x12d   :  { %6549 = vtanh.f32 %v673_v47  ;;  %11837 = vst [vmem:[#allocation11_spill] sm:$0xff] %v7453_v39 }
 0x12f   :  { %1166 = vadd.xlane.f32.xlu2 %v1165_v51  ;;  %v5791_v51 = vunpack.c.h.bf16 %v6185_v26 }
 0x130   :  { %1163 = vadd.xlane.f32.xlu1 %v1162_v55  ;;  %v930_v55 = vmul.f32 %v7397_v37, %v6542_v48 }
 0x131   :  { %1160 = vadd.xlane.f32.xlu0 %v1159_v59  ;;  %v678_v59 = vadd.f32 %v5791_v51, %v7345_v43  ;;  %v6546_v63 = vpop.eup %6545 }
 0x132   :  { %v1198_v0 = vsel %vm553_vm0, %v930_v55, 0.0  ;;  %v6548_v1 = vpop.eup %6547 }
 0x133   :  { %v6550_v3 = vpop.eup %6549  ;;  %6551 = vtanh.f32 %v678_v59  ;;  %v933_v9 = vmul.f32 %v7397_v37, %v6548_v1  ;;  %v5814_v1 = vunpack.c.l.bf16 %v6191_v56 }
 0x134   :  { %6553 = vtanh.f32 %v677_v61  ;;  %v932_v12 = vmul.f32 %v7397_v37, %v6550_v3  ;;  %v5811_v3 = vunpack.c.h.bf16 %v6190_v36 }
 0x135   :  { %6555 = vtanh.f32 %v676_v20  ;;  %v1207_v22 = vsel %vm553_vm0, %v933_v9, 0.0  ;;  %v7475_v20 = vpop.xlane.xlu2 %1001  ;;  %v689_v9 = vadd.f32 %v5814_v1, %v7428_v4 }
 0x136   :  { %v1204_v24 = vsel %vm553_vm0, %v932_v12, 0.0  ;;  %6557 = vtanh.f32 %v681_v15  ;;  %11839 = vst [vmem:[#allocation13_spill] sm:$0xff] %v7475_v20 }
 0x137   :  { %1175 = vadd.xlane.f32.xlu2 %v1174_v2  ;;  %v1195_v2 = vsel %vm553_vm0, %v929_v57, 0.0  ;;  %6559 = vtanh.f32 %v680_v17  ;;  %v6192_v17 = vld [vmem:[%s11556_s1 + $0x168] sm:$0xff]  }
 0x138   :  { %1172 = vadd.xlane.f32.xlu1 %v1171_v7  ;;  %v934_v7 = vmul.f32 %v7397_v37, %v6546_v63  ;;  %v7473_v63 = vpop.xlane.xlu0 %1034 }
 0x139   :  { %1169 = vadd.xlane.f32.xlu0 %v1168_v11  ;;  %v5794_v11 = vunpack.c.l.bf16 %v6186_v18  ;;  %v6552_v21 = vpop.eup %6551  ;;  %11838 = vst [vmem:[#allocation12_spill] sm:$0xff] %v7473_v63 }
 0x13a   :  { %v1210_v16 = vsel %vm553_vm0, %v934_v7, 0.0  ;;  %v6554_v42 = vpop.eup %6553  ;;  %v937_v28 = vmul.f32 %v7397_v37, %v6552_v21 }
 0x13b   :  { %v6556_v25 = vpop.eup %6555  ;;  %v936_v30 = vmul.f32 %v7397_v37, %v6554_v42 }
 0x13c   :  { %v935_v32 = vmul.f32 %v7397_v37, %v6556_v25  ;;  %v1219_v34 = vsel %vm553_vm0, %v937_v28, 0.0  ;;  %v6558_v38 = vpop.eup %6557  ;;  %v5818_v28 = vunpack.c.l.bf16 %v6192_v17 }
 0x13d   :  { %v1216_v40 = vsel %vm553_vm0, %v936_v30, 0.0  ;;  %v6560_v44 = vpop.eup %6559  ;;  %v940_v47 = vmul.f32 %v7397_v37, %v6558_v38  ;;  %v7496_v29 = vpop.xlane.xlu2 %1004 }
 0x13e   :  { %v1213_v26 = vsel %vm553_vm0, %v935_v32, 0.0 }
 0x13f   :  { %1184 = vadd.xlane.f32.xlu2 %v1183_v23  ;;  %v679_v23 = vadd.f32 %v5794_v11, %v7345_v43  ;;  %v1228_v53 = vsel %vm553_vm0, %v940_v47, 0.0  ;;  %v6193_v11 = vld [vmem:[%s11556_s1 + $0x170] sm:$0xff]  }
 0x140   :  { %1181 = vadd.xlane.f32.xlu1 %v1180_v27  ;;  %v5803_v27 = vunpack.c.h.bf16 %v6188_v19  ;;  %v7493_v25 = vpop.xlane.xlu0 %1043 }
 0x141   :  { %1178 = vadd.xlane.f32.xlu0 %v1177_v31  ;;  %6561 = vtanh.f32 %v679_v23  ;;  %v5799_v31 = vunpack.c.h.bf16 %v6187_v62  ;;  %v5822_v23 = vunpack.c.l.bf16 %v6193_v11  ;;  %11840 = vst [vmem:[#allocation14_spill] sm:$0xff] %v7493_v25 }
 0x142   :  { %v684_v43 = vadd.f32 %v5803_v27, %v7428_v4 }
 0x143   :  { %v682_v14 = vadd.f32 %v5799_v31, %v7428_v4  ;;  %v7499_v31 = vpop.xlane.xlu1 %995  ;;  %v693_v32 = vadd.f32 %v5822_v23, %v7428_v4 }
 0x144   :  { %6563 = vtanh.f32 %v684_v43  ;;  %11841 = vst [vmem:[#allocation15_spill] sm:$0xff] %v7499_v31 }
 0x145   :  { %6565 = vtanh.f32 %v683_v35  ;;  %v6194_v35 = vld [vmem:[%s11556_s1 + $0x178] sm:$0xff]  }
 0x146   :  { %6567 = vtanh.f32 %v682_v14 }
 0x147   :  { %1193 = vadd.xlane.f32.xlu2 %v1192_v41  ;;  %v6189_v41 = vld [vmem:[%s11556_s1 + $0x150] sm:$0xff]   ;;  %v6562_v45 = vpop.eup %6561 }
 0x148   :  { %1190 = vadd.xlane.f32.xlu1 %v1189_v46  ;;  %v5810_v46 = vunpack.c.l.bf16 %v6190_v36  ;;  %v5807_v48 = vunpack.c.h.bf16 %v6189_v41  ;;  %v5806_v50 = vunpack.c.l.bf16 %v6189_v41  ;;  %v938_v51 = vmul.f32 %v7397_v37, %v6562_v45 }
 0x149   :  { %1187 = vadd.xlane.f32.xlu0 %v1186_v49  ;;  %v939_v49 = vmul.f32 %v7397_v37, %v6560_v44 }
 0x14a   :  { %v687_v52 = vadd.f32 %v5810_v46, %v7428_v4  ;;  %v686_v55 = vadd.f32 %v5807_v48, %v7428_v4  ;;  %v6564_v57 = vpop.eup %6563  ;;  %v685_v59 = vadd.f32 %v5806_v50, %v7428_v4  ;;  %v1222_v61 = vsel %vm553_vm0, %v938_v51, 0.0  ;;  %v7514_v51 = vpop.xlane.xlu0 %1052 }
 0x14b   :  { %v1225_v58 = vsel %vm553_vm0, %v939_v49, 0.0  ;;  %v943_v18 = vmul.f32 %v7397_v37, %v6564_v57  ;;  %v5826_v46 = vunpack.c.l.bf16 %v6194_v35  ;;  %v5823_v48 = vunpack.c.h.bf16 %v6193_v11  ;;  %11842 = vst [vmem:[#allocation16_spill] sm:$0xff] %v7514_v51  ;;  %v6196_v57 = vld [vmem:[%s11556_s1 + $0x188] sm:$0xff]  }
 0x14c   :  { %6569 = vtanh.f32 %v687_v52  ;;  %v583_v50 = vrot.slane %v7058_v10, 6 }
 0x14d   :  { %6571 = vtanh.f32 %v686_v55  ;;  %v1237_v8 = vsel %vm553_vm0, %v943_v18, 0.0 }
 0x14e   :  { %6573 = vtanh.f32 %v685_v59  ;;  %v7524_v59 = vpop.xlane.xlu1 %998 }
 0x14f   :  { %1202 = vadd.xlane.f32.xlu2 %v1201_v60  ;;  %v6566_v60 = vpop.eup %6565  ;;  %11843 = vst [vmem:[#allocation17_spill] sm:$0xff] %v7524_v59 }
 0x150   :  { %1199 = vadd.xlane.f32.xlu1 %v1198_v0  ;;  %v6568_v62 = vpop.eup %6567  ;;  %v5815_v0 = vunpack.c.h.bf16 %v6191_v56  ;;  %v695_v56 = vadd.f32 %v5826_v46, %v7428_v4  ;;  %v6198_v46 = vld [vmem:[%s11556_s1 + $0x198] sm:$0xff]  }
 0x151   :  { %1196 = vadd.xlane.f32.xlu0 %v1195_v2  ;;  %v942_v2 = vmul.f32 %v7397_v37, %v6566_v60  ;;  %v941_v5 = vmul.f32 %v7397_v37, %v6568_v62  ;;  %v6195_v62 = vld [vmem:[%s11556_s1 + $0x180] sm:$0xff]  }
 0x152   :  { %v690_v7 = vadd.f32 %v5815_v0, %v7428_v4  ;;  %v6570_v12 = vpop.eup %6569 }
 0x153   :  { %v1234_v15 = vsel %vm553_vm0, %v942_v2, 0.0  ;;  %v6572_v19 = vpop.eup %6571  ;;  %v1231_v21 = vsel %vm553_vm0, %v941_v5, 0.0  ;;  %v946_v42 = vmul.f32 %v7397_v37, %v6570_v12  ;;  %v7532_v2 = vperm.slane %v583_v50, 0 }
 0x154   :  { %6575 = vtanh.f32 %v690_v7  ;;  %v945_v27 = vmul.f32 %v7397_v37, %v6572_v19  ;;  %v5831_v7 = vunpack.c.h.bf16 %v6195_v62  ;;  %v7543_v19 = vpop.xlane.xlu0 %1061 }
 0x155   :  { %6577 = vtanh.f32 %v689_v9  ;;  %v1246_v43 = vsel %vm553_vm0, %v946_v42, 0.0  ;;  %11844 = vst [vmem:[#allocation18_spill] sm:$0xff] %v7543_v19 }
 0x156   :  { %v1243_v38 = vsel %vm553_vm0, %v945_v27, 0.0 }
 0x157   :  { %1211 = vadd.xlane.f32.xlu2 %v1210_v16  ;;  %v688_v16 = vadd.f32 %v5811_v3, %v7428_v4  ;;  %v5834_v3 = vunpack.c.l.bf16 %v6196_v57 }
 0x158   :  { %1208 = vadd.xlane.f32.xlu1 %v1207_v22  ;;  %v6574_v22 = vpop.eup %6573 }
 0x159   :  { %1205 = vadd.xlane.f32.xlu0 %v1204_v24  ;;  %v5819_v24 = vunpack.c.h.bf16 %v6192_v17  ;;  %6579 = vtanh.f32 %v688_v16  ;;  %v944_v30 = vmul.f32 %v7397_v37, %v6574_v22  ;;  %v699_v11 = vadd.f32 %v5834_v3, %v7532_v2  ;;  %v6197_v16 = vld [vmem:[%s11556_s1 + $0x190] sm:$0xff]   ;;  %v6200_v3 = vld [vmem:[%s11556_s1 + $0x1a8] sm:$0xff]  }
 0x15a   :  { %v6576_v36 = vpop.eup %6575  ;;  %6581 = vtanh.f32 %v693_v32 }
 0x15b   :  { %v6578_v14 = vpop.eup %6577  ;;  %v1240_v41 = vsel %vm553_vm0, %v944_v30, 0.0  ;;  %v949_v45 = vmul.f32 %v7397_v37, %v6576_v36  ;;  %v5839_v30 = vunpack.c.h.bf16 %v6197_v16 }
 0x15c   :  { %v948_v47 = vmul.f32 %v7397_v37, %v6578_v14  ;;  %v7567_v50 = vpop.xlane.xlu0 %1070 }
 0x15d   :  { %v1255_v55 = vsel %vm553_vm0, %v949_v45, 0.0  ;;  %11846 = vst [vmem:[#allocation20_spill] sm:$0xff] %v7567_v50 }
 0x15e   :  { %v1252_v60 = vsel %vm553_vm0, %v948_v47, 0.0 }
 0x15f   :  { %1220 = vadd.xlane.f32.xlu2 %v1219_v34  ;;  %v692_v34 = vadd.f32 %v5819_v24, %v7428_v4  ;;  %v6580_v44 = vpop.eup %6579 }
 0x160   :  { %1217 = vadd.xlane.f32.xlu1 %v1216_v40  ;;  %v691_v40 = vadd.f32 %v5818_v28, %v7428_v4  ;;  %v947_v49 = vmul.f32 %v7397_v37, %v6580_v44  ;;  %v7550_v28 = vpop.xlane.xlu1 %1010 }
 0x161   :  { %1214 = vadd.xlane.f32.xlu0 %v1213_v26  ;;  %v5827_v26 = vunpack.c.h.bf16 %v6194_v35  ;;  %6583 = vtanh.f32 %v692_v34  ;;  %11845 = vst [vmem:[#allocation19_spill] sm:$0xff] %v7550_v28  ;;  %v5835_v35 = vunpack.c.h.bf16 %v6196_v57  ;;  %v5843_v57 = vunpack.c.h.bf16 %v6198_v46 }
 0x162   :  { %6585 = vtanh.f32 %v691_v40  ;;  %v1249_v18 = vsel %vm553_vm0, %v947_v49, 0.0 }
 0x163   :  { %v696_v52 = vadd.f32 %v5827_v26, %v7428_v4  ;;  %v700_v45 = vadd.f32 %v5835_v35, %v7532_v2 }
 0x165   :  { %6587 = vtanh.f32 %v696_v52 }
 0x166   :  { %6589 = vtanh.f32 %v695_v56 }
 0x167   :  { %1229 = vadd.xlane.f32.xlu2 %v1228_v53  ;;  %v7517_v53 = vpop.xlane.xlu2 %1013 }
 0x168   :  { %1226 = vadd.xlane.f32.xlu1 %v1225_v58  ;;  %v6582_v58 = vpop.eup %6581 }
 0x169   :  { %1223 = vadd.xlane.f32.xlu0 %v1222_v61  ;;  %v694_v61 = vadd.f32 %v5823_v48, %v7428_v4  ;;  %v6584_v0 = vpop.eup %6583  ;;  %v952_v5 = vmul.f32 %v7397_v37, %v6582_v58  ;;  %v7572_v58 = vpop.xlane.xlu1 %1019 }
 0x16a   :  { %v6586_v1 = vpop.eup %6585  ;;  %v951_v4 = vmul.f32 %v7397_v37, %v6584_v0  ;;  %11847 = vst [vmem:[#allocation21_spill] sm:$0xff] %v7572_v58 }
 0x16b   :  { %6591 = vtanh.f32 %v694_v61  ;;  %v950_v9 = vmul.f32 %v7397_v37, %v6586_v1  ;;  %v1264_v12 = vsel %vm553_vm0, %v952_v5, 0.0  ;;  %v6588_v17 = vpop.eup %6587  ;;  %v5842_v61 = vunpack.c.l.bf16 %v6198_v46 }
 0x16c   :  { %v6590_v23 = vpop.eup %6589  ;;  %6593 = vtanh.f32 %v699_v11  ;;  %v955_v32 = vmul.f32 %v7397_v37, %v6588_v17  ;;  %v704_v1 = vadd.f32 %v5843_v57, %v7532_v2  ;;  %v7586_v17 = vpop.xlane.xlu0 %1079 }
 0x16d   :  { %v1258_v24 = vsel %vm553_vm0, %v950_v9, 0.0  ;;  %v954_v34 = vmul.f32 %v7397_v37, %v6590_v23  ;;  %11848 = vst [vmem:[#allocation22_spill] sm:$0xff] %v7586_v17 }
 0x16e   :  { %v1273_v40 = vsel %vm553_vm0, %v955_v32, 0.0 }
 0x16f   :  { %1238 = vadd.xlane.f32.xlu2 %v1237_v8  ;;  %v5830_v8 = vunpack.c.l.bf16 %v6195_v62  ;;  %v7547_v42 = vpop.xlane.xlu2 %1022  ;;  %v1270_v26 = vsel %vm553_vm0, %v954_v34, 0.0  ;;  %v6202_v34 = vld [vmem:[%s11556_s1 + $0x1b8] sm:$0xff]  }
 0x170   :  { %1235 = vadd.xlane.f32.xlu1 %v1234_v15  ;;  %v698_v15 = vadd.f32 %v5831_v7, %v7532_v2 }
 0x171   :  { %1232 = vadd.xlane.f32.xlu0 %v1231_v21  ;;  %v1261_v21 = vsel %vm553_vm0, %v951_v4, 0.0  ;;  %v697_v22 = vadd.f32 %v5830_v8, %v7532_v2  ;;  %v6592_v27 = vpop.eup %6591  ;;  %v703_v4 = vadd.f32 %v5842_v61, %v7532_v2 }
 0x172   :  { %6595 = vtanh.f32 %v698_v15  ;;  %v953_v36 = vmul.f32 %v7397_v37, %v6592_v27  ;;  %v6594_v44 = vpop.eup %6593  ;;  %v7592_v27 = vpop.xlane.xlu1 %1028 }
 0x173   :  { %6597 = vtanh.f32 %v697_v22  ;;  %v958_v56 = vmul.f32 %v7397_v37, %v6594_v44  ;;  %11849 = vst [vmem:[#allocation23_spill] sm:$0xff] %v7592_v27 }
 0x174   :  { %v1267_v48 = vsel %vm553_vm0, %v953_v36, 0.0 }
 0x177   :  { %1247 = vadd.xlane.f32.xlu2 %v1246_v43  ;;  %v5838_v43 = vunpack.c.l.bf16 %v6197_v16  ;;  %v5850_v16 = vunpack.c.l.bf16 %v6200_v3 }
 0x178   :  { %1244 = vadd.xlane.f32.xlu1 %v1243_v38  ;;  %v702_v38 = vadd.f32 %v5839_v30, %v7532_v2  ;;  %v6596_v47 = vpop.eup %6595 }
 0x179   :  { %1241 = vadd.xlane.f32.xlu0 %v1240_v41  ;;  %v701_v14 = vadd.f32 %v5838_v43, %v7532_v2  ;;  %v6199_v41 = vld [vmem:[%s11556_s1 + $0x1a0] sm:$0xff]   ;;  %v6598_v49 = vpop.eup %6597  ;;  %v707_v43 = vadd.f32 %v5850_v16, %v7532_v2  ;;  %v5859_v16 = vunpack.c.h.bf16 %v6202_v34 }
 0x17a   :  { %6599 = vtanh.f32 %v702_v38  ;;  %v5846_v52 = vunpack.c.l.bf16 %v6199_v41  ;;  %v956_v62 = vmul.f32 %v7397_v37, %v6598_v49  ;;  %v5847_v22 = vunpack.c.h.bf16 %v6199_v41 }
 0x17b   :  { %6601 = vtanh.f32 %v701_v14 }
 0x17c   :  { %6603 = vtanh.f32 %v700_v45  ;;  %v705_v0 = vadd.f32 %v5846_v52, %v7532_v2  ;;  %v1276_v9 = vsel %vm553_vm0, %v956_v62, 0.0  ;;  %v706_v38 = vadd.f32 %v5847_v22, %v7532_v2 }
 0x17d   :  { %v584_v52 = vrot.slane %v7058_v10, 7 }
 0x17e   :  { %6605 = vtanh.f32 %v705_v0  ;;  %v6203_v0 = vld [vmem:[%s11556_s1 + $0x1c0] sm:$0xff]  }
 0x17f   :  { %1256 = vadd.xlane.f32.xlu2 %v1255_v55  ;;  %v7569_v55 = vpop.xlane.xlu2 %1031  ;;  %6607 = vtanh.f32 %v704_v1  ;;  %v7620_v1 = vpop.xlane.xlu1 %1037 }
 0x180   :  { %1253 = vadd.xlane.f32.xlu1 %v1252_v60  ;;  %v957_v60 = vmul.f32 %v7397_v37, %v6596_v47  ;;  %v6600_v5 = vpop.eup %6599  ;;  %6609 = vtanh.f32 %v703_v4  ;;  %11851 = vst [vmem:[#allocation25_spill] sm:$0xff] %v7620_v1 }
 0x181   :  { %1250 = vadd.xlane.f32.xlu0 %v1249_v18  ;;  %v1282_v18 = vsel %vm553_vm0, %v958_v56, 0.0  ;;  %v6602_v8 = vpop.eup %6601  ;;  %v961_v15 = vmul.f32 %v7397_v37, %v6600_v5  ;;  %v7610_v56 = vpop.xlane.xlu0 %1088 }
 0x182   :  { %v1279_v7 = vsel %vm553_vm0, %v957_v60, 0.0  ;;  %v6604_v11 = vpop.eup %6603  ;;  %11850 = vst [vmem:[#allocation24_spill] sm:$0xff] %v7610_v56 }
 0x183   :  { %v1291_v32 = vsel %vm553_vm0, %v961_v15, 0.0 }
 0x184   :  { %v6606_v35 = vpop.eup %6605 }
 0x185   :  { %v6608_v14 = vpop.eup %6607  ;;  %v964_v45 = vmul.f32 %v7397_v37, %v6606_v35 }
 0x186   :  { %v6610_v44 = vpop.eup %6609  ;;  %v963_v47 = vmul.f32 %v7397_v37, %v6608_v14 }
 0x187   :  { %1265 = vadd.xlane.f32.xlu2 %v1264_v12  ;;  %v5851_v12 = vunpack.c.h.bf16 %v6200_v3  ;;  %v7589_v23 = vpop.xlane.xlu2 %1040  ;;  %v962_v49 = vmul.f32 %v7397_v37, %v6610_v44  ;;  %v1300_v61 = vsel %vm553_vm0, %v964_v45, 0.0 }
 0x188   :  { %1262 = vadd.xlane.f32.xlu1 %v1261_v21  ;;  %v960_v21 = vmul.f32 %v7397_v37, %v6602_v8  ;;  %v1297_v10 = vsel %vm553_vm0, %v963_v47, 0.0  ;;  %v7625_v8 = vperm.slane %v584_v52, 0 }
 0x189   :  { %1259 = vadd.xlane.f32.xlu0 %v1258_v24  ;;  %v959_v24 = vmul.f32 %v7397_v37, %v6604_v11  ;;  %v708_v30 = vadd.f32 %v5851_v12, %v7532_v2  ;;  %v5862_v12 = vunpack.c.l.bf16 %v6203_v0  ;;  %v7636_v35 = vpop.xlane.xlu0 %1097 }
 0x18a   :  { %v1288_v36 = vsel %vm553_vm0, %v960_v21, 0.0  ;;  %11852 = vst [vmem:[#allocation26_spill] sm:$0xff] %v7636_v35 }
 0x18b   :  { %v1285_v41 = vsel %vm553_vm0, %v959_v24, 0.0  ;;  %6611 = vtanh.f32 %v708_v30  ;;  %v713_v30 = vadd.f32 %v5862_v12, %v7625_v8 }
 0x18c   :  { %6613 = vtanh.f32 %v707_v43 }
 0x18d   :  { %6615 = vtanh.f32 %v706_v38  ;;  %v6204_v38 = vld [vmem:[%s11556_s1 + $0x1c8] sm:$0xff]  }
 0x18f   :  { %1274 = vadd.xlane.f32.xlu2 %v1273_v40  ;;  %v6201_v40 = vld [vmem:[%s11556_s1 + $0x1b0] sm:$0xff]   ;;  %v7613_v60 = vpop.xlane.xlu2 %1049 }
 0x190   :  { %1271 = vadd.xlane.f32.xlu1 %v1270_v26  ;;  %v5858_v26 = vunpack.c.l.bf16 %v6202_v34  ;;  %v5855_v46 = vunpack.c.h.bf16 %v6201_v40  ;;  %v712_v34 = vadd.f32 %v5859_v16, %v7532_v2 }
 0x191   :  { %1268 = vadd.xlane.f32.xlu0 %v1267_v48  ;;  %v5854_v48 = vunpack.c.l.bf16 %v6201_v40 }
 0x192   :  { %v711_v57 = vadd.f32 %v5858_v26, %v7532_v2  ;;  %v710_v62 = vadd.f32 %v5855_v46, %v7532_v2  ;;  %v7646_v26 = vpop.xlane.xlu1 %1046 }
 0x193   :  { %v709_v3 = vadd.f32 %v5854_v48, %v7532_v2  ;;  %11853 = vst [vmem:[#allocation27_spill] sm:$0xff] %v7646_v26  ;;  %v5867_v2 = vunpack.c.h.bf16 %v6204_v38  ;;  %v5866_v48 = vunpack.c.l.bf16 %v6204_v38 }
 0x194   :  { %6617 = vtanh.f32 %v711_v57 }
 0x195   :  { %6619 = vtanh.f32 %v710_v62  ;;  %v6206_v62 = vld [vmem:[%s11556_s1 + $0x1d8] sm:$0xff]  }
 0x196   :  { %6621 = vtanh.f32 %v709_v3 }
 0x197   :  { %1283 = vadd.xlane.f32.xlu2 %v1282_v18  ;;  %v6612_v18 = vpop.eup %6611  ;;  %v7643_v14 = vpop.xlane.xlu2 %1058 }
 0x198   :  { %1280 = vadd.xlane.f32.xlu1 %v1279_v7  ;;  %v6614_v5 = vpop.eup %6613  ;;  %v1294_v7 = vsel %vm553_vm0, %v962_v49, 0.0  ;;  %v967_v11 = vmul.f32 %v7397_v37, %v6612_v18 }
 0x199   :  { %1277 = vadd.xlane.f32.xlu0 %v1276_v9  ;;  %v6616_v4 = vpop.eup %6615  ;;  %v5863_v9 = vunpack.c.h.bf16 %v6203_v0  ;;  %v966_v15 = vmul.f32 %v7397_v37, %v6614_v5 }
 0x19a   :  { %v965_v21 = vmul.f32 %v7397_v37, %v6616_v4  ;;  %v1309_v24 = vsel %vm553_vm0, %v967_v11, 0.0  ;;  %v6618_v43 = vpop.eup %6617  ;;  %v7660_v4 = vpop.xlane.xlu0 %1106 }
 0x19b   :  { %v714_v22 = vadd.f32 %v5863_v9, %v7625_v8  ;;  %v6620_v40 = vpop.eup %6619  ;;  %v970_v46 = vmul.f32 %v7397_v37, %v6618_v43  ;;  %11854 = vst [vmem:[#allocation28_spill] sm:$0xff] %v7660_v4  ;;  %v5875_v9 = vunpack.c.h.bf16 %v6206_v62  ;;  %v7665_v16 = vpop.xlane.xlu1 %1055 }
 0x19c   :  { %v6622_v44 = vpop.eup %6621  ;;  %v969_v47 = vmul.f32 %v7397_v37, %v6620_v40  ;;  %11855 = vst [vmem:[#allocation29_spill] sm:$0xff] %v7665_v16 }
 0x19d   :  { %6623 = vtanh.f32 %v714_v22  ;;  %v968_v49 = vmul.f32 %v7397_v37, %v6622_v44  ;;  %v1318_v57 = vsel %vm553_vm0, %v970_v46, 0.0 }
 0x19e   :  { %6625 = vtanh.f32 %v713_v30  ;;  %v1315_v18 = vsel %vm553_vm0, %v969_v47, 0.0  ;;  %v720_v30 = vadd.f32 %v5875_v9, %v7625_v8 }
 0x19f   :  { %1292 = vadd.xlane.f32.xlu2 %v1291_v32  ;;  %v6205_v32 = vld [vmem:[%s11556_s1 + $0x1d0] sm:$0xff]   ;;  %6627 = vtanh.f32 %v712_v34  ;;  %v1312_v5 = vsel %vm553_vm0, %v968_v49, 0.0  ;;  %v7662_v11 = vpop.xlane.xlu2 %1067  ;;  %v6208_v34 = vld [vmem:[%s11556_s1 + $0x1e8] sm:$0xff]  }
 0x1a0   :  { %1289 = vadd.xlane.f32.xlu1 %v1288_v36  ;;  %v1306_v36 = vsel %vm553_vm0, %v966_v15, 0.0  ;;  %v5870_v45 = vunpack.c.l.bf16 %v6205_v32  ;;  %v5874_v15 = vunpack.c.l.bf16 %v6206_v62  ;;  %v5871_v22 = vunpack.c.h.bf16 %v6205_v32  ;;  %v6207_v32 = vld [vmem:[%s11556_s1 + $0x1e0] sm:$0xff]  }
 0x1a1   :  { %1286 = vadd.xlane.f32.xlu0 %v1285_v41  ;;  %v1303_v41 = vsel %vm553_vm0, %v965_v21, 0.0 }
 0x1a2   :  { %v717_v52 = vadd.f32 %v5870_v45, %v7625_v8  ;;  %v7682_v49 = vpop.xlane.xlu0 %1115 }
 0x1a3   :  { %v6624_v0 = vpop.eup %6623  ;;  %11856 = vst [vmem:[#allocation30_spill] sm:$0xff] %v7682_v49 }
 0x1a4   :  { %v6626_v3 = vpop.eup %6625  ;;  %6629 = vtanh.f32 %v717_v52  ;;  %v973_v12 = vmul.f32 %v7397_v37, %v6624_v0  ;;  %v7688_v0 = vpop.xlane.xlu1 %1064 }
 0x1a5   :  { %v972_v21 = vmul.f32 %v7397_v37, %v6626_v3  ;;  %11857 = vst [vmem:[#allocation31_spill] sm:$0xff] %v7688_v0 }
 0x1a6   :  { %v1327_v43 = vsel %vm553_vm0, %v973_v12, 0.0 }
 0x1a7   :  { %1301 = vadd.xlane.f32.xlu2 %v1300_v61  ;;  %v716_v61 = vadd.f32 %v5867_v2, %v7625_v8  ;;  %v1324_v40 = vsel %vm553_vm0, %v972_v21, 0.0  ;;  %v5882_v2 = vunpack.c.l.bf16 %v6208_v34 }
 0x1a8   :  { %1298 = vadd.xlane.f32.xlu1 %v1297_v10  ;;  %v715_v10 = vadd.f32 %v5866_v48, %v7625_v8  ;;  %v5879_v48 = vunpack.c.h.bf16 %v6207_v32 }
 0x1a9   :  { %1295 = vadd.xlane.f32.xlu0 %v1294_v7  ;;  %v6628_v7 = vpop.eup %6627  ;;  %6631 = vtanh.f32 %v716_v61  ;;  %v7685_v61 = vpop.xlane.xlu2 %1076 }
 0x1aa   :  { %6633 = vtanh.f32 %v715_v10  ;;  %v6630_v38 = vpop.eup %6629  ;;  %v722_v3 = vadd.f32 %v5879_v48, %v7625_v8 }
 0x1ab   :  { %6635 = vtanh.f32 %v720_v30  ;;  %v976_v47 = vmul.f32 %v7397_v37, %v6630_v38  ;;  %v5883_v38 = vunpack.c.h.bf16 %v6208_v34 }
 0x1ad   :  { %v1336_v10 = vsel %vm553_vm0, %v976_v47, 0.0 }
 0x1af   :  { %1310 = vadd.xlane.f32.xlu2 %v1309_v24  ;;  %v971_v24 = vmul.f32 %v7397_v37, %v6628_v7  ;;  %v6632_v44 = vpop.eup %6631 }
 0x1b0   :  { %1307 = vadd.xlane.f32.xlu1 %v1306_v36  ;;  %v719_v36 = vadd.f32 %v5874_v15, %v7625_v8  ;;  %v6634_v46 = vpop.eup %6633  ;;  %v975_v52 = vmul.f32 %v7397_v37, %v6632_v44 }
 0x1b1   :  { %1304 = vadd.xlane.f32.xlu0 %v1303_v41  ;;  %v718_v41 = vadd.f32 %v5871_v22, %v7625_v8  ;;  %v1321_v45 = vsel %vm553_vm0, %v971_v24, 0.0  ;;  %v974_v62 = vmul.f32 %v7397_v37, %v6634_v46  ;;  %v6636_v7 = vpop.eup %6635 }
 0x1b2   :  { %6637 = vtanh.f32 %v719_v36  ;;  %v1333_v9 = vsel %vm553_vm0, %v975_v52, 0.0  ;;  %v979_v30 = vmul.f32 %v7397_v37, %v6636_v7  ;;  %v7712_v52 = vpop.xlane.xlu1 %1073 }
 0x1b3   :  { %6639 = vtanh.f32 %v718_v41  ;;  %v1330_v21 = vsel %vm553_vm0, %v974_v62, 0.0  ;;  %v11564_v41 = vlaneseq  ;;  %11859 = vst [vmem:[#allocation33_spill] sm:$0xff] %v7712_v52  ;;  %v6210_v62 = vld [vmem:[%s11556_s1 + $0x1f8] sm:$0xff]  }
 0x1b4   :  { %v1345_v46 = vsel %vm553_vm0, %v979_v30, 0.0  ;;  %v5891_v7 = vunpack.c.h.bf16 %v6210_v62 }
 0x1b5   :  { %v7710_v47 = vshrl.u32 %v11564_v41, 7 }
 0x1b7   :  { %1319 = vadd.xlane.f32.xlu2 %v1318_v57  ;;  %v5878_v57 = vunpack.c.l.bf16 %v6207_v32  ;;  %v7702_v32 = vpop.xlane.xlu0 %1124  ;;  %6316 = vset.pattern.permute.xlu0 %v7710_v47  ;;  %v7811_v41 = vadd.s32 80, %v7710_v47 }
 0x1b8   :  { %1316 = vadd.xlane.f32.xlu1 %v1315_v18  ;;  %v723_v18 = vadd.f32 %v5882_v2, %v7625_v8  ;;  %v6638_v15 = vpop.eup %6637  ;;  %11858 = vst [vmem:[#allocation32_spill] sm:$0xff] %v7702_v32  ;;  %6277 = vset.pattern.permute.xlu2 %v7710_v47 }
 0x1b9   :  { %1313 = vadd.xlane.f32.xlu0 %v1312_v5  ;;  %v6209_v5 = vld [vmem:[%s11556_s1 + $0x1f0] sm:$0xff]   ;;  %v721_v12 = vadd.f32 %v5878_v57, %v7625_v8  ;;  %v6640_v22 = vpop.eup %6639  ;;  %v978_v36 = vmul.f32 %v7397_v37, %v6638_v15  ;;  %v724_v57 = vadd.f32 %v5883_v38, %v7625_v8  ;;  %v7732_v38 = vadd.s32 16, %v7710_v47 }
 0x1ba   :  { %6641 = vtanh.f32 %v723_v18  ;;  %v5887_v24 = vunpack.c.h.bf16 %v6209_v5 }
 0x1bb   :  { %6643 = vtanh.f32 %v722_v3  ;;  %v1342_v34 = vsel %vm553_vm0, %v978_v36, 0.0  ;;  %6278 = vset.pattern.permute.xlu1 %v7732_v38 }
 0x1bc   :  { %6645 = vtanh.f32 %v721_v12  ;;  %v726_v44 = vadd.f32 %v5887_v24, %v7625_v8  ;;  %v5890_v12 = vunpack.c.l.bf16 %v6210_v62 }
 0x1be   :  { %6647 = vtanh.f32 %v726_v44  ;;  %v727_v36 = vadd.f32 %v5890_v12, %v7625_v8 }
 0x1bf   :  { %1328 = vadd.xlane.f32.xlu2 %v1327_v43  ;;  %v5886_v43 = vunpack.c.l.bf16 %v6209_v5  ;;  %v7727_v30 = vpop.xlane.xlu0 %1133 }
 0x1c0   :  { %1325 = vadd.xlane.f32.xlu1 %v1324_v40  ;;  %v977_v40 = vmul.f32 %v7397_v37, %v6640_v22  ;;  %v6642_v48 = vpop.eup %6641  ;;  %v728_v22 = vadd.f32 %v5891_v7, %v7625_v8  ;;  %11860 = vst [vmem:[#allocation34_spill] sm:$0xff] %v7727_v30 }
 0x1c1   :  { %1322 = vadd.xlane.f32.xlu0 %v1321_v45  ;;  %v7705_v45 = vpop.xlane.xlu2 %1085  ;;  %v725_v2 = vadd.f32 %v5886_v43, %v7625_v8  ;;  %v6644_v18 = vpop.eup %6643  ;;  %v982_v5 = vmul.f32 %v7397_v37, %v6642_v48 }
 0x1c2   :  { %v6646_v3 = vpop.eup %6645  ;;  %v7737_v48 = vpop.xlane.xlu1 %1082 }
 0x1c3   :  { %6649 = vtanh.f32 %v725_v2  ;;  %v980_v15 = vmul.f32 %v7397_v37, %v6646_v3  ;;  %11861 = vst [vmem:[#allocation35_spill] sm:$0xff] %v7737_v48 }
 0x1c4   :  { %6651 = vtanh.f32 %v724_v57  ;;  %v6648_v24 = vpop.eup %6647 }
 0x1c5   :  { %6653 = vtanh.f32 %v728_v22 }
 0x1c6   :  { %6655 = vtanh.f32 %v727_v36 }
 0x1c7   :  { %1337 = vadd.xlane.f32.xlu2 %v1336_v10  ;;  %v1339_v10 = vsel %vm553_vm0, %v977_v40, 0.0  ;;  %v7746_v7 = vpop.xlane.xlu0 %1142 }
 0x1c8   :  { %1334 = vadd.xlane.f32.xlu1 %v1333_v9  ;;  %v981_v9 = vmul.f32 %v7397_v37, %v6644_v18  ;;  %11862 = vst [vmem:[#allocation36_spill] sm:$0xff] %v7746_v7  ;;  %v7826_v7 = vadd.s32 48, %v7710_v47 }
 0x1c9   :  { %1331 = vadd.xlane.f32.xlu0 %v1330_v21  ;;  %v1354_v21 = vsel %vm553_vm0, %v982_v5, 0.0  ;;  %v6650_v40 = vpop.eup %6649  ;;  %v7734_v44 = vpop.xlane.xlu2 %1094 }
 0x1ca   :  { %v1351_v43 = vsel %vm553_vm0, %v981_v9, 0.0  ;;  %v6652_v2 = vpop.eup %6651  ;;  %v984_v8 = vmul.f32 %v7397_v37, %v6650_v40  ;;  %v7750_v12 = vpop.xlane.xlu1 %1091 }
 0x1cb   :  { %v983_v57 = vmul.f32 %v7397_v37, %v6652_v2  ;;  %11863 = vst [vmem:[#allocation37_spill] sm:$0xff] %v7750_v12 }
 0x1cc   :  { %v1360_v18 = vsel %vm553_vm0, %v984_v8, 0.0 }
 0x1cd   :  { %v1357_v3 = vsel %vm553_vm0, %v983_v57, 0.0 }
 0x1cf   :  { %1346 = vadd.xlane.f32.xlu2 %v1345_v46  ;;  %v1348_v46 = vsel %vm553_vm0, %v980_v15, 0.0 }
 0x1d0   :  { %1343 = vadd.xlane.f32.xlu1 %v1342_v34  ;;  %v985_v34 = vmul.f32 %v7397_v37, %v6648_v24 }
 0x1d1   :  { %1340 = vadd.xlane.f32.xlu0 %v1339_v10  ;;  %v6654_v10 = vpop.eup %6653  ;;  %v7748_v9 = vpop.xlane.xlu2 %1103 }
 0x1d2   :  { %v1363_v62 = vsel %vm553_vm0, %v985_v34, 0.0  ;;  %v6656_v5 = vpop.eup %6655  ;;  %v987_v15 = vmul.f32 %v7397_v37, %v6654_v10  ;;  %v7760_v40 = vpop.xlane.xlu1 %1100 }
 0x1d3   :  { %11865 = vst [vmem:[#allocation39_spill] sm:$0xff] %v7760_v40 }
 0x1d4   :  { %v1369_v22 = vsel %vm553_vm0, %v987_v15, 0.0 }
 0x1d7   :  { %1355 = vadd.xlane.f32.xlu2 %v1354_v21  ;;  %v986_v21 = vmul.f32 %v7397_v37, %v6656_v5  ;;  %v7793_v5 = vadd.s32 40, %v7710_v47 }
 0x1d8   :  { %1352 = vadd.xlane.f32.xlu1 %v1351_v43  ;;  %v7756_v43 = vpop.xlane.xlu0 %1151 }
 0x1d9   :  { %1349 = vadd.xlane.f32.xlu0 %v1348_v46  ;;  %v1366_v24 = vsel %vm553_vm0, %v986_v21, 0.0  ;;  %11864 = vst [vmem:[#allocation38_spill] sm:$0xff] %v7756_v43  ;;  %v7758_v36 = vpop.xlane.xlu2 %1112  ;;  %v7765_v46 = vld [vmem:[%s11558_s3] sm:$0xff]  ;;  %v7821_v43 = vadd.s32 56, %v7710_v47  ;;  %vm11652_vm0 = vcmask 1041409  }
 0x1da   :  { %v7768_v2 = vperm.slane %v7765_v46, 0  ;;  %v7774_v8 = vpop.xlane.xlu1 %1109  ;;  %v7778_v57 = vperm.slane %v7765_v46, 3  ;;  %v8024_v59 = vperm.slane %v7765_v46, 2 }
 0x1db   :  { %11867 = vst [vmem:[#allocation41_spill] sm:$0xff] %v7774_v8  ;;  %v7868_v8 = vperm.slane %v7765_v46, 4 }
 0x1df   :  { %1364 = vadd.xlane.f32.xlu2 %v1363_v62  ;;  %v7781_v62 = vadd.s32 24, %v7710_v47 }
 0x1e0   :  { %1361 = vadd.xlane.f32.xlu1 %v1360_v18  ;;  %v7770_v37 = vpop.xlane.xlu0 %1160 }
 0x1e1   :  { %1358 = vadd.xlane.f32.xlu0 %v1357_v3  ;;  %11866 = vst [vmem:[#allocation40_spill] sm:$0xff] %v7770_v37  ;;  %v7772_v34 = vpop.xlane.xlu2 %1121 }
 0x1e2   :  { %v7789_v3 = vpop.xlane.xlu1 %1118 }
 0x1e3   :  { %11869 = vst [vmem:[#allocation43_spill] sm:$0xff] %v7789_v3 }
 0x1e8   :  { %1370 = vadd.xlane.f32.xlu1 %v1369_v22  ;;  %v7784_v18 = vpop.xlane.xlu0 %1169 }
 0x1e9   :  { %1367 = vadd.xlane.f32.xlu0 %v1366_v24  ;;  %11868 = vst [vmem:[#allocation42_spill] sm:$0xff] %v7784_v18  ;;  %v7787_v10 = vpop.xlane.xlu2 %1130  ;;  %v7805_v24 = vadd.s32 32, %v7710_v47 }
 0x1ea   :  { %v7802_v22 = vpop.xlane.xlu1 %1127 }
 0x1eb   :  { %11871 = vst [vmem:[#allocation45_spill] sm:$0xff] %v7802_v22 }
 0x1f0   :  { %v7797_v15 = vpop.xlane.xlu0 %1178 }
 0x1f1   :  { %11870 = vst [vmem:[#allocation44_spill] sm:$0xff] %v7797_v15  ;;  %v7800_v21 = vpop.xlane.xlu2 %1139 }
 0x1f2   :  { %v7817_v37 = vpop.xlane.xlu1 %1136 }
 0x1f3   :  { %11873 = vst [vmem:[#allocation47_spill] sm:$0xff] %v7817_v37  ;;  %v7838_v37 = vadd.s32 120, %v7710_v47 }
 0x1f7   :  { %1378 = vperm.xlu2 %6277, %v7768_v2  }
 0x1f8   :  { %v7813_v18 = vpop.xlane.xlu0 %1187 }
 0x1f9   :  { %11872 = vst [vmem:[#allocation46_spill] sm:$0xff] %v7813_v18  ;;  %v7815_v15 = vpop.xlane.xlu2 %1148 }
 0x1fa   :  { %v7833_v32 = vpop.xlane.xlu1 %1145 }
 0x1fb   :  { %11875 = vst [vmem:[#allocation49_spill] sm:$0xff] %v7833_v32  ;;  %v7850_v32 = vadd.s32 72, %v7710_v47 }
 0x1fd   :  { %1669 = vperm.xlu0 %6316, %v7778_v57  }
 0x1ff   :  { %6279 = vset.pattern.permute.xlu2 %v7781_v62 }
 0x200   :  { %v7828_v30 = vpop.xlane.xlu0 %1196 }
 0x201   :  { %1390 = vperm.xlu1 %6278, %v7768_v2   ;;  %11874 = vst [vmem:[#allocation48_spill] sm:$0xff] %v7828_v30  ;;  %v7831_v18 = vpop.xlane.xlu2 %1157 }
 0x202   :  { %v7846_v49 = vpop.xlane.xlu1 %1154 }
 0x203   :  { %11877 = vst [vmem:[#allocation51_spill] sm:$0xff] %v7846_v49  ;;  %v7863_v49 = vadd.s32 96, %v7710_v47 }
 0x205   :  { %6321 = vset.pattern.permute.xlu0 %v7793_v5 }
 0x207   :  { %1396 = vperm.xlu2 %6279, %v7768_v2  }
 0x208   :  { %v7841_v22 = vpop.xlane.xlu0 %1205 }
 0x209   :  { %6281 = vset.pattern.permute.xlu1 %v7793_v5  ;;  %11876 = vst [vmem:[#allocation50_spill] sm:$0xff] %v7841_v22  ;;  %v7844_v30 = vpop.xlane.xlu2 %1166 }
 0x20a   :  { %v7859_v4 = vpop.xlane.xlu1 %1163 }
 0x20b   :  { %11879 = vst [vmem:[#allocation53_spill] sm:$0xff] %v7859_v4 }
 0x20d   :  { %1699 = vperm.xlu0 %6321, %v7778_v57  }
 0x20f   :  { %6280 = vset.pattern.permute.xlu2 %v7805_v24 }
 0x210   :  { %v7854_v3 = vpop.xlane.xlu0 %1214 }
 0x211   :  { %1408 = vperm.xlu1 %6281, %v7768_v2   ;;  %11878 = vst [vmem:[#allocation52_spill] sm:$0xff] %v7854_v3  ;;  %v7857_v22 = vpop.xlane.xlu2 %1175  ;;  %v7873_v3 = vadd.s32 88, %v7710_v47 }
 0x212   :  { %v7877_v4 = vpop.xlane.xlu1 %1172 }
 0x213   :  { %11881 = vst [vmem:[#allocation55_spill] sm:$0xff] %v7877_v4  ;;  %v7892_v4 = vadd.s32 112, %v7710_v47 }
 0x215   :  { %6326 = vset.pattern.permute.xlu0 %v7811_v41 }
 0x217   :  { %1402 = vperm.xlu2 %6280, %v7768_v2  }
 0x218   :  { %v7870_v35 = vpop.xlane.xlu0 %1223 }
 0x219   :  { %6283 = vset.pattern.permute.xlu1 %v7821_v43  ;;  %11880 = vst [vmem:[#allocation54_spill] sm:$0xff] %v7870_v35  ;;  %v7875_v40 = vpop.xlane.xlu2 %1184 }
 0x21a   :  { %v7887_v35 = vpop.xlane.xlu1 %1181 }
 0x21b   :  { %11883 = vst [vmem:[#allocation57_spill] sm:$0xff] %v7887_v35  ;;  %v7905_v35 = vadd.s32 8, %v7710_v47 }
 0x21d   :  { %1729 = vperm.xlu0 %6326, %v7778_v57  }
 0x21f   :  { %6282 = vset.pattern.permute.xlu2 %v7826_v7 }
 0x220   :  { %v7882_v56 = vpop.xlane.xlu0 %1232 }
 0x221   :  { %1420 = vperm.xlu1 %6283, %v7768_v2   ;;  %11882 = vst [vmem:[#allocation56_spill] sm:$0xff] %v7882_v56  ;;  %v7885_v12 = vpop.xlane.xlu2 %1193 }
 0x222   :  { %v7900_v48 = vpop.xlane.xlu1 %1190 }
 0x223   :  { %11885 = vst [vmem:[#allocation59_spill] sm:$0xff] %v7900_v48  ;;  %v7917_v48 = vperm.slane %v7765_v46, 1 }
 0x225   :  { %6331 = vset.pattern.permute.xlu0 %v7838_v37 }
 0x227   :  { %1414 = vperm.xlu2 %6282, %v7768_v2  }
 0x228   :  { %v7895_v17 = vpop.xlane.xlu0 %1241 }
 0x229   :  { %6285 = vset.pattern.permute.xlu1 %v7811_v41  ;;  %11884 = vst [vmem:[#allocation58_spill] sm:$0xff] %v7895_v17  ;;  %v7898_v56 = vpop.xlane.xlu2 %1202 }
 0x22a   :  { %v7913_v52 = vpop.xlane.xlu1 %1199 }
 0x22b   :  { %11887 = vst [vmem:[#allocation61_spill] sm:$0xff] %v7913_v52  ;;  %v7931_v52 = vperm.slane %v7765_v46, 5 }
 0x22d   :  { %1759 = vperm.xlu0 %6331, %v7778_v57  }
 0x22f   :  { %6284 = vset.pattern.permute.xlu2 %v7850_v32 }
 0x230   :  { %v7908_v50 = vpop.xlane.xlu0 %1250 }
 0x231   :  { %1438 = vperm.xlu1 %6285, %v7768_v2   ;;  %11886 = vst [vmem:[#allocation60_spill] sm:$0xff] %v7908_v50  ;;  %v7911_v17 = vpop.xlane.xlu2 %1211 }
 0x232   :  { %v7925_v50 = vpop.xlane.xlu1 %1208 }
 0x233   :  { %11889 = vst [vmem:[#allocation63_spill] sm:$0xff] %v7925_v50  ;;  %v7943_v50 = vadd.s32 64, %v7710_v47 }
 0x235   :  { %6336 = vset.pattern.permute.xlu0 %v7805_v24 }
 0x237   :  { %1432 = vperm.xlu2 %6284, %v7768_v2  }
 0x238   :  { %v7921_v19 = vpop.xlane.xlu0 %1259 }
 0x239   :  { %6287 = vset.pattern.permute.xlu1 %v7863_v49  ;;  %11888 = vst [vmem:[#allocation62_spill] sm:$0xff] %v7921_v19  ;;  %v7923_v0 = vpop.xlane.xlu2 %1220 }
 0x23a   :  { %v7938_v19 = vpop.xlane.xlu1 %1217 }
 0x23b   :  { %11891 = vst [vmem:[#allocation65_spill] sm:$0xff] %v7938_v19 }
 0x23d   :  { %1790 = vperm.xlu0 %6336, %v7868_v8  }
 0x23f   :  { %6286 = vset.pattern.permute.xlu2 %v7873_v3 }
 0x240   :  { %v7933_v51 = vpop.xlane.xlu0 %1268 }
 0x241   :  { %1450 = vperm.xlu1 %6287, %v7768_v2   ;;  %11890 = vst [vmem:[#allocation64_spill] sm:$0xff] %v7933_v51  ;;  %v7936_v16 = vpop.xlane.xlu2 %1229 }
 0x242   :  { %v7951_v26 = vpop.xlane.xlu1 %1226 }
 0x243   :  { %11893 = vst [vmem:[#allocation67_spill] sm:$0xff] %v7951_v26 }
 0x245   :  { %6341 = vset.pattern.permute.xlu0 %v7850_v32 }
 0x247   :  { %1444 = vperm.xlu2 %6286, %v7768_v2  }
 0x248   :  { %v7946_v25 = vpop.xlane.xlu0 %1277 }
 0x249   :  { %6289 = vset.pattern.permute.xlu1 %v7838_v37  ;;  %11892 = vst [vmem:[#allocation66_spill] sm:$0xff] %v7946_v25  ;;  %v7949_v51 = vpop.xlane.xlu2 %1238  ;;  %v7967_v25 = vadd.s32 104, %v7710_v47 }
 0x24a   :  { %v7961_v1 = vpop.xlane.xlu1 %1235 }
 0x24b   :  { %11895 = vst [vmem:[#allocation69_spill] sm:$0xff] %v7961_v1 }
 0x24d   :  { %1820 = vperm.xlu0 %6341, %v7868_v8  }
 0x24f   :  { %6288 = vset.pattern.permute.xlu2 %v7892_v4 }
 0x250   :  { %v7956_v19 = vpop.xlane.xlu0 %1286 }
 0x251   :  { %1468 = vperm.xlu1 %6289, %v7768_v2   ;;  %11894 = vst [vmem:[#allocation68_spill] sm:$0xff] %v7956_v19  ;;  %v7959_v63 = vpop.xlane.xlu2 %1247 }
 0x252   :  { %v7973_v19 = vpop.xlane.xlu1 %1244 }
 0x253   :  { %11897 = vst [vmem:[#allocation71_spill] sm:$0xff] %v7973_v19 }
 0x255   :  { %6346 = vset.pattern.permute.xlu0 %v7892_v4 }
 0x257   :  { %1462 = vperm.xlu2 %6288, %v7768_v2  }
 0x258   :  { %v7969_v26 = vpop.xlane.xlu0 %1295 }
 0x259   :  { %6291 = vset.pattern.permute.xlu1 %v7905_v35  ;;  %11896 = vst [vmem:[#allocation70_spill] sm:$0xff] %v7969_v26  ;;  %v7971_v39 = vpop.xlane.xlu2 %1256 }
 0x25a   :  { %v7983_v13 = vpop.xlane.xlu1 %1253 }
 0x25b   :  { %11900 = vst [vmem:[#allocation74_spill] sm:$0xff] %v7983_v13 }
 0x25d   :  { %1850 = vperm.xlu0 %6346, %v7868_v8  }
 0x25f   :  { %6290 = vset.pattern.permute.xlu2 %v7710_v47 }
 0x260   :  { %v7978_v1 = vpop.xlane.xlu0 %1304 }
 0x261   :  { %1481 = vperm.xlu1 %6291, %v7917_v48   ;;  %11898 = vst [vmem:[#allocation72_spill] sm:$0xff] %v7978_v1  ;;  %v7981_v27 = vpop.xlane.xlu2 %1265 }
 0x262   :  { %11899 = vst [vmem:[#allocation73_spill] sm:$0xff] %v7981_v27  ;;  %v7993_v58 = vpop.xlane.xlu1 %1262 }
 0x263   :  { %11903 = vst [vmem:[#allocation77_spill] sm:$0xff] %v7993_v58 }
 0x265   :  { %6351 = vset.pattern.permute.xlu0 %v7781_v62 }
 0x267   :  { %1475 = vperm.xlu2 %6290, %v7917_v48  }
 0x268   :  { %v7988_v26 = vpop.xlane.xlu0 %1313 }
 0x269   :  { %6293 = vset.pattern.permute.xlu1 %v7805_v24  ;;  %11901 = vst [vmem:[#allocation75_spill] sm:$0xff] %v7988_v26  ;;  %v7991_v19 = vpop.xlane.xlu2 %1274  ;;  %v8009_v26 = vperm.slane %v7765_v46, 6 }
 0x26a   :  { %11902 = vst [vmem:[#allocation76_spill] sm:$0xff] %v7991_v19  ;;  %v8003_v54 = vpop.xlane.xlu1 %1271 }
 0x26b   :  { %11906 = vst [vmem:[#allocation80_spill] sm:$0xff] %v8003_v54 }
 0x26d   :  { %1881 = vperm.xlu0 %6351, %v7931_v52  }
 0x26f   :  { %6292 = vset.pattern.permute.xlu2 %v7781_v62 }
 0x270   :  { %v7998_v1 = vpop.xlane.xlu0 %1322 }
 0x271   :  { %1499 = vperm.xlu1 %6293, %v7917_v48   ;;  %11904 = vst [vmem:[#allocation78_spill] sm:$0xff] %v7998_v1  ;;  %v8001_v13 = vpop.xlane.xlu2 %1283 }
 0x272   :  { %11905 = vst [vmem:[#allocation79_spill] sm:$0xff] %v8001_v13  ;;  %v8015_v1 = vpop.xlane.xlu1 %1280 }
 0x273   :  { %11909 = vst [vmem:[#allocation83_spill] sm:$0xff] %v8015_v1 }
 0x275   :  { %6352 = vset.pattern.permute.xlu0 %v7943_v50 }
 0x277   :  { %1493 = vperm.xlu2 %6292, %v7917_v48  }
 0x278   :  { %v8011_v58 = vpop.xlane.xlu0 %1331 }
 0x279   :  { %6295 = vset.pattern.permute.xlu1 %v7826_v7  ;;  %11907 = vst [vmem:[#allocation81_spill] sm:$0xff] %v8011_v58  ;;  %v8013_v28 = vpop.xlane.xlu2 %1292 }
 0x27a   :  { %11908 = vst [vmem:[#allocation82_spill] sm:$0xff] %v8013_v28  ;;  %v8028_v58 = vpop.xlane.xlu1 %1289 }
 0x27b   :  { %11912 = vst [vmem:[#allocation86_spill] sm:$0xff] %v8028_v58 }
 0x27d   :  { %1426 = vperm.xlu0 %6352, %v7768_v2  }
 0x27f   :  { %6294 = vset.pattern.permute.xlu2 %v7793_v5 }
 0x280   :  { %v8020_v54 = vpop.xlane.xlu0 %1340 }
 0x281   :  { %1511 = vperm.xlu1 %6295, %v7917_v48   ;;  %11910 = vst [vmem:[#allocation84_spill] sm:$0xff] %v8020_v54  ;;  %v8026_v20 = vpop.xlane.xlu2 %1301 }
 0x282   :  { %11911 = vst [vmem:[#allocation85_spill] sm:$0xff] %v8026_v20  ;;  %v8038_v33 = vpop.xlane.xlu1 %1298 }
 0x283   :  { %11915 = vst [vmem:[#allocation89_spill] sm:$0xff] %v8038_v33 }
 0x285   :  { %1911 = vperm.xlu0 %6352, %v7931_v52  }
 0x287   :  { %1505 = vperm.xlu2 %6294, %v7917_v48  }
 0x288   :  { %v8033_v1 = vpop.xlane.xlu0 %1349 }
 0x289   :  { %6297 = vset.pattern.permute.xlu1 %v7850_v32  ;;  %11913 = vst [vmem:[#allocation87_spill] sm:$0xff] %v8033_v1  ;;  %v8036_v54 = vpop.xlane.xlu2 %1310 }
 0x28a   :  { %11914 = vst [vmem:[#allocation88_spill] sm:$0xff] %v8036_v54  ;;  %v8048_v20 = vpop.xlane.xlu1 %1307 }
 0x28b   :  { %11918 = vst [vmem:[#allocation92_spill] sm:$0xff] %v8048_v20 }
 0x28d   :  { %6357 = vset.pattern.permute.xlu0 %v7967_v25 }
 0x28f   :  { %6296 = vset.pattern.permute.xlu2 %v7943_v50 }
 0x290   :  { %v8043_v58 = vpop.xlane.xlu0 %1358 }
 0x291   :  { %1529 = vperm.xlu1 %6297, %v7917_v48   ;;  %11916 = vst [vmem:[#allocation90_spill] sm:$0xff] %v8043_v58  ;;  %v8046_v31 = vpop.xlane.xlu2 %1319 }
 0x292   :  { %11917 = vst [vmem:[#allocation91_spill] sm:$0xff] %v8046_v31  ;;  %v8057_v54 = vpop.xlane.xlu1 %1316 }
 0x293   :  { %11921 = vst [vmem:[#allocation95_spill] sm:$0xff] %v8057_v54 }
 0x295   :  { %1456 = vperm.xlu0 %6357, %v7768_v2  }
 0x297   :  { %1523 = vperm.xlu2 %6296, %v7917_v48  }
 0x298   :  { %v8053_v1 = vpop.xlane.xlu0 %1367 }
 0x299   :  { %6299 = vset.pattern.permute.xlu1 %v7873_v3  ;;  %11919 = vst [vmem:[#allocation93_spill] sm:$0xff] %v8053_v1  ;;  %v8055_v33 = vpop.xlane.xlu2 %1328 }
 0x29a   :  { %11920 = vst [vmem:[#allocation94_spill] sm:$0xff] %v8055_v33  ;;  %v8067_v31 = vpop.xlane.xlu1 %1325 }
 0x29b   :  { %11924 = vst [vmem:[#allocation98_spill] sm:$0xff] %v8067_v31 }
 0x29d   :  { %1941 = vperm.xlu0 %6357, %v7931_v52  }
 0x29f   :  { %6298 = vset.pattern.permute.xlu2 %v7811_v41 }
 0x2a0   :  { %v8062_v58 = vpop.permute.xlu0 %1669 }
 0x2a1   :  { %1541 = vperm.xlu1 %6299, %v7917_v48   ;;  %11922 = vst [vmem:[#allocation96_spill] sm:$0xff] %v8062_v58  ;;  %v8065_v20 = vpop.xlane.xlu2 %1337 }
 0x2a2   :  { %11923 = vst [vmem:[#allocation97_spill] sm:$0xff] %v8065_v20  ;;  %v8077_v54 = vpop.xlane.xlu1 %1334 }
 0x2a3   :  { %11926 = vst [vmem:[#allocation100_spill] sm:$0xff] %v8077_v54  ;;  %v8095_v54 = vperm.slane %v7765_v46, 7 }
 0x2a5   :  { %6362 = vset.pattern.permute.xlu0 %v7732_v38 }
 0x2a7   :  { %1535 = vperm.xlu2 %6298, %v7917_v48  }
 0x2a8   :  { %v8071_v1 = vpop.permute.xlu0 %1699 }
 0x2a9   :  { %6301 = vset.pattern.permute.xlu1 %v7892_v4 }
 0x2aa   :  { %v8087_v20 = vpop.xlane.xlu1 %1343 }
 0x2ab   :  { %11929 = vst [vmem:[#allocation103_spill] sm:$0xff] %v8087_v20 }
 0x2ad   :  { %1487 = vperm.xlu0 %6362, %v7917_v48  }
 0x2af   :  { %6300 = vset.pattern.permute.xlu2 %v7967_v25 }
 0x2b0   :  { %v8080_v58 = vpop.permute.xlu0 %1729 }
 0x2b1   :  { %1559 = vperm.xlu1 %6301, %v7917_v48   ;;  %11927 = vst [vmem:[#allocation101_spill] sm:$0xff] %v8080_v58 }
 0x2b5   :  { %1972 = vperm.xlu0 %6362, %v8009_v26  }
 0x2b7   :  { %1553 = vperm.xlu2 %6300, %v7917_v48  }
 0x2b8   :  { %v8089_v33 = vpop.permute.xlu0 %1759 }
 0x2b9   :  { %6303 = vset.pattern.permute.xlu1 %v7710_v47  ;;  %11930 = vst [vmem:[#allocation104_spill] sm:$0xff] %v8089_v33 }
 0x2bd   :  { %6367 = vset.pattern.permute.xlu0 %v7821_v43 }
 0x2bf   :  { %6302 = vset.pattern.permute.xlu2 %v7838_v37 }
 0x2c1   :  { %1572 = vperm.xlu1 %6303, %v8024_v59  }
 0x2c5   :  { %1517 = vperm.xlu0 %6367, %v7917_v48  }
 0x2c7   :  { %1565 = vperm.xlu2 %6302, %v7917_v48  }
 0x2c9   :  { %6305 = vset.pattern.permute.xlu1 %v7781_v62 }
 0x2cd   :  { %2002 = vperm.xlu0 %6367, %v8009_v26  }
 0x2cf   :  { %6304 = vset.pattern.permute.xlu2 %v7732_v38 }
 0x2d1   :  { %1590 = vperm.xlu1 %6305, %v8024_v59  }
 0x2d5   :  { %6372 = vset.pattern.permute.xlu0 %v7863_v49 }
 0x2d7   :  { %1584 = vperm.xlu2 %6304, %v8024_v59  }
 0x2d9   :  { %6307 = vset.pattern.permute.xlu1 %v7793_v5 }
 0x2dd   :  { %1547 = vperm.xlu0 %6372, %v7917_v48   ;;  %v8075_v48 = vpop.xlane.xlu2 %1346 }
 0x2de   :  { %11925 = vst [vmem:[#allocation99_spill] sm:$0xff] %v8075_v48  ;;  %v8101_v48 = vpop.xlane.xlu1 %1352 }
 0x2df   :  { %6306 = vset.pattern.permute.xlu2 %v7805_v24  ;;  %11932 = vst [vmem:[#allocation106_spill] sm:$0xff] %v8101_v48 }
 0x2e1   :  { %1602 = vperm.xlu1 %6307, %v8024_v59  }
 0x2e5   :  { %2032 = vperm.xlu0 %6372, %v8009_v26   ;;  %v8085_v31 = vpop.xlane.xlu2 %1355 }
 0x2e6   :  { %11928 = vst [vmem:[#allocation102_spill] sm:$0xff] %v8085_v31  ;;  %v8109_v31 = vpop.xlane.xlu1 %1361 }
 0x2e7   :  { %1596 = vperm.xlu2 %6306, %v8024_v59   ;;  %11934 = vst [vmem:[#allocation108_spill] sm:$0xff] %v8109_v31 }
 0x2e9   :  { %6309 = vset.pattern.permute.xlu1 %v7943_v50 }
 0x2ed   :  { %6377 = vset.pattern.permute.xlu0 %v7905_v35  ;;  %v8099_v58 = vpop.xlane.xlu2 %1364 }
 0x2ee   :  { %11931 = vst [vmem:[#allocation105_spill] sm:$0xff] %v8099_v58  ;;  %v8119_v58 = vpop.xlane.xlu1 %1370 }
 0x2ef   :  { %6308 = vset.pattern.permute.xlu2 %v7821_v43  ;;  %11937 = vst [vmem:[#allocation111_spill] sm:$0xff] %v8119_v58 }
 0x2f1   :  { %1620 = vperm.xlu1 %6309, %v8024_v59  }
 0x2f5   :  { %1384 = vperm.xlu0 %6377, %v7768_v2   ;;  %v8097_v2 = vpop.permute.xlu0 %1790  ;;  %v1379_v33 = vpop.permute.xlu2 %1378 }
 0x2f6   :  { %v8128_v28 = vpop.permute.xlu1 %1390 }
 0x2f7   :  { %1614 = vperm.xlu2 %6308, %v8024_v59   ;;  %11939 = vst [vmem:[#allocation113_spill] sm:$0xff] %v8128_v28 }
 0x2f9   :  { %6311 = vset.pattern.permute.xlu1 %v7811_v41 }
 0x2fd   :  { %1578 = vperm.xlu0 %6377, %v8024_v59   ;;  %v8106_v20 = vpop.permute.xlu0 %1820  ;;  %v8117_v48 = vpop.permute.xlu2 %1396 }
 0x2fe   :  { %11933 = vst [vmem:[#allocation107_spill] sm:$0xff] %v8106_v20 }
 0x2ff   :  { %6310 = vset.pattern.permute.xlu2 %v7850_v32  ;;  %11936 = vst [vmem:[#allocation110_spill] sm:$0xff] %v8117_v48  ;;  %v1409_v48 = vpop.permute.xlu1 %1408 }
 0x301   :  { %1632 = vperm.xlu1 %6311, %v8024_v59  }
 0x305   :  { %2063 = vperm.xlu0 %6377, %v8095_v54   ;;  %v8113_v46 = vpop.permute.xlu0 %1850  ;;  %v8126_v31 = vpop.permute.xlu2 %1402 }
 0x306   :  { %11935 = vst [vmem:[#allocation109_spill] sm:$0xff] %v8113_v46 }
 0x307   :  { %1626 = vperm.xlu2 %6310, %v8024_v59   ;;  %11938 = vst [vmem:[#allocation112_spill] sm:$0xff] %v8126_v31  ;;  %v8142_v28 = vpop.permute.xlu1 %1420 }
 0x308   :  { %11943 = vst [vmem:[#allocation117_spill] sm:$0xff] %v8142_v28 }
 0x309   :  { %6313 = vset.pattern.permute.xlu1 %v7967_v25 }
 0x30d   :  { %6382 = vset.pattern.permute.xlu0 %v7826_v7  ;;  %v8122_v20 = vpop.permute.xlu0 %1881  ;;  %v8133_v58 = vpop.permute.xlu2 %1414 }
 0x30e   :  { %11940 = vst [vmem:[#allocation114_spill] sm:$0xff] %v8133_v58 }
 0x30f   :  { %6312 = vset.pattern.permute.xlu2 %v7863_v49  ;;  %v8149_v27 = vpop.permute.xlu1 %1438 }
 0x310   :  { %11945 = vst [vmem:[#allocation119_spill] sm:$0xff] %v8149_v27  ;;  %v8164_v27 = vadd.f32 %v1409_v48, %v7496_v29 }
 0x311   :  { %1650 = vperm.xlu1 %6313, %v8024_v59  }
 0x312   :  { %11948 = vst [vmem:[#allocation122_spill] sm:$0xff] %v8164_v27 }
 0x315   :  { %1608 = vperm.xlu0 %6382, %v8024_v59   ;;  %v1427_v46 = vpop.permute.xlu0 %1426  ;;  %v8140_v31 = vpop.permute.xlu2 %1432 }
 0x316   :  { %11942 = vst [vmem:[#allocation116_spill] sm:$0xff] %v8140_v31 }
 0x317   :  { %1644 = vperm.xlu2 %6312, %v8024_v59   ;;  %v8160_v28 = vpop.permute.xlu1 %1450 }
 0x319   :  { %6315 = vset.pattern.permute.xlu1 %v7838_v37 }
 0x31d   :  { %2093 = vperm.xlu0 %6382, %v8095_v54   ;;  %v8136_v13 = vpop.permute.xlu0 %1911  ;;  %v1445_v58 = vpop.permute.xlu2 %1444 }
 0x31e   :  { %11941 = vst [vmem:[#allocation115_spill] sm:$0xff] %v8136_v13  ;;  %v11565_v13 = vmov 0  }
 0x31f   :  { %6314 = vset.pattern.permute.xlu2 %v7892_v4 }
 0x321   :  { %1662 = vperm.xlu1 %6315, %v8024_v59  }
 0x325   :  { %6387 = vset.pattern.permute.xlu0 %v7873_v3  ;;  %v8145_v19 = vpop.permute.xlu0 %1456 }
 0x326   :  { %11944 = vst [vmem:[#allocation118_spill] sm:$0xff] %v8145_v19  ;;  %v1463_v19 = vpop.permute.xlu2 %1462 }
 0x327   :  { %1656 = vperm.xlu2 %6314, %v8024_v59  }
 0x329   :  { %6318 = vset.pattern.permute.xlu1 %v7732_v38 }
 0x32d   :  { %1638 = vperm.xlu0 %6387, %v8024_v59   ;;  %v8153_v59 = vadd.f32 %v1379_v33, %v7371_v6  ;;  %v8157_v31 = vpop.permute.xlu0 %1941 }
 0x32e   :  { %11947 = vst [vmem:[#allocation121_spill] sm:$0xff] %v8157_v31  ;;  %v8170_v33 = vpop.permute.xlu2 %1475  ;;  %v8186_v31 = vadd.f32 %v1445_v58, %v7547_v42 }
 0x32f   :  { %6317 = vset.pattern.permute.xlu2 %v7905_v35  ;;  %11946 = vst [vmem:[#allocation120_spill] sm:$0xff] %v8153_v59 }
 0x330   :  { %11952 = vst [vmem:[#allocation126_spill] sm:$0xff] %v8186_v31 }
 0x331   :  { %1681 = vperm.xlu1 %6318, %v7778_v57  }
 0x335   :  { %2123 = vperm.xlu0 %6387, %v8095_v54   ;;  %v8167_v6 = vpop.permute.xlu0 %1487 }
 0x336   :  { %11949 = vst [vmem:[#allocation123_spill] sm:$0xff] %v8167_v6  ;;  %v8180_v29 = vpop.permute.xlu2 %1493  ;;  %v8194_v6 = vadd.f32 %v1463_v19, %v7569_v55 }
 0x337   :  { %1675 = vperm.xlu2 %6317, %v7778_v57   ;;  %11951 = vst [vmem:[#allocation125_spill] sm:$0xff] %v8180_v29 }
 0x338   :  { %11953 = vst [vmem:[#allocation127_spill] sm:$0xff] %v8194_v6 }
 0x339   :  { %6320 = vset.pattern.permute.xlu1 %v7805_v24 }
 0x33d   :  { %6396 = vset.pattern.permute.xlu0 %v11565_v13  ;;  %v8172_v13 = vpop.permute.xlu1 %1468 }
 0x33e   :  { %2534 = vperm.xlu0 %6396, %v8153_v59   ;;  %v8176_v59 = vadd.f32 %v1427_v46, %v7517_v53  ;;  %v8190_v53 = vpop.permute.xlu2 %1505 }
 0x33f   :  { %6319 = vset.pattern.permute.xlu2 %v7781_v62 }
 0x340   :  { %11950 = vst [vmem:[#allocation124_spill] sm:$0xff] %v8176_v59 }
 0x341   :  { %1693 = vperm.xlu1 %6320, %v7778_v57  }
 0x345   :  { %v1482_v48 = vpop.permute.xlu1 %1481 }
 0x346   :  { %2549 = vperm.xlu0 %6396, %v8164_v27   ;;  %v8182_v27 = vpop.permute.xlu0 %1972  ;;  %v8198_v29 = vpop.permute.xlu2 %1523 }
 0x347   :  { %1687 = vperm.xlu2 %6319, %v7778_v57   ;;  %11954 = vst [vmem:[#allocation128_spill] sm:$0xff] %v8198_v29 }
 0x349   :  { %6323 = vset.pattern.permute.xlu1 %v7821_v43 }
 0x34d   :  { %v1500_v46 = vpop.permute.xlu1 %1499 }
 0x34e   :  { %2558 = vperm.xlu0 %6396, %v8176_v59   ;;  %v1518_v59 = vpop.permute.xlu0 %1517  ;;  %v1536_v19 = vpop.permute.xlu2 %1535  ;;  %v8216_v29 = vadd.f32 %v1500_v46, %v7613_v60 }
 0x34f   :  { %6322 = vset.pattern.permute.xlu2 %v7826_v7 }
 0x350   :  { %11957 = vst [vmem:[#allocation131_spill] sm:$0xff] %v8216_v29 }
 0x351   :  { %1711 = vperm.xlu1 %6323, %v7778_v57  }
 0x355   :  { %v8200_v42 = vpop.permute.xlu1 %1511 }
 0x356   :  { %2567 = vperm.xlu0 %6396, %v8186_v31   ;;  %v8203_v58 = vpop.permute.xlu0 %2002  ;;  %v8206_v31 = vadd.f32 %v1482_v48, %v7589_v23  ;;  %v1554_v23 = vpop.permute.xlu2 %1553 }
 0x357   :  { %1705 = vperm.xlu2 %6322, %v7778_v57   ;;  %11955 = vst [vmem:[#allocation129_spill] sm:$0xff] %v8203_v58 }
 0x358   :  { %11956 = vst [vmem:[#allocation130_spill] sm:$0xff] %v8206_v31 }
 0x359   :  { %6325 = vset.pattern.permute.xlu1 %v7850_v32 }
 0x35d   :  { %v8210_v55 = vpop.permute.xlu1 %1529 }
 0x35e   :  { %2576 = vperm.xlu0 %6396, %v8194_v6   ;;  %v8213_v6 = vpop.permute.xlu0 %1547  ;;  %v8230_v60 = vpop.permute.xlu2 %1565 }
 0x35f   :  { %6324 = vset.pattern.permute.xlu2 %v7943_v50 }
 0x361   :  { %1723 = vperm.xlu1 %6325, %v7778_v57  }
 0x365   :  { %v8220_v48 = vpop.permute.xlu1 %1541 }
 0x366   :  { %2585 = vperm.xlu0 %6396, %v8206_v31   ;;  %11958 = vst [vmem:[#allocation132_spill] sm:$0xff] %v8220_v48  ;;  %v8224_v31 = vadd.f32 %v1518_v59, %v7643_v14  ;;  %v8226_v58 = vpop.permute.xlu0 %2032  ;;  %v8242_v14 = vpop.permute.xlu2 %1584 }
 0x367   :  { %1717 = vperm.xlu2 %6324, %v7778_v57   ;;  %11960 = vst [vmem:[#allocation134_spill] sm:$0xff] %v8226_v58 }
 0x368   :  { %11959 = vst [vmem:[#allocation133_spill] sm:$0xff] %v8224_v31 }
 0x369   :  { %6328 = vset.pattern.permute.xlu1 %v7863_v49 }
 0x36d   :  { %v8232_v46 = vpop.permute.xlu1 %1559 }
 0x36e   :  { %2594 = vperm.xlu0 %6396, %v8216_v29   ;;  %v8236_v29 = vadd.f32 %v1536_v19, %v7662_v11  ;;  %v8238_v48 = vpop.permute.xlu0 %1384  ;;  %v8252_v11 = vpop.permute.xlu2 %1596 }
 0x36f   :  { %6327 = vset.pattern.permute.xlu2 %v7873_v3  ;;  %11963 = vst [vmem:[#allocation137_spill] sm:$0xff] %v8252_v11 }
 0x370   :  { %11961 = vst [vmem:[#allocation135_spill] sm:$0xff] %v8236_v29 }
 0x371   :  { %1741 = vperm.xlu1 %6328, %v7778_v57  }
 0x375   :  { %v1573_v59 = vpop.permute.xlu1 %1572 }
 0x376   :  { %2603 = vperm.xlu0 %6396, %v8224_v31   ;;  %v8246_v31 = vadd.f32 %v1554_v23, %v7685_v61  ;;  %v8249_v58 = vpop.permute.xlu0 %1578  ;;  %v8260_v61 = vpop.permute.xlu2 %1614 }
 0x377   :  { %1735 = vperm.xlu2 %6327, %v7778_v57   ;;  %11965 = vst [vmem:[#allocation139_spill] sm:$0xff] %v8260_v61 }
 0x378   :  { %11962 = vst [vmem:[#allocation136_spill] sm:$0xff] %v8246_v31 }
 0x379   :  { %6330 = vset.pattern.permute.xlu1 %v7892_v4 }
 0x37d   :  { %v1591_v19 = vpop.permute.xlu1 %1590 }
 0x37e   :  { %2612 = vperm.xlu0 %6396, %v8236_v29   ;;  %v8256_v29 = vadd.f32 %v1573_v59, %v7705_v45  ;;  %v1627_v45 = vpop.permute.xlu2 %1626 }
 0x37f   :  { %6329 = vset.pattern.permute.xlu2 %v7967_v25 }
 0x380   :  { %11964 = vst [vmem:[#allocation138_spill] sm:$0xff] %v8256_v29 }
 0x381   :  { %1753 = vperm.xlu1 %6330, %v7778_v57  }
 0x385   :  { %v8262_v23 = vpop.permute.xlu1 %1602 }
 0x386   :  { %2621 = vperm.xlu0 %6396, %v8246_v31   ;;  %v8264_v31 = vpop.permute.xlu0 %2063  ;;  %v1645_v11 = vpop.permute.xlu2 %1644 }
 0x387   :  { %1747 = vperm.xlu2 %6329, %v7778_v57   ;;  %v8268_v57 = vadd.f32 %v1591_v19, %v7734_v44  ;;  %v8284_v19 = vadd.f32 %v1627_v45, %v7758_v36 }
 0x389   :  { %6333 = vset.pattern.permute.xlu1 %v7905_v35  ;;  %11966 = vst [vmem:[#allocation140_spill] sm:$0xff] %v8268_v57 }
 0x38a   :  { %11968 = vst [vmem:[#allocation142_spill] sm:$0xff] %v8284_v19 }
 0x38d   :  { %v8272_v59 = vpop.permute.xlu1 %1620 }
 0x38e   :  { %2630 = vperm.xlu0 %6396, %v8256_v29   ;;  %v1609_v29 = vpop.permute.xlu0 %1608 }
 0x38f   :  { %6332 = vset.pattern.permute.xlu2 %v7710_v47  ;;  %v8276_v61 = vadd.f32 %v1609_v29, %v7748_v9  ;;  %v8294_v29 = vadd.f32 %v1645_v11, %v7772_v34 }
 0x391   :  { %1772 = vperm.xlu1 %6333, %v7868_v8   ;;  %11967 = vst [vmem:[#allocation141_spill] sm:$0xff] %v8276_v61 }
 0x392   :  { %11969 = vst [vmem:[#allocation143_spill] sm:$0xff] %v8294_v29 }
 0x395   :  { %v8280_v44 = vpop.permute.xlu1 %1632 }
 0x396   :  { %2639 = vperm.xlu0 %6396, %v8268_v57   ;;  %v8288_v57 = vpop.permute.xlu2 %1656 }
 0x397   :  { %1766 = vperm.xlu2 %6332, %v7868_v8  }
 0x399   :  { %6335 = vset.pattern.permute.xlu1 %v7781_v62 }
 0x39d   :  { %v8290_v9 = vpop.permute.xlu1 %1650 }
 0x39e   :  { %2648 = vperm.xlu0 %6396, %v8276_v61   ;;  %v8298_v61 = vpop.permute.xlu2 %1675 }
 0x39f   :  { %6334 = vset.pattern.permute.xlu2 %v7732_v38 }
 0x3a1   :  { %1784 = vperm.xlu1 %6335, %v7868_v8  }
 0x3a5   :  { %v1663_v36 = vpop.permute.xlu1 %1662 }
 0x3a6   :  { %2657 = vperm.xlu0 %6396, %v8284_v19   ;;  %v8302_v45 = vadd.f32 %v1663_v36, %v7787_v10  ;;  %v8306_v19 = vpop.permute.xlu2 %1687  ;;  %v8319_v10 = vadd.f32 %v8071_v1, %v7815_v15 }
 0x3a7   :  { %1778 = vperm.xlu2 %6334, %v7868_v8  }
 0x3a8   :  { %11970 = vst [vmem:[#allocation144_spill] sm:$0xff] %v8302_v45 }
 0x3a9   :  { %6338 = vset.pattern.permute.xlu1 %v7826_v7  ;;  %11972 = vst [vmem:[#allocation146_spill] sm:$0xff] %v8319_v10 }
 0x3ad   :  { %v1682_v34 = vpop.permute.xlu1 %1681 }
 0x3ae   :  { %2666 = vperm.xlu0 %6396, %v8294_v29   ;;  %v8310_v11 = vadd.f32 %v1682_v34, %v7800_v21 }
 0x3af   :  { %6337 = vset.pattern.permute.xlu2 %v7793_v5 }
 0x3b0   :  { %11971 = vst [vmem:[#allocation145_spill] sm:$0xff] %v8310_v11 }
 0x3b1   :  { %1802 = vperm.xlu1 %6338, %v7868_v8   ;;  %v8314_v29 = vpop.permute.xlu2 %1705 }
 0x3b5   :  { %v8333_v15 = vpop.permute.xlu1 %1693 }
 0x3b6   :  { %2675 = vperm.xlu0 %6396, %v8302_v45  }
 0x3b7   :  { %1796 = vperm.xlu2 %6337, %v7868_v8  }
 0x3b9   :  { %6340 = vset.pattern.permute.xlu1 %v7943_v50 }
 0x3be   :  { %2684 = vperm.xlu0 %6396, %v8310_v11  }
 0x3bf   :  { %6339 = vset.pattern.permute.xlu2 %v7821_v43 }
 0x3c1   :  { %1814 = vperm.xlu1 %6340, %v7868_v8   ;;  %v1718_v36 = vpop.permute.xlu2 %1717 }
 0x3c2   :  { %v8325_v21 = vadd.f32 %v1718_v36, %v7831_v18 }
 0x3c3   :  { %v8338_v18 = vpop.permute.xlu1 %1711 }
 0x3c4   :  { %11973 = vst [vmem:[#allocation147_spill] sm:$0xff] %v8325_v21 }
 0x3c6   :  { %2693 = vperm.xlu0 %6396, %v8319_v10  }
 0x3c7   :  { %1808 = vperm.xlu2 %6339, %v7868_v8  }
 0x3c9   :  { %6343 = vset.pattern.permute.xlu1 %v7873_v3 }
 0x3ce   :  { %2702 = vperm.xlu0 %6396, %v8325_v21  }
 0x3cf   :  { %6342 = vset.pattern.permute.xlu2 %v7811_v41 }
 0x3d1   :  { %1832 = vperm.xlu1 %6343, %v7868_v8   ;;  %v1736_v34 = vpop.permute.xlu2 %1735 }
 0x3d2   :  { %v8331_v1 = vadd.f32 %v1736_v34, %v7844_v30 }
 0x3d3   :  { %v8342_v36 = vpop.permute.xlu1 %1723 }
 0x3d4   :  { %11974 = vst [vmem:[#allocation148_spill] sm:$0xff] %v8331_v1 }
 0x3d6   :  { %2711 = vperm.xlu0 %6396, %v8331_v1  }
 0x3d7   :  { %1826 = vperm.xlu2 %6342, %v7868_v8  }
 0x3d9   :  { %6345 = vset.pattern.permute.xlu1 %v7967_v25 }
 0x3df   :  { %6344 = vset.pattern.permute.xlu2 %v7863_v49 }
 0x3e1   :  { %1844 = vperm.xlu1 %6345, %v7868_v8   ;;  %v8357_v21 = vpop.permute.xlu2 %1747 }
 0x3e3   :  { %v8346_v30 = vpop.permute.xlu1 %1741 }
 0x3e7   :  { %1838 = vperm.xlu2 %6344, %v7868_v8  }
 0x3e9   :  { %6348 = vset.pattern.permute.xlu1 %v7710_v47 }
 0x3ef   :  { %6347 = vset.pattern.permute.xlu2 %v7838_v37 }
 0x3f1   :  { %1863 = vperm.xlu1 %6348, %v7931_v52  }
 0x3f3   :  { %v1754_v34 = vpop.permute.xlu1 %1753 }
 0x3f4   :  { %v8351_v1 = vadd.f32 %v1754_v34, %v7857_v22  ;;  %v8365_v22 = vpop.permute.xlu2 %1766 }
 0x3f6   :  { %11975 = vst [vmem:[#allocation149_spill] sm:$0xff] %v8351_v1  ;;  %2720 = vperm.xlu0 %6396, %v8351_v1  }
 0x3f7   :  { %1856 = vperm.xlu2 %6347, %v7868_v8   ;;  %v8370_v8 = vadd.f32 %v8097_v2, %v7885_v12 }
 0x3f9   :  { %6350 = vset.pattern.permute.xlu1 %v7732_v38  ;;  %11977 = vst [vmem:[#allocation151_spill] sm:$0xff] %v8370_v8 }
 0x3ff   :  { %6349 = vset.pattern.permute.xlu2 %v7905_v35 }
 0x401   :  { %1875 = vperm.xlu1 %6350, %v7931_v52   ;;  %v8374_v34 = vpop.permute.xlu2 %1778 }
 0x403   :  { %v1773_v10 = vpop.permute.xlu1 %1772 }
 0x404   :  { %v8361_v11 = vadd.f32 %v1773_v10, %v7875_v40 }
 0x406   :  { %11976 = vst [vmem:[#allocation150_spill] sm:$0xff] %v8361_v11  ;;  %2729 = vperm.xlu0 %6396, %v8361_v11  }
 0x407   :  { %1869 = vperm.xlu2 %6349, %v7931_v52  }
 0x409   :  { %6354 = vset.pattern.permute.xlu1 %v7793_v5 }
 0x40e   :  { %2738 = vperm.xlu0 %6396, %v8370_v8  }
 0x40f   :  { %6353 = vset.pattern.permute.xlu2 %v7805_v24 }
 0x411   :  { %1893 = vperm.xlu1 %6354, %v7931_v52   ;;  %v8378_v40 = vpop.permute.xlu2 %1796 }
 0x413   :  { %v8394_v11 = vpop.permute.xlu1 %1784 }
 0x417   :  { %1887 = vperm.xlu2 %6353, %v7931_v52  }
 0x419   :  { %6356 = vset.pattern.permute.xlu1 %v7821_v43 }
 0x41f   :  { %6355 = vset.pattern.permute.xlu2 %v7826_v7 }
 0x421   :  { %1905 = vperm.xlu1 %6356, %v7931_v52   ;;  %v1809_v12 = vpop.permute.xlu2 %1808 }
 0x422   :  { %v8384_v2 = vadd.f32 %v1809_v12, %v7898_v56 }
 0x423   :  { %v8399_v56 = vpop.permute.xlu1 %1802 }
 0x424   :  { %11978 = vst [vmem:[#allocation152_spill] sm:$0xff] %v8384_v2  ;;  %2747 = vperm.xlu0 %6396, %v8384_v2  }
 0x427   :  { %1899 = vperm.xlu2 %6355, %v7931_v52  }
 0x429   :  { %6359 = vset.pattern.permute.xlu1 %v7811_v41 }
 0x42f   :  { %6358 = vset.pattern.permute.xlu2 %v7850_v32 }
 0x431   :  { %1923 = vperm.xlu1 %6359, %v7931_v52   ;;  %v1827_v10 = vpop.permute.xlu2 %1826 }
 0x432   :  { %v8392_v8 = vadd.f32 %v1827_v10, %v7911_v17 }
 0x433   :  { %v8403_v12 = vpop.permute.xlu1 %1814 }
 0x434   :  { %11979 = vst [vmem:[#allocation153_spill] sm:$0xff] %v8392_v8  ;;  %2756 = vperm.xlu0 %6396, %v8392_v8  }
 0x437   :  { %1917 = vperm.xlu2 %6358, %v7931_v52  }
 0x439   :  { %6361 = vset.pattern.permute.xlu1 %v7863_v49 }
 0x43f   :  { %6360 = vset.pattern.permute.xlu2 %v7873_v3 }
 0x441   :  { %1935 = vperm.xlu1 %6361, %v7931_v52   ;;  %v8418_v2 = vpop.permute.xlu2 %1838 }
 0x443   :  { %v8407_v17 = vpop.permute.xlu1 %1832 }
 0x447   :  { %1929 = vperm.xlu2 %6360, %v7931_v52  }
 0x449   :  { %6364 = vset.pattern.permute.xlu1 %v7838_v37 }
 0x44f   :  { %6363 = vset.pattern.permute.xlu2 %v7892_v4 }
 0x451   :  { %1953 = vperm.xlu1 %6364, %v7931_v52  }
 0x453   :  { %v1845_v10 = vpop.permute.xlu1 %1844 }
 0x454   :  { %v8412_v8 = vadd.f32 %v1845_v10, %v7923_v0  ;;  %v8426_v0 = vpop.permute.xlu2 %1856 }
 0x456   :  { %11980 = vst [vmem:[#allocation154_spill] sm:$0xff] %v8412_v8  ;;  %2765 = vperm.xlu0 %6396, %v8412_v8  }
 0x457   :  { %1947 = vperm.xlu2 %6363, %v7931_v52  }
 0x459   :  { %6366 = vset.pattern.permute.xlu1 %v7905_v35  ;;  %v8431_v35 = vadd.f32 %v8122_v20, %v7949_v51 }
 0x45b   :  { %11982 = vst [vmem:[#allocation156_spill] sm:$0xff] %v8431_v35 }
 0x45f   :  { %6365 = vset.pattern.permute.xlu2 %v7710_v47 }
 0x461   :  { %1966 = vperm.xlu1 %6366, %v8009_v26   ;;  %v8435_v52 = vpop.permute.xlu2 %1869 }
 0x463   :  { %v1864_v1 = vpop.permute.xlu1 %1863 }
 0x464   :  { %v8422_v45 = vadd.f32 %v1864_v1, %v7936_v16 }
 0x466   :  { %11981 = vst [vmem:[#allocation155_spill] sm:$0xff] %v8422_v45  ;;  %2774 = vperm.xlu0 %6396, %v8422_v45   ;;  %v11987_v45 = vld [vmem:[#allocation76_spill] sm:$0xff] }
 0x467   :  { %1960 = vperm.xlu2 %6365, %v8009_v26  }
 0x469   :  { %6369 = vset.pattern.permute.xlu1 %v7805_v24 }
 0x46e   :  { %2783 = vperm.xlu0 %6396, %v8431_v35  }
 0x46f   :  { %6368 = vset.pattern.permute.xlu2 %v7781_v62 }
 0x471   :  { %1984 = vperm.xlu1 %6369, %v8009_v26   ;;  %v8439_v16 = vpop.permute.xlu2 %1887 }
 0x473   :  { %v8455_v10 = vpop.permute.xlu1 %1875 }
 0x477   :  { %1978 = vperm.xlu2 %6368, %v8009_v26  }
 0x479   :  { %6371 = vset.pattern.permute.xlu1 %v7826_v7 }
 0x47f   :  { %6370 = vset.pattern.permute.xlu2 %v7793_v5 }
 0x481   :  { %1996 = vperm.xlu1 %6371, %v8009_v26   ;;  %v1900_v20 = vpop.permute.xlu2 %1899 }
 0x482   :  { %v8445_v51 = vadd.f32 %v1900_v20, %v7959_v63 }
 0x483   :  { %v8460_v63 = vpop.permute.xlu1 %1893 }
 0x484   :  { %11983 = vst [vmem:[#allocation157_spill] sm:$0xff] %v8445_v51  ;;  %2792 = vperm.xlu0 %6396, %v8445_v51  }
 0x487   :  { %1990 = vperm.xlu2 %6370, %v8009_v26  }
 0x489   :  { %6374 = vset.pattern.permute.xlu1 %v7850_v32 }
 0x48f   :  { %6373 = vset.pattern.permute.xlu2 %v7943_v50 }
 0x491   :  { %2014 = vperm.xlu1 %6374, %v8009_v26   ;;  %v1918_v1 = vpop.permute.xlu2 %1917 }
 0x492   :  { %v8453_v7 = vadd.f32 %v1918_v1, %v7971_v39 }
 0x493   :  { %v8464_v20 = vpop.permute.xlu1 %1905 }
 0x494   :  { %11984 = vst [vmem:[#allocation158_spill] sm:$0xff] %v8453_v7  ;;  %2801 = vperm.xlu0 %6396, %v8453_v7  }
 0x497   :  { %2008 = vperm.xlu2 %6373, %v8009_v26  }
 0x499   :  { %6376 = vset.pattern.permute.xlu1 %v7873_v3  ;;  %v11985_v3 = vld [vmem:[#allocation73_spill] sm:$0xff] }
 0x49f   :  { %6375 = vset.pattern.permute.xlu2 %v7811_v41 }
 0x4a1   :  { %2026 = vperm.xlu1 %6376, %v8009_v26   ;;  %v8479_v51 = vpop.permute.xlu2 %1929 }
 0x4a3   :  { %v8468_v39 = vpop.permute.xlu1 %1923 }
 0x4a7   :  { %2020 = vperm.xlu2 %6375, %v8009_v26  }
 0x4a9   :  { %6379 = vset.pattern.permute.xlu1 %v7892_v4 }
 0x4af   :  { %6378 = vset.pattern.permute.xlu2 %v7967_v25 }
 0x4b1   :  { %2044 = vperm.xlu1 %6379, %v8009_v26  }
 0x4b3   :  { %v1936_v1 = vpop.permute.xlu1 %1935 }
 0x4b4   :  { %v8473_v7 = vadd.f32 %v1936_v1, %v11985_v3  ;;  %v8487_v1 = vpop.permute.xlu2 %1947  ;;  %v11989_v3 = vld [vmem:[#allocation79_spill] sm:$0xff] }
 0x4b6   :  { %11986 = vst [vmem:[#allocation73_spill] sm:$0xff] %v8473_v7  ;;  %2810 = vperm.xlu0 %6396, %v8473_v7  }
 0x4b7   :  { %2038 = vperm.xlu2 %6378, %v8009_v26  }
 0x4b9   :  { %6381 = vset.pattern.permute.xlu1 %v7710_v47  ;;  %v8492_v47 = vadd.f32 %v8182_v27, %v11989_v3 }
 0x4bb   :  { %11990 = vst [vmem:[#allocation79_spill] sm:$0xff] %v8492_v47 }
 0x4bf   :  { %6380 = vset.pattern.permute.xlu2 %v7838_v37 }
 0x4c1   :  { %2057 = vperm.xlu1 %6381, %v8095_v54   ;;  %v8496_v7 = vpop.permute.xlu2 %1960 }
 0x4c3   :  { %v1954_v35 = vpop.permute.xlu1 %1953 }
 0x4c4   :  { %v8483_v8 = vadd.f32 %v1954_v35, %v11987_v45 }
 0x4c6   :  { %11988 = vst [vmem:[#allocation76_spill] sm:$0xff] %v8483_v8  ;;  %2819 = vperm.xlu0 %6396, %v8483_v8   ;;  %v12023_v8 = vld [vmem:[#allocation21_spill] sm:$0xff] }
 0x4c7   :  { %2050 = vperm.xlu2 %6380, %v8009_v26   ;;  %v11991_v26 = vld [vmem:[#allocation82_spill] sm:$0xff] }
 0x4c9   :  { %6384 = vset.pattern.permute.xlu1 %v7781_v62 }
 0x4ce   :  { %2828 = vperm.xlu0 %6396, %v8492_v47  }
 0x4cf   :  { %6383 = vset.pattern.permute.xlu2 %v7732_v38 }
 0x4d1   :  { %2075 = vperm.xlu1 %6384, %v8095_v54   ;;  %v8500_v45 = vpop.permute.xlu2 %1978 }
 0x4d7   :  { %2069 = vperm.xlu2 %6383, %v8095_v54  }
 0x4d9   :  { %6386 = vset.pattern.permute.xlu1 %v7793_v5  ;;  %v11993_v5 = vld [vmem:[#allocation85_spill] sm:$0xff] }
 0x4df   :  { %6385 = vset.pattern.permute.xlu2 %v7805_v24  ;;  %v8516_v24 = vpop.permute.xlu1 %1966 }
 0x4e1   :  { %2087 = vperm.xlu1 %6386, %v8095_v54   ;;  %v1991_v27 = vpop.permute.xlu2 %1990 }
 0x4e2   :  { %v8506_v62 = vadd.f32 %v1991_v27, %v11991_v26 }
 0x4e4   :  { %11992 = vst [vmem:[#allocation82_spill] sm:$0xff] %v8506_v62  ;;  %2837 = vperm.xlu0 %6396, %v8506_v62  }
 0x4e7   :  { %2081 = vperm.xlu2 %6385, %v8095_v54   ;;  %v8521_v3 = vpop.permute.xlu1 %1984 }
 0x4e9   :  { %6389 = vset.pattern.permute.xlu1 %v7943_v50 }
 0x4ef   :  { %6388 = vset.pattern.permute.xlu2 %v7821_v43 }
 0x4f1   :  { %2105 = vperm.xlu1 %6389, %v8095_v54   ;;  %v2009_v38 = vpop.permute.xlu2 %2008 }
 0x4f2   :  { %v8514_v35 = vadd.f32 %v2009_v38, %v11993_v5  ;;  %v12000_v5 = vld [vmem:[#allocation15_spill] sm:$0xff] }
 0x4f3   :  { %v8525_v50 = vpop.permute.xlu1 %1996 }
 0x4f4   :  { %11994 = vst [vmem:[#allocation85_spill] sm:$0xff] %v8514_v35  ;;  %2846 = vperm.xlu0 %6396, %v8514_v35  }
 0x4f7   :  { %2099 = vperm.xlu2 %6388, %v8095_v54  }
 0x4f9   :  { %6391 = vset.pattern.permute.xlu1 %v7811_v41  ;;  %v11996_v41 = vld [vmem:[#allocation88_spill] sm:$0xff] }
 0x4ff   :  { %6390 = vset.pattern.permute.xlu2 %v7850_v32 }
 0x501   :  { %2117 = vperm.xlu1 %6391, %v8095_v54   ;;  %v8540_v32 = vpop.permute.xlu2 %2020 }
 0x503   :  { %v8529_v43 = vpop.permute.xlu1 %2014 }
 0x504   :  { %11995 = vst [vmem:[#allocation159_spill] sm:$0xff] %v8529_v43 }
 0x507   :  { %2111 = vperm.xlu2 %6390, %v8095_v54  }
 0x509   :  { %6393 = vset.pattern.permute.xlu1 %v7967_v25 }
 0x50f   :  { %6392 = vset.pattern.permute.xlu2 %v7863_v49  ;;  %v11998_v49 = vld [vmem:[#allocation91_spill] sm:$0xff] }
 0x511   :  { %2135 = vperm.xlu1 %6393, %v8095_v54  }
 0x513   :  { %v2027_v27 = vpop.permute.xlu1 %2026 }
 0x514   :  { %v8534_v26 = vadd.f32 %v2027_v27, %v11996_v41  ;;  %v12001_v27 = vld [vmem:[#allocation113_spill] sm:$0xff] }
 0x515   :  { %v8550_v41 = vadd.f32 %v12001_v27, %v12000_v5  ;;  %v12010_v5 = vld [vmem:[#allocation112_spill] sm:$0xff] }
 0x516   :  { %11997 = vst [vmem:[#allocation88_spill] sm:$0xff] %v8534_v26  ;;  %2855 = vperm.xlu0 %6396, %v8534_v26   ;;  %v8552_v26 = vpop.permute.xlu2 %2038 }
 0x517   :  { %2129 = vperm.xlu2 %6392, %v8095_v54   ;;  %12002 = vst [vmem:[#allocation15_spill] sm:$0xff] %v8550_v41 }
 0x518   :  { %12003 = vst [vmem:[#allocation113_spill] sm:$0xff] %v8552_v26 }
 0x519   :  { %6395 = vset.pattern.permute.xlu1 %v7838_v37  ;;  %v12004_v37 = vmov 0  }
 0x51f   :  { %6394 = vset.pattern.permute.xlu2 %v7892_v4  ;;  %v12005_v4 = vld [vmem:[#allocation94_spill] sm:$0xff] }
 0x520   :  { %v8558_v35 = vadd.f32 %v8264_v31, %v12005_v4  ;;  %v12013_v31 = vld [vmem:[#allocation17_spill] sm:$0xff]  ;;  %v12014_v4 = vld [vmem:[#allocation110_spill] sm:$0xff] }
 0x521   :  { %2147 = vperm.xlu1 %6395, %v8095_v54   ;;  %v8576_v62 = vadd.f32 %v12014_v4, %v12013_v31  ;;  %v12026_v4 = vld [vmem:[#allocation97_spill] sm:$0xff] }
 0x522   :  { %12006 = vst [vmem:[#allocation94_spill] sm:$0xff] %v8558_v35 }
 0x523   :  { %v2045_v25 = vpop.permute.xlu1 %2044  ;;  %12015 = vst [vmem:[#allocation17_spill] sm:$0xff] %v8576_v62 }
 0x524   :  { %v8544_v38 = vadd.f32 %v2045_v25, %v11998_v49  ;;  %v12007_v25 = vld [vmem:[#allocation8_spill] sm:$0xff] }
 0x525   :  { %v8562_v49 = vadd.f32 %v8238_v48, %v12007_v25  ;;  %v12016_v48 = vld [vmem:[#allocation19_spill] sm:$0xff]  ;;  %v12017_v25 = vld [vmem:[#allocation117_spill] sm:$0xff] }
 0x526   :  { %11999 = vst [vmem:[#allocation91_spill] sm:$0xff] %v8544_v38  ;;  %2864 = vperm.xlu0 %6396, %v8544_v38   ;;  %v8571_v38 = vpop.permute.xlu2 %2050  ;;  %v8580_v47 = vadd.f32 %v12017_v25, %v12016_v48  ;;  %v12028_v25 = vld [vmem:[#allocation10_spill] sm:$0xff] }
 0x527   :  { %2141 = vperm.xlu2 %6394, %v8095_v54   ;;  %12008 = vst [vmem:[#allocation8_spill] sm:$0xff] %v8562_v49  ;;  %v12009_v54 = vld [vmem:[#allocation13_spill] sm:$0xff] }
 0x528   :  { %v8568_v27 = vadd.f32 %v12010_v5, %v12009_v54  ;;  %12012 = vst [vmem:[#allocation112_spill] sm:$0xff] %v8571_v38  ;;  %v12020_v54 = vld [vmem:[#allocation9_spill] sm:$0xff]  ;;  %v12021_v5 = vld [vmem:[#allocation114_spill] sm:$0xff] }
 0x529   :  { %6398 = vset.pattern.permute.xlu1 %v12004_v37  ;;  %12018 = vst [vmem:[#allocation110_spill] sm:$0xff] %v8580_v47 }
 0x52a   :  { %2540 = vperm.xlu1 %6398, %v8550_v41   ;;  %12011 = vst [vmem:[#allocation13_spill] sm:$0xff] %v8568_v27 }
 0x52e   :  { %2873 = vperm.xlu0 %6396, %v8558_v35   ;;  %v8588_v35 = vadd.f32 %v12021_v5, %v12020_v54  ;;  %v12031_v54 = vld [vmem:[#allocation23_spill] sm:$0xff]  ;;  %v12032_v5 = vld [vmem:[#allocation118_spill] sm:$0xff] }
 0x52f   :  { %6397 = vset.pattern.permute.xlu2 %v12004_v37 }
 0x530   :  { %2537 = vperm.xlu2 %6397, %v8562_v49   ;;  %12022 = vst [vmem:[#allocation117_spill] sm:$0xff] %v8588_v35  ;;  %v8606_v49 = vadd.f32 %v12032_v5, %v12031_v54  ;;  %v8623_v54 = vpop.permute.xlu0 %2093 }
 0x531   :  { %v8583_v37 = vpop.permute.xlu2 %2069  ;;  %12040 = vst [vmem:[#allocation23_spill] sm:$0xff] %v8623_v54  ;;  %v12105_v54 = vld [vmem:[#allocation47_spill] sm:$0xff] }
 0x532   :  { %2546 = vperm.xlu1 %6398, %v8568_v27   ;;  %12019 = vst [vmem:[#allocation19_spill] sm:$0xff] %v8583_v37  ;;  %v12024_v27 = vld [vmem:[#allocation119_spill] sm:$0xff]  ;;  %v8829_v37 = vadd.f32 %v8298_v61, %v12105_v54 }
 0x533   :  { %v8592_v41 = vadd.f32 %v12024_v27, %v12023_v8  ;;  %12033 = vst [vmem:[#allocation119_spill] sm:$0xff] %v8606_v49  ;;  %v12034_v8 = vld [vmem:[#allocation11_spill] sm:$0xff]  ;;  %v8625_v5 = vpop.permute.xlu1 %2057 }
 0x534   :  { %v8612_v27 = vadd.f32 %v8160_v28, %v12034_v8  ;;  %12041 = vst [vmem:[#allocation118_spill] sm:$0xff] %v8625_v5  ;;  %v12042_v28 = vld [vmem:[#allocation12_spill] sm:$0xff]  ;;  %v12126_v5 = vld [vmem:[#allocation38_spill] sm:$0xff] }
 0x535   :  { %12025 = vst [vmem:[#allocation9_spill] sm:$0xff] %v8592_v41  ;;  %v8630_v8 = vadd.f32 %v8172_v13, %v12042_v28  ;;  %v8926_v26 = vadd.f32 %v8314_v29, %v12126_v5  ;;  %v6222_v5 = vld [vmem:[%s11557_s2 + $0x60] sm:$0xff]  }
 0x536   :  { %12035 = vst [vmem:[#allocation97_spill] sm:$0xff] %v8612_v27 }
 0x537   :  { %12043 = vst [vmem:[#allocation11_spill] sm:$0xff] %v8630_v8 }
 0x538   :  { %2543 = vperm.xlu2 %6397, %v8576_v62   ;;  %12106 = vst [vmem:[#allocation47_spill] sm:$0xff] %v8829_v37 }
 0x539   :  { %12127 = vst [vmem:[#allocation38_spill] sm:$0xff] %v8926_v26 }
 0x53a   :  { %2555 = vperm.xlu1 %6398, %v8580_v47   ;;  %v12029_v47 = vld [vmem:[#allocation116_spill] sm:$0xff] }
 0x53b   :  { %v8602_v62 = vadd.f32 %v12029_v47, %v12028_v25  ;;  %v12038_v25 = vld [vmem:[#allocation99_spill] sm:$0xff] }
 0x53d   :  { %12030 = vst [vmem:[#allocation21_spill] sm:$0xff] %v8602_v62 }
 0x540   :  { %2552 = vperm.xlu2 %6397, %v8588_v35   ;;  %v12063_v35 = vld [vmem:[#allocation33_spill] sm:$0xff] }
 0x541   :  { %v2082_v31 = vpop.permute.xlu2 %2081 }
 0x542   :  { %v8596_v48 = vadd.f32 %v2082_v31, %v12026_v4  ;;  %2564 = vperm.xlu1 %6398, %v8592_v41   ;;  %v12036_v31 = vld [vmem:[#allocation25_spill] sm:$0xff]  ;;  %v12049_v41 = vld [vmem:[#allocation123_spill] sm:$0xff] }
 0x543   :  { %v8616_v4 = vadd.f32 %v8170_v33, %v12036_v31  ;;  %v12044_v33 = vld [vmem:[#allocation27_spill] sm:$0xff]  ;;  %v12045_v31 = vld [vmem:[#allocation125_spill] sm:$0xff] }
 0x544   :  { %12027 = vst [vmem:[#allocation114_spill] sm:$0xff] %v8596_v48  ;;  %2882 = vperm.xlu0 %6396, %v8596_v48  }
 0x545   :  { %12037 = vst [vmem:[#allocation10_spill] sm:$0xff] %v8616_v4 }
 0x548   :  { %2561 = vperm.xlu2 %6397, %v8602_v62  }
 0x54a   :  { %2573 = vperm.xlu1 %6398, %v8606_v49   ;;  %v8634_v49 = vadd.f32 %v12045_v31, %v12044_v33  ;;  %v12055_v31 = vld [vmem:[#allocation16_spill] sm:$0xff] }
 0x54c   :  { %12046 = vst [vmem:[#allocation25_spill] sm:$0xff] %v8634_v49 }
 0x550   :  { %2570 = vperm.xlu2 %6397, %v8612_v27   ;;  %v12069_v27 = vld [vmem:[#allocation132_spill] sm:$0xff] }
 0x551   :  { %v2100_v47 = vpop.permute.xlu2 %2099 }
 0x552   :  { %v8620_v48 = vadd.f32 %v2100_v47, %v12038_v25  ;;  %2582 = vperm.xlu1 %6398, %v8616_v4   ;;  %v8638_v47 = vpop.permute.xlu0 %1638  ;;  %v8640_v25 = vpop.permute.xlu1 %2075  ;;  %v12048_v4 = vld [vmem:[#allocation14_spill] sm:$0xff] }
 0x553   :  { %12047 = vst [vmem:[#allocation99_spill] sm:$0xff] %v8640_v25  ;;  %v8644_v62 = vadd.f32 %v12049_v41, %v12048_v4  ;;  %v12061_v4 = vld [vmem:[#allocation128_spill] sm:$0xff] }
 0x554   :  { %12039 = vst [vmem:[#allocation116_spill] sm:$0xff] %v8620_v48  ;;  %2891 = vperm.xlu0 %6396, %v8620_v48   ;;  %v12051_v48 = vld [vmem:[#allocation29_spill] sm:$0xff] }
 0x555   :  { %12050 = vst [vmem:[#allocation12_spill] sm:$0xff] %v8644_v62  ;;  %v8648_v13 = vadd.f32 %v8200_v42, %v12051_v48  ;;  %v12060_v48 = vld [vmem:[#allocation18_spill] sm:$0xff] }
 0x557   :  { %12052 = vst [vmem:[#allocation27_spill] sm:$0xff] %v8648_v13 }
 0x558   :  { %2579 = vperm.xlu2 %6397, %v8630_v8   ;;  %v12057_v8 = vld [vmem:[#allocation31_spill] sm:$0xff] }
 0x559   :  { %v8662_v41 = vadd.f32 %v8210_v55, %v12057_v8 }
 0x55a   :  { %2591 = vperm.xlu1 %6398, %v8634_v49   ;;  %v8652_v28 = vpop.permute.xlu1 %2087  ;;  %v8654_v33 = vpop.permute.xlu0 %2123  ;;  %v8658_v49 = vadd.f32 %v8190_v53, %v12055_v31  ;;  %v8676_v53 = vadd.f32 %v8213_v6, %v12063_v35  ;;  %v12066_v31 = vld [vmem:[#allocation102_spill] sm:$0xff] }
 0x55b   :  { %12053 = vst [vmem:[#allocation125_spill] sm:$0xff] %v8652_v28 }
 0x55c   :  { %12054 = vst [vmem:[#allocation14_spill] sm:$0xff] %v8654_v33 }
 0x55d   :  { %12056 = vst [vmem:[#allocation123_spill] sm:$0xff] %v8658_v49 }
 0x55e   :  { %12058 = vst [vmem:[#allocation29_spill] sm:$0xff] %v8662_v41 }
 0x55f   :  { %12064 = vst [vmem:[#allocation18_spill] sm:$0xff] %v8676_v53 }
 0x560   :  { %2588 = vperm.xlu2 %6397, %v8644_v62  }
 0x561   :  { %v8679_v55 = vpop.permute.xlu2 %2111 }
 0x562   :  { %2600 = vperm.xlu1 %6398, %v8648_v13   ;;  %v8670_v13 = vadd.f32 %v12061_v4, %v12060_v48  ;;  %v8672_v62 = vpop.permute.xlu0 %2534  ;;  %12065 = vst [vmem:[#allocation128_spill] sm:$0xff] %v8679_v55  ;;  %v12071_v4 = vld [vmem:[#allocation35_spill] sm:$0xff] }
 0x563   :  { %v8666_v42 = vpop.permute.xlu1 %2105  ;;  %v8692_v6 = vadd.f32 %v8230_v60, %v12071_v4  ;;  %v6217_v4 = vld [vmem:[%s11557_s2 + $0x38] sm:$0xff]  }
 0x564   :  { %12059 = vst [vmem:[#allocation16_spill] sm:$0xff] %v8666_v42  ;;  %v12099_v42 = vld [vmem:[#allocation45_spill] sm:$0xff] }
 0x565   :  { %12062 = vst [vmem:[#allocation31_spill] sm:$0xff] %v8670_v13 }
 0x568   :  { %2597 = vperm.xlu2 %6397, %v8658_v49   ;;  %v12068_v49 = vld [vmem:[#allocation20_spill] sm:$0xff] }
 0x569   :  { %v8687_v48 = vadd.f32 %v12069_v27, %v12068_v49  ;;  %12072 = vst [vmem:[#allocation20_spill] sm:$0xff] %v8692_v6  ;;  %v12076_v49 = vld [vmem:[#allocation37_spill] sm:$0xff] }
 0x56a   :  { %2609 = vperm.xlu1 %6398, %v8662_v41   ;;  %v8695_v35 = vpop.permute.xlu0 %2549  ;;  %v8706_v27 = vadd.f32 %v8242_v14, %v12076_v49  ;;  %v12081_v14 = vld [vmem:[#allocation24_spill] sm:$0xff] }
 0x56b   :  { %12070 = vst [vmem:[#allocation102_spill] sm:$0xff] %v8687_v48  ;;  %v8722_v49 = vadd.f32 %v8249_v58, %v12081_v14  ;;  %v12086_v14 = vld [vmem:[#allocation137_spill] sm:$0xff] }
 0x56d   :  { %12082 = vst [vmem:[#allocation24_spill] sm:$0xff] %v8722_v49 }
 0x570   :  { %2606 = vperm.xlu2 %6397, %v8670_v13  }
 0x571   :  { %v8697_v13 = vpop.permute.xlu2 %2129 }
 0x572   :  { %2618 = vperm.xlu1 %6398, %v8676_v53   ;;  %12073 = vst [vmem:[#allocation132_spill] sm:$0xff] %v8697_v13  ;;  %v5922_v53 = vunpack.c.l.bf16 %v6217_v4  ;;  %v12094_v13 = vld [vmem:[#allocation43_spill] sm:$0xff] }
 0x573   :  { %v2118_v8 = vpop.permute.xlu1 %2117 }
 0x574   :  { %v8683_v41 = vadd.f32 %v2118_v8, %v12066_v31  ;;  %v12074_v8 = vld [vmem:[#allocation22_spill] sm:$0xff] }
 0x575   :  { %v8702_v31 = vadd.f32 %v8232_v46, %v12074_v8  ;;  %12077 = vst [vmem:[#allocation22_spill] sm:$0xff] %v8706_v27  ;;  %v12079_v46 = vld [vmem:[#allocation105_spill] sm:$0xff] }
 0x576   :  { %12067 = vst [vmem:[#allocation33_spill] sm:$0xff] %v8683_v41  ;;  %2900 = vperm.xlu0 %6396, %v8683_v41   ;;  %v8715_v41 = vpop.permute.xlu0 %2558 }
 0x577   :  { %12075 = vst [vmem:[#allocation35_spill] sm:$0xff] %v8702_v31 }
 0x578   :  { %2615 = vperm.xlu2 %6397, %v8687_v48   ;;  %v5923_v48 = vunpack.c.h.bf16 %v6217_v4  ;;  %v12085_v4 = vld [vmem:[#allocation26_spill] sm:$0xff] }
 0x57a   :  { %2627 = vperm.xlu1 %6398, %v8692_v6   ;;  %4643 = vmatpush.msra.mxu1 %v5923_v48 }
 0x57c   :  { %4644 = vmatpush.msra.mxu1 %v5922_v53 }
 0x580   :  { %2624 = vperm.xlu2 %6397, %v8702_v31   ;;  %v12083_v31 = vld [vmem:[#allocation39_spill] sm:$0xff] }
 0x581   :  { %v8709_v60 = vpop.permute.xlu2 %2141 }
 0x582   :  { %12078 = vst [vmem:[#allocation37_spill] sm:$0xff] %v8709_v60  ;;  %2636 = vperm.xlu1 %6398, %v8706_v27   ;;  %v8727_v27 = vadd.f32 %v8262_v23, %v12083_v31  ;;  %v6216_v60 = vld [vmem:[%s11557_s2 + $0x30] sm:$0xff]   ;;  %v8739_v31 = vpop.permute.xlu0 %2567 }
 0x583   :  { %v2136_v6 = vpop.permute.xlu1 %2135  ;;  %v5918_v58 = vunpack.c.l.bf16 %v6216_v60 }
 0x584   :  { %v8718_v8 = vadd.f32 %v2136_v6, %v12079_v46  ;;  %12084 = vst [vmem:[#allocation39_spill] sm:$0xff] %v8727_v27  ;;  %v5919_v6 = vunpack.c.h.bf16 %v6216_v60  ;;  %v6215_v46 = vld [vmem:[%s11557_s2 + $0x28] sm:$0xff]   ;;  %v6214_v60 = vld [vmem:[%s11557_s2 + $0x20] sm:$0xff]  }
 0x585   :  { %v5915_v23 = vunpack.c.h.bf16 %v6215_v46  ;;  %v5914_v53 = vunpack.c.l.bf16 %v6215_v46  ;;  %v12092_v46 = vld [vmem:[#allocation139_spill] sm:$0xff] }
 0x586   :  { %12080 = vst [vmem:[#allocation105_spill] sm:$0xff] %v8718_v8  ;;  %2909 = vperm.xlu0 %6396, %v8718_v8   ;;  %4645 = vmatpush.msra.mxu1 %v5919_v6  ;;  %v8743_v8 = vadd.f32 %v12086_v14, %v12085_v4  ;;  %v5911_v6 = vunpack.c.h.bf16 %v6214_v60  ;;  %v5910_v4 = vunpack.c.l.bf16 %v6214_v60  ;;  %v6212_v60 = vld [vmem:[%s11557_s2 + $0x10] sm:$0xff]  }
 0x588   :  { %2633 = vperm.xlu2 %6397, %v8722_v49   ;;  %12087 = vst [vmem:[#allocation26_spill] sm:$0xff] %v8743_v8  ;;  %4646 = vmatpush.msra.mxu1 %v5918_v58  ;;  %v12088_v49 = vld [vmem:[#allocation41_spill] sm:$0xff] }
 0x589   :  { %v6213_v58 = vld [vmem:[%s11557_s2 + $0x18] sm:$0xff]  }
 0x58a   :  { %2645 = vperm.xlu1 %6398, %v8727_v27   ;;  %v8734_v48 = vpop.permute.xlu2 %2537  ;;  %v8747_v27 = vadd.f32 %v8272_v59, %v12088_v49  ;;  %4647 = vmatpush.msra.mxu1 %v5915_v23  ;;  %v5907_v49 = vunpack.c.h.bf16 %v6213_v58  ;;  %v12091_v23 = vld [vmem:[#allocation28_spill] sm:$0xff] }
 0x58b   :  { %v8761_v14 = vadd.f32 %v12092_v46, %v12091_v23 }
 0x58c   :  { %12089 = vst [vmem:[#allocation137_spill] sm:$0xff] %v8747_v27  ;;  %4648 = vmatpush.msra.mxu1 %v5914_v53  ;;  %v5906_v53 = vunpack.c.l.bf16 %v6213_v58 }
 0x58d   :  { %12093 = vst [vmem:[#allocation28_spill] sm:$0xff] %v8761_v14 }
 0x58e   :  { %4649 = vmatpush.msra.mxu1 %v5911_v6  ;;  %v5903_v6 = vunpack.c.h.bf16 %v6212_v60 }
 0x590   :  { %2642 = vperm.xlu2 %6397, %v8743_v8   ;;  %4650 = vmatpush.msra.mxu1 %v5910_v4  ;;  %v8763_v8 = vpop.permute.xlu0 %2576  ;;  %v5902_v4 = vunpack.c.l.bf16 %v6212_v60 }
 0x592   :  { %2654 = vperm.xlu1 %6398, %v8747_v27   ;;  %v2544_v33 = vpop.permute.xlu2 %2543  ;;  %v8767_v27 = vadd.f32 %v8638_v47, %v12094_v13  ;;  %4651 = vmatpush.msra.mxu1 %v5907_v49  ;;  %v6211_v47 = vld [vmem:[%s11557_s2 + $0x8] sm:$0xff]   ;;  %v12096_v49 = vlaneseq }
 0x593   :  { %v8757_v59 = vpop.permute.xlu1 %2147  ;;  %v5899_v46 = vunpack.c.h.bf16 %v6211_v47 }
 0x594   :  { %12090 = vst [vmem:[#allocation41_spill] sm:$0xff] %v8757_v59  ;;  %4652 = vmatpush.msra.mxu1 %v5906_v53  ;;  %v8780_v58 = vand.u32 127, %v12096_v49  ;;  %v12097_v59 = vld [vmem:[#allocation30_spill] sm:$0xff]  ;;  %v5898_v53 = vunpack.c.l.bf16 %v6211_v47 }
 0x595   :  { %12095 = vst [vmem:[#allocation139_spill] sm:$0xff] %v8767_v27 }
 0x596   :  { %4653 = vmatpush.msra.mxu1 %v5903_v6  ;;  %v8790_v60 = vadd.s32 4294967288, %v8780_v58  ;;  %v8794_v6 = vadd.f32 %v8288_v57, %v12099_v42  ;;  %v8797_v49 = vadd.s32 4294967280, %v8780_v58  ;;  %v2919_v42 = vperm.slane %v8672_v62, %v8780_v58 }
 0x597   :  { %v8811_v47 = vadd.s32 4294967264, %v8780_v58  ;;  %v8845_v61 = vadd.s32 4294967248, %v8780_v58 }
 0x598   :  { %2651 = vperm.xlu2 %6397, %v8761_v14   ;;  %v5893_v14 = vld [vmem:[%s11557_s2] sm:$0xff]   ;;  %4654 = vmatpush.msra.mxu1 %v5902_v4  ;;  %12100 = vst [vmem:[#allocation30_spill] sm:$0xff] %v8794_v6  ;;  %v8800_v28 = vpop.permute.xlu0 %2585 }
 0x599   :  { %v5895_v55 = vunpack.c.h.bf16 %v5893_v14  ;;  %v5894_v57 = vunpack.c.l.bf16 %v5893_v14  ;;  %12101 = vst [vmem:[#allocation45_spill] sm:$0xff] %v8811_v47 }
 0x59a   :  { %2663 = vperm.xlu1 %6398, %v8767_v27   ;;  %v8774_v23 = vpop.permute.xlu2 %2552  ;;  %v8787_v27 = vadd.f32 %v8280_v44, %v12097_v59  ;;  %4655 = vmatpush.msra.mxu1 %v5899_v46  ;;  %v2921_v44 = vperm.slane %v8734_v48, %v8790_v60  ;;  %v8814_v48 = vadd.s32 4294967272, %v8780_v58  ;;  %12108 = vst [vmem:[#allocation162_spill] sm:$0xff] %v8845_v61 }
 0x59c   :  { %v2541_v13 = vpop.permute.xlu1 %2540  ;;  %12098 = vst [vmem:[#allocation43_spill] sm:$0xff] %v8787_v27  ;;  %4656 = vmatpush.msra.mxu1 %v5898_v53  ;;  %v8824_v53 = vadd.s32 4294967256, %v8780_v58 }
 0x59d   :  { %v2925_v59 = vperm.slane %v2541_v13, %v8797_v49  ;;  %v2923_v13 = vsel %vm2922_vm1, %v2921_v44, %v2919_v42 }
 0x59e   :  { %4657 = vmatpush.msra.mxu1 %v5895_v55  ;;  %12104 = vst [vmem:[#allocation160_spill] sm:$0xff] %v8824_v53  ;;  %v2929_v55 = vperm.slane %v2544_v33, %v8814_v48 }
 0x59f   :  { %v2927_v14 = vsel %vm2926_vm2, %v2925_v59, %v2923_v13  ;;  %v2937_v59 = vperm.slane %v8695_v35, %v8824_v53  ;;  %v12109_v13 = vld [vmem:[#allocation34_spill] sm:$0xff]  ;;  %v8854_v35 = vadd.s32 4294967232, %v8780_v58 }
 0x5a0   :  { %2660 = vperm.xlu2 %6397, %v8787_v27   ;;  %v12102_v27 = vld [vmem:[#allocation32_spill] sm:$0xff]  ;;  %4658 = vmatpush.msra.mxu1 %v5894_v57  ;;  %v8839_v33 = vpop.permute.xlu0 %2594  ;;  %v8842_v57 = vadd.s32 4294967240, %v8780_v58 }
 0x5a2   :  { %2672 = vperm.xlu1 %6398, %v8794_v6   ;;  %v8806_v4 = vpop.permute.xlu2 %2561  ;;  %v8819_v6 = vadd.f32 %v8290_v9, %v12102_v27  ;;  %v2931_v9 = vsel %vm2930_vm3, %v2929_v55, %v2927_v14  ;;  %12107 = vst [vmem:[#allocation161_spill] sm:$0xff] %v8842_v57  ;;  %v12110_v14 = vld [vmem:[#allocation96_spill] sm:$0xff]  ;;  %v2941_v55 = vperm.slane %v8774_v23, %v8845_v61 }
 0x5a3   :  { %12112 = vst [vmem:[#allocation96_spill] sm:$0xff] %v8854_v35  ;;  %v2949_v23 = vperm.slane %v8715_v41, %v8854_v35 }
 0x5a4   :  { %v2547_v46 = vpop.permute.xlu1 %2546  ;;  %12103 = vst [vmem:[#allocation32_spill] sm:$0xff] %v8819_v6 }
 0x5a5   :  { %v2933_v62 = vperm.slane %v2547_v46, %v8811_v47 }
 0x5a7   :  { %v2935_v27 = vsel %vm2934_vm4, %v2933_v62, %v2931_v9  ;;  %v8851_v62 = vadd.f32 %v12110_v14, %v12109_v13  ;;  %v12113_v9 = vld [vmem:[#allocation49_spill] sm:$0xff] }
 0x5a8   :  { %2669 = vperm.xlu2 %6397, %v8819_v6   ;;  %v2939_v42 = vsel %vm2938_vm5, %v2937_v59, %v2935_v27  ;;  %v6225_v59 = vld [vmem:[%s11557_s2 + $0x78] sm:$0xff]  }
 0x5a9   :  { %12111 = vst [vmem:[#allocation34_spill] sm:$0xff] %v8851_v62  ;;  %v2943_v27 = vsel %vm2942_vm6, %v2941_v55, %v2939_v42  ;;  %v5955_v13 = vunpack.c.h.bf16 %v6225_v59  ;;  %v8875_v42 = vadd.s32 4294967224, %v8780_v58 }
 0x5aa   :  { %2681 = vperm.xlu1 %6398, %v8829_v37   ;;  %v8835_v44 = vpop.permute.xlu2 %2570  ;;  %v8860_v37 = vadd.f32 %v8333_v15, %v12113_v9  ;;  %v5954_v15 = vunpack.c.l.bf16 %v6225_v59  ;;  %v8872_v9 = vadd.s32 4294967216, %v8780_v58 }
 0x5ab   :  { %12116 = vst [vmem:[#allocation164_spill] sm:$0xff] %v8875_v42  ;;  %4664 = vmatpush.msra.mxu2 %v5955_v13  ;;  %v2953_v41 = vperm.slane %v8806_v4, %v8875_v42  ;;  %v12120_v13 = vld [vmem:[#allocation51_spill] sm:$0xff]  ;;  %v6224_v4 = vld [vmem:[%s11557_s2 + $0x70] sm:$0xff]  }
 0x5ac   :  { %v2556_v54 = vpop.permute.xlu1 %2555  ;;  %12114 = vst [vmem:[#allocation49_spill] sm:$0xff] %v8860_v37 }
 0x5ad   :  { %v2945_v46 = vperm.slane %v2556_v54, %v8842_v57  ;;  %12115 = vst [vmem:[#allocation163_spill] sm:$0xff] %v8872_v9  ;;  %4665 = vmatpush.msra.mxu2 %v5954_v15  ;;  %v5950_v15 = vunpack.c.l.bf16 %v6224_v4 }
 0x5af   :  { %v2947_v54 = vsel %vm11831_vm7, %v2945_v46, %v2943_v27  ;;  %v8879_v46 = vadd.s32 4294967208, %v8780_v58  ;;  %v8881_v27 = vpop.permute.xlu0 %2603 }
 0x5b0   :  { %2678 = vperm.xlu2 %6397, %v8851_v62   ;;  %v2951_v55 = vsel %vm11832_vm8, %v2949_v23, %v2947_v54  ;;  %v8893_v23 = vadd.f32 %v8338_v18, %v12120_v13  ;;  %v8906_v18 = vadd.s32 4294967184, %v8780_v58 }
 0x5b1   :  { %12117 = vst [vmem:[#allocation165_spill] sm:$0xff] %v8879_v46  ;;  %v2955_v54 = vsel %vm11672_vm9, %v2953_v41, %v2951_v55  ;;  %v8909_v55 = vadd.s32 4294967200, %v8780_v58 }
 0x5b2   :  { %2690 = vperm.xlu1 %6398, %v8860_v37   ;;  %v2580_v14 = vpop.permute.xlu2 %2579  ;;  %v12118_v37 = vld [vmem:[#allocation36_spill] sm:$0xff]  ;;  %12121 = vst [vmem:[#allocation51_spill] sm:$0xff] %v8893_v23 }
 0x5b3   :  { %v8888_v6 = vadd.f32 %v8306_v19, %v12118_v37  ;;  %v6223_v19 = vld [vmem:[%s11557_s2 + $0x68] sm:$0xff]   ;;  %v2961_v37 = vperm.slane %v8739_v31, %v8879_v46  ;;  %12122 = vst [vmem:[#allocation166_spill] sm:$0xff] %v8906_v18  ;;  %v2965_v13 = vperm.slane %v8835_v44, %v8909_v55 }
 0x5b4   :  { %v2565_v62 = vpop.permute.xlu1 %2564  ;;  %12123 = vst [vmem:[#allocation167_spill] sm:$0xff] %v8909_v55  ;;  %v5947_v31 = vunpack.c.h.bf16 %v6223_v19  ;;  %v5946_v38 = vunpack.c.l.bf16 %v6223_v19 }
 0x5b5   :  { %v2957_v59 = vperm.slane %v2565_v62, %v8872_v9  ;;  %12119 = vst [vmem:[#allocation36_spill] sm:$0xff] %v8888_v6  ;;  %v5951_v62 = vunpack.c.h.bf16 %v6224_v4 }
 0x5b7   :  { %v2959_v25 = vsel %vm11673_vm10, %v2957_v59, %v2955_v54  ;;  %v8915_v59 = vadd.s32 4294967192, %v8780_v58  ;;  %4666 = vmatpush.msra.mxu2 %v5951_v62  ;;  %v8931_v44 = vpop.permute.xlu0 %2612 }
 0x5b8   :  { %2687 = vperm.xlu2 %6397, %v8888_v6   ;;  %v2963_v54 = vsel %vm11833_vm11, %v2961_v37, %v2959_v25  ;;  %v8921_v6 = vadd.s32 4294967176, %v8780_v58  ;;  %v2973_v25 = vperm.slane %v8763_v8, %v8906_v18  ;;  %v6221_v8 = vld [vmem:[%s11557_s2 + $0x58] sm:$0xff]  }
 0x5b9   :  { %12124 = vst [vmem:[#allocation168_spill] sm:$0xff] %v8915_v59  ;;  %4667 = vmatpush.msra.mxu2 %v5950_v15  ;;  %v2967_v37 = vsel %vm11762_vm12, %v2965_v13, %v2963_v54  ;;  %v12129_v15 = vld [vmem:[#allocation101_spill] sm:$0xff]  ;;  %v5942_v54 = vunpack.c.l.bf16 %v6222_v5 }
 0x5ba   :  { %2699 = vperm.xlu1 %6398, %v8893_v23   ;;  %v8912_v41 = vpop.permute.xlu2 %2588  ;;  %12125 = vst [vmem:[#allocation169_spill] sm:$0xff] %v8921_v6  ;;  %v2977_v62 = vperm.slane %v2580_v14, %v8921_v6 }
 0x5bb   :  { %4668 = vmatpush.msra.mxu2 %v5947_v31 }
 0x5bc   :  { %v2574_v4 = vpop.permute.xlu1 %2573 }
 0x5bd   :  { %v2969_v23 = vperm.slane %v2574_v4, %v8915_v59  ;;  %v12128_v4 = vld [vmem:[#allocation53_spill] sm:$0xff]  ;;  %4669 = vmatpush.msra.mxu2 %v5946_v38  ;;  %v6220_v38 = vld [vmem:[%s11557_s2 + $0x50] sm:$0xff]  }
 0x5be   :  { %v8937_v19 = vadd.f32 %v12129_v15, %v12128_v4 }
 0x5bf   :  { %v2971_v43 = vsel %vm11760_vm13, %v2969_v23, %v2967_v37  ;;  %v5943_v23 = vunpack.c.h.bf16 %v6222_v5  ;;  %v12131_v37 = vld [vmem:[#allocation40_spill] sm:$0xff]  ;;  %v8964_v5 = vpop.permute.xlu0 %2621 }
 0x5c0   :  { %12130 = vst [vmem:[#allocation53_spill] sm:$0xff] %v8937_v19  ;;  %2696 = vperm.xlu2 %6397, %v8926_v26   ;;  %v2975_v29 = vsel %vm11758_vm14, %v2973_v25, %v2971_v43  ;;  %v5939_v43 = vunpack.c.h.bf16 %v6221_v8  ;;  %v5938_v25 = vunpack.c.l.bf16 %v6221_v8  ;;  %v8954_v4 = vadd.f32 %v8342_v36, %v12131_v37  ;;  %v6219_v36 = vld [vmem:[%s11557_s2 + $0x48] sm:$0xff]  }
 0x5c1   :  { %v8948_v14 = vsel %vm11755_vm15, %v2977_v62, %v2975_v29  ;;  %4670 = vmatpush.msra.mxu2 %v5943_v23  ;;  %v12133_v62 = vld [vmem:[#allocation55_spill] sm:$0xff]  ;;  %v5935_v29 = vunpack.c.h.bf16 %v6220_v38  ;;  %v5934_v8 = vunpack.c.l.bf16 %v6220_v38  ;;  %v2981_v37 = vperm.slane %v8800_v28, %v8790_v60  ;;  %v12135_v38 = vld [vmem:[#allocation42_spill] sm:$0xff] }
 0x5c2   :  { %2708 = vperm.xlu1 %6398, %v8937_v19   ;;  %4659 = vmatmul.f32.vlgmr.msra.gmra.mxu1 %v8948_v14  ;;  %v2598_v31 = vpop.permute.xlu2 %2597  ;;  %12132 = vst [vmem:[#allocation101_spill] sm:$0xff] %v8954_v4  ;;  %v8961_v15 = vadd.f32 %v8357_v21, %v12133_v62  ;;  %v5930_v62 = vunpack.c.l.bf16 %v6219_v36  ;;  %v12136_v19 = vld [vmem:[#allocation57_spill] sm:$0xff]  ;;  %v2983_v28 = vperm.slane %v8912_v41, %v8797_v49  ;;  %v12137_v41 = vld [vmem:[#allocation44_spill] sm:$0xff] }
 0x5c3   :  { %4671 = vmatpush.msra.mxu2 %v5942_v54  ;;  %v8984_v26 = vadd.f32 %v8365_v22, %v12136_v19  ;;  %v2987_v22 = vperm.slane %v8839_v33, %v8811_v47 }
 0x5c4   :  { %v2583_v13 = vpop.permute.xlu1 %2582  ;;  %12134 = vst [vmem:[#allocation40_spill] sm:$0xff] %v8961_v15 }
 0x5c5   :  { %4672 = vmatpush.msra.mxu2 %v5939_v43  ;;  %v2980_v54 = vperm.slane %v2583_v13, %v8780_v58  ;;  %v5931_v43 = vunpack.c.h.bf16 %v6219_v36 }
 0x5c7   :  { %4673 = vmatpush.msra.mxu2 %v5938_v25  ;;  %v6218_v25 = vld [vmem:[%s11557_s2 + $0x40] sm:$0xff]  }
 0x5c8   :  { %2705 = vperm.xlu2 %6397, %v8954_v4   ;;  %v8978_v4 = vadd.f32 %v8346_v30, %v12135_v38  ;;  %v12139_v38 = vld [vmem:[#allocation59_spill] sm:$0xff] }
 0x5c9   :  { %4674 = vmatpush.msra.mxu2 %v5935_v29  ;;  %v5927_v29 = vunpack.c.h.bf16 %v6218_v25 }
 0x5ca   :  { %2717 = vperm.xlu1 %6398, %v8961_v15   ;;  %v2607_v23 = vpop.permute.xlu2 %2606  ;;  %v2982_v15 = vsel %vm2922_vm1, %v2981_v37, %v2980_v54  ;;  %v8991_v54 = vpop.permute.xlu0 %2630 }
 0x5cb   :  { %4675 = vmatpush.msra.mxu2 %v5934_v8  ;;  %v5926_v8 = vunpack.c.l.bf16 %v6218_v25  ;;  %v2984_v30 = vsel %vm2926_vm2, %v2983_v28, %v2982_v15  ;;  %v2989_v25 = vperm.slane %v2598_v31, %v8824_v53  ;;  %v9005_v28 = vadd.f32 %v8394_v11, %v12139_v38 }
 0x5cc   :  { %v2592_v21 = vpop.permute.xlu1 %2591  ;;  %v2993_v31 = vperm.slane %v8881_v27, %v8842_v57 }
 0x5cd   :  { %v2985_v13 = vperm.slane %v2592_v21, %v8814_v48  ;;  %4676 = vmatpush.msra.mxu2 %v5931_v43  ;;  %v12138_v21 = vld [vmem:[#allocation104_spill] sm:$0xff] }
 0x5ce   :  { %v8998_v37 = vadd.f32 %v12138_v21, %v12137_v41  ;;  %v12140_v21 = vld [vmem:[#allocation46_spill] sm:$0xff] }
 0x5cf   :  { %4677 = vmatpush.msra.mxu2 %v5930_v62  ;;  %v2986_v43 = vsel %vm2930_vm3, %v2985_v13, %v2984_v30  ;;  %v6233_v13 = vld [vmem:[%s11557_s2 + $0xb8] sm:$0xff]  }
 0x5d0   :  { %2714 = vperm.xlu2 %6397, %v8978_v4   ;;  %v2988_v62 = vsel %vm2934_vm4, %v2987_v22, %v2986_v43  ;;  %v5987_v30 = vunpack.c.h.bf16 %v6233_v13  ;;  %v5986_v43 = vunpack.c.l.bf16 %v6233_v13 }
 0x5d1   :  { %4678 = vmatpush.msra.mxu2 %v5927_v29  ;;  %v2990_v33 = vsel %vm2938_vm5, %v2989_v25, %v2988_v62  ;;  %v9022_v62 = vadd.f32 %v8374_v34, %v12140_v21  ;;  %v12141_v25 = vld [vmem:[#allocation61_spill] sm:$0xff]  ;;  %v6231_v34 = vld [vmem:[%s11557_s2 + $0xa8] sm:$0xff]  }
 0x5d2   :  { %2726 = vperm.xlu1 %6398, %v8984_v26   ;;  %v2616_v36 = vpop.permute.xlu2 %2615  ;;  %4685 = vmatpush.msra.mxu3 %v5987_v30  ;;  %v9016_v22 = vpop.permute.xlu0 %2639  ;;  %v9027_v38 = vadd.f32 %v8399_v56, %v12141_v25  ;;  %v2999_v56 = vperm.slane %v8931_v44, %v8872_v9 }
 0x5d3   :  { %4679 = vmatpush.msra.mxu2 %v5926_v8 }
 0x5d4   :  { %v2601_v19 = vpop.permute.xlu1 %2600  ;;  %4686 = vmatpush.msra.mxu3 %v5986_v43  ;;  %12142 = vst [vmem:[#allocation55_spill] sm:$0xff] %v9027_v38 }
 0x5d5   :  { %v2991_v15 = vperm.slane %v2601_v19, %v8845_v61 }
 0x5d7   :  { %v2992_v29 = vsel %vm2942_vm6, %v2991_v15, %v2990_v33  ;;  %v2995_v15 = vperm.slane %v2607_v23, %v8854_v35  ;;  %v6232_v33 = vld [vmem:[%s11557_s2 + $0xb0] sm:$0xff]  }
 0x5d8   :  { %2723 = vperm.xlu2 %6397, %v8998_v37   ;;  %v2994_v19 = vsel %vm11831_vm7, %v2993_v31, %v2992_v29  ;;  %v5983_v23 = vunpack.c.h.bf16 %v6232_v33  ;;  %v5982_v29 = vunpack.c.l.bf16 %v6232_v33  ;;  %v5979_v31 = vunpack.c.h.bf16 %v6231_v34  ;;  %v12144_v33 = vld [vmem:[#allocation63_spill] sm:$0xff] }
 0x5d9   :  { %v2996_v27 = vsel %vm11832_vm8, %v2995_v15, %v2994_v19  ;;  %v3001_v19 = vperm.slane %v2616_v36, %v8879_v46  ;;  %v12143_v15 = vld [vmem:[#allocation48_spill] sm:$0xff]  ;;  %v6230_v36 = vld [vmem:[%s11557_s2 + $0xa0] sm:$0xff]  }
 0x5da   :  { %2735 = vperm.xlu1 %6398, %v9005_v28   ;;  %v2625_v8 = vpop.permute.xlu2 %2624  ;;  %4687 = vmatpush.msra.mxu3 %v5983_v23  ;;  %v9048_v25 = vadd.f32 %v8378_v40, %v12143_v15  ;;  %v9050_v44 = vpop.permute.xlu0 %2648  ;;  %v12145_v23 = vld [vmem:[#allocation107_spill] sm:$0xff]  ;;  %v6229_v40 = vld [vmem:[%s11557_s2 + $0x98] sm:$0xff]  }
 0x5dc   :  { %v2610_v11 = vpop.permute.xlu1 %2609  ;;  %4688 = vmatpush.msra.mxu3 %v5982_v29  ;;  %v5975_v29 = vunpack.c.h.bf16 %v6230_v36 }
 0x5dd   :  { %v2997_v41 = vperm.slane %v2610_v11, %v8875_v42 }
 0x5de   :  { %4689 = vmatpush.msra.mxu3 %v5979_v31 }
 0x5df   :  { %v2998_v13 = vsel %vm11672_vm9, %v2997_v41, %v2996_v27  ;;  %v5978_v41 = vunpack.c.l.bf16 %v6231_v34  ;;  %v3005_v34 = vperm.slane %v8964_v5, %v8915_v59 }
 0x5e0   :  { %2732 = vperm.xlu2 %6397, %v9022_v62   ;;  %v3000_v43 = vsel %vm11673_vm10, %v2999_v56, %v2998_v13  ;;  %v5974_v56 = vunpack.c.l.bf16 %v6230_v36 }
 0x5e1   :  { %v3002_v27 = vsel %vm11833_vm11, %v3001_v19, %v3000_v43  ;;  %4690 = vmatpush.msra.mxu3 %v5978_v41  ;;  %v3007_v19 = vperm.slane %v2625_v8, %v8906_v18  ;;  %v12147_v8 = vld [vmem:[#allocation65_spill] sm:$0xff] }
 0x5e2   :  { %2744 = vperm.xlu1 %6398, %v9027_v38   ;;  %v9041_v30 = vpop.permute.xlu2 %2633  ;;  %v9055_v38 = vadd.f32 %v12145_v23, %v12144_v33  ;;  %v12146_v33 = vld [vmem:[#allocation50_spill] sm:$0xff]  ;;  %v9082_v36 = vadd.f32 %v8418_v2, %v12147_v8 }
 0x5e3   :  { %4691 = vmatpush.msra.mxu3 %v5975_v29  ;;  %v9073_v5 = vadd.f32 %v8403_v12, %v12146_v33  ;;  %v9092_v29 = vpop.permute.xlu0 %2657 }
 0x5e4   :  { %v2619_v11 = vpop.permute.xlu1 %2618 }
 0x5e5   :  { %v3003_v21 = vperm.slane %v2619_v11, %v8909_v55  ;;  %v5971_v11 = vunpack.c.h.bf16 %v6229_v40  ;;  %4692 = vmatpush.msra.mxu3 %v5974_v56 }
 0x5e7   :  { %v3004_v13 = vsel %vm11762_vm12, %v3003_v21, %v3002_v27  ;;  %v5970_v27 = vunpack.c.l.bf16 %v6229_v40  ;;  %4693 = vmatpush.msra.mxu3 %v5971_v11 }
 0x5e8   :  { %2741 = vperm.xlu2 %6397, %v9048_v25   ;;  %v3006_v43 = vsel %vm11760_vm13, %v3005_v34, %v3004_v13  ;;  %v6228_v13 = vld [vmem:[%s11557_s2 + $0x90] sm:$0xff]   ;;  %v6227_v34 = vld [vmem:[%s11557_s2 + $0x88] sm:$0xff]  }
 0x5e9   :  { %v3008_v41 = vsel %vm11758_vm14, %v3007_v19, %v3006_v43  ;;  %v5967_v12 = vunpack.c.h.bf16 %v6228_v13  ;;  %4694 = vmatpush.msra.mxu3 %v5970_v27  ;;  %v5966_v56 = vunpack.c.l.bf16 %v6228_v13  ;;  %v5963_v43 = vunpack.c.h.bf16 %v6227_v34  ;;  %v6226_v19 = vld [vmem:[%s11557_s2 + $0x80] sm:$0xff]   ;;  %v12149_v13 = vld [vmem:[#allocation67_spill] sm:$0xff] }
 0x5ea   :  { %2753 = vperm.xlu1 %6398, %v9055_v38   ;;  %v2643_v31 = vpop.permute.xlu2 %2642  ;;  %v3012_v27 = vperm.slane %v9041_v30, %v8790_v60  ;;  %v9109_v8 = vadd.f32 %v8426_v0, %v12149_v13  ;;  %v12150_v0 = vld [vmem:[#allocation54_spill] sm:$0xff] }
 0x5eb   :  { %4695 = vmatpush.msra.mxu3 %v5967_v12  ;;  %v5958_v12 = vunpack.c.l.bf16 %v6226_v19 }
 0x5ec   :  { %v2628_v21 = vpop.permute.xlu1 %2627 }
 0x5ed   :  { %v3009_v15 = vperm.slane %v2628_v21, %v8921_v6  ;;  %4696 = vmatpush.msra.mxu3 %v5966_v56  ;;  %v12148_v21 = vld [vmem:[#allocation52_spill] sm:$0xff] }
 0x5ef   :  { %v3010_v23 = vsel %vm11755_vm15, %v3009_v15, %v3008_v41  ;;  %v9100_v15 = vadd.f32 %v8407_v17, %v12148_v21  ;;  %4697 = vmatpush.msra.mxu3 %v5963_v43  ;;  %v5959_v41 = vunpack.c.h.bf16 %v6226_v19 }
 0x5f0   :  { %v9086_v40 = vsel %vm11652_vm0, %v3010_v23, %v8948_v14  ;;  %4680 = vmatmul.f32.vlgmr.msra.gmra.mxu2 %v3010_v23  ;;  %2750 = vperm.xlu2 %6397, %v9073_v5   ;;  %v5962_v14 = vunpack.c.l.bf16 %v6227_v34  ;;  %v3011_v23 = vperm.slane %v8991_v54, %v8780_v58  ;;  %v9114_v34 = vpop.permute.xlu0 %2666  ;;  %v3016_v54 = vperm.slane %v9016_v22, %v8814_v48 }
 0x5f1   :  { %vm11654_vm0 = vcmask 1042434  }
 0x5f2   :  { %2762 = vperm.xlu1 %6398, %v9082_v36   ;;  %v2652_v2 = vpop.permute.xlu2 %2651  ;;  %4698 = vmatpush.msra.mxu3 %v5962_v14  ;;  %v3013_v17 = vsel %vm2922_vm1, %v3012_v27, %v3011_v23  ;;  %v3018_v27 = vperm.slane %v2643_v31, %v8811_v47  ;;  %v12152_v23 = vld [vmem:[#allocation69_spill] sm:$0xff]  ;;  %v3022_v31 = vperm.slane %v9050_v44, %v8845_v61 }
 0x5f3   :  { %v9128_v13 = vadd.f32 %v8455_v10, %v12152_v23 }
 0x5f4   :  { %v2637_v11 = vpop.permute.xlu1 %2636  ;;  %4699 = vmatpush.msra.mxu3 %v5959_v41 }
 0x5f5   :  { %v3014_v33 = vperm.slane %v2637_v11, %v8797_v49  ;;  %v12151_v11 = vld [vmem:[#allocation109_spill] sm:$0xff] }
 0x5f6   :  { %4700 = vmatpush.msra.mxu3 %v5958_v12  ;;  %v9121_v21 = vadd.f32 %v12151_v11, %v12150_v0  ;;  %v6241_v12 = vld [vmem:[%s11557_s2 + $0xf8] sm:$0xff]   ;;  %v12153_v0 = vld [vmem:[#allocation56_spill] sm:$0xff] }
 0x5f7   :  { %v3015_v56 = vsel %vm2926_vm2, %v3014_v33, %v3013_v17  ;;  %v6019_v17 = vunpack.c.h.bf16 %v6241_v12  ;;  %v9143_v11 = vadd.f32 %v8435_v52, %v12153_v0  ;;  %v6018_v23 = vunpack.c.l.bf16 %v6241_v12  ;;  %v6239_v12 = vld [vmem:[%s11557_s2 + $0xe8] sm:$0xff]  }
 0x5f8   :  { %2759 = vperm.xlu2 %6397, %v9100_v15   ;;  %v3017_v14 = vsel %vm2930_vm3, %v3016_v54, %v3015_v56  ;;  %v2676_v10 = vpop.permute.xlu0 %2675  ;;  %v3028_v52 = vperm.slane %v9092_v29, %v8875_v42  ;;  %v12156_v29 = vld [vmem:[#allocation58_spill] sm:$0xff] }
 0x5f9   :  { %v3019_v22 = vsel %vm2934_vm4, %v3018_v27, %v3017_v14  ;;  %4706 = vmatpush.msrb.mxu0 %v6019_v17  ;;  %v3024_v14 = vperm.slane %v2652_v2, %v8842_v57 }
 0x5fa   :  { %2771 = vperm.xlu1 %6398, %v9109_v8   ;;  %v2661_v30 = vpop.permute.xlu2 %2660 }
 0x5fb   :  { %4707 = vmatpush.msrb.mxu0 %v6018_v23  ;;  %v12157_v23 = vld [vmem:[#allocation74_spill] sm:$0xff] }
 0x5fc   :  { %v2646_v43 = vpop.permute.xlu1 %2645 }
 0x5fd   :  { %v3020_v19 = vperm.slane %v2646_v43, %v8824_v53 }
 0x5ff   :  { %v3021_v33 = vsel %vm2938_vm5, %v3020_v19, %v3019_v22  ;;  %v12154_v19 = vld [vmem:[#allocation71_spill] sm:$0xff]  ;;  %v6240_v22 = vld [vmem:[%s11557_s2 + $0xf0] sm:$0xff]  }
 0x600   :  { %2768 = vperm.xlu2 %6397, %v9121_v21   ;;  %v3023_v54 = vsel %vm2942_vm6, %v3022_v31, %v3021_v33  ;;  %v9148_v27 = vadd.f32 %v8460_v63, %v12154_v19  ;;  %v6015_v31 = vunpack.c.h.bf16 %v6240_v22  ;;  %v6014_v63 = vunpack.c.l.bf16 %v6240_v22  ;;  %v9171_v19 = vpop.permute.xlu0 %2684  ;;  %v12158_v22 = vld [vmem:[#allocation115_spill] sm:$0xff] }
 0x601   :  { %v3025_v44 = vsel %vm11831_vm7, %v3024_v14, %v3023_v54  ;;  %v6011_v54 = vunpack.c.h.bf16 %v6239_v12  ;;  %v9169_v14 = vadd.f32 %v8439_v16, %v12156_v29  ;;  %v6238_v16 = vld [vmem:[%s11557_s2 + $0xe0] sm:$0xff]  }
 0x602   :  { %2780 = vperm.xlu1 %6398, %v9128_v13   ;;  %v2670_v41 = vpop.permute.xlu2 %2669  ;;  %12155 = vst [vmem:[#allocation42_spill] sm:$0xff] %v9148_v27  ;;  %4708 = vmatpush.msrb.mxu0 %v6015_v31  ;;  %v3034_v31 = vperm.slane %v9114_v34, %v8909_v55  ;;  %v3040_v34 = vperm.slane %v2676_v10, %v8921_v6 }
 0x604   :  { %v2655_v56 = vpop.permute.xlu1 %2654  ;;  %4709 = vmatpush.msrb.mxu0 %v6014_v63 }
 0x605   :  { %v3026_v43 = vperm.slane %v2655_v56, %v8854_v35 }
 0x606   :  { %4710 = vmatpush.msrb.mxu0 %v6011_v54 }
 0x607   :  { %v3027_v33 = vsel %vm11832_vm8, %v3026_v43, %v3025_v44  ;;  %v3030_v43 = vperm.slane %v2661_v30, %v8872_v9  ;;  %v6010_v30 = vunpack.c.l.bf16 %v6239_v12  ;;  %v3036_v12 = vperm.slane %v2670_v41, %v8915_v59 }
 0x608   :  { %2777 = vperm.xlu2 %6397, %v9143_v11   ;;  %v3029_v17 = vsel %vm11672_vm9, %v3028_v52, %v3027_v33  ;;  %v6007_v52 = vunpack.c.h.bf16 %v6238_v16 }
 0x609   :  { %v3031_v44 = vsel %vm11673_vm10, %v3030_v43, %v3029_v17  ;;  %4711 = vmatpush.msrb.mxu0 %v6010_v30  ;;  %v6006_v17 = vunpack.c.l.bf16 %v6238_v16 }
 0x60a   :  { %2789 = vperm.xlu1 %6398, %v9148_v27   ;;  %v9159_v2 = vpop.permute.xlu2 %2678  ;;  %v9176_v27 = vadd.f32 %v12158_v22, %v12157_v23 }
 0x60b   :  { %4712 = vmatpush.msrb.mxu0 %v6007_v52 }
 0x60c   :  { %v2664_v56 = vpop.permute.xlu1 %2663 }
 0x60d   :  { %v3032_v0 = vperm.slane %v2664_v56, %v8879_v46  ;;  %v6237_v56 = vld [vmem:[%s11557_s2 + $0xd8] sm:$0xff]   ;;  %4713 = vmatpush.msrb.mxu0 %v6006_v17 }
 0x60e   :  { %v6002_v10 = vunpack.c.l.bf16 %v6237_v56 }
 0x60f   :  { %v3033_v33 = vsel %vm11833_vm11, %v3032_v0, %v3031_v44  ;;  %v6003_v0 = vunpack.c.h.bf16 %v6237_v56  ;;  %v12159_v44 = vld [vmem:[#allocation60_spill] sm:$0xff]  ;;  %v6235_v56 = vld [vmem:[%s11557_s2 + $0xc8] sm:$0xff]  }
 0x610   :  { %2786 = vperm.xlu2 %6397, %v9169_v14   ;;  %v3035_v54 = vsel %vm11762_vm12, %v3034_v31, %v3033_v33  ;;  %v9195_v23 = vadd.f32 %v8464_v20, %v12159_v44  ;;  %v12160_v33 = vld [vmem:[#allocation77_spill] sm:$0xff]  ;;  %v6236_v20 = vld [vmem:[%s11557_s2 + $0xd0] sm:$0xff]   ;;  %v2694_v31 = vpop.permute.xlu0 %2693  ;;  %v6234_v44 = vld [vmem:[%s11557_s2 + $0xc0] sm:$0xff]  }
 0x611   :  { %v3037_v22 = vsel %vm11760_vm13, %v3036_v12, %v3035_v54  ;;  %v9201_v41 = vadd.f32 %v8479_v51, %v12160_v33  ;;  %4714 = vmatpush.msrb.mxu0 %v6003_v0  ;;  %v5999_v17 = vunpack.c.h.bf16 %v6236_v20  ;;  %v5998_v54 = vunpack.c.l.bf16 %v6236_v20  ;;  %v12161_v0 = vld [vmem:[#allocation62_spill] sm:$0xff] }
 0x612   :  { %2798 = vperm.xlu1 %6398, %v9176_v27   ;;  %v2688_v63 = vpop.permute.xlu2 %2687  ;;  %v5991_v33 = vunpack.c.h.bf16 %v6234_v44 }
 0x613   :  { %4715 = vmatpush.msrb.mxu0 %v6002_v10  ;;  %v5990_v10 = vunpack.c.l.bf16 %v6234_v44  ;;  %v12165_v44 = vld [vmem:[#allocation83_spill] sm:$0xff] }
 0x614   :  { %v2673_v43 = vpop.permute.xlu1 %2672 }
 0x615   :  { %v3038_v29 = vperm.slane %v2673_v43, %v8906_v18  ;;  %4716 = vmatpush.msrb.mxu0 %v5999_v17  ;;  %v5995_v43 = vunpack.c.h.bf16 %v6235_v56 }
 0x617   :  { %v3039_v30 = vsel %vm11758_vm14, %v3038_v29, %v3037_v22  ;;  %v9218_v29 = vadd.f32 %v8468_v39, %v12161_v0  ;;  %4717 = vmatpush.msrb.mxu0 %v5998_v54  ;;  %v12162_v22 = vld [vmem:[#allocation80_spill] sm:$0xff]  ;;  %v3042_v39 = vperm.slane %v9159_v2, %v8780_v58  ;;  %v3045_v54 = vperm.slane %v9171_v19, %v8797_v49 }
 0x618   :  { %2795 = vperm.xlu2 %6397, %v9195_v23   ;;  %v3041_v16 = vsel %vm11755_vm15, %v3040_v34, %v3039_v30  ;;  %v9226_v30 = vadd.f32 %v8487_v1, %v12162_v22  ;;  %v2703_v20 = vpop.permute.xlu0 %2702  ;;  %v9244_v22 = vadd.f32 %v8516_v24, %v12165_v44 }
 0x619   :  { %v9210_v52 = vsel %vm11654_vm0, %v3041_v16, %v9086_v40  ;;  %4701 = vmatmul.f32.vlgmr.msra.gmra.mxu3 %v3041_v16  ;;  %v5994_v40 = vunpack.c.l.bf16 %v6235_v56  ;;  %4718 = vmatpush.msrb.mxu0 %v5995_v43  ;;  %v12163_v56 = vld [vmem:[#allocation64_spill] sm:$0xff]  ;;  %vm11665_vm0 = vcmask 1043459  }
 0x61a   :  { %2807 = vperm.xlu1 %6398, %v9201_v41   ;;  %v2697_v51 = vpop.permute.xlu2 %2696 }
 0x61b   :  { %4719 = vmatpush.msrb.mxu0 %v5994_v40  ;;  %v3047_v40 = vperm.slane %v2688_v63, %v8814_v48 }
 0x61c   :  { %v2682_v12 = vpop.permute.xlu1 %2681 }
 0x61d   :  { %v3043_v34 = vperm.slane %v2682_v12, %v8790_v60  ;;  %4720 = vmatpush.msrb.mxu0 %v5991_v33  ;;  %v12164_v12 = vld [vmem:[#allocation121_spill] sm:$0xff] }
 0x61e   :  { %v9237_v43 = vadd.f32 %v12164_v12, %v12163_v56  ;;  %v3053_v56 = vperm.slane %v2697_v51, %v8845_v61  ;;  %v12167_v12 = vld [vmem:[#allocation86_spill] sm:$0xff] }
 0x61f   :  { %v3044_v17 = vsel %vm2922_vm1, %v3043_v34, %v3042_v39  ;;  %4721 = vmatpush.msrb.mxu0 %v5990_v10  ;;  %v3051_v39 = vperm.slane %v2694_v31, %v8824_v53  ;;  %v6249_v31 = vld [vmem:[%s11557_s2 + $0x138] sm:$0xff]  }
 0x620   :  { %2804 = vperm.xlu2 %6397, %v9218_v29   ;;  %v3046_v0 = vsel %vm2926_vm2, %v3045_v54, %v3044_v17  ;;  %v2712_v54 = vpop.permute.xlu0 %2711  ;;  %v6051_v44 = vunpack.c.h.bf16 %v6249_v31 }
 0x621   :  { %v3048_v19 = vsel %vm2930_vm3, %v3047_v40, %v3046_v0  ;;  %v9260_v0 = vadd.f32 %v8521_v3, %v12167_v12  ;;  %v12170_v12 = vld [vmem:[#allocation129_spill] sm:$0xff] }
 0x622   :  { %2816 = vperm.xlu1 %6398, %v9226_v30   ;;  %v2706_v16 = vpop.permute.xlu2 %2705  ;;  %4727 = vmatpush.msrb.mxu1 %v6051_v44 }
 0x624   :  { %v2691_v1 = vpop.permute.xlu1 %2690 }
 0x625   :  { %v3049_v2 = vperm.slane %v2691_v1, %v8811_v47  ;;  %v12166_v1 = vld [vmem:[#allocation66_spill] sm:$0xff] }
 0x626   :  { %v9255_v24 = vadd.f32 %v8496_v7, %v12166_v1  ;;  %v3057_v7 = vperm.slane %v2703_v20, %v8854_v35  ;;  %v12168_v1 = vld [vmem:[#allocation68_spill] sm:$0xff] }
 0x627   :  { %v3050_v34 = vsel %vm2934_vm4, %v3049_v2, %v3048_v19  ;;  %v6050_v19 = vunpack.c.l.bf16 %v6249_v31 }
 0x628   :  { %2813 = vperm.xlu2 %6397, %v9237_v43   ;;  %v3052_v10 = vsel %vm2938_vm5, %v3051_v39, %v3050_v34  ;;  %v2721_v39 = vpop.permute.xlu0 %2720 }
 0x629   :  { %v3054_v2 = vsel %vm2942_vm6, %v3053_v56, %v3052_v10  ;;  %4728 = vmatpush.msrb.mxu1 %v6050_v19  ;;  %v12169_v56 = vld [vmem:[#allocation89_spill] sm:$0xff] }
 0x62a   :  { %2825 = vperm.xlu1 %6398, %v9244_v22   ;;  %v2715_v33 = vpop.permute.xlu2 %2714 }
 0x62c   :  { %v2700_v17 = vpop.permute.xlu1 %2699 }
 0x62d   :  { %v3055_v63 = vperm.slane %v2700_v17, %v8842_v57  ;;  %v3059_v17 = vperm.slane %v2706_v16, %v8875_v42  ;;  %v6248_v16 = vld [vmem:[%s11557_s2 + $0x130] sm:$0xff]  }
 0x62e   :  { %v6047_v44 = vunpack.c.h.bf16 %v6248_v16 }
 0x62f   :  { %v3056_v40 = vsel %vm11831_vm7, %v3055_v63, %v3054_v2  ;;  %v9275_v63 = vadd.f32 %v8500_v45, %v12168_v1  ;;  %v9280_v2 = vadd.f32 %v12170_v12, %v12169_v56  ;;  %v3063_v45 = vperm.slane %v2712_v54, %v8879_v46  ;;  %v12172_v12 = vld [vmem:[#allocation70_spill] sm:$0xff] }
 0x630   :  { %2822 = vperm.xlu2 %6397, %v9255_v24   ;;  %v3058_v3 = vsel %vm11832_vm8, %v3057_v7, %v3056_v40  ;;  %v6247_v40 = vld [vmem:[%s11557_s2 + $0x128] sm:$0xff]   ;;  %v6046_v7 = vunpack.c.l.bf16 %v6248_v16  ;;  %4729 = vmatpush.msrb.mxu1 %v6047_v44  ;;  %v2730_v1 = vpop.permute.xlu0 %2729  ;;  %v3069_v54 = vperm.slane %v2721_v39, %v8906_v18  ;;  %v9300_v16 = vadd.f32 %v8525_v50, %v12172_v12  ;;  %v6246_v50 = vld [vmem:[%s11557_s2 + $0x120] sm:$0xff]  }
 0x631   :  { %v3060_v20 = vsel %vm11672_vm9, %v3059_v17, %v3058_v3  ;;  %12171 = vst [vmem:[#allocation57_spill] sm:$0xff] %v9280_v2  ;;  %v3065_v17 = vperm.slane %v2715_v33, %v8909_v55  ;;  %v6042_v56 = vunpack.c.l.bf16 %v6247_v40  ;;  %v12174_v33 = vld [vmem:[#allocation92_spill] sm:$0xff] }
 0x632   :  { %2834 = vperm.xlu1 %6398, %v9260_v0   ;;  %v2724_v51 = vpop.permute.xlu2 %2723  ;;  %4730 = vmatpush.msrb.mxu1 %v6046_v7  ;;  %12173 = vst [vmem:[#allocation44_spill] sm:$0xff] %v9300_v16  ;;  %v9307_v44 = vadd.f32 %v8540_v32, %v12174_v33  ;;  %v6038_v7 = vunpack.c.l.bf16 %v6246_v50 }
 0x634   :  { %v2709_v34 = vpop.permute.xlu1 %2708  ;;  %12175 = vst [vmem:[#allocation104_spill] sm:$0xff] %v9307_v44 }
 0x635   :  { %v3061_v10 = vperm.slane %v2709_v34, %v8872_v9  ;;  %v6043_v34 = vunpack.c.h.bf16 %v6247_v40  ;;  %v6039_v40 = vunpack.c.h.bf16 %v6246_v50  ;;  %v6243_v50 = vld [vmem:[%s11557_s2 + $0x108] sm:$0xff]  }
 0x637   :  { %v3062_v31 = vsel %vm11673_vm10, %v3061_v10, %v3060_v20  ;;  %4731 = vmatpush.msrb.mxu1 %v6043_v34 }
 0x638   :  { %2831 = vperm.xlu2 %6397, %v9275_v63   ;;  %v3064_v3 = vsel %vm11833_vm11, %v3063_v45, %v3062_v31  ;;  %v3071_v31 = vperm.slane %v2724_v51, %v8921_v6  ;;  %v6245_v51 = vld [vmem:[%s11557_s2 + $0x118] sm:$0xff]  }
 0x639   :  { %4732 = vmatpush.msrb.mxu1 %v6042_v56  ;;  %v6035_v34 = vunpack.c.h.bf16 %v6245_v51  ;;  %v2739_v56 = vpop.permute.xlu0 %2738 }
 0x63a   :  { %2843 = vperm.xlu1 %6398, %v9280_v2   ;;  %v9292_v19 = vpop.permute.xlu2 %2732  ;;  %v3066_v2 = vsel %vm11762_vm12, %v3065_v17, %v3064_v3 }
 0x63b   :  { %4733 = vmatpush.msrb.mxu1 %v6039_v40 }
 0x63c   :  { %v2718_v10 = vpop.permute.xlu1 %2717 }
 0x63d   :  { %v3067_v20 = vperm.slane %v2718_v10, %v8915_v59  ;;  %4734 = vmatpush.msrb.mxu1 %v6038_v7  ;;  %v6034_v10 = vunpack.c.l.bf16 %v6245_v51  ;;  %v6027_v7 = vunpack.c.h.bf16 %v6243_v50 }
 0x63f   :  { %v3068_v45 = vsel %vm11760_vm13, %v3067_v20, %v3066_v2  ;;  %v12176_v20 = vld [vmem:[#allocation72_spill] sm:$0xff]  ;;  %4735 = vmatpush.msrb.mxu1 %v6035_v34 }
 0x640   :  { %2840 = vperm.xlu2 %6397, %v9300_v16   ;;  %v3070_v39 = vsel %vm11758_vm14, %v3069_v54, %v3068_v45  ;;  %v12177_v54 = vld [vmem:[#allocation159_spill] sm:$0xff]  ;;  %v12186_v16 = vld [vmem:[#allocation118_spill] sm:$0xff] }
 0x641   :  { %v3072_v2 = vsel %vm11755_vm15, %v3071_v31, %v3070_v39  ;;  %v9325_v12 = vadd.f32 %v12177_v54, %v12176_v20  ;;  %v6244_v31 = vld [vmem:[%s11557_s2 + $0x110] sm:$0xff]   ;;  %v12179_v45 = vld [vmem:[#allocation95_spill] sm:$0xff]  ;;  %4736 = vmatpush.msrb.mxu1 %v6034_v10  ;;  %v3074_v20 = vperm.slane %v2730_v1, %v8790_v60  ;;  %v6026_v54 = vunpack.c.l.bf16 %v6243_v50 }
 0x642   :  { %2852 = vperm.xlu1 %6398, %v9307_v44   ;;  %v9321_v32 = vsel %vm11665_vm0, %v3072_v2, %v9210_v52  ;;  %4722 = vmatmul.f32.vlgmr.msrb.gmra.mxu0 %v3072_v2  ;;  %v2742_v3 = vpop.permute.xlu2 %2741  ;;  %v12180_v52 = vld [vmem:[#allocation113_spill] sm:$0xff]  ;;  %v6031_v39 = vunpack.c.h.bf16 %v6244_v31  ;;  %v6030_v51 = vunpack.c.l.bf16 %v6244_v31  ;;  %v2748_v31 = vpop.permute.xlu0 %2747  ;;  %v12185_v44 = vld [vmem:[#allocation98_spill] sm:$0xff]  ;;  %v3076_v50 = vperm.slane %v9292_v19, %v8797_v49 }
 0x643   :  { %12178 = vst [vmem:[#allocation59_spill] sm:$0xff] %v9325_v12  ;;  %v9332_v33 = vadd.f32 %v12180_v52, %v12179_v45  ;;  %v6242_v45 = vld [vmem:[%s11557_s2 + $0x100] sm:$0xff]   ;;  %v12182_v52 = vld [vmem:[#allocation75_spill] sm:$0xff]  ;;  %v9352_v1 = vadd.f32 %v12186_v16, %v12185_v44  ;;  %v12189_v44 = vld [vmem:[#allocation112_spill] sm:$0xff]  ;;  %vm11671_vm0 = vcmask 1044484  }
 0x644   :  { %v2727_v17 = vpop.permute.xlu1 %2726  ;;  %4737 = vmatpush.msrb.mxu1 %v6031_v39  ;;  %v6023_v39 = vunpack.c.h.bf16 %v6242_v45  ;;  %v12188_v16 = vld [vmem:[#allocation78_spill] sm:$0xff] }
 0x645   :  { %12181 = vst [vmem:[#allocation46_spill] sm:$0xff] %v9332_v33  ;;  %v3073_v40 = vperm.slane %v2727_v17, %v8780_v58 }
 0x646   :  { %4738 = vmatpush.msrb.mxu1 %v6030_v51  ;;  %12187 = vst [vmem:[#allocation48_spill] sm:$0xff] %v9352_v1  ;;  %v6022_v51 = vunpack.c.l.bf16 %v6242_v45 }
 0x648   :  { %2849 = vperm.xlu2 %6397, %v9325_v12   ;;  %v12183_v12 = vld [vmem:[#allocation134_spill] sm:$0xff]  ;;  %4739 = vmatpush.msrb.mxu1 %v6027_v7  ;;  %v3080_v7 = vperm.slane %v2739_v56, %v8811_v47  ;;  %v6257_v56 = vld [vmem:[%s11557_s2 + $0x178] sm:$0xff]  }
 0x649   :  { %v9346_v10 = vadd.f32 %v12183_v12, %v12182_v52  ;;  %v9363_v52 = vadd.f32 %v12189_v44, %v12188_v16  ;;  %v12194_v16 = vld [vmem:[#allocation81_spill] sm:$0xff]  ;;  %v12195_v44 = vld [vmem:[#allocation19_spill] sm:$0xff] }
 0x64a   :  { %2861 = vperm.xlu1 %6398, %v9332_v33   ;;  %v2751_v2 = vpop.permute.xlu2 %2750  ;;  %v3075_v33 = vsel %vm2922_vm1, %v3074_v20, %v3073_v40  ;;  %4740 = vmatpush.msrb.mxu1 %v6026_v54  ;;  %v2757_v45 = vpop.permute.xlu0 %2756 }
 0x64b   :  { %12184 = vst [vmem:[#allocation61_spill] sm:$0xff] %v9346_v10  ;;  %v3077_v12 = vsel %vm2926_vm2, %v3076_v50, %v3075_v33  ;;  %v3082_v33 = vperm.slane %v2742_v3, %v8824_v53  ;;  %v12191_v50 = vld [vmem:[#allocation100_spill] sm:$0xff]  ;;  %v3086_v3 = vperm.slane %v2748_v31, %v8842_v57 }
 0x64c   :  { %v2736_v34 = vpop.permute.xlu1 %2735  ;;  %4741 = vmatpush.msrb.mxu1 %v6023_v39  ;;  %12190 = vst [vmem:[#allocation63_spill] sm:$0xff] %v9363_v52  ;;  %v6083_v39 = vunpack.c.h.bf16 %v6257_v56 }
 0x64d   :  { %v3078_v17 = vperm.slane %v2736_v34, %v8814_v48 }
 0x64e   :  { %4742 = vmatpush.msrb.mxu1 %v6022_v51  ;;  %4748 = vmatpush.msrb.mxu2 %v6083_v39  ;;  %v6255_v39 = vld [vmem:[%s11557_s2 + $0x168] sm:$0xff]  }
 0x64f   :  { %v3079_v34 = vsel %vm2930_vm3, %v3078_v17, %v3077_v12 }
 0x650   :  { %2858 = vperm.xlu2 %6397, %v9346_v10   ;;  %v3081_v19 = vsel %vm2934_vm4, %v3080_v7, %v3079_v34  ;;  %v6082_v34 = vunpack.c.l.bf16 %v6257_v56  ;;  %v6256_v56 = vld [vmem:[%s11557_s2 + $0x170] sm:$0xff]  }
 0x651   :  { %v3083_v17 = vsel %vm2938_vm5, %v3082_v33, %v3081_v19  ;;  %v3088_v19 = vperm.slane %v2751_v2, %v8854_v35  ;;  %v12197_v33 = vld [vmem:[#allocation103_spill] sm:$0xff]  ;;  %v6079_v2 = vunpack.c.h.bf16 %v6256_v56 }
 0x652   :  { %2870 = vperm.xlu1 %6398, %v9352_v1   ;;  %v2760_v40 = vpop.permute.xlu2 %2759  ;;  %v12192_v1 = vld [vmem:[#allocation99_spill] sm:$0xff]  ;;  %4749 = vmatpush.msrb.mxu2 %v6082_v34  ;;  %v3092_v34 = vperm.slane %v2757_v45, %v8872_v9 }
 0x653   :  { %v9370_v10 = vadd.f32 %v12192_v1, %v12191_v50  ;;  %v9384_v50 = vadd.f32 %v12195_v44, %v12194_v16 }
 0x654   :  { %v2745_v20 = vpop.permute.xlu1 %2744  ;;  %4750 = vmatpush.msrb.mxu2 %v6079_v2  ;;  %v12203_v2 = vld [vmem:[#allocation128_spill] sm:$0xff] }
 0x655   :  { %v3084_v54 = vperm.slane %v2745_v20, %v8845_v61  ;;  %12193 = vst [vmem:[#allocation107_spill] sm:$0xff] %v9370_v10 }
 0x656   :  { %12196 = vst [vmem:[#allocation50_spill] sm:$0xff] %v9384_v50 }
 0x657   :  { %v3085_v51 = vsel %vm2942_vm6, %v3084_v54, %v3083_v17  ;;  %v2766_v54 = vpop.permute.xlu0 %2765  ;;  %v12198_v17 = vld [vmem:[#allocation23_spill] sm:$0xff] }
 0x658   :  { %2867 = vperm.xlu2 %6397, %v9363_v52   ;;  %v3087_v7 = vsel %vm11831_vm7, %v3086_v3, %v3085_v51  ;;  %v6078_v3 = vunpack.c.l.bf16 %v6256_v56 }
 0x659   :  { %v3089_v31 = vsel %vm11832_vm8, %v3088_v19, %v3087_v7  ;;  %v6075_v7 = vunpack.c.h.bf16 %v6255_v39  ;;  %v3094_v19 = vperm.slane %v2760_v40, %v8879_v46  ;;  %v6254_v40 = vld [vmem:[%s11557_s2 + $0x160] sm:$0xff]  }
 0x65a   :  { %2879 = vperm.xlu1 %6398, %v9370_v10   ;;  %v2769_v12 = vpop.permute.xlu2 %2768  ;;  %v9389_v10 = vadd.f32 %v12198_v17, %v12197_v33  ;;  %4751 = vmatpush.msrb.mxu2 %v6078_v3  ;;  %v6074_v17 = vunpack.c.l.bf16 %v6255_v39  ;;  %v6253_v39 = vld [vmem:[%s11557_s2 + $0x158] sm:$0xff]   ;;  %v3098_v3 = vperm.slane %v2766_v54, %v8915_v59  ;;  %v12206_v54 = vld [vmem:[#allocation16_spill] sm:$0xff] }
 0x65c   :  { %v2754_v1 = vpop.permute.xlu1 %2753  ;;  %12199 = vst [vmem:[#allocation65_spill] sm:$0xff] %v9389_v10  ;;  %4752 = vmatpush.msrb.mxu2 %v6075_v7  ;;  %v6070_v7 = vunpack.c.l.bf16 %v6254_v40 }
 0x65d   :  { %v3090_v20 = vperm.slane %v2754_v1, %v8875_v42 }
 0x65e   :  { %4753 = vmatpush.msrb.mxu2 %v6074_v17 }
 0x65f   :  { %v3091_v51 = vsel %vm11672_vm9, %v3090_v20, %v3089_v31  ;;  %v12200_v20 = vld [vmem:[#allocation84_spill] sm:$0xff]  ;;  %v12201_v31 = vld [vmem:[#allocation125_spill] sm:$0xff]  ;;  %v2775_v45 = vpop.permute.xlu0 %2774 }
 0x660   :  { %2876 = vperm.xlu2 %6397, %v9384_v50   ;;  %v3093_v16 = vsel %vm11673_vm10, %v3092_v34, %v3091_v51  ;;  %v9409_v56 = vadd.f32 %v12201_v31, %v12200_v20  ;;  %v12202_v50 = vld [vmem:[#allocation106_spill] sm:$0xff]  ;;  %v6071_v34 = vunpack.c.h.bf16 %v6254_v40  ;;  %v6066_v20 = vunpack.c.l.bf16 %v6253_v39  ;;  %v12205_v31 = vld [vmem:[#allocation87_spill] sm:$0xff] }
 0x661   :  { %v9414_v52 = vadd.f32 %v12203_v2, %v12202_v50  ;;  %v9431_v17 = vadd.f32 %v12206_v54, %v12205_v31  ;;  %v6250_v54 = vld [vmem:[%s11557_s2 + $0x140] sm:$0xff]  }
 0x662   :  { %2888 = vperm.xlu1 %6398, %v9389_v10   ;;  %v9402_v1 = vpop.permute.xlu2 %2777  ;;  %v3095_v10 = vsel %vm11833_vm11, %v3094_v19, %v3093_v16  ;;  %4754 = vmatpush.msrb.mxu2 %v6071_v34  ;;  %v6067_v16 = vunpack.c.h.bf16 %v6253_v39 }
 0x663   :  { %12204 = vst [vmem:[#allocation52_spill] sm:$0xff] %v9414_v52 }
 0x664   :  { %v2763_v44 = vpop.permute.xlu1 %2762  ;;  %4755 = vmatpush.msrb.mxu2 %v6070_v7  ;;  %12207 = vst [vmem:[#allocation67_spill] sm:$0xff] %v9431_v17 }
 0x665   :  { %v3096_v33 = vperm.slane %v2763_v44, %v8909_v55  ;;  %v3100_v44 = vperm.slane %v2769_v12, %v8906_v18  ;;  %v12208_v12 = vld [vmem:[#allocation108_spill] sm:$0xff] }
 0x666   :  { %4756 = vmatpush.msrb.mxu2 %v6067_v16 }
 0x667   :  { %v3097_v51 = vsel %vm11762_vm12, %v3096_v33, %v3095_v10  ;;  %v2784_v16 = vpop.permute.xlu0 %2783 }
 0x668   :  { %2885 = vperm.xlu2 %6397, %v9409_v56   ;;  %v3099_v10 = vsel %vm11760_vm13, %v3098_v3, %v3097_v51  ;;  %v6252_v51 = vld [vmem:[%s11557_s2 + $0x150] sm:$0xff]   ;;  %4757 = vmatpush.msrb.mxu2 %v6066_v20  ;;  %v3105_v20 = vperm.slane %v9402_v1, %v8790_v60 }
 0x669   :  { %v3101_v2 = vsel %vm11758_vm14, %v3100_v44, %v3099_v10  ;;  %v12209_v3 = vld [vmem:[#allocation132_spill] sm:$0xff]  ;;  %v6063_v7 = vunpack.c.h.bf16 %v6252_v51  ;;  %v6251_v10 = vld [vmem:[%s11557_s2 + $0x148] sm:$0xff]   ;;  %v6062_v44 = vunpack.c.l.bf16 %v6252_v51 }
 0x66a   :  { %2897 = vperm.xlu1 %6398, %v9414_v52   ;;  %v2787_v50 = vpop.permute.xlu2 %2786  ;;  %v9440_v34 = vadd.f32 %v12209_v3, %v12208_v12  ;;  %v6055_v3 = vunpack.c.h.bf16 %v6250_v54  ;;  %v6054_v52 = vunpack.c.l.bf16 %v6250_v54 }
 0x66b   :  { %4758 = vmatpush.msrb.mxu2 %v6063_v7  ;;  %v3104_v7 = vperm.slane %v2775_v45, %v8780_v58  ;;  %v3111_v54 = vperm.slane %v2787_v50, %v8811_v47 }
 0x66c   :  { %v2772_v19 = vpop.permute.xlu1 %2771  ;;  %12210 = vst [vmem:[#allocation54_spill] sm:$0xff] %v9440_v34 }
 0x66d   :  { %v3102_v33 = vperm.slane %v2772_v19, %v8921_v6  ;;  %4759 = vmatpush.msrb.mxu2 %v6062_v44  ;;  %v12215_v44 = vld [vmem:[#allocation41_spill] sm:$0xff] }
 0x66f   :  { %v3103_v40 = vsel %vm11755_vm15, %v3102_v33, %v3101_v2  ;;  %v6059_v33 = vunpack.c.h.bf16 %v6251_v10  ;;  %v12211_v2 = vld [vmem:[#allocation90_spill] sm:$0xff] }
 0x670   :  { %v9444_v39 = vsel %vm11671_vm0, %v3103_v40, %v9321_v32  ;;  %4743 = vmatmul.f32.vlgmr.msrb.gmra.mxu1 %v3103_v40  ;;  %2894 = vperm.xlu2 %6397, %v9431_v17   ;;  %v6058_v32 = vunpack.c.l.bf16 %v6251_v10  ;;  %v12212_v40 = vld [vmem:[#allocation14_spill] sm:$0xff]  ;;  %v2793_v17 = vpop.permute.xlu0 %2792  ;;  %vm3205_vm0 = vcmask 1045509  }
 0x671   :  { %v9456_v12 = vadd.f32 %v12212_v40, %v12211_v2  ;;  %4760 = vmatpush.msrb.mxu2 %v6059_v33  ;;  %v3106_v2 = vsel %vm2922_vm1, %v3105_v20, %v3104_v7  ;;  %v3109_v33 = vperm.slane %v2784_v16, %v8814_v48  ;;  %v12216_v40 = vld [vmem:[#allocation93_spill] sm:$0xff] }
 0x672   :  { %2906 = vperm.xlu1 %6398, %v9440_v34   ;;  %v2796_v19 = vpop.permute.xlu2 %2795  ;;  %v12214_v34 = vld [vmem:[#allocation111_spill] sm:$0xff]  ;;  %v6265_v20 = vld [vmem:[%s11557_s2 + $0x1b8] sm:$0xff]  }
 0x673   :  { %12213 = vst [vmem:[#allocation109_spill] sm:$0xff] %v9456_v12  ;;  %v9464_v10 = vadd.f32 %v12215_v44, %v12214_v34  ;;  %4761 = vmatpush.msrb.mxu2 %v6058_v32  ;;  %v12217_v34 = vld [vmem:[#allocation37_spill] sm:$0xff] }
 0x674   :  { %v2781_v31 = vpop.permute.xlu1 %2780  ;;  %v9473_v44 = vadd.f32 %v12217_v34, %v12216_v40  ;;  %v6114_v34 = vunpack.c.l.bf16 %v6265_v20 }
 0x675   :  { %v3107_v51 = vperm.slane %v2781_v31, %v8797_v49  ;;  %4762 = vmatpush.msrb.mxu2 %v6055_v3 }
 0x676   :  { %12218 = vst [vmem:[#allocation69_spill] sm:$0xff] %v9473_v44 }
 0x677   :  { %v3108_v31 = vsel %vm2926_vm2, %v3107_v51, %v3106_v2  ;;  %4763 = vmatpush.msrb.mxu2 %v6054_v52  ;;  %v6115_v52 = vunpack.c.h.bf16 %v6265_v20  ;;  %v3115_v2 = vperm.slane %v2793_v17, %v8845_v61  ;;  %v6263_v17 = vld [vmem:[%s11557_s2 + $0x1a8] sm:$0xff]  }
 0x678   :  { %2903 = vperm.xlu2 %6397, %v9456_v12   ;;  %v3110_v12 = vsel %vm2930_vm3, %v3109_v33, %v3108_v31  ;;  %v2802_v51 = vpop.permute.xlu0 %2801 }
 0x679   :  { %v3112_v16 = vsel %vm2934_vm4, %v3111_v54, %v3110_v12  ;;  %4769 = vmatpush.msrb.mxu3 %v6115_v52  ;;  %v6264_v12 = vld [vmem:[%s11557_s2 + $0x1b0] sm:$0xff]   ;;  %v3121_v52 = vperm.slane %v2802_v51, %v8875_v42  ;;  %v6262_v51 = vld [vmem:[%s11557_s2 + $0x1a0] sm:$0xff]  }
 0x67a   :  { %2915 = vperm.xlu1 %6398, %v9464_v10   ;;  %v2805_v1 = vpop.permute.xlu2 %2804 }
 0x67b   :  { %4770 = vmatpush.msrb.mxu3 %v6114_v34 }
 0x67c   :  { %v2790_v45 = vpop.permute.xlu1 %2789 }
 0x67d   :  { %v3113_v32 = vperm.slane %v2790_v45, %v8824_v53  ;;  %v3117_v45 = vperm.slane %v2796_v19, %v8842_v57  ;;  %v6110_v19 = vunpack.c.l.bf16 %v6264_v12 }
 0x67f   :  { %v3114_v3 = vsel %vm2938_vm5, %v3113_v32, %v3112_v16  ;;  %v6111_v16 = vunpack.c.h.bf16 %v6264_v12 }
 0x680   :  { %2912 = vperm.xlu2 %6397, %v9473_v44   ;;  %v3116_v33 = vsel %vm2942_vm6, %v3115_v2, %v3114_v3  ;;  %v2811_v54 = vpop.permute.xlu0 %2810  ;;  %v6106_v44 = vunpack.c.l.bf16 %v6263_v17 }
 0x681   :  { %v3118_v40 = vsel %vm11831_vm7, %v3117_v45, %v3116_v33  ;;  %4771 = vmatpush.msrb.mxu3 %v6111_v16  ;;  %v3123_v33 = vperm.slane %v2805_v1, %v8872_v9  ;;  %v3127_v34 = vperm.slane %v2811_v54, %v8909_v55  ;;  %v6261_v1 = vld [vmem:[%s11557_s2 + $0x198] sm:$0xff]  }
 0x682   :  { %v2814_v7 = vpop.permute.xlu2 %2813 }
 0x683   :  { %4772 = vmatpush.msrb.mxu3 %v6110_v19 }
 0x684   :  { %v2799_v31 = vpop.permute.xlu1 %2798 }
 0x685   :  { %v3119_v50 = vperm.slane %v2799_v31, %v8854_v35  ;;  %v6107_v31 = vunpack.c.h.bf16 %v6263_v17 }
 0x687   :  { %v3120_v32 = vsel %vm11832_vm8, %v3119_v50, %v3118_v40  ;;  %4773 = vmatpush.msrb.mxu3 %v6107_v31 }
 0x688   :  { %v3122_v2 = vsel %vm11672_vm9, %v3121_v52, %v3120_v32  ;;  %v2820_v12 = vpop.permute.xlu0 %2819  ;;  %v6103_v32 = vunpack.c.h.bf16 %v6262_v51  ;;  %v6102_v52 = vunpack.c.l.bf16 %v6262_v51 }
 0x689   :  { %v3124_v50 = vsel %vm11673_vm10, %v3123_v33, %v3122_v2  ;;  %4774 = vmatpush.msrb.mxu3 %v6106_v44  ;;  %v3129_v2 = vperm.slane %v2814_v7, %v8915_v59  ;;  %v3133_v54 = vperm.slane %v2820_v12, %v8921_v6  ;;  %v6260_v7 = vld [vmem:[%s11557_s2 + $0x190] sm:$0xff]  }
 0x68a   :  { %v2823_v3 = vpop.permute.xlu2 %2822  ;;  %v6095_v51 = vunpack.c.h.bf16 %v6260_v7 }
 0x68b   :  { %4775 = vmatpush.msrb.mxu3 %v6103_v32  ;;  %v6094_v32 = vunpack.c.l.bf16 %v6260_v7 }
 0x68c   :  { %v2808_v20 = vpop.permute.xlu1 %2807 }
 0x68d   :  { %v3125_v45 = vperm.slane %v2808_v20, %v8879_v46  ;;  %v6099_v20 = vunpack.c.h.bf16 %v6261_v1  ;;  %4776 = vmatpush.msrb.mxu3 %v6102_v52 }
 0x68f   :  { %v3126_v40 = vsel %vm11833_vm11, %v3125_v45, %v3124_v50  ;;  %4777 = vmatpush.msrb.mxu3 %v6099_v20  ;;  %v6098_v50 = vunpack.c.l.bf16 %v6261_v1  ;;  %v6258_v20 = vld [vmem:[%s11557_s2 + $0x180] sm:$0xff]  }
 0x690   :  { %v3128_v19 = vsel %vm11762_vm12, %v3127_v34, %v3126_v40  ;;  %v6259_v34 = vld [vmem:[%s11557_s2 + $0x188] sm:$0xff]   ;;  %v2829_v52 = vpop.permute.xlu0 %2828 }
 0x691   :  { %v3130_v33 = vsel %vm11760_vm13, %v3129_v2, %v3128_v19  ;;  %4778 = vmatpush.msrb.mxu3 %v6098_v50  ;;  %v6091_v1 = vunpack.c.h.bf16 %v6259_v34  ;;  %v6090_v2 = vunpack.c.l.bf16 %v6259_v34  ;;  %v3138_v50 = vperm.slane %v2829_v52, %v8797_v49 }
 0x692   :  { %v2832_v16 = vpop.permute.xlu2 %2831 }
 0x693   :  { %4779 = vmatpush.msrb.mxu3 %v6095_v51 }
 0x694   :  { %v2817_v17 = vpop.permute.xlu1 %2816 }
 0x695   :  { %v3131_v31 = vperm.slane %v2817_v17, %v8906_v18  ;;  %4780 = vmatpush.msrb.mxu3 %v6094_v32 }
 0x697   :  { %v3132_v45 = vsel %vm11758_vm14, %v3131_v31, %v3130_v33  ;;  %4781 = vmatpush.msrb.mxu3 %v6091_v1 }
 0x698   :  { %v3134_v44 = vsel %vm11755_vm15, %v3133_v54, %v3132_v45  ;;  %v2838_v31 = vpop.permute.xlu0 %2837  ;;  %v6087_v45 = vunpack.c.h.bf16 %v6258_v20 }
 0x699   :  { %v9521_v40 = vsel %vm3205_vm0, %v3134_v44, %v9444_v39  ;;  %4764 = vmatmul.f32.vlgmr.msrb.gmra.mxu2 %v3134_v44  ;;  %v3135_v39 = vperm.slane %v2823_v3, %v8780_v58  ;;  %4782 = vmatpush.msrb.mxu3 %v6090_v2  ;;  %v6086_v44 = vunpack.c.l.bf16 %v6258_v20  ;;  %v3140_v3 = vperm.slane %v2832_v16, %v8814_v48  ;;  %v6273_v16 = vld [vmem:[%s11557_s2 + $0x1f8] sm:$0xff]  }
 0x69a   :  { %v2841_v12 = vpop.permute.xlu2 %2840  ;;  %v3144_v1 = vperm.slane %v2838_v31, %v8824_v53 }
 0x69b   :  { %4783 = vmatpush.msrb.mxu3 %v6087_v45 }
 0x69c   :  { %v2826_v19 = vpop.permute.xlu1 %2825 }
 0x69d   :  { %v3136_v17 = vperm.slane %v2826_v19, %v8790_v60  ;;  %4784 = vmatpush.msrb.mxu3 %v6086_v44 }
 0x69f   :  { %v3137_v54 = vsel %vm2922_vm1, %v3136_v17, %v3135_v39 }
 0x6a0   :  { %v3139_v51 = vsel %vm2926_vm2, %v3138_v50, %v3137_v54  ;;  %v2847_v2 = vpop.permute.xlu0 %2846  ;;  %v3146_v54 = vperm.slane %v2841_v12, %v8845_v61  ;;  %v6147_v50 = vunpack.c.h.bf16 %v6273_v16 }
 0x6a1   :  { %v3141_v32 = vsel %vm2930_vm3, %v3140_v3, %v3139_v51  ;;  %v3150_v31 = vperm.slane %v2847_v2, %v8854_v35  ;;  %v6271_v2 = vld [vmem:[%s11557_s2 + $0x1e8] sm:$0xff]  }
 0x6a2   :  { %v2850_v33 = vpop.permute.xlu2 %2849  ;;  %4790 = vmatpush.msra.mxu0 %v6147_v50 }
 0x6a4   :  { %v2835_v7 = vpop.permute.xlu1 %2834 }
 0x6a5   :  { %v3142_v34 = vperm.slane %v2835_v7, %v8811_v47  ;;  %v6146_v7 = vunpack.c.l.bf16 %v6273_v16 }
 0x6a7   :  { %v3143_v19 = vsel %vm2934_vm4, %v3142_v34, %v3141_v32  ;;  %v3152_v32 = vperm.slane %v2850_v33, %v8875_v42  ;;  %4791 = vmatpush.msra.mxu0 %v6146_v7 }
 0x6a8   :  { %v3145_v39 = vsel %vm2938_vm5, %v3144_v1, %v3143_v19  ;;  %v2856_v51 = vpop.permute.xlu0 %2855 }
 0x6a9   :  { %v3147_v45 = vsel %vm2942_vm6, %v3146_v54, %v3145_v39  ;;  %v6272_v39 = vld [vmem:[%s11557_s2 + $0x1f0] sm:$0xff]  }
 0x6aa   :  { %v2859_v52 = vpop.permute.xlu2 %2858  ;;  %v6143_v54 = vunpack.c.h.bf16 %v6272_v39  ;;  %v6142_v33 = vunpack.c.l.bf16 %v6272_v39 }
 0x6ab   :  { %v3158_v50 = vperm.slane %v2859_v52, %v8909_v55  ;;  %v6270_v52 = vld [vmem:[%s11557_s2 + $0x1e0] sm:$0xff]  }
 0x6ac   :  { %v2844_v17 = vpop.permute.xlu1 %2843  ;;  %4792 = vmatpush.msra.mxu0 %v6143_v54 }
 0x6ad   :  { %v3148_v20 = vperm.slane %v2844_v17, %v8842_v57 }
 0x6ae   :  { %4793 = vmatpush.msra.mxu0 %v6142_v33 }
 0x6af   :  { %v3149_v44 = vsel %vm11831_vm7, %v3148_v20, %v3147_v45  ;;  %v3156_v20 = vperm.slane %v2856_v51, %v8879_v46 }
 0x6b0   :  { %v3151_v34 = vsel %vm11832_vm8, %v3150_v31, %v3149_v44  ;;  %v2865_v45 = vpop.permute.xlu0 %2864  ;;  %v6139_v44 = vunpack.c.h.bf16 %v6271_v2 }
 0x6b1   :  { %v3153_v1 = vsel %vm11672_vm9, %v3152_v32, %v3151_v34  ;;  %v6138_v34 = vunpack.c.l.bf16 %v6271_v2 }
 0x6b2   :  { %v2868_v19 = vpop.permute.xlu2 %2867  ;;  %4794 = vmatpush.msra.mxu0 %v6139_v44  ;;  %v6268_v44 = vld [vmem:[%s11557_s2 + $0x1d0] sm:$0xff]  }
 0x6b3   :  { %v3164_v51 = vperm.slane %v2868_v19, %v8921_v6  ;;  %v6134_v19 = vunpack.c.l.bf16 %v6270_v52 }
 0x6b4   :  { %v2853_v3 = vpop.permute.xlu1 %2852  ;;  %4795 = vmatpush.msra.mxu0 %v6138_v34 }
 0x6b5   :  { %v3154_v12 = vperm.slane %v2853_v3, %v8872_v9  ;;  %v3162_v3 = vperm.slane %v2865_v45, %v8906_v18 }
 0x6b7   :  { %v3155_v17 = vsel %vm11673_vm10, %v3154_v12, %v3153_v1 }
 0x6b8   :  { %v3157_v16 = vsel %vm11833_vm11, %v3156_v20, %v3155_v17  ;;  %v6269_v17 = vld [vmem:[%s11557_s2 + $0x1d8] sm:$0xff]   ;;  %v6135_v20 = vunpack.c.h.bf16 %v6270_v52 }
 0x6b9   :  { %v3159_v32 = vsel %vm11762_vm12, %v3158_v50, %v3157_v16  ;;  %v6131_v54 = vunpack.c.h.bf16 %v6269_v17  ;;  %v6130_v45 = vunpack.c.l.bf16 %v6269_v17  ;;  %v2874_v16 = vpop.permute.xlu0 %2873  ;;  %v6127_v50 = vunpack.c.h.bf16 %v6268_v44 }
 0x6ba   :  { %v2877_v39 = vpop.permute.xlu2 %2876  ;;  %4796 = vmatpush.msra.mxu0 %v6135_v20 }
 0x6bc   :  { %v2862_v7 = vpop.permute.xlu1 %2861  ;;  %4797 = vmatpush.msra.mxu0 %v6134_v19  ;;  %v3169_v19 = vperm.slane %v2877_v39, %v8797_v49 }
 0x6bd   :  { %v3160_v31 = vperm.slane %v2862_v7, %v8915_v59  ;;  %v6267_v7 = vld [vmem:[%s11557_s2 + $0x1c8] sm:$0xff]  }
 0x6be   :  { %4798 = vmatpush.msra.mxu0 %v6131_v54  ;;  %v6266_v54 = vld [vmem:[%s11557_s2 + $0x1c0] sm:$0xff]  }
 0x6bf   :  { %v3161_v12 = vsel %vm11760_vm13, %v3160_v31, %v3159_v32  ;;  %v6126_v31 = vunpack.c.l.bf16 %v6268_v44  ;;  %v6123_v32 = vunpack.c.h.bf16 %v6267_v7 }
 0x6c0   :  { %v3163_v1 = vsel %vm11758_vm14, %v3162_v3, %v3161_v12  ;;  %4799 = vmatpush.msra.mxu0 %v6130_v45  ;;  %v3167_v12 = vperm.slane %v2874_v16, %v8790_v60  ;;  %v6118_v45 = vunpack.c.l.bf16 %v6266_v54 }
 0x6c1   :  { %v9575_v2 = vsel %vm11755_vm15, %v3164_v51, %v3163_v1  ;;  %v6122_v1 = vunpack.c.l.bf16 %v6267_v7  ;;  %v2883_v52 = vpop.permute.xlu0 %2882 }
 0x6c2   :  { %4785 = vmatmul.f32.vlgmr.msrb.gmra.mxu3 %v9575_v2  ;;  %v2886_v34 = vpop.permute.xlu2 %2885  ;;  %4800 = vmatpush.msra.mxu0 %v6127_v50  ;;  %v3173_v50 = vperm.slane %v2883_v52, %v8811_v47 }
 0x6c4   :  { %v2871_v33 = vpop.permute.xlu1 %2870  ;;  %4801 = vmatpush.msra.mxu0 %v6126_v31 }
 0x6c5   :  { %v3166_v3 = vperm.slane %v2871_v33, %v8780_v58  ;;  %v6119_v33 = vunpack.c.h.bf16 %v6266_v54 }
 0x6c6   :  { %4802 = vmatpush.msra.mxu0 %v6123_v32 }
 0x6c7   :  { %v3168_v17 = vsel %vm2922_vm1, %v3167_v12, %v3166_v3 }
 0x6c8   :  { %4803 = vmatpush.msra.mxu0 %v6122_v1  ;;  %v3170_v44 = vsel %vm2926_vm2, %v3169_v19, %v3168_v17 }
 0x6c9   :  { %v2892_v3 = vpop.permute.xlu0 %2891 }
 0x6ca   :  { %4804 = vmatpush.msra.mxu0 %v6119_v33  ;;  %v2895_v31 = vpop.permute.xlu2 %2894  ;;  %v3179_v17 = vperm.slane %v2892_v3, %v8842_v57 }
 0x6cb   :  { %v3181_v33 = vperm.slane %v2895_v31, %v8854_v35 }
 0x6cc   :  { %v2880_v51 = vpop.permute.xlu1 %2879  ;;  %4805 = vmatpush.msra.mxu0 %v6118_v45 }
 0x6cd   :  { %v3171_v20 = vperm.slane %v2880_v51, %v8814_v48  ;;  %v3175_v51 = vperm.slane %v2886_v34, %v8824_v53 }
 0x6cf   :  { %v3172_v16 = vsel %vm2930_vm3, %v3171_v20, %v3170_v44 }
 0x6d0   :  { %v3174_v39 = vsel %vm2934_vm4, %v3173_v50, %v3172_v16 }
 0x6d1   :  { %v3176_v12 = vsel %vm2938_vm5, %v3175_v51, %v3174_v39  ;;  %v2901_v54 = vpop.permute.xlu0 %2900 }
 0x6d2   :  { %v2904_v45 = vpop.permute.xlu2 %2903  ;;  %v3185_v34 = vperm.slane %v2901_v54, %v8872_v9 }
 0x6d3   :  { %v3187_v3 = vperm.slane %v2904_v45, %v8879_v46 }
 0x6d4   :  { %v2889_v7 = vpop.permute.xlu1 %2888 }
 0x6d5   :  { %v3177_v32 = vperm.slane %v2889_v7, %v8845_v61 }
 0x6d7   :  { %v3178_v1 = vsel %vm2942_vm6, %v3177_v32, %v3176_v12 }
 0x6d8   :  { %v3180_v19 = vsel %vm11831_vm7, %v3179_v17, %v3178_v1 }
 0x6d9   :  { %v3182_v44 = vsel %vm11832_vm8, %v3181_v33, %v3180_v19  ;;  %v2910_v32 = vpop.permute.xlu0 %2909 }
 0x6da   :  { %v3191_v31 = vperm.slane %v2910_v32, %v8915_v59  ;;  %v2913_v1 = vpop.permute.xlu2 %2912 }
 0x6dc   :  { %v2898_v20 = vpop.permute.xlu1 %2897 }
 0x6dd   :  { %v3183_v52 = vperm.slane %v2898_v20, %v8875_v42  ;;  %v3193_v20 = vperm.slane %v2913_v1, %v8906_v18  ;;  %v12222_v1 = vld [vmem:[#allocation130_spill] sm:$0xff] }
 0x6df   :  { %v3184_v16 = vsel %vm11672_vm9, %v3183_v52, %v3182_v44  ;;  %vm3207_vm9 = vcmask 1046534  }
 0x6e0   :  { %v3186_v50 = vsel %vm11673_vm10, %v3185_v34, %v3184_v16  ;;  %vm3209_vm10 = vcmask 1047559   ;;  %v3208_v45 = vsel %vm3207_vm9, %v9575_v2, %v9521_v40  ;;  %v12221_v40 = vld [vmem:[#allocation120_spill] sm:$0xff] }
 0x6e1   :  { %v3188_v51 = vsel %vm11833_vm11, %v3187_v3, %v3186_v50 }
 0x6e4   :  { %v2907_v7 = vpop.permute.xlu1 %2906 }
 0x6e5   :  { %v3189_v39 = vperm.slane %v2907_v7, %v8909_v55  ;;  %v12219_v7 = vld [vmem:[#allocation97_spill] sm:$0xff] }
 0x6e7   :  { %v3190_v12 = vsel %vm11762_vm12, %v3189_v39, %v3188_v51  ;;  %v12220_v39 = vld [vmem:[#allocation8_spill] sm:$0xff]  ;;  %vm12369_vm12 = vcmask 1044484  }
 0x6e8   :  { %v3192_v17 = vsel %vm11760_vm13, %v3191_v31, %v3190_v12  ;;  %vm12368_vm13 = vcmask 1043459  }
 0x6e9   :  { %v3194_v54 = vsel %vm11758_vm14, %v3193_v20, %v3192_v17  ;;  %v12223_v20 = vld [vmem:[#allocation17_spill] sm:$0xff]  ;;  %vm12367_vm14 = vcmask 1042434  }
 0x6ec   :  { %v2916_v19 = vpop.permute.xlu1 %2915 }
 0x6ed   :  { %v3195_v52 = vperm.slane %v2916_v19, %v8921_v6 }
 0x6ef   :  { %v3196_v33 = vsel %vm11755_vm15, %v3195_v52, %v3194_v54  ;;  %v12224_v52 = vld [vmem:[#allocation15_spill] sm:$0xff]  ;;  %vm12366_vm15 = vcmask 1041409  }
 0x6f0   :  { %4806 = vmatmul.f32.vlgmr.msra.gmra.mxu0 %v3196_v33  ;;  %v3210_v44 = vsel %vm3209_vm10, %v3196_v33, %v3208_v45 }
 0x6f1   :  { %3212 = vmax.xlane.f32.xlu0 %v3210_v44 }
 0x764   :  { %v9622_v16 = vpop.xlane.xlu0 %3212 }
 0x765   :  { %v9625_v34 = vperm.slane %v9622_v16, 0  ;;  %v9628_v50 = vperm.slane %v9622_v16, 1 }
 0x767   :  { %v3243_v3 = vsub.f32 %v12219_v7, %v9625_v34  ;;  %v3232_v32 = vsub.f32 %v12220_v39, %v9625_v34  ;;  %v3231_v2 = vsub.f32 %v12221_v40, %v9625_v34  ;;  %v3248_v17 = vsub.f32 %v12222_v1, %v9628_v50 }
 0x768   :  { %v3234_v19 = vsub.f32 %v12223_v20, %v9625_v34  ;;  %v3233_v54 = vsub.f32 %v12224_v52, %v9625_v34 }
 0x769   :  { %v3383_v51 = vmul.f32 1.442695, %v3243_v3  ;;  %v3361_v12 = vmul.f32 1.442695, %v3232_v32  ;;  %v3359_v31 = vmul.f32 1.442695, %v3231_v2 }
 0x76a   :  { %v3393_v33 = vmul.f32 1.442695, %v3248_v17  ;;  %v3365_v45 = vmul.f32 1.442695, %v3234_v19  ;;  %v3363_v7 = vmul.f32 1.442695, %v3233_v54 }
 0x76b   :  { %6657 = vpow2.f32 %v3383_v51  ;;  %v12228_v32 = vld [vmem:[#allocation131_spill] sm:$0xff]  ;;  %v12229_v2 = vld [vmem:[#allocation122_spill] sm:$0xff] }
 0x76c   :  { %6659 = vpow2.f32 %v3361_v12  ;;  %v3251_v40 = vsub.f32 %v12228_v32, %v9628_v50  ;;  %v3236_v51 = vsub.f32 %v12229_v2, %v9625_v34  ;;  %v12230_v12 = vld [vmem:[#allocation13_spill] sm:$0xff] }
 0x76d   :  { %6661 = vpow2.f32 %v3359_v31  ;;  %v3235_v31 = vsub.f32 %v12230_v12, %v9625_v34 }
 0x76e   :  { %6663 = vpow2.f32 %v3393_v33  ;;  %v3399_v1 = vmul.f32 1.442695, %v3251_v40  ;;  %v3369_v17 = vmul.f32 1.442695, %v3236_v51  ;;  %v12234_v33 = vld [vmem:[#allocation133_spill] sm:$0xff] }
 0x76f   :  { %6665 = vpow2.f32 %v3365_v45  ;;  %v3367_v19 = vmul.f32 1.442695, %v3235_v31  ;;  %v3254_v45 = vsub.f32 %v12234_v33, %v9628_v50  ;;  %v12236_v40 = vld [vmem:[#allocation117_spill] sm:$0xff] }
 0x770   :  { %6667 = vpow2.f32 %v3363_v7  ;;  %v12235_v7 = vld [vmem:[#allocation110_spill] sm:$0xff]  ;;  %v3237_v2 = vsub.f32 %v12236_v40, %v9625_v34  ;;  %v12241_v33 = vld [vmem:[#allocation21_spill] sm:$0xff] }
 0x771   :  { %v9642_v44 = vpop.eup %6657  ;;  %6669 = vpow2.f32 %v3399_v1  ;;  %v3238_v32 = vsub.f32 %v12235_v7, %v9625_v34  ;;  %v3405_v51 = vmul.f32 1.442695, %v3254_v45  ;;  %v3240_v45 = vsub.f32 %v12241_v33, %v9625_v34  ;;  %v12242_v7 = vld [vmem:[#allocation124_spill] sm:$0xff]  ;;  %v12248_v33 = vld [vmem:[#allocation9_spill] sm:$0xff] }
 0x772   :  { %12225 = vst [vmem:[#allocation56_spill] sm:$0xff] %v9642_v44  ;;  %v9644_v3 = vpop.eup %6659  ;;  %3780 = vperm.xlu0 %6396, %v9642_v44   ;;  %6671 = vpow2.f32 %v3369_v17  ;;  %v3371_v44 = vmul.f32 1.442695, %v3237_v2  ;;  %v12240_v17 = vld [vmem:[#allocation135_spill] sm:$0xff] }
 0x773   :  { %12226 = vst [vmem:[#allocation71_spill] sm:$0xff] %v9644_v3  ;;  %v9647_v39 = vpop.eup %6661  ;;  %3747 = vperm.xlu1 %6398, %v9644_v3   ;;  %6673 = vpow2.f32 %v3367_v19  ;;  %v3373_v12 = vmul.f32 1.442695, %v3238_v32  ;;  %v3257_v19 = vsub.f32 %v12240_v17, %v9628_v50  ;;  %v3239_v32 = vsub.f32 %v12242_v7, %v9625_v34  ;;  %v12247_v17 = vld [vmem:[#allocation126_spill] sm:$0xff] }
 0x774   :  { %12227 = vst [vmem:[#allocation58_spill] sm:$0xff] %v9647_v39  ;;  %3744 = vperm.xlu2 %6397, %v9647_v39   ;;  %v9657_v20 = vpop.eup %6663  ;;  %6675 = vpow2.f32 %v3405_v51  ;;  %v3377_v2 = vmul.f32 1.442695, %v3240_v45  ;;  %v3241_v45 = vsub.f32 %v12248_v33, %v9625_v34  ;;  %v9703_v7 = vperm.slane %v9622_v16, 2 }
 0x775   :  { %12231 = vst [vmem:[#allocation74_spill] sm:$0xff] %v9657_v20  ;;  %v9659_v52 = vpop.eup %6665  ;;  %6677 = vpow2.f32 %v3373_v12  ;;  %v3411_v40 = vmul.f32 1.442695, %v3257_v19  ;;  %v12246_v12 = vld [vmem:[#allocation136_spill] sm:$0xff]  ;;  %v3242_v19 = vsub.f32 %v12247_v17, %v9625_v34 }
 0x776   :  { %12232 = vst [vmem:[#allocation115_spill] sm:$0xff] %v9659_v52  ;;  %v9662_v54 = vpop.eup %6667  ;;  %6679 = vpow2.f32 %v3371_v44  ;;  %v3260_v44 = vsub.f32 %v12246_v12, %v9628_v50 }
 0x777   :  { %12233 = vst [vmem:[#allocation60_spill] sm:$0xff] %v9662_v54  ;;  %v9672_v31 = vpop.eup %6669  ;;  %6681 = vpow2.f32 %v3411_v40  ;;  %v3379_v40 = vmul.f32 1.442695, %v3241_v45 }
 0x778   :  { %12237 = vst [vmem:[#allocation77_spill] sm:$0xff] %v9672_v31  ;;  %6683 = vpow2.f32 %v3377_v2 }
 0x77a   :  { %3795 = vperm.xlu0 %6396, %v9657_v20  }
 0x77b   :  { %3753 = vperm.xlu1 %6398, %v9659_v52   ;;  %v9674_v52 = vpop.eup %6671 }
 0x77c   :  { %3750 = vperm.xlu2 %6397, %v9662_v54   ;;  %12238 = vst [vmem:[#allocation62_spill] sm:$0xff] %v9674_v52  ;;  %v9677_v1 = vpop.eup %6673  ;;  %v3375_v54 = vmul.f32 1.442695, %v3239_v32  ;;  %v3417_v32 = vmul.f32 1.442695, %v3260_v44  ;;  %v12253_v44 = vld [vmem:[#allocation127_spill] sm:$0xff] }
 0x77d   :  { %12239 = vst [vmem:[#allocation80_spill] sm:$0xff] %v9677_v1  ;;  %v3245_v17 = vsub.f32 %v12253_v44, %v9625_v34  ;;  %v12260_v44 = vld [vmem:[#allocation11_spill] sm:$0xff] }
 0x77e   :  { %6685 = vpow2.f32 %v3375_v54  ;;  %v12252_v54 = vld [vmem:[#allocation138_spill] sm:$0xff] }
 0x77f   :  { %6687 = vpow2.f32 %v3417_v32  ;;  %v3263_v12 = vsub.f32 %v12252_v54, %v9703_v7  ;;  %v12259_v54 = vld [vmem:[#allocation10_spill] sm:$0xff] }
 0x781   :  { %v3423_v45 = vmul.f32 1.442695, %v3263_v12  ;;  %v3247_v12 = vsub.f32 %v12259_v54, %v9628_v50 }
 0x782   :  { %3804 = vperm.xlu0 %6396, %v9672_v31   ;;  %v9687_v31 = vpop.eup %6675 }
 0x783   :  { %3759 = vperm.xlu1 %6398, %v9674_v52   ;;  %12243 = vst [vmem:[#allocation64_spill] sm:$0xff] %v9687_v31  ;;  %v9689_v52 = vpop.eup %6677 }
 0x784   :  { %3756 = vperm.xlu2 %6397, %v9677_v1   ;;  %12244 = vst [vmem:[#allocation121_spill] sm:$0xff] %v9689_v52  ;;  %v9692_v51 = vpop.eup %6679 }
 0x785   :  { %12245 = vst [vmem:[#allocation83_spill] sm:$0xff] %v9692_v51 }
 0x78a   :  { %3813 = vperm.xlu0 %6396, %v9687_v31   ;;  %v3381_v31 = vmul.f32 1.442695, %v3242_v19  ;;  %v12254_v19 = vld [vmem:[#allocation119_spill] sm:$0xff] }
 0x78b   :  { %3765 = vperm.xlu1 %6398, %v9689_v52   ;;  %v9705_v52 = vpop.eup %6681  ;;  %v3244_v33 = vsub.f32 %v12254_v19, %v9625_v34 }
 0x78c   :  { %3762 = vperm.xlu2 %6397, %v9692_v51   ;;  %12249 = vst [vmem:[#allocation66_spill] sm:$0xff] %v9705_v52  ;;  %v9707_v1 = vpop.eup %6683  ;;  %6689 = vpow2.f32 %v3381_v31  ;;  %v12258_v31 = vld [vmem:[#allocation140_spill] sm:$0xff] }
 0x78d   :  { %12250 = vst [vmem:[#allocation86_spill] sm:$0xff] %v9707_v1  ;;  %v9710_v2 = vpop.eup %6685  ;;  %6691 = vpow2.f32 %v3379_v40  ;;  %v3385_v20 = vmul.f32 1.442695, %v3244_v33  ;;  %v3266_v40 = vsub.f32 %v12258_v31, %v9703_v7  ;;  %v3391_v33 = vmul.f32 1.442695, %v3247_v12 }
 0x78e   :  { %12251 = vst [vmem:[#allocation68_spill] sm:$0xff] %v9710_v2  ;;  %v9720_v51 = vpop.eup %6687  ;;  %6693 = vpow2.f32 %v3423_v45 }
 0x78f   :  { %12255 = vst [vmem:[#allocation89_spill] sm:$0xff] %v9720_v51  ;;  %v3429_v19 = vmul.f32 1.442695, %v3266_v40  ;;  %v12266_v40 = vld [vmem:[#allocation12_spill] sm:$0xff] }
 0x790   :  { %v3249_v54 = vsub.f32 %v12266_v40, %v9628_v50 }
 0x792   :  { %3822 = vperm.xlu0 %6396, %v9705_v52   ;;  %v3387_v52 = vmul.f32 1.442695, %v3245_v17  ;;  %v3246_v17 = vsub.f32 %v12260_v44, %v9625_v34  ;;  %v12265_v34 = vld [vmem:[#allocation25_spill] sm:$0xff] }
 0x793   :  { %3771 = vperm.xlu1 %6398, %v9707_v1   ;;  %v9722_v1 = vpop.eup %6689  ;;  %v3250_v31 = vsub.f32 %v12265_v34, %v9628_v50  ;;  %v12272_v34 = vld [vmem:[#allocation123_spill] sm:$0xff] }
 0x794   :  { %3768 = vperm.xlu2 %6397, %v9710_v2   ;;  %12256 = vst [vmem:[#allocation129_spill] sm:$0xff] %v9722_v1  ;;  %v9725_v32 = vpop.eup %6691  ;;  %6695 = vpow2.f32 %v3387_v52  ;;  %v3389_v2 = vmul.f32 1.442695, %v3246_v17  ;;  %v12264_v52 = vld [vmem:[#allocation141_spill] sm:$0xff] }
 0x795   :  { %12257 = vst [vmem:[#allocation70_spill] sm:$0xff] %v9725_v32  ;;  %6697 = vpow2.f32 %v3385_v20  ;;  %v3269_v20 = vsub.f32 %v12264_v52, %v9703_v7  ;;  %v3397_v44 = vmul.f32 1.442695, %v3250_v31  ;;  %v12271_v52 = vld [vmem:[#allocation27_spill] sm:$0xff]  ;;  %v3252_v31 = vsub.f32 %v12272_v34, %v9628_v50 }
 0x796   :  { %6699 = vpow2.f32 %v3429_v19 }
 0x797   :  { %6701 = vpow2.f32 %v3391_v33  ;;  %v3435_v12 = vmul.f32 1.442695, %v3269_v20  ;;  %v12270_v33 = vld [vmem:[#allocation142_spill] sm:$0xff]  ;;  %v3253_v20 = vsub.f32 %v12271_v52, %v9628_v50  ;;  %v12278_v52 = vld [vmem:[#allocation31_spill] sm:$0xff] }
 0x798   :  { %6703 = vpow2.f32 %v3389_v2  ;;  %v3272_v2 = vsub.f32 %v12270_v33, %v9703_v7  ;;  %v12277_v33 = vld [vmem:[#allocation29_spill] sm:$0xff] }
 0x799   :  { %6705 = vpow2.f32 %v3435_v12 }
 0x79a   :  { %3831 = vperm.xlu0 %6396, %v9720_v51   ;;  %v9735_v51 = vpop.eup %6693  ;;  %6707 = vpow2.f32 %v3397_v44  ;;  %v3441_v40 = vmul.f32 1.442695, %v3272_v2  ;;  %v12276_v44 = vld [vmem:[#allocation143_spill] sm:$0xff]  ;;  %v3256_v2 = vsub.f32 %v12277_v33, %v9628_v50  ;;  %v12284_v33 = vld [vmem:[#allocation102_spill] sm:$0xff] }
 0x79b   :  { %3777 = vperm.xlu1 %6398, %v9722_v1   ;;  %12261 = vst [vmem:[#allocation92_spill] sm:$0xff] %v9735_v51  ;;  %v9737_v1 = vpop.eup %6695 }
 0x79c   :  { %3774 = vperm.xlu2 %6397, %v9725_v32   ;;  %12262 = vst [vmem:[#allocation72_spill] sm:$0xff] %v9737_v1  ;;  %v9740_v45 = vpop.eup %6697 }
 0x79d   :  { %12263 = vst [vmem:[#allocation159_spill] sm:$0xff] %v9740_v45  ;;  %v9750_v17 = vpop.eup %6699 }
 0x79e   :  { %12267 = vst [vmem:[#allocation95_spill] sm:$0xff] %v9750_v17 }
 0x7a2   :  { %3840 = vperm.xlu0 %6396, %v9735_v51   ;;  %v3395_v51 = vmul.f32 1.442695, %v3249_v54  ;;  %v3403_v54 = vmul.f32 1.442695, %v3253_v20  ;;  %v3255_v20 = vsub.f32 %v12278_v52, %v9628_v50  ;;  %v9796_v52 = vperm.slane %v9622_v16, 3 }
 0x7a3   :  { %3786 = vperm.xlu1 %6398, %v9737_v1   ;;  %v9752_v1 = vpop.eup %6701 }
 0x7a4   :  { %3783 = vperm.xlu2 %6397, %v9740_v45   ;;  %12268 = vst [vmem:[#allocation113_spill] sm:$0xff] %v9752_v1  ;;  %v9755_v19 = vpop.eup %6703  ;;  %6709 = vpow2.f32 %v3395_v51  ;;  %v3401_v45 = vmul.f32 1.442695, %v3252_v31  ;;  %v3275_v51 = vsub.f32 %v12276_v44, %v9703_v7  ;;  %v3409_v31 = vmul.f32 1.442695, %v3256_v2  ;;  %v12283_v44 = vld [vmem:[#allocation18_spill] sm:$0xff] }
 0x7a5   :  { %12269 = vst [vmem:[#allocation75_spill] sm:$0xff] %v9755_v19  ;;  %6711 = vpow2.f32 %v3441_v40  ;;  %v3258_v2 = vsub.f32 %v12284_v33, %v9628_v50 }
 0x7a6   :  { %6713 = vpow2.f32 %v3403_v54  ;;  %v3447_v34 = vmul.f32 1.442695, %v3275_v51  ;;  %v12282_v54 = vld [vmem:[#allocation144_spill] sm:$0xff]  ;;  %v3259_v51 = vsub.f32 %v12283_v44, %v9628_v50 }
 0x7a7   :  { %6715 = vpow2.f32 %v3401_v45  ;;  %v3278_v45 = vsub.f32 %v12282_v54, %v9703_v7 }
 0x7a8   :  { %6717 = vpow2.f32 %v3447_v34  ;;  %v3413_v34 = vmul.f32 1.442695, %v3258_v2 }
 0x7a9   :  { %6719 = vpow2.f32 %v3409_v31 }
 0x7aa   :  { %3849 = vperm.xlu0 %6396, %v9750_v17   ;;  %v9765_v17 = vpop.eup %6705 }
 0x7ab   :  { %3792 = vperm.xlu1 %6398, %v9752_v1   ;;  %12273 = vst [vmem:[#allocation134_spill] sm:$0xff] %v9765_v17  ;;  %v9767_v1 = vpop.eup %6707 }
 0x7ac   :  { %3789 = vperm.xlu2 %6397, %v9755_v19   ;;  %12274 = vst [vmem:[#allocation98_spill] sm:$0xff] %v9767_v1  ;;  %v9770_v12 = vpop.eup %6709  ;;  %v3407_v19 = vmul.f32 1.442695, %v3255_v20  ;;  %v3453_v20 = vmul.f32 1.442695, %v3278_v45  ;;  %v12289_v45 = vld [vmem:[#allocation20_spill] sm:$0xff] }
 0x7ad   :  { %12275 = vst [vmem:[#allocation118_spill] sm:$0xff] %v9770_v12  ;;  %v3262_v44 = vsub.f32 %v12289_v45, %v9628_v50 }
 0x7ae   :  { %6721 = vpow2.f32 %v3407_v19  ;;  %v12288_v19 = vld [vmem:[#allocation145_spill] sm:$0xff] }
 0x7af   :  { %6723 = vpow2.f32 %v3453_v20  ;;  %v3281_v54 = vsub.f32 %v12288_v19, %v9796_v52 }
 0x7b1   :  { %v3459_v2 = vmul.f32 1.442695, %v3281_v54  ;;  %v12296_v54 = vld [vmem:[#allocation24_spill] sm:$0xff] }
 0x7b2   :  { %3858 = vperm.xlu0 %6396, %v9765_v17   ;;  %v9780_v17 = vpop.eup %6711  ;;  %v3264_v45 = vsub.f32 %v12296_v54, %v9703_v7 }
 0x7b3   :  { %3801 = vperm.xlu1 %6398, %v9767_v1   ;;  %12279 = vst [vmem:[#allocation78_spill] sm:$0xff] %v9780_v17  ;;  %v9782_v1 = vpop.eup %6713 }
 0x7b4   :  { %3798 = vperm.xlu2 %6397, %v9770_v12   ;;  %12280 = vst [vmem:[#allocation112_spill] sm:$0xff] %v9782_v1  ;;  %v9785_v40 = vpop.eup %6715 }
 0x7b5   :  { %12281 = vst [vmem:[#allocation100_spill] sm:$0xff] %v9785_v40 }
 0x7ba   :  { %3867 = vperm.xlu0 %6396, %v9780_v17   ;;  %v3415_v17 = vmul.f32 1.442695, %v3259_v51  ;;  %v12290_v51 = vld [vmem:[#allocation35_spill] sm:$0xff] }
 0x7bb   :  { %3810 = vperm.xlu1 %6398, %v9782_v1   ;;  %v9798_v1 = vpop.eup %6717  ;;  %v3261_v33 = vsub.f32 %v12290_v51, %v9628_v50  ;;  %v12295_v50 = vld [vmem:[#allocation22_spill] sm:$0xff] }
 0x7bc   :  { %3807 = vperm.xlu2 %6397, %v9785_v40   ;;  %12285 = vst [vmem:[#allocation99_spill] sm:$0xff] %v9798_v1  ;;  %v9800_v12 = vpop.eup %6719  ;;  %6725 = vpow2.f32 %v3415_v17  ;;  %v12294_v17 = vld [vmem:[#allocation146_spill] sm:$0xff]  ;;  %v3265_v19 = vsub.f32 %v12295_v50, %v9703_v7 }
 0x7bd   :  { %12286 = vst [vmem:[#allocation81_spill] sm:$0xff] %v9800_v12  ;;  %v9803_v31 = vpop.eup %6721  ;;  %6727 = vpow2.f32 %v3413_v34  ;;  %v3419_v39 = vmul.f32 1.442695, %v3261_v33  ;;  %v3284_v34 = vsub.f32 %v12294_v17, %v9796_v52 }
 0x7be   :  { %12287 = vst [vmem:[#allocation19_spill] sm:$0xff] %v9803_v31  ;;  %v9813_v40 = vpop.eup %6723  ;;  %6729 = vpow2.f32 %v3459_v2  ;;  %v3427_v33 = vmul.f32 1.442695, %v3265_v19  ;;  %v3425_v2 = vmul.f32 1.442695, %v3264_v45  ;;  %v12302_v19 = vld [vmem:[#allocation26_spill] sm:$0xff] }
 0x7bf   :  { %12291 = vst [vmem:[#allocation103_spill] sm:$0xff] %v9813_v40  ;;  %v3465_v51 = vmul.f32 1.442695, %v3284_v34  ;;  %v12301_v34 = vld [vmem:[#allocation39_spill] sm:$0xff]  ;;  %v3267_v54 = vsub.f32 %v12302_v19, %v9703_v7 }
 0x7c0   :  { %v3268_v50 = vsub.f32 %v12301_v34, %v9703_v7 }
 0x7c2   :  { %3876 = vperm.xlu0 %6396, %v9798_v1   ;;  %v3421_v1 = vmul.f32 1.442695, %v3262_v44 }
 0x7c3   :  { %3819 = vperm.xlu1 %6398, %v9800_v12   ;;  %v9815_v12 = vpop.eup %6725 }
 0x7c4   :  { %3816 = vperm.xlu2 %6397, %v9803_v31   ;;  %12292 = vst [vmem:[#allocation23_spill] sm:$0xff] %v9815_v12  ;;  %v9818_v20 = vpop.eup %6727  ;;  %6731 = vpow2.f32 %v3421_v1 }
 0x7c5   :  { %12293 = vst [vmem:[#allocation84_spill] sm:$0xff] %v9818_v20  ;;  %6733 = vpow2.f32 %v3419_v39  ;;  %v12300_v39 = vld [vmem:[#allocation147_spill] sm:$0xff] }
 0x7c6   :  { %6735 = vpow2.f32 %v3465_v51  ;;  %v3287_v1 = vsub.f32 %v12300_v39, %v9796_v52  ;;  %v3431_v51 = vmul.f32 1.442695, %v3267_v54 }
 0x7c7   :  { %6737 = vpow2.f32 %v3427_v33  ;;  %v12306_v33 = vld [vmem:[#allocation148_spill] sm:$0xff] }
 0x7c8   :  { %6739 = vpow2.f32 %v3425_v2  ;;  %v3290_v2 = vsub.f32 %v12306_v33, %v9796_v52 }
 0x7ca   :  { %3885 = vperm.xlu0 %6396, %v9813_v40   ;;  %v9830_v40 = vpop.eup %6729 }
 0x7cb   :  { %3828 = vperm.xlu1 %6398, %v9815_v12   ;;  %12297 = vst [vmem:[#allocation125_spill] sm:$0xff] %v9830_v40  ;;  %v9832_v12 = vpop.eup %6731 }
 0x7cc   :  { %3825 = vperm.xlu2 %6397, %v9818_v20   ;;  %12298 = vst [vmem:[#allocation106_spill] sm:$0xff] %v9832_v12  ;;  %v9835_v17 = vpop.eup %6733  ;;  %v3433_v20 = vmul.f32 1.442695, %v3268_v50  ;;  %v12308_v50 = vld [vmem:[#allocation28_spill] sm:$0xff] }
 0x7cd   :  { %12299 = vst [vmem:[#allocation128_spill] sm:$0xff] %v9835_v17  ;;  %v9847_v31 = vpop.eup %6735  ;;  %v3270_v19 = vsub.f32 %v12308_v50, %v9703_v7 }
 0x7ce   :  { %v9828_v44 = vpop.permute.xlu2 %3744  ;;  %12303 = vst [vmem:[#allocation87_spill] sm:$0xff] %v9847_v31 }
 0x7d2   :  { %3894 = vperm.xlu0 %6396, %v9830_v40   ;;  %v3471_v40 = vmul.f32 1.442695, %v3287_v1  ;;  %v12307_v1 = vld [vmem:[#allocation137_spill] sm:$0xff] }
 0x7d3   :  { %3837 = vperm.xlu1 %6398, %v9832_v12   ;;  %v9849_v12 = vpop.eup %6737  ;;  %v3271_v34 = vsub.f32 %v12307_v1, %v9703_v7 }
 0x7d4   :  { %3834 = vperm.xlu2 %6397, %v9835_v17   ;;  %12304 = vst [vmem:[#allocation16_spill] sm:$0xff] %v9849_v12  ;;  %v9852_v39 = vpop.eup %6739  ;;  %6741 = vpow2.f32 %v3471_v40  ;;  %v3437_v40 = vmul.f32 1.442695, %v3270_v19  ;;  %v12316_v19 = vld [vmem:[#allocation43_spill] sm:$0xff] }
 0x7d5   :  { %12305 = vst [vmem:[#allocation108_spill] sm:$0xff] %v9852_v39  ;;  %6743 = vpow2.f32 %v3433_v20  ;;  %v3439_v17 = vmul.f32 1.442695, %v3271_v34  ;;  %v12313_v20 = vld [vmem:[#allocation149_spill] sm:$0xff] }
 0x7d6   :  { %v9845_v45 = vpop.permute.xlu2 %3750  ;;  %6745 = vpow2.f32 %v3431_v51  ;;  %v3293_v51 = vsub.f32 %v12313_v20, %v9796_v52 }
 0x7d8   :  { %v3483_v20 = vmul.f32 1.442695, %v3293_v51  ;;  %v12322_v51 = vld [vmem:[#allocation30_spill] sm:$0xff] }
 0x7da   :  { %3903 = vperm.xlu0 %6396, %v9847_v31   ;;  %v3477_v31 = vmul.f32 1.442695, %v3290_v2  ;;  %v9864_v3 = vpop.eup %6741  ;;  %v12315_v2 = vld [vmem:[#allocation139_spill] sm:$0xff] }
 0x7db   :  { %3846 = vperm.xlu1 %6398, %v9849_v12   ;;  %12310 = vst [vmem:[#allocation90_spill] sm:$0xff] %v9864_v3  ;;  %v9866_v12 = vpop.eup %6743  ;;  %v3274_v34 = vsub.f32 %v12315_v2, %v9703_v7 }
 0x7dc   :  { %3843 = vperm.xlu2 %6397, %v9852_v39   ;;  %12311 = vst [vmem:[#allocation14_spill] sm:$0xff] %v9866_v12  ;;  %v9869_v33 = vpop.eup %6745  ;;  %6747 = vpow2.f32 %v3477_v31  ;;  %v9886_v31 = vperm.slane %v9622_v16, 4 }
 0x7dd   :  { %12312 = vst [vmem:[#allocation111_spill] sm:$0xff] %v9869_v33  ;;  %6749 = vpow2.f32 %v3439_v17 }
 0x7de   :  { %v9862_v54 = vpop.permute.xlu2 %3756  ;;  %6751 = vpow2.f32 %v3437_v40  ;;  %v12321_v40 = vld [vmem:[#allocation150_spill] sm:$0xff] }
 0x7df   :  { %12309 = vst [vmem:[#allocation132_spill] sm:$0xff] %v9862_v54  ;;  %6753 = vpow2.f32 %v3483_v20 }
 0x7e2   :  { %3912 = vperm.xlu0 %6396, %v9864_v3   ;;  %v3273_v3 = vsub.f32 %v12316_v19, %v9703_v7  ;;  %v3296_v19 = vsub.f32 %v12321_v40, %v9886_v31 }
 0x7e3   :  { %3855 = vperm.xlu1 %6398, %v9866_v12   ;;  %v3445_v12 = vmul.f32 1.442695, %v3274_v34 }
 0x7e4   :  { %3852 = vperm.xlu2 %6397, %v9869_v33   ;;  %v9875_v1 = vpop.permute.xlu0 %3780  ;;  %v9888_v33 = vpop.eup %6747  ;;  %v3443_v32 = vmul.f32 1.442695, %v3273_v3  ;;  %v3277_v3 = vsub.f32 %v12322_v51, %v9703_v7  ;;  %v3489_v20 = vmul.f32 1.442695, %v3296_v19 }
 0x7e5   :  { %12314 = vst [vmem:[#allocation41_spill] sm:$0xff] %v9875_v1  ;;  %v9879_v50 = vpop.permute.xlu1 %3747  ;;  %v9890_v17 = vpop.eup %6749  ;;  %6755 = vpow2.f32 %v3445_v12 }
 0x7e6   :  { %v9883_v39 = vpop.permute.xlu2 %3762  ;;  %12318 = vst [vmem:[#allocation37_spill] sm:$0xff] %v9888_v33  ;;  %v9893_v2 = vpop.eup %6751  ;;  %6757 = vpow2.f32 %v3443_v32  ;;  %v12328_v32 = vld [vmem:[#allocation151_spill] sm:$0xff] }
 0x7e7   :  { %12317 = vst [vmem:[#allocation93_spill] sm:$0xff] %v9883_v39  ;;  %v9909_v1 = vpop.eup %6753  ;;  %6759 = vpow2.f32 %v3489_v20  ;;  %v3299_v51 = vsub.f32 %v12328_v32, %v9886_v31 }
 0x7e8   :  { %12319 = vst [vmem:[#allocation97_spill] sm:$0xff] %v9890_v17 }
 0x7e9   :  { %12320 = vst [vmem:[#allocation8_spill] sm:$0xff] %v9893_v2  ;;  %v3495_v20 = vmul.f32 1.442695, %v3299_v51  ;;  %v12339_v51 = vld [vmem:[#allocation49_spill] sm:$0xff] }
 0x7ea   :  { %3921 = vperm.xlu0 %6396, %v9888_v33   ;;  %v12323_v33 = vld [vmem:[#allocation32_spill] sm:$0xff]  ;;  %12325 = vst [vmem:[#allocation130_spill] sm:$0xff] %v9909_v1 }
 0x7eb   :  { %3864 = vperm.xlu1 %6398, %v9890_v17   ;;  %v3276_v59 = vsub.f32 %v12323_v33, %v9703_v7  ;;  %v3451_v17 = vmul.f32 1.442695, %v3277_v3  ;;  %v12330_v33 = vld [vmem:[#allocation47_spill] sm:$0xff]  ;;  %v12332_v3 = vld [vmem:[#allocation34_spill] sm:$0xff] }
 0x7ec   :  { %3861 = vperm.xlu2 %6397, %v9893_v2   ;;  %v9899_v6 = vpop.permute.xlu0 %3795  ;;  %v9911_v2 = vpop.eup %6755 }
 0x7ed   :  { %v9903_v34 = vpop.permute.xlu1 %3753  ;;  %v3449_v40 = vmul.f32 1.442695, %v3276_v59  ;;  %12326 = vst [vmem:[#allocation17_spill] sm:$0xff] %v9911_v2  ;;  %v9914_v12 = vpop.eup %6757  ;;  %6761 = vpow2.f32 %v3451_v17  ;;  %v3280_v59 = vsub.f32 %v12330_v33, %v9796_v52 }
 0x7ee   :  { %v9907_v18 = vpop.permute.xlu2 %3768  ;;  %12327 = vst [vmem:[#allocation15_spill] sm:$0xff] %v9914_v12  ;;  %v9930_v9 = vpop.eup %6759 }
 0x7ef   :  { %12324 = vst [vmem:[#allocation120_spill] sm:$0xff] %v9907_v18  ;;  %6763 = vpow2.f32 %v3449_v40  ;;  %v12337_v40 = vld [vmem:[#allocation152_spill] sm:$0xff] }
 0x7f0   :  { %12334 = vst [vmem:[#allocation133_spill] sm:$0xff] %v9930_v9  ;;  %6765 = vpow2.f32 %v3495_v20  ;;  %v3302_v33 = vsub.f32 %v12337_v40, %v9886_v31 }
 0x7f2   :  { %3930 = vperm.xlu0 %6396, %v9909_v1   ;;  %v3279_v1 = vsub.f32 %v12332_v3, %v9796_v52  ;;  %v3501_v20 = vmul.f32 1.442695, %v3302_v33  ;;  %v12348_v33 = vld [vmem:[#allocation51_spill] sm:$0xff] }
 0x7f3   :  { %3873 = vperm.xlu1 %6398, %v9911_v2   ;;  %v3457_v2 = vmul.f32 1.442695, %v3280_v59 }
 0x7f4   :  { %3870 = vperm.xlu2 %6397, %v9914_v12   ;;  %v9920_v7 = vpop.permute.xlu0 %3804  ;;  %v3455_v32 = vmul.f32 1.442695, %v3279_v1  ;;  %v9932_v12 = vpop.eup %6761  ;;  %v3283_v1 = vsub.f32 %v12339_v51, %v9796_v52 }
 0x7f5   :  { %12329 = vst [vmem:[#allocation131_spill] sm:$0xff] %v9920_v7  ;;  %v9924_v19 = vpop.permute.xlu1 %3759  ;;  %v9935_v17 = vpop.eup %6763  ;;  %6767 = vpow2.f32 %v3457_v2 }
 0x7f6   :  { %12331 = vst [vmem:[#allocation122_spill] sm:$0xff] %v9924_v19  ;;  %v9928_v55 = vpop.permute.xlu2 %3774  ;;  %6769 = vpow2.f32 %v3455_v32  ;;  %v9951_v18 = vpop.eup %6765  ;;  %v12346_v32 = vld [vmem:[#allocation153_spill] sm:$0xff] }
 0x7f7   :  { %12333 = vst [vmem:[#allocation13_spill] sm:$0xff] %v9928_v55  ;;  %6771 = vpow2.f32 %v3501_v20  ;;  %v3305_v51 = vsub.f32 %v12346_v32, %v9886_v31  ;;  %v4660_v32 = vpop.f32.mrf.mxu1 }
 0x7f8   :  { %12335 = vst [vmem:[#allocation110_spill] sm:$0xff] %v9932_v12 }
 0x7f9   :  { %12336 = vst [vmem:[#allocation117_spill] sm:$0xff] %v9935_v17  ;;  %v3507_v20 = vmul.f32 1.442695, %v3305_v51  ;;  %v4723_v51 = vpop.f32.mrf.mxu0 }
 0x7fa   :  { %3939 = vperm.xlu0 %6396, %v9930_v9   ;;  %v12341_v9 = vld [vmem:[#allocation36_spill] sm:$0xff]  ;;  %12343 = vst [vmem:[#allocation136_spill] sm:$0xff] %v9951_v18 }
 0x7fb   :  { %3882 = vperm.xlu1 %6398, %v9932_v12   ;;  %v3282_v55 = vsub.f32 %v12341_v9, %v9796_v52  ;;  %v3463_v12 = vmul.f32 1.442695, %v3283_v1 }
 0x7fc   :  { %3879 = vperm.xlu2 %6397, %v9935_v17   ;;  %v9941_v3 = vpop.permute.xlu0 %3813  ;;  %v9953_v17 = vpop.eup %6767 }
 0x7fd   :  { %12338 = vst [vmem:[#allocation135_spill] sm:$0xff] %v9941_v3  ;;  %v9945_v59 = vpop.permute.xlu1 %3765  ;;  %v3461_v40 = vmul.f32 1.442695, %v3282_v55  ;;  %v9956_v2 = vpop.eup %6769  ;;  %6773 = vpow2.f32 %v3463_v12  ;;  %v3286_v55 = vsub.f32 %v12348_v33, %v9796_v52 }
 0x7fe   :  { %12340 = vst [vmem:[#allocation21_spill] sm:$0xff] %v9945_v59  ;;  %v9949_v46 = vpop.permute.xlu2 %3783  ;;  %v9972_v42 = vpop.eup %6771 }
 0x7ff   :  { %12342 = vst [vmem:[#allocation124_spill] sm:$0xff] %v9949_v46  ;;  %6775 = vpow2.f32 %v3461_v40  ;;  %v4681_v12 = vpop.f32.mrf.mxu2 }
 0x800   :  { %12344 = vst [vmem:[#allocation126_spill] sm:$0xff] %v9953_v17  ;;  %6777 = vpow2.f32 %v3507_v20  ;;  %v9994_v20 = vperm.slane %v9622_v16, 5 }
 0x801   :  { %12345 = vst [vmem:[#allocation9_spill] sm:$0xff] %v9956_v2 }
 0x802   :  { %3948 = vperm.xlu0 %6396, %v9951_v18   ;;  %v12350_v18 = vld [vmem:[#allocation38_spill] sm:$0xff]  ;;  %12352 = vst [vmem:[#allocation140_spill] sm:$0xff] %v9972_v42 }
 0x803   :  { %3891 = vperm.xlu1 %6398, %v9953_v17   ;;  %v3285_v46 = vsub.f32 %v12350_v18, %v9796_v52  ;;  %v3469_v17 = vmul.f32 1.442695, %v3286_v55  ;;  %v9974_v3 = vpop.eup %6773  ;;  %v12355_v18 = vld [vmem:[#allocation154_spill] sm:$0xff] }
 0x804   :  { %3888 = vperm.xlu2 %6397, %v9956_v2   ;;  %v9962_v9 = vpop.permute.xlu0 %3822  ;;  %12353 = vst [vmem:[#allocation10_spill] sm:$0xff] %v9974_v3  ;;  %v3308_v40 = vsub.f32 %v12355_v18, %v9886_v31 }
 0x805   :  { %12347 = vst [vmem:[#allocation138_spill] sm:$0xff] %v9962_v9  ;;  %v9966_v1 = vpop.permute.xlu1 %3771  ;;  %v3467_v2 = vmul.f32 1.442695, %v3285_v46  ;;  %v9977_v33 = vpop.eup %6775  ;;  %6779 = vpow2.f32 %v3469_v17  ;;  %v12357_v46 = vld [vmem:[#allocation53_spill] sm:$0xff] }
 0x806   :  { %12349 = vst [vmem:[#allocation127_spill] sm:$0xff] %v9966_v1  ;;  %v9970_v35 = vpop.permute.xlu2 %3789  ;;  %v4702_v9 = vpop.f32.mrf.mxu3  ;;  %v3513_v18 = vmul.f32 1.442695, %v3308_v40 }
 0x807   :  { %12351 = vst [vmem:[#allocation119_spill] sm:$0xff] %v9970_v35  ;;  %v3289_v35 = vsub.f32 %v12357_v46, %v9796_v52  ;;  %6781 = vpow2.f32 %v3467_v2  ;;  %v4744_v17 = vpop.f32.mrf.mxu1  ;;  %v4820_v46 = vrot.slane %v4702_v9, 6  ;;  %v12365_v9 = vld [vmem:[#allocation40_spill] sm:$0xff] }
 0x808   :  { %12354 = vst [vmem:[#allocation11_spill] sm:$0xff] %v9977_v33  ;;  %6783 = vpow2.f32 %v3513_v18  ;;  %v4824_v19 = vrot.slane %v4744_v17, 4  ;;  %v3291_v18 = vsub.f32 %v8978_v4, %v9796_v52 }
 0x809   :  { %v3475_v59 = vmul.f32 1.442695, %v3289_v35  ;;  %v12363_v35 = vld [vmem:[#allocation155_spill] sm:$0xff] }
 0x80a   :  { %3957 = vperm.xlu0 %6396, %v9972_v42   ;;  %v12359_v42 = vld [vmem:[#allocation101_spill] sm:$0xff]  ;;  %v3311_v40 = vsub.f32 %v12363_v35, %v9994_v20 }
 0x80b   :  { %3900 = vperm.xlu1 %6398, %v9974_v3   ;;  %v3288_v39 = vsub.f32 %v12359_v42, %v9796_v52  ;;  %v4822_v42 = vrot.slane %v4723_v51, 5  ;;  %6785 = vpow2.f32 %v3475_v59 }
 0x80c   :  { %3897 = vperm.xlu2 %6397, %v9977_v33   ;;  %v9983_v55 = vpop.permute.xlu0 %3831  ;;  %v9996_v33 = vpop.eup %6777 }
 0x80d   :  { %12356 = vst [vmem:[#allocation141_spill] sm:$0xff] %v9983_v55  ;;  %v9987_v1 = vpop.permute.xlu1 %3777  ;;  %v4818_v55 = vrot.slane %v4681_v12, 7  ;;  %v3473_v57 = vmul.f32 1.442695, %v3288_v39  ;;  %v9998_v61 = vpop.eup %6779 }
 0x80e   :  { %12358 = vst [vmem:[#allocation25_spill] sm:$0xff] %v9987_v1  ;;  %v9991_v3 = vpop.permute.xlu2 %3798  ;;  %v4765_v1 = vpop.f32.mrf.mxu2 }
 0x80f   :  { %12360 = vst [vmem:[#allocation12_spill] sm:$0xff] %v9996_v33  ;;  %v10001_v2 = vpop.eup %6781  ;;  %v4786_v54 = vpop.f32.mrf.mxu3  ;;  %v4819_v53 = vsel %vm12366_vm15, %v4818_v55, %v4660_v32  ;;  %v4826_v51 = vrot.slane %v4765_v1, 3  ;;  %6787 = vpow2.f32 %v3473_v57  ;;  %v3479_v57 = vmul.f32 1.442695, %v3291_v18 }
 0x810   :  { %12361 = vst [vmem:[#allocation142_spill] sm:$0xff] %v9998_v61  ;;  %v4807_v12 = vpop.f32.mrf.mxu0  ;;  %v4821_v17 = vsel %vm12367_vm14, %v4820_v46, %v4819_v53  ;;  %v4828_v35 = vrot.slane %v4786_v54, 2  ;;  %v10021_v32 = vpop.eup %6783  ;;  %v12373_v54 = vld [vmem:[#allocation156_spill] sm:$0xff]  ;;  %vm12535_vm14 = vcmask 720512  }
 0x811   :  { %12362 = vst [vmem:[#allocation27_spill] sm:$0xff] %v10001_v2  ;;  %v4830_v59 = vrot.slane %v4807_v12, 1  ;;  %v10024_v55 = vpop.eup %6785  ;;  %vm12538_vm15 = vmmov %vm12535_vm14 }
 0x812   :  { %3966 = vperm.xlu0 %6396, %v9996_v33   ;;  %v3292_v33 = vsub.f32 %v12365_v9, %v9796_v52  ;;  %12370 = vst [vmem:[#allocation143_spill] sm:$0xff] %v10021_v32 }
 0x813   :  { %3909 = vperm.xlu1 %6398, %v9998_v61   ;;  %12371 = vst [vmem:[#allocation29_spill] sm:$0xff] %v10024_v55 }
 0x814   :  { %3906 = vperm.xlu2 %6397, %v10001_v2   ;;  %v10007_v39 = vpop.permute.xlu0 %3840  ;;  %v4823_v2 = vsel %vm12368_vm13, %v4822_v42, %v4821_v17  ;;  %v3481_v47 = vmul.f32 1.442695, %v3292_v33 }
 0x815   :  { %12364 = vst [vmem:[#allocation123_spill] sm:$0xff] %v10007_v39  ;;  %v10012_v7 = vpop.permute.xlu1 %3786  ;;  %v3519_v39 = vmul.f32 1.442695, %v3311_v40  ;;  %v4825_v9 = vsel %vm12369_vm12, %v4824_v19, %v4823_v2  ;;  %v10028_v4 = vpop.eup %6787  ;;  %v3314_v19 = vsub.f32 %v12373_v54, %v9994_v20  ;;  %v3295_v2 = vsub.f32 %v8984_v26, %v9886_v31  ;;  %v12377_v26 = vld [vmem:[#allocation157_spill] sm:$0xff] }
 0x816   :  { %v10017_v61 = vpop.permute.xlu2 %3807  ;;  %v4827_v1 = vsel %vm3205_vm0, %v4826_v51, %v4825_v9  ;;  %12372 = vst [vmem:[#allocation31_spill] sm:$0xff] %v10028_v4  ;;  %v3294_v40 = vsub.f32 %v8998_v37, %v9796_v52  ;;  %v3298_v52 = vsub.f32 %v9005_v28, %v9886_v31  ;;  %v12381_v28 = vld [vmem:[#allocation158_spill] sm:$0xff]  ;;  %vm12528_vm12 = vcmask 654912  }
 0x817   :  { %v4829_v53 = vsel %vm3207_vm9, %v4828_v35, %v4827_v1  ;;  %6789 = vpow2.f32 %v3519_v39  ;;  %v3525_v39 = vmul.f32 1.442695, %v3314_v19  ;;  %v3487_v51 = vmul.f32 1.442695, %v3295_v2  ;;  %vm12533_vm13 = vmmov %vm12528_vm12 }
 0x818   :  { %v4831_v33 = vsel %vm3209_vm10, %v4830_v59, %v4829_v53  ;;  %6791 = vpow2.f32 %v3481_v47  ;;  %v3485_v17 = vmul.f32 1.442695, %v3294_v40  ;;  %v3317_v59 = vsub.f32 %v12377_v26, %v9994_v20 }
 0x819   :  { %4833 = vst [vmem:[#allocation2] sm:$0xff] %v4831_v33  ;;  %6793 = vpow2.f32 %v3479_v57  ;;  %v3297_v1 = vsub.f32 %v9022_v62, %v9886_v31  ;;  %v3493_v54 = vmul.f32 1.442695, %v3298_v52 }
 0x81a   :  { %3975 = vperm.xlu0 %6396, %v10021_v32   ;;  %6795 = vpow2.f32 %v3525_v39  ;;  %v3531_v53 = vmul.f32 1.442695, %v3317_v59  ;;  %v3320_v39 = vsub.f32 %v12381_v28, %v9994_v20  ;;  %v3300_v59 = vsub.f32 %v9048_v25, %v9886_v31  ;;  %5613 = dma.vmem_to_hbm [thread:$0]  %s5609_s15, 128, %s5611_s13, [#allocation3]  }
 0x81b   :  { %3918 = vperm.xlu1 %6398, %v10024_v55   ;;  %6797 = vpow2.f32 %v3487_v51  ;;  %v3491_v33 = vmul.f32 1.442695, %v3297_v1  ;;  %v12382_v51 = vld [vmem:[#allocation55_spill] sm:$0xff] }
 0x81c   :  { %3915 = vperm.xlu2 %6397, %v10028_v4   ;;  %v10035_v46 = vpop.permute.xlu0 %3849  ;;  %6799 = vpow2.f32 %v3485_v17  ;;  %v3301_v17 = vsub.f32 %v12382_v51, %v9886_v31  ;;  %v3537_v1 = vmul.f32 1.442695, %v3320_v39  ;;  %v3497_v28 = vmul.f32 1.442695, %v3300_v59 }
 0x81d   :  { %v10039_v42 = vpop.permute.xlu1 %3792  ;;  %v10045_v18 = vpop.eup %6789  ;;  %6801 = vpow2.f32 %v3531_v53  ;;  %v3304_v39 = vsub.f32 %v9055_v38, %v9886_v31  ;;  %v3303_v59 = vsub.f32 %v9073_v5, %v9886_v31  ;;  %v12390_v38 = vld [vmem:[#allocation76_spill] sm:$0xff] }
 0x81e   :  { %v10043_v12 = vpop.permute.xlu2 %3816  ;;  %12374 = vst [vmem:[#allocation144_spill] sm:$0xff] %v10045_v18  ;;  %v10047_v35 = vpop.eup %6791  ;;  %6803 = vpow2.f32 %v3493_v54  ;;  %v3499_v53 = vmul.f32 1.442695, %v3301_v17 }
 0x81f   :  { %12375 = vst [vmem:[#allocation18_spill] sm:$0xff] %v10047_v35  ;;  %v10050_v47 = vpop.eup %6793  ;;  %6805 = vpow2.f32 %v3491_v33  ;;  %v12386_v33 = vld [vmem:[#allocation73_spill] sm:$0xff] }
 0x820   :  { %12376 = vst [vmem:[#allocation102_spill] sm:$0xff] %v10050_v47  ;;  %v10066_v19 = vpop.eup %6795  ;;  %6807 = vpow2.f32 %v3537_v1  ;;  %v3323_v51 = vsub.f32 %v12386_v33, %v9994_v20  ;;  %v3503_v33 = vmul.f32 1.442695, %v3303_v59  ;;  %v3306_v59 = vsub.f32 %v9100_v15, %v9886_v31  ;;  %v12394_v15 = vld [vmem:[#allocation79_spill] sm:$0xff] }
 0x821   :  { %12378 = vst [vmem:[#allocation145_spill] sm:$0xff] %v10066_v19  ;;  %v10068_v2 = vpop.eup %6797  ;;  %6809 = vpow2.f32 %v3499_v53 }
 0x822   :  { %3984 = vperm.xlu0 %6396, %v10045_v18   ;;  %12379 = vst [vmem:[#allocation20_spill] sm:$0xff] %v10068_v2  ;;  %v10071_v40 = vpop.eup %6799  ;;  %6811 = vpow2.f32 %v3497_v28  ;;  %v3543_v1 = vmul.f32 1.442695, %v3323_v51  ;;  %v3326_v28 = vsub.f32 %v12390_v38, %v9994_v20  ;;  %v3307_v51 = vsub.f32 %v9082_v36, %v9886_v31 }
 0x823   :  { %3927 = vperm.xlu1 %6398, %v10047_v35   ;;  %12380 = vst [vmem:[#allocation35_spill] sm:$0xff] %v10071_v40 }
 0x824   :  { %3924 = vperm.xlu2 %6397, %v10050_v47   ;;  %v10056_v37 = vpop.permute.xlu0 %3858  ;;  %6813 = vpow2.f32 %v3543_v1  ;;  %v10130_v1 = vperm.slane %v9622_v16, 6  ;;  %v3549_v38 = vmul.f32 1.442695, %v3326_v28  ;;  %v3509_v47 = vmul.f32 1.442695, %v3306_v59 }
 0x825   :  { %v10060_v9 = vpop.permute.xlu1 %3801  ;;  %v3310_v28 = vsub.f32 %v9109_v8, %v9886_v31 }
 0x826   :  { %v10064_v57 = vpop.permute.xlu2 %3825 }
 0x82a   :  { %3993 = vperm.xlu0 %6396, %v10066_v19  }
 0x82b   :  { %3936 = vperm.xlu1 %6398, %v10068_v2   ;;  %v10087_v2 = vpop.eup %6801 }
 0x82c   :  { %3933 = vperm.xlu2 %6397, %v10071_v40   ;;  %v10077_v62 = vpop.permute.xlu0 %3867  ;;  %12383 = vst [vmem:[#allocation146_spill] sm:$0xff] %v10087_v2  ;;  %v10089_v40 = vpop.eup %6803 }
 0x82d   :  { %v10081_v26 = vpop.permute.xlu1 %3810  ;;  %12384 = vst [vmem:[#allocation22_spill] sm:$0xff] %v10089_v40  ;;  %v10092_v54 = vpop.eup %6805 }
 0x82e   :  { %v10085_v52 = vpop.permute.xlu2 %3834  ;;  %12385 = vst [vmem:[#allocation24_spill] sm:$0xff] %v10092_v54  ;;  %v10108_v19 = vpop.eup %6807 }
 0x82f   :  { %12387 = vst [vmem:[#allocation147_spill] sm:$0xff] %v10108_v19 }
 0x832   :  { %4002 = vperm.xlu0 %6396, %v10087_v2  }
 0x833   :  { %3945 = vperm.xlu1 %6398, %v10089_v40   ;;  %v3505_v40 = vmul.f32 1.442695, %v3304_v39 }
 0x834   :  { %3942 = vperm.xlu2 %6397, %v10092_v54   ;;  %v10098_v25 = vpop.permute.xlu0 %3876  ;;  %v10110_v54 = vpop.eup %6809 }
 0x835   :  { %v10102_v17 = vpop.permute.xlu1 %3819  ;;  %12388 = vst [vmem:[#allocation39_spill] sm:$0xff] %v10110_v54  ;;  %v10113_v53 = vpop.eup %6811  ;;  %6815 = vpow2.f32 %v3505_v40 }
 0x836   :  { %v10106_v2 = vpop.permute.xlu2 %3843  ;;  %12389 = vst [vmem:[#allocation26_spill] sm:$0xff] %v10113_v53  ;;  %6817 = vpow2.f32 %v3503_v33  ;;  %v3329_v33 = vsub.f32 %v12394_v15, %v10130_v1 }
 0x837   :  { %6819 = vpow2.f32 %v3549_v38 }
 0x838   :  { %v3555_v38 = vmul.f32 1.442695, %v3329_v33 }
 0x83a   :  { %4011 = vperm.xlu0 %6396, %v10108_v19  }
 0x83b   :  { %3954 = vperm.xlu1 %6398, %v10110_v54   ;;  %v3511_v54 = vmul.f32 1.442695, %v3307_v51 }
 0x83c   :  { %3951 = vperm.xlu2 %6397, %v10113_v53   ;;  %v10119_v5 = vpop.permute.xlu0 %3885  ;;  %v10132_v53 = vpop.eup %6813 }
 0x83d   :  { %v10123_v39 = vpop.permute.xlu1 %3828  ;;  %12391 = vst [vmem:[#allocation148_spill] sm:$0xff] %v10132_v53  ;;  %v10134_v40 = vpop.eup %6815  ;;  %6821 = vpow2.f32 %v3511_v54 }
 0x83e   :  { %v10127_v19 = vpop.permute.xlu2 %3852  ;;  %12392 = vst [vmem:[#allocation137_spill] sm:$0xff] %v10134_v40  ;;  %v10137_v36 = vpop.eup %6817  ;;  %6823 = vpow2.f32 %v3509_v47  ;;  %v12398_v47 = vld [vmem:[#allocation82_spill] sm:$0xff] }
 0x83f   :  { %12393 = vst [vmem:[#allocation28_spill] sm:$0xff] %v10137_v36  ;;  %v10153_v18 = vpop.eup %6819  ;;  %6825 = vpow2.f32 %v3555_v38  ;;  %v3332_v54 = vsub.f32 %v12398_v47, %v10130_v1 }
 0x840   :  { %12395 = vst [vmem:[#allocation149_spill] sm:$0xff] %v10153_v18 }
 0x841   :  { %v3561_v38 = vmul.f32 1.442695, %v3332_v54 }
 0x842   :  { %4020 = vperm.xlu0 %6396, %v10132_v53   ;;  %v3309_v53 = vsub.f32 %v9121_v21, %v9886_v31  ;;  %v3313_v21 = vsub.f32 %v9128_v13, %v9994_v20 }
 0x843   :  { %3963 = vperm.xlu1 %6398, %v10134_v40   ;;  %v3517_v40 = vmul.f32 1.442695, %v3310_v28 }
 0x844   :  { %3960 = vperm.xlu2 %6397, %v10137_v36   ;;  %v10145_v51 = vpop.permute.xlu0 %3894  ;;  %v3515_v15 = vmul.f32 1.442695, %v3309_v53  ;;  %v10155_v36 = vpop.eup %6821  ;;  %v3312_v53 = vsub.f32 %v9143_v11, %v9994_v20  ;;  %v12402_v11 = vld [vmem:[#allocation85_spill] sm:$0xff] }
 0x845   :  { %v10147_v59 = vpop.permute.xlu1 %3837  ;;  %12396 = vst [vmem:[#allocation139_spill] sm:$0xff] %v10155_v36  ;;  %v10158_v8 = vpop.eup %6823  ;;  %6827 = vpow2.f32 %v3517_v40  ;;  %v3335_v40 = vsub.f32 %v12402_v11, %v10130_v1 }
 0x846   :  { %v10151_v35 = vpop.permute.xlu2 %3861  ;;  %12397 = vst [vmem:[#allocation43_spill] sm:$0xff] %v10158_v8  ;;  %6829 = vpow2.f32 %v3515_v15  ;;  %v3521_v47 = vmul.f32 1.442695, %v3312_v53  ;;  %v12403_v15 = vld [vmem:[#allocation42_spill] sm:$0xff]  ;;  %v3315_v53 = vsub.f32 %v9169_v14, %v9994_v20  ;;  %v12407_v14 = vld [vmem:[#allocation88_spill] sm:$0xff] }
 0x847   :  { %6831 = vpow2.f32 %v3561_v38  ;;  %v3316_v54 = vsub.f32 %v12403_v15, %v9994_v20  ;;  %v3567_v4 = vmul.f32 1.442695, %v3335_v40  ;;  %v3319_v40 = vsub.f32 %v9176_v27, %v9994_v20 }
 0x848   :  { %v3527_v11 = vmul.f32 1.442695, %v3315_v53 }
 0x84a   :  { %4029 = vperm.xlu0 %6396, %v10153_v18   ;;  %v10174_v18 = vpop.eup %6825 }
 0x84b   :  { %3972 = vperm.xlu1 %6398, %v10155_v36   ;;  %v3523_v36 = vmul.f32 1.442695, %v3313_v21  ;;  %12399 = vst [vmem:[#allocation150_spill] sm:$0xff] %v10174_v18 }
 0x84c   :  { %3969 = vperm.xlu2 %6397, %v10158_v8   ;;  %v10172_v28 = vpop.permute.xlu0 %3903  ;;  %v10176_v8 = vpop.eup %6827 }
 0x84d   :  { %v10166_v31 = vpop.permute.xlu1 %3846  ;;  %12400 = vst [vmem:[#allocation30_spill] sm:$0xff] %v10176_v8  ;;  %v10179_v13 = vpop.eup %6829  ;;  %6833 = vpow2.f32 %v3523_v36 }
 0x84e   :  { %v10170_v33 = vpop.permute.xlu2 %3870  ;;  %12401 = vst [vmem:[#allocation32_spill] sm:$0xff] %v10179_v13  ;;  %6835 = vpow2.f32 %v3521_v47  ;;  %v10193_v38 = vpop.eup %6831  ;;  %v3338_v47 = vsub.f32 %v12407_v14, %v10130_v1 }
 0x84f   :  { %12404 = vst [vmem:[#allocation151_spill] sm:$0xff] %v10193_v38  ;;  %6837 = vpow2.f32 %v3567_v4 }
 0x852   :  { %4038 = vperm.xlu0 %6396, %v10174_v18  }
 0x853   :  { %3981 = vperm.xlu1 %6398, %v10176_v8   ;;  %v3529_v8 = vmul.f32 1.442695, %v3316_v54  ;;  %v3318_v54 = vsub.f32 %v9195_v23, %v9994_v20  ;;  %v12412_v23 = vld [vmem:[#allocation91_spill] sm:$0xff] }
 0x854   :  { %3978 = vperm.xlu2 %6397, %v10179_v13   ;;  %v10195_v55 = vpop.permute.xlu0 %3912  ;;  %v10197_v13 = vpop.eup %6833 }
 0x855   :  { %v10187_v21 = vpop.permute.xlu1 %3855  ;;  %12405 = vst [vmem:[#allocation47_spill] sm:$0xff] %v10197_v13  ;;  %v10200_v36 = vpop.eup %6835  ;;  %6839 = vpow2.f32 %v3529_v8  ;;  %v3533_v32 = vmul.f32 1.442695, %v3318_v54  ;;  %v3321_v54 = vsub.f32 %v9218_v29, %v9994_v20  ;;  %v12416_v29 = vld [vmem:[#allocation94_spill] sm:$0xff] }
 0x856   :  { %v10191_v18 = vpop.permute.xlu2 %3879  ;;  %12406 = vst [vmem:[#allocation34_spill] sm:$0xff] %v10200_v36  ;;  %6841 = vpow2.f32 %v3527_v11  ;;  %v10214_v4 = vpop.eup %6837  ;;  %v3341_v11 = vsub.f32 %v12412_v23, %v10130_v1 }
 0x857   :  { %12408 = vst [vmem:[#allocation152_spill] sm:$0xff] %v10214_v4 }
 0x85a   :  { %4047 = vperm.xlu0 %6396, %v10193_v38   ;;  %v3573_v38 = vmul.f32 1.442695, %v3338_v47  ;;  %v3322_v47 = vsub.f32 %v9201_v41, %v9994_v20 }
 0x85b   :  { %3990 = vperm.xlu1 %6398, %v10197_v13   ;;  %v3535_v13 = vmul.f32 1.442695, %v3319_v40  ;;  %v10216_v14 = vpop.eup %6839 }
 0x85c   :  { %3987 = vperm.xlu2 %6397, %v10200_v36   ;;  %12409 = vst [vmem:[#allocation49_spill] sm:$0xff] %v10216_v14  ;;  %v10219_v8 = vpop.eup %6841  ;;  %v10221_v27 = vpop.permute.xlu0 %3921  ;;  %6843 = vpow2.f32 %v3573_v38  ;;  %v3579_v38 = vmul.f32 1.442695, %v3341_v11  ;;  %v3541_v36 = vmul.f32 1.442695, %v3322_v47 }
 0x85d   :  { %v10208_v15 = vpop.permute.xlu1 %3864  ;;  %12410 = vst [vmem:[#allocation36_spill] sm:$0xff] %v10219_v8  ;;  %6845 = vpow2.f32 %v3535_v13 }
 0x85e   :  { %v10212_v53 = vpop.permute.xlu2 %3888  ;;  %12411 = vst [vmem:[#allocation153_spill] sm:$0xff] %v10221_v27  ;;  %6847 = vpow2.f32 %v3533_v32 }
 0x85f   :  { %6849 = vpow2.f32 %v3579_v38 }
 0x860   :  { %6851 = vpow2.f32 %v3541_v36  ;;  %v12421_v36 = vld [vmem:[#allocation114_spill] sm:$0xff] }
 0x862   :  { %4056 = vperm.xlu0 %6396, %v10214_v4   ;;  %v10238_v23 = vpop.eup %6843 }
 0x863   :  { %3999 = vperm.xlu1 %6398, %v10216_v14   ;;  %v10236_v14 = vperm.slane %v9622_v16, 7  ;;  %12413 = vst [vmem:[#allocation51_spill] sm:$0xff] %v10238_v23  ;;  %v10240_v13 = vpop.eup %6845  ;;  %v3325_v16 = vsub.f32 %v9226_v30, %v9994_v20 }
 0x864   :  { %3996 = vperm.xlu2 %6397, %v10219_v8   ;;  %v3539_v8 = vmul.f32 1.442695, %v3321_v54  ;;  %12414 = vst [vmem:[#allocation38_spill] sm:$0xff] %v10240_v13  ;;  %v10243_v41 = vpop.eup %6847  ;;  %v10251_v11 = vpop.permute.xlu0 %3930  ;;  %v3324_v54 = vsub.f32 %v9237_v43, %v9994_v20  ;;  %v3328_v43 = vsub.f32 %v9244_v22, %v10130_v1 }
 0x865   :  { %v10229_v40 = vpop.permute.xlu1 %3873  ;;  %12415 = vst [vmem:[#allocation154_spill] sm:$0xff] %v10243_v41  ;;  %v3344_v32 = vsub.f32 %v12416_v29, %v10236_v14  ;;  %v10259_v27 = vpop.eup %6849 }
 0x866   :  { %v10233_v4 = vpop.permute.xlu2 %3897  ;;  %6853 = vpow2.f32 %v3539_v8  ;;  %12418 = vst [vmem:[#allocation101_spill] sm:$0xff] %v10259_v27  ;;  %v3545_v29 = vmul.f32 1.442695, %v3324_v54  ;;  %v3347_v8 = vsub.f32 %v12421_v36, %v10236_v14 }
 0x867   :  { %v3585_v38 = vmul.f32 1.442695, %v3344_v32  ;;  %v3327_v32 = vsub.f32 %v9255_v24, %v10130_v1  ;;  %v12426_v24 = vld [vmem:[#allocation116_spill] sm:$0xff] }
 0x869   :  { %6855 = vpow2.f32 %v3585_v38  ;;  %v3591_v38 = vmul.f32 1.442695, %v3347_v8  ;;  %v3551_v36 = vmul.f32 1.442695, %v3327_v32 }
 0x86a   :  { %4065 = vperm.xlu0 %6396, %v10238_v23  }
 0x86b   :  { %4008 = vperm.xlu1 %6398, %v10240_v13   ;;  %v3547_v13 = vmul.f32 1.442695, %v3325_v16 }
 0x86c   :  { %4005 = vperm.xlu2 %6397, %v10243_v41   ;;  %v10261_v41 = vpop.eup %6851  ;;  %v10278_v54 = vpop.permute.xlu0 %3939 }
 0x86d   :  { %v10253_v47 = vpop.permute.xlu1 %3882  ;;  %12419 = vst [vmem:[#allocation155_spill] sm:$0xff] %v10261_v41  ;;  %v10264_v30 = vpop.eup %6853  ;;  %6857 = vpow2.f32 %v3547_v13  ;;  %v3350_v13 = vsub.f32 %v12426_v24, %v10236_v14 }
 0x86e   :  { %12417 = vst [vmem:[#allocation53_spill] sm:$0xff] %v10253_v47  ;;  %v10257_v23 = vpop.permute.xlu2 %3906  ;;  %6859 = vpow2.f32 %v3545_v29  ;;  %v3331_v29 = vsub.f32 %v9260_v0, %v10130_v1 }
 0x86f   :  { %12420 = vst [vmem:[#allocation40_spill] sm:$0xff] %v10264_v30  ;;  %6861 = vpow2.f32 %v3591_v38 }
 0x872   :  { %4074 = vperm.xlu0 %6396, %v10259_v27   ;;  %v10280_v27 = vpop.eup %6855 }
 0x873   :  { %4017 = vperm.xlu1 %6398, %v10261_v41   ;;  %v3553_v41 = vmul.f32 1.442695, %v3328_v43  ;;  %12423 = vst [vmem:[#allocation157_spill] sm:$0xff] %v10280_v27  ;;  %v3330_v43 = vsub.f32 %v9275_v63, %v10130_v1  ;;  %v12432_v63 = vld [vmem:[#allocation33_spill] sm:$0xff] }
 0x874   :  { %4014 = vperm.xlu2 %6397, %v10264_v30   ;;  %v10282_v30 = vpop.eup %6857  ;;  %v10301_v47 = vpop.permute.xlu0 %3948 }
 0x875   :  { %v10272_v20 = vpop.permute.xlu1 %3891  ;;  %12424 = vst [vmem:[#allocation158_spill] sm:$0xff] %v10282_v30  ;;  %v10285_v22 = vpop.eup %6859  ;;  %6863 = vpow2.f32 %v3553_v41  ;;  %v3557_v24 = vmul.f32 1.442695, %v3330_v43  ;;  %v3353_v41 = vsub.f32 %v12432_v63, %v10236_v14  ;;  %v12435_v43 = vld [vmem:[#allocation44_spill] sm:$0xff] }
 0x876   :  { %v10276_v16 = vpop.permute.xlu2 %3915  ;;  %12425 = vst [vmem:[#allocation55_spill] sm:$0xff] %v10285_v22  ;;  %6865 = vpow2.f32 %v3551_v36  ;;  %v10299_v38 = vpop.eup %6861  ;;  %v12433_v36 = vld [vmem:[#allocation57_spill] sm:$0xff] }
 0x877   :  { %12422 = vst [vmem:[#allocation156_spill] sm:$0xff] %v10276_v16  ;;  %v3603_v16 = vmul.f32 1.442695, %v3353_v41  ;;  %v12442_v41 = vld [vmem:[#allocation104_spill] sm:$0xff] }
 0x878   :  { %12428 = vst [vmem:[#allocation76_spill] sm:$0xff] %v10299_v38 }
 0x879   :  { %12429 = vst [vmem:[#allocation79_spill] sm:$0xff] %v10301_v47 }
 0x87a   :  { %4083 = vperm.xlu0 %6396, %v10280_v27   ;;  %v3597_v27 = vmul.f32 1.442695, %v3350_v13  ;;  %v3334_v13 = vsub.f32 %v12433_v36, %v10130_v1 }
 0x87b   :  { %4026 = vperm.xlu1 %6398, %v10282_v30   ;;  %v3559_v30 = vmul.f32 1.442695, %v3331_v29 }
 0x87c   :  { %4023 = vperm.xlu2 %6397, %v10285_v22   ;;  %v10303_v22 = vpop.eup %6863  ;;  %6867 = vpow2.f32 %v3597_v27  ;;  %v10327_v36 = vpop.permute.xlu0 %3957 }
 0x87d   :  { %v10293_v8 = vpop.permute.xlu1 %3900  ;;  %12430 = vst [vmem:[#allocation82_spill] sm:$0xff] %v10303_v22  ;;  %v10306_v0 = vpop.eup %6865  ;;  %6869 = vpow2.f32 %v3559_v30 }
 0x87e   :  { %v10297_v32 = vpop.permute.xlu2 %3924  ;;  %12431 = vst [vmem:[#allocation85_spill] sm:$0xff] %v10306_v0  ;;  %6871 = vpow2.f32 %v3557_v24  ;;  %v12441_v24 = vld [vmem:[#allocation105_spill] sm:$0xff] }
 0x87f   :  { %12427 = vst [vmem:[#allocation73_spill] sm:$0xff] %v10297_v32  ;;  %6873 = vpow2.f32 %v3603_v16 }
 0x880   :  { %12440 = vst [vmem:[#allocation116_spill] sm:$0xff] %v10327_v36 }
 0x882   :  { %4092 = vperm.xlu0 %6396, %v10299_v38   ;;  %v3333_v38 = vsub.f32 %v12435_v43, %v10130_v1  ;;  %v10320_v27 = vpop.eup %6867  ;;  %v3356_v43 = vsub.f32 %v12441_v24, %v10236_v14 }
 0x883   :  { %4035 = vperm.xlu1 %6398, %v10303_v22   ;;  %v3565_v22 = vmul.f32 1.442695, %v3334_v13  ;;  %12437 = vst [vmem:[#allocation91_spill] sm:$0xff] %v10320_v27  ;;  %v10322_v63 = vpop.eup %6869 }
 0x884   :  { %4032 = vperm.xlu2 %6397, %v10306_v0   ;;  %v3563_v47 = vmul.f32 1.442695, %v3333_v38  ;;  %12438 = vst [vmem:[#allocation94_spill] sm:$0xff] %v10322_v63  ;;  %v10325_v30 = vpop.eup %6871  ;;  %v3337_v38 = vsub.f32 %v12442_v41, %v10130_v1  ;;  %v3609_v36 = vmul.f32 1.442695, %v3356_v43  ;;  %v10352_v43 = vpop.permute.xlu0 %3966 }
 0x885   :  { %v10314_v29 = vpop.permute.xlu1 %3909  ;;  %12439 = vst [vmem:[#allocation114_spill] sm:$0xff] %v10325_v30  ;;  %6875 = vpow2.f32 %v3565_v22  ;;  %v10341_v16 = vpop.eup %6873 }
 0x886   :  { %12434 = vst [vmem:[#allocation42_spill] sm:$0xff] %v10314_v29  ;;  %v10318_v32 = vpop.permute.xlu2 %3933  ;;  %6877 = vpow2.f32 %v3563_v47  ;;  %v12449_v47 = vld [vmem:[#allocation46_spill] sm:$0xff] }
 0x887   :  { %12436 = vst [vmem:[#allocation88_spill] sm:$0xff] %v10318_v32  ;;  %6879 = vpow2.f32 %v3609_v36 }
 0x888   :  { %12446 = vst [vmem:[#allocation44_spill] sm:$0xff] %v10341_v16 }
 0x88a   :  { %4101 = vperm.xlu0 %6396, %v10320_v27   ;;  %v12444_v27 = vld [vmem:[#allocation59_spill] sm:$0xff] }
 0x88b   :  { %4044 = vperm.xlu1 %6398, %v10322_v63   ;;  %v3336_v0 = vsub.f32 %v12444_v27, %v10130_v1  ;;  %v3571_v63 = vmul.f32 1.442695, %v3337_v38  ;;  %v10343_v24 = vpop.eup %6875  ;;  %v3340_v27 = vsub.f32 %v12449_v47, %v10130_v1  ;;  %12450 = vst [vmem:[#allocation59_spill] sm:$0xff] %v10352_v43 }
 0x88c   :  { %4041 = vperm.xlu2 %6397, %v10325_v30   ;;  %12447 = vst [vmem:[#allocation105_spill] sm:$0xff] %v10343_v24  ;;  %v10346_v22 = vpop.eup %6877 }
 0x88d   :  { %v10335_v13 = vpop.permute.xlu1 %3918  ;;  %v3569_v29 = vmul.f32 1.442695, %v3336_v0  ;;  %12448 = vst [vmem:[#allocation104_spill] sm:$0xff] %v10346_v22  ;;  %6881 = vpow2.f32 %v3571_v63  ;;  %v12452_v0 = vld [vmem:[#allocation61_spill] sm:$0xff]  ;;  %v3577_v30 = vmul.f32 1.442695, %v3340_v27 }
 0x88e   :  { %12443 = vst [vmem:[#allocation33_spill] sm:$0xff] %v10335_v13  ;;  %v10339_v32 = vpop.permute.xlu2 %3942  ;;  %v3339_v38 = vsub.f32 %v12452_v0, %v10130_v1  ;;  %v10360_v13 = vpop.eup %6879  ;;  %v12458_v27 = vld [vmem:[#allocation63_spill] sm:$0xff] }
 0x88f   :  { %12445 = vst [vmem:[#allocation57_spill] sm:$0xff] %v10339_v32  ;;  %6883 = vpow2.f32 %v3569_v29  ;;  %v12457_v29 = vld [vmem:[#allocation48_spill] sm:$0xff] }
 0x890   :  { %12454 = vst [vmem:[#allocation170_spill] sm:$0xff] %v10360_v13  ;;  %v3575_v36 = vmul.f32 1.442695, %v3339_v38  ;;  %6885 = vpow2.f32 %v3577_v30  ;;  %v3343_v47 = vsub.f32 %v12457_v29, %v10236_v14  ;;  %v3342_v38 = vsub.f32 %v12458_v27, %v10130_v1  ;;  %v12463_v30 = vld [vmem:[#allocation107_spill] sm:$0xff]  ;;  %v12465_v1 = vld [vmem:[#allocation50_spill] sm:$0xff] }
 0x891   :  { %v3345_v27 = vsub.f32 %v12465_v1, %v10236_v14 }
 0x892   :  { %4110 = vperm.xlu0 %6396, %v10341_v16   ;;  %6887 = vpow2.f32 %v3575_v36  ;;  %v3581_v43 = vmul.f32 1.442695, %v3342_v38  ;;  %v3346_v36 = vsub.f32 %v12463_v30, %v10236_v14 }
 0x893   :  { %4053 = vperm.xlu1 %6398, %v10343_v24   ;;  %v10362_v24 = vpop.eup %6881 }
 0x894   :  { %4050 = vperm.xlu2 %6397, %v10346_v22   ;;  %12455 = vst [vmem:[#allocation171_spill] sm:$0xff] %v10362_v24  ;;  %v3589_v38 = vmul.f32 1.442695, %v3346_v36  ;;  %v3348_v36 = vsub.f32 %v9409_v56, %v10236_v14  ;;  %v12477_v56 = vld [vmem:[#allocation67_spill] sm:$0xff] }
 0x895   :  { %v10354_v41 = vpop.permute.xlu1 %3927  ;;  %v10365_v63 = vpop.eup %6883 }
 0x896   :  { %12451 = vst [vmem:[#allocation46_spill] sm:$0xff] %v10354_v41  ;;  %v10358_v16 = vpop.permute.xlu2 %3951  ;;  %v10377_v41 = vpop.permute.xlu0 %3975 }
 0x897   :  { %12453 = vst [vmem:[#allocation61_spill] sm:$0xff] %v10358_v16  ;;  %v10379_v16 = vpop.eup %6885 }
 0x898   :  { %12456 = vst [vmem:[#allocation172_spill] sm:$0xff] %v10365_v63 }
 0x899   :  { %12460 = vst [vmem:[#allocation63_spill] sm:$0xff] %v10377_v41  ;;  %v3587_v41 = vmul.f32 1.442695, %v3345_v27 }
 0x89a   :  { %4119 = vperm.xlu0 %6396, %v10360_v13   ;;  %v3583_v13 = vmul.f32 1.442695, %v3343_v47  ;;  %12461 = vst [vmem:[#allocation173_spill] sm:$0xff] %v10379_v16 }
 0x89b   :  { %4062 = vperm.xlu1 %6398, %v10362_v24   ;;  %v10381_v24 = vpop.eup %6887 }
 0x89c   :  { %4059 = vperm.xlu2 %6397, %v10365_v63   ;;  %12462 = vst [vmem:[#allocation174_spill] sm:$0xff] %v10381_v24  ;;  %6889 = vpow2.f32 %v3583_v13  ;;  %v12469_v13 = vld [vmem:[#allocation65_spill] sm:$0xff] }
 0x89d   :  { %v10371_v0 = vpop.permute.xlu1 %3936  ;;  %6891 = vpow2.f32 %v3581_v43  ;;  %v3349_v43 = vsub.f32 %v12469_v13, %v10236_v14 }
 0x89e   :  { %v10375_v22 = vpop.permute.xlu2 %3960  ;;  %v10393_v63 = vpop.permute.xlu0 %3984  ;;  %6893 = vpow2.f32 %v3589_v38 }
 0x89f   :  { %12459 = vst [vmem:[#allocation48_spill] sm:$0xff] %v10375_v22  ;;  %6895 = vpow2.f32 %v3587_v41  ;;  %v3595_v27 = vmul.f32 1.442695, %v3349_v43  ;;  %v12475_v41 = vld [vmem:[#allocation52_spill] sm:$0xff]  ;;  %v3351_v43 = vsub.f32 %v12477_v56, %v10236_v14 }
 0x8a0   :  { %v3352_v38 = vsub.f32 %v12475_v41, %v10236_v14 }
 0x8a1   :  { %6897 = vpow2.f32 %v3595_v27  ;;  %v12480_v27 = vld [vmem:[#allocation54_spill] sm:$0xff] }
 0x8a2   :  { %v10395_v22 = vpop.eup %6889  ;;  %v3355_v41 = vsub.f32 %v12480_v27, %v10236_v14  ;;  %v12488_v27 = vld [vmem:[#allocation69_spill] sm:$0xff] }
 0x8a3   :  { %4071 = vperm.xlu1 %6398, %v10379_v16   ;;  %12467 = vst [vmem:[#allocation175_spill] sm:$0xff] %v10395_v22  ;;  %v10397_v16 = vpop.eup %6891 }
 0x8a4   :  { %4068 = vperm.xlu2 %6397, %v10381_v24   ;;  %12468 = vst [vmem:[#allocation176_spill] sm:$0xff] %v10397_v16  ;;  %v3593_v24 = vmul.f32 1.442695, %v3348_v36 }
 0x8a5   :  { %v10387_v29 = vpop.permute.xlu1 %3945 }
 0x8a6   :  { %12464 = vst [vmem:[#allocation107_spill] sm:$0xff] %v10387_v29  ;;  %v10391_v47 = vpop.permute.xlu2 %3969  ;;  %6899 = vpow2.f32 %v3593_v24 }
 0x8a7   :  { %12466 = vst [vmem:[#allocation50_spill] sm:$0xff] %v10391_v47  ;;  %v10409_v47 = vpop.eup %6893 }
 0x8a8   :  { %12472 = vst [vmem:[#allocation178_spill] sm:$0xff] %v10409_v47  ;;  %v10411_v32 = vpop.eup %6895 }
 0x8a9   :  { %12473 = vst [vmem:[#allocation179_spill] sm:$0xff] %v10411_v32 }
 0x8ab   :  { %4080 = vperm.xlu1 %6398, %v10395_v22   ;;  %v10413_v22 = vpop.permute.xlu0 %3993 }
 0x8ac   :  { %4077 = vperm.xlu2 %6397, %v10397_v16   ;;  %12474 = vst [vmem:[#allocation180_spill] sm:$0xff] %v10413_v22  ;;  %v3601_v16 = vmul.f32 1.442695, %v3352_v38  ;;  %v12483_v38 = vld [vmem:[#allocation109_spill] sm:$0xff] }
 0x8ad   :  { %v10403_v30 = vpop.permute.xlu1 %3954  ;;  %v3354_v56 = vsub.f32 %v12483_v38, %v10236_v14  ;;  %v3357_v38 = vsub.f32 %v12488_v27, %v10236_v14 }
 0x8ae   :  { %12470 = vst [vmem:[#allocation65_spill] sm:$0xff] %v10403_v30  ;;  %v10407_v1 = vpop.permute.xlu2 %3978  ;;  %v10425_v30 = vpop.eup %6897  ;;  %6901 = vpow2.f32 %v3601_v16  ;;  %v3358_v16 = vsub.f32 %v9464_v10, %v10236_v14 }
 0x8af   :  { %12471 = vst [vmem:[#allocation177_spill] sm:$0xff] %v10407_v1  ;;  %v3599_v1 = vmul.f32 1.442695, %v3351_v43  ;;  %v10427_v22 = vpop.eup %6899 }
 0x8b0   :  { %12478 = vst [vmem:[#allocation67_spill] sm:$0xff] %v10425_v30 }
 0x8b1   :  { %12479 = vst [vmem:[#allocation181_spill] sm:$0xff] %v10427_v22  ;;  %6903 = vpow2.f32 %v3599_v1 }
 0x8b3   :  { %4089 = vperm.xlu1 %6398, %v10409_v47   ;;  %v10433_v24 = vpop.permute.xlu0 %4002  ;;  %v3607_v47 = vmul.f32 1.442695, %v3355_v41 }
 0x8b4   :  { %4086 = vperm.xlu2 %6397, %v10411_v32   ;;  %12481 = vst [vmem:[#allocation54_spill] sm:$0xff] %v10433_v24  ;;  %v10441_v29 = vpop.eup %6901 }
 0x8b5   :  { %v10419_v13 = vpop.permute.xlu1 %3963  ;;  %12485 = vst [vmem:[#allocation183_spill] sm:$0xff] %v10441_v29  ;;  %6905 = vpow2.f32 %v3607_v47 }
 0x8b6   :  { %12476 = vst [vmem:[#allocation52_spill] sm:$0xff] %v10419_v13  ;;  %v10423_v36 = vpop.permute.xlu2 %3987  ;;  %v3605_v13 = vmul.f32 1.442695, %v3354_v56 }
 0x8b8   :  { %6907 = vpow2.f32 %v3605_v13 }
 0x8bb   :  { %4098 = vperm.xlu1 %6398, %v10425_v30   ;;  %v10443_v30 = vpop.eup %6903  ;;  %v10455_v56 = vpop.permute.xlu0 %4011 }
 0x8bc   :  { %4095 = vperm.xlu2 %6397, %v10427_v22   ;;  %12486 = vst [vmem:[#allocation184_spill] sm:$0xff] %v10443_v30  ;;  %v3613_v22 = vmul.f32 1.442695, %v3358_v16  ;;  %v10457_v24 = vpop.eup %6905 }
 0x8bd   :  { %v10435_v32 = vpop.permute.xlu1 %3972  ;;  %12490 = vst [vmem:[#allocation186_spill] sm:$0xff] %v10455_v56  ;;  %v4128_v56 = vperm.slane %v9879_v50, %v8790_v60  ;;  %v4132_v50 = vperm.slane %v9903_v34, %v8814_v48 }
 0x8be   :  { %12482 = vst [vmem:[#allocation182_spill] sm:$0xff] %v10435_v32  ;;  %v10439_v43 = vpop.permute.xlu2 %3996  ;;  %v3611_v32 = vmul.f32 1.442695, %v3357_v38  ;;  %6909 = vpow2.f32 %v3613_v22 }
 0x8bf   :  { %12484 = vst [vmem:[#allocation109_spill] sm:$0xff] %v10439_v43  ;;  %v12511_v43 = vld [vmem:[#allocation131_spill] sm:$0xff] }
 0x8c0   :  { %12491 = vst [vmem:[#allocation187_spill] sm:$0xff] %v10457_v24  ;;  %6911 = vpow2.f32 %v3611_v32 }
 0x8c3   :  { %4107 = vperm.xlu1 %6398, %v10441_v29   ;;  %v10459_v29 = vpop.eup %6907  ;;  %v10467_v14 = vpop.permute.xlu0 %4020 }
 0x8c4   :  { %4104 = vperm.xlu2 %6397, %v10443_v30   ;;  %12492 = vst [vmem:[#allocation188_spill] sm:$0xff] %v10459_v29  ;;  %v10469_v13 = vpop.eup %6909 }
 0x8c5   :  { %v10449_v1 = vpop.permute.xlu1 %3981  ;;  %12494 = vst [vmem:[#allocation190_spill] sm:$0xff] %v10467_v14 }
 0x8c6   :  { %12487 = vst [vmem:[#allocation185_spill] sm:$0xff] %v10449_v1  ;;  %v10453_v41 = vpop.permute.xlu2 %4005  ;;  %v10471_v16 = vpop.eup %6911 }
 0x8c7   :  { %12489 = vst [vmem:[#allocation69_spill] sm:$0xff] %v10453_v41 }
 0x8c8   :  { %12495 = vst [vmem:[#allocation191_spill] sm:$0xff] %v10469_v13 }
 0x8c9   :  { %12496 = vst [vmem:[#allocation192_spill] sm:$0xff] %v10471_v16 }
 0x8cb   :  { %4116 = vperm.xlu1 %6398, %v10457_v24   ;;  %v10479_v22 = vpop.permute.xlu0 %4029 }
 0x8cc   :  { %4113 = vperm.xlu2 %6397, %v10459_v29   ;;  %12499 = vst [vmem:[#allocation195_spill] sm:$0xff] %v10479_v22  ;;  %v4158_v22 = vperm.slane %v10039_v42, %v8780_v58 }
 0x8cd   :  { %v10463_v10 = vpop.permute.xlu1 %3990 }
 0x8ce   :  { %v10465_v47 = vpop.permute.xlu2 %4014 }
 0x8cf   :  { %12493 = vst [vmem:[#allocation189_spill] sm:$0xff] %v10465_v47 }
 0x8d3   :  { %4125 = vperm.xlu1 %6398, %v10469_v13   ;;  %v10485_v24 = vpop.permute.xlu0 %4038 }
 0x8d4   :  { %4122 = vperm.xlu2 %6397, %v10471_v16   ;;  %12501 = vst [vmem:[#allocation197_spill] sm:$0xff] %v10485_v24 }
 0x8d5   :  { %v10475_v27 = vpop.permute.xlu1 %3999 }
 0x8d6   :  { %12497 = vst [vmem:[#allocation193_spill] sm:$0xff] %v10475_v27  ;;  %v10477_v38 = vpop.permute.xlu2 %4023  ;;  %v12513_v27 = vld [vmem:[#allocation122_spill] sm:$0xff] }
 0x8d7   :  { %12498 = vst [vmem:[#allocation194_spill] sm:$0xff] %v10477_v38 }
 0x8db   :  { %v10493_v13 = vpop.permute.xlu0 %4047 }
 0x8dc   :  { %12505 = vst [vmem:[#allocation201_spill] sm:$0xff] %v10493_v13 }
 0x8dd   :  { %v10481_v29 = vpop.permute.xlu1 %4008 }
 0x8de   :  { %12500 = vst [vmem:[#allocation196_spill] sm:$0xff] %v10481_v29  ;;  %v10483_v32 = vpop.permute.xlu2 %4032 }
 0x8e3   :  { %v10499_v38 = vpop.permute.xlu0 %4056 }
 0x8e4   :  { %12507 = vst [vmem:[#allocation203_spill] sm:$0xff] %v10499_v38  ;;  %v4163_v38 = vperm.slane %v10060_v9, %v8814_v48  ;;  %v12510_v9 = vld [vmem:[#allocation45_spill] sm:$0xff] }
 0x8e5   :  { %v10487_v30 = vpop.permute.xlu1 %4017 }
 0x8e6   :  { %12502 = vst [vmem:[#allocation198_spill] sm:$0xff] %v10487_v30  ;;  %v10489_v1 = vpop.permute.xlu2 %4041  ;;  %v4159_v30 = vperm.slane %v9899_v6, %v8790_v60  ;;  %v4161_v6 = vperm.slane %v9991_v3, %v8797_v49  ;;  %v12515_v3 = vld [vmem:[#allocation132_spill] sm:$0xff] }
 0x8e7   :  { %12503 = vst [vmem:[#allocation199_spill] sm:$0xff] %v10489_v1 }
 0x8eb   :  { %v10531_v1 = vpop.permute.xlu0 %4065 }
 0x8ec   :  { %12514 = vst [vmem:[#allocation45_spill] sm:$0xff] %v10531_v1 }
 0x8ed   :  { %v10491_v14 = vpop.permute.xlu1 %4026 }
 0x8ee   :  { %12504 = vst [vmem:[#allocation200_spill] sm:$0xff] %v10491_v14  ;;  %v10495_v16 = vpop.permute.xlu2 %4050  ;;  %v4127_v14 = vperm.slane %v9828_v44, %v8780_v58 }
 0x8ef   :  { %12506 = vst [vmem:[#allocation202_spill] sm:$0xff] %v10495_v16  ;;  %v4160_v16 = vsel %vm2922_vm1, %v4159_v30, %v4158_v22 }
 0x8f0   :  { %v4129_v42 = vsel %vm2922_vm1, %v4128_v56, %v4127_v14  ;;  %v4162_v44 = vsel %vm2926_vm2, %v4161_v6, %v4160_v16  ;;  %v4165_v56 = vperm.slane %v12511_v43, %v12510_v9  ;;  %v12512_v14 = vld [vmem:[#allocation160_spill] sm:$0xff]  ;;  %v12516_v16 = vld [vmem:[#allocation162_spill] sm:$0xff] }
 0x8f1   :  { %v4164_v30 = vsel %vm2930_vm3, %v4163_v38, %v4162_v44  ;;  %v4136_v34 = vperm.slane %v12513_v27, %v12512_v14  ;;  %v4190_v38 = vperm.slane %v10106_v2, %v8790_v60  ;;  %v4167_v27 = vperm.slane %v10017_v61, %v12512_v14  ;;  %v12519_v44 = vld [vmem:[#allocation161_spill] sm:$0xff] }
 0x8f5   :  { %v10497_v47 = vpop.permute.xlu1 %4035 }
 0x8f6   :  { %v10507_v41 = vpop.permute.xlu2 %4059 }
 0x8f7   :  { %12508 = vst [vmem:[#allocation204_spill] sm:$0xff] %v10507_v41  ;;  %v4130_v41 = vperm.slane %v9845_v45, %v8797_v49  ;;  %v4166_v45 = vsel %vm2934_vm4, %v4165_v56, %v4164_v30  ;;  %v12520_v30 = vld [vmem:[#allocation21_spill] sm:$0xff]  ;;  %v12521_v56 = vld [vmem:[#allocation123_spill] sm:$0xff] }
 0x8f8   :  { %v4189_v2 = vperm.slane %v12521_v56, %v8780_v58  ;;  %v12525_v56 = vld [vmem:[#allocation127_spill] sm:$0xff] }
 0x8f9   :  { %v4131_v13 = vsel %vm2926_vm2, %v4130_v41, %v4129_v42  ;;  %v4169_v41 = vperm.slane %v10081_v26, %v12516_v16  ;;  %v4192_v42 = vperm.slane %v10166_v31, %v8797_v49  ;;  %v4140_v26 = vperm.slane %v12520_v30, %v12519_v44  ;;  %v12523_v31 = vld [vmem:[#allocation135_spill] sm:$0xff] }
 0x8fa   :  { %v4133_v22 = vsel %vm2930_vm3, %v4132_v50, %v4131_v13 }
 0x8fd   :  { %v10511_v29 = vpop.permute.xlu1 %4044 }
 0x8fe   :  { %12509 = vst [vmem:[#allocation205_spill] sm:$0xff] %v10511_v29  ;;  %v4134_v29 = vperm.slane %v12515_v3, %v12510_v9  ;;  %v10547_v50 = vpop.permute.xlu2 %4068  ;;  %v12522_v3 = vld [vmem:[#allocation93_spill] sm:$0xff] }
 0x8ff   :  { %12518 = vst [vmem:[#allocation160_spill] sm:$0xff] %v10547_v50  ;;  %v4138_v1 = vperm.slane %v12522_v3, %v12516_v16  ;;  %v4171_v50 = vperm.slane %v12523_v31, %v12519_v44  ;;  %v4194_v3 = vperm.slane %v10035_v46, %v8814_v48 }
 0x900   :  { %v4135_v43 = vsel %vm2934_vm4, %v4134_v29, %v4133_v22  ;;  %v4168_v29 = vsel %vm2938_vm5, %v4167_v27, %v4166_v45  ;;  %v4191_v22 = vsel %vm2922_vm1, %v4190_v38, %v4189_v2  ;;  %v12526_v45 = vld [vmem:[#allocation96_spill] sm:$0xff] }
 0x901   :  { %v4137_v6 = vsel %vm2938_vm5, %v4136_v34, %v4135_v43  ;;  %v4170_v61 = vsel %vm2942_vm6, %v4169_v41, %v4168_v29  ;;  %v4193_v43 = vsel %vm2926_vm2, %v4192_v42, %v4191_v22  ;;  %v12527_v27 = vld [vmem:[#allocation120_spill] sm:$0xff]  ;;  %v12530_v22 = vld [vmem:[#allocation25_spill] sm:$0xff] }
 0x902   :  { %v4139_v34 = vsel %vm2942_vm6, %v4138_v1, %v4137_v6  ;;  %v4142_v41 = vperm.slane %v12527_v27, %v12526_v45  ;;  %v4172_v38 = vsel %vm11831_vm7, %v4171_v50, %v4170_v61  ;;  %v4173_v1 = vperm.slane %v10043_v12, %v12526_v45 }
 0x903   :  { %v4141_v30 = vsel %vm11831_vm7, %v4140_v26, %v4139_v34  ;;  %v4195_v42 = vsel %vm2930_vm3, %v4194_v3, %v4193_v43  ;;  %v4198_v6 = vperm.slane %v10187_v21, %v12512_v14  ;;  %v10578_v26 = vpop.permute.xlu0 %4074  ;;  %v4196_v50 = vperm.slane %v10127_v19, %v12510_v9  ;;  %v12531_v34 = vld [vmem:[#allocation163_spill] sm:$0xff]  ;;  %v12532_v43 = vld [vmem:[#allocation13_spill] sm:$0xff] }
 0x904   :  { %v4143_v46 = vsel %vm11832_vm8, %v4142_v41, %v4141_v30  ;;  %v4174_v12 = vsel %vm11832_vm8, %v4173_v1, %v4172_v38  ;;  %v12534_v30 = vld [vmem:[#allocation138_spill] sm:$0xff]  ;;  %v12536_v38 = vld [vmem:[#allocation167_spill] sm:$0xff]  ;;  %v12537_v1 = vld [vmem:[#allocation41_spill] sm:$0xff] }
 0x905   :  { %v10540_v13 = vpop.permute.xlu1 %4053  ;;  %v4197_v3 = vsel %vm2934_vm4, %v4196_v50, %v4195_v42  ;;  %v4177_v41 = vperm.slane %v12534_v30, %v12531_v34  ;;  %v4181_v42 = vperm.slane %v10123_v39, %v12536_v38  ;;  %v12541_v30 = vld [vmem:[#allocation168_spill] sm:$0xff] }
 0x906   :  { %12517 = vst [vmem:[#allocation131_spill] sm:$0xff] %v10540_v13  ;;  %v12524_v13 = vld [vmem:[#allocation164_spill] sm:$0xff]  ;;  %v10593_v27 = vpop.permute.xlu2 %4077  ;;  %v4199_v19 = vsel %vm2938_vm5, %v4198_v6, %v4197_v3  ;;  %v4220_v3 = vperm.slane %v10212_v53, %v8780_v58 }
 0x907   :  { %v4144_v24 = vperm.slane %v12525_v56, %v12524_v13  ;;  %v4175_v2 = vperm.slane %v10102_v17, %v12524_v13  ;;  %v12529_v17 = vld [vmem:[#allocation165_spill] sm:$0xff]  ;;  %v4146_v56 = vperm.slane %v12532_v43, %v12531_v34 }
 0x908   :  { %v4148_v31 = vperm.slane %v12530_v22, %v12529_v17  ;;  %v4150_v22 = vperm.slane %v12537_v1, %v12536_v38  ;;  %v4179_v50 = vperm.slane %v10064_v57, %v12529_v17 }
 0x909   :  { %v4145_v61 = vsel %vm12528_vm12, %v4144_v24, %v4143_v46  ;;  %v4176_v21 = vsel %vm12533_vm13, %v4175_v2, %v4174_v12  ;;  %v4200_v46 = vperm.slane %v10056_v37, %v12516_v16  ;;  %v4221_v37 = vperm.slane %v10272_v20, %v8790_v60 }
 0x90a   :  { %v4147_v24 = vsel %vm12535_vm14, %v4146_v56, %v4145_v61  ;;  %v4178_v2 = vsel %vm12538_vm15, %v4177_v41, %v4176_v21  ;;  %v4204_v61 = vperm.slane %v10208_v15, %v12526_v45  ;;  %v4202_v12 = vperm.slane %v10151_v35, %v12519_v44  ;;  %v12540_v21 = vld [vmem:[#allocation166_spill] sm:$0xff]  ;;  %v12542_v15 = vld [vmem:[#allocation124_spill] sm:$0xff] }
 0x90b   :  { %v4149_v43 = vsel %vm11833_vm11, %v4148_v31, %v4147_v24  ;;  %v4201_v6 = vsel %vm2942_vm6, %v4200_v46, %v4199_v19  ;;  %vm12539_vm12 = vcmask 851712   ;;  %v4154_v39 = vperm.slane %v10012_v7, %v12540_v21  ;;  %v10628_v35 = vpop.permute.xlu0 %4083  ;;  %v12544_v24 = vld [vmem:[#allocation141_spill] sm:$0xff] }
 0x90c   :  { %v4151_v56 = vsel %vm12539_vm12, %v4150_v22, %v4149_v43  ;;  %v4180_v57 = vsel %vm11833_vm11, %v4179_v50, %v4178_v2  ;;  %v4152_v41 = vperm.slane %v12542_v15, %v12541_v30  ;;  %vm12543_vm13 = vmmov %vm12539_vm12  ;;  %v4203_v19 = vsel %vm11831_vm7, %v4202_v12, %v4201_v6  ;;  %v12545_v22 = vld [vmem:[#allocation169_spill] sm:$0xff]  ;;  %v12546_v43 = vld [vmem:[#allocation119_spill] sm:$0xff] }
 0x90d   :  { %v10580_v29 = vpop.permute.xlu1 %4062  ;;  %v4182_v20 = vsel %vm12543_vm13, %v4181_v42, %v4180_v57  ;;  %v4183_v46 = vperm.slane %v12544_v24, %v12541_v30  ;;  %v4205_v1 = vsel %vm11832_vm8, %v4204_v61, %v4203_v19  ;;  %v4222_v7 = vsel %vm2922_vm1, %v4221_v37, %v4220_v3 }
 0x90e   :  { %v4156_v2 = vperm.slane %v12546_v43, %v12545_v22  ;;  %vm12547_vm14 = vcmask 917312   ;;  %v4206_v50 = vperm.slane %v10077_v62, %v12524_v13  ;;  %v4223_v42 = vperm.slane %v10145_v51, %v8797_v49  ;;  %v10647_v57 = vpop.permute.xlu2 %4086  ;;  %v12554_v43 = vld [vmem:[#allocation153_spill] sm:$0xff] }
 0x90f   :  { %v4153_v53 = vsel %vm12547_vm14, %v4152_v41, %v4151_v56  ;;  %vm12548_vm15 = vcmask 982912   ;;  %v4185_v12 = vperm.slane %v10085_v52, %v12540_v21  ;;  %vm12549_vm12 = vmmov %vm12547_vm14  ;;  %v4187_v37 = vperm.slane %v10147_v59, %v12545_v22 }
 0x910   :  { %v4155_v6 = vsel %vm12548_vm15, %v4154_v39, %v4153_v53  ;;  %v4184_v61 = vsel %vm12549_vm12, %v4183_v46, %v4182_v20  ;;  %vm12550_vm13 = vcmask 654912   ;;  %v4210_v62 = vperm.slane %v10229_v40, %v12529_v17 }
 0x911   :  { %v4207_v56 = vsel %vm12550_vm13, %v4206_v50, %v4205_v1  ;;  %v4224_v3 = vsel %vm2926_vm2, %v4223_v42, %v4222_v7  ;;  %v4227_v51 = vperm.slane %v10293_v8, %v12510_v9  ;;  %v4208_v52 = vperm.slane %v10170_v33, %v12531_v34 }
 0x912   :  { %v4225_v39 = vperm.slane %v10233_v4, %v8814_v48  ;;  %vm12551_vm14 = vcmask 1048512   ;;  %v4212_v15 = vperm.slane %v10098_v25, %v12536_v38  ;;  %v4218_v40 = vperm.slane %v10119_v5, %v12545_v22 }
 0x913   :  { %v10660_v59 = vsel %vm12551_vm14, %v4156_v2, %v4155_v6  ;;  %v4186_v41 = vsel %vm12548_vm15, %v4185_v12, %v4184_v61  ;;  %vm12552_vm12 = vmmov %vm12551_vm14  ;;  %v4229_v33 = vperm.slane %v10172_v28, %v12512_v14  ;;  %vm12553_vm13 = vcmask 720512   ;;  %v4093_v42 = vpop.permute.xlu0 %4092  ;;  %v12556_v61 = vld [vmem:[#allocation42_spill] sm:$0xff] }
 0x914   :  { %v10668_v8 = vsel %vm12552_vm12, %v4187_v37, %v4186_v41  ;;  %v4209_v4 = vsel %vm12553_vm13, %v4208_v52, %v4207_v56  ;;  %v4226_v19 = vsel %vm2930_vm3, %v4225_v39, %v4224_v3  ;;  %v4251_v46 = vperm.slane %v10371_v0, %v8780_v58 }
 0x915   :  { %v10616_v31 = vpop.permute.xlu1 %4071  ;;  %v4211_v24 = vsel %vm11833_vm11, %v4210_v62, %v4209_v4  ;;  %v4228_v25 = vsel %vm2934_vm4, %v4227_v51, %v4226_v19  ;;  %v4314_v1 = vperm.slane %v10497_v47, %v8790_v60  ;;  %v4235_v7 = vperm.slane %v10195_v55, %v12526_v45  ;;  %v12558_v62 = vld [vmem:[#allocation57_spill] sm:$0xff] }
 0x916   :  { %v4214_v28 = vperm.slane %v10191_v18, %v12541_v30  ;;  %v4241_v2 = vperm.slane %v12554_v43, %v12529_v17  ;;  %v4283_v53 = vperm.slane %v10423_v36, %v8790_v60  ;;  %v4247_v50 = vperm.slane %v10251_v11, %v12540_v21  ;;  %v12559_v51 = vld [vmem:[#allocation197_spill] sm:$0xff]  ;;  %v10713_v39 = vpop.permute.xlu2 %4095  ;;  %v12612_v11 = vld [vmem:[#allocation88_spill] sm:$0xff] }
 0x917   :  { %v4252_v0 = vperm.slane %v10278_v54, %v8790_v60  ;;  %v4285_v47 = vperm.slane %v10463_v10, %v8797_v49  ;;  %v4313_v55 = vperm.slane %v10483_v32, %v8780_v58  ;;  %vm12555_vm14 = vcmask 851712   ;;  %v12557_v10 = vld [vmem:[#allocation107_spill] sm:$0xff] }
 0x918   :  { %v4213_v18 = vsel %vm12555_vm14, %v4212_v15, %v4211_v24  ;;  %v4231_v6 = vperm.slane %v10257_v23, %v12516_v16  ;;  %v4230_v36 = vsel %vm2938_vm5, %v4229_v33, %v4228_v25  ;;  %v4282_v12 = vperm.slane %v10393_v63, %v8780_v58  ;;  %v12561_v33 = vld [vmem:[#allocation180_spill] sm:$0xff] }
 0x919   :  { %v4233_v54 = vperm.slane %v12556_v61, %v12519_v44  ;;  %v4253_v37 = vsel %vm2922_vm1, %v4252_v0, %v4251_v46  ;;  %v4256_v56 = vperm.slane %v12557_v10, %v8814_v48  ;;  %v4315_v32 = vsel %vm2922_vm1, %v4314_v1, %v4313_v55  ;;  %v12566_v10 = vld [vmem:[#allocation156_spill] sm:$0xff] }
 0x91a   :  { %v4254_v3 = vperm.slane %v12558_v62, %v8797_v49  ;;  %v4284_v23 = vsel %vm2922_vm1, %v4283_v53, %v4282_v12  ;;  %v4316_v52 = vperm.slane %v12559_v51, %v8797_v49  ;;  %vm12560_vm15 = vcmask 917312   ;;  %v12565_v12 = vld [vmem:[#allocation193_spill] sm:$0xff] }
 0x91b   :  { %v10717_v15 = vsel %vm12560_vm15, %v4214_v28, %v4213_v18  ;;  %v4232_v41 = vsel %vm2942_vm6, %v4231_v6, %v4230_v36  ;;  %v4287_v4 = vperm.slane %v12561_v33, %v8814_v48  ;;  %v4286_v19 = vsel %vm2926_vm2, %v4285_v47, %v4284_v23  ;;  %v12563_v28 = vld [vmem:[#allocation79_spill] sm:$0xff]  ;;  %v12567_v62 = vld [vmem:[#allocation109_spill] sm:$0xff] }
 0x91c   :  { %v4255_v25 = vsel %vm2926_vm2, %v4254_v3, %v4253_v37  ;;  %v4345_v46 = vperm.slane %v10628_v35, %v8790_v60  ;;  %v4317_v1 = vsel %vm2926_vm2, %v4316_v52, %v4315_v32  ;;  %v4258_v0 = vperm.slane %v12563_v28, %v12510_v9  ;;  %v12564_v47 = vld [vmem:[#allocation199_spill] sm:$0xff]  ;;  %v12568_v52 = vld [vmem:[#allocation65_spill] sm:$0xff] }
 0x91d   :  { %v4081_v20 = vpop.permute.xlu1 %4080  ;;  %v4234_v55 = vsel %vm11831_vm7, %v4233_v54, %v4232_v41  ;;  %v4257_v18 = vsel %vm2930_vm3, %v4256_v56, %v4255_v25  ;;  %v4318_v6 = vperm.slane %v12564_v47, %v8814_v48  ;;  %v4288_v36 = vsel %vm2930_vm3, %v4287_v4, %v4286_v19  ;;  %v12569_v33 = vld [vmem:[#allocation61_spill] sm:$0xff] }
 0x91e   :  { %v4344_v63 = vperm.slane %v4081_v20, %v8780_v58  ;;  %v12562_v20 = vld [vmem:[#allocation205_spill] sm:$0xff]  ;;  %v4291_v35 = vperm.slane %v12565_v12, %v12512_v14  ;;  %v4237_v32 = vperm.slane %v12566_v10, %v12524_v13  ;;  %v4289_v54 = vperm.slane %v12567_v62, %v12510_v9 }
 0x91f   :  { %v4320_v53 = vperm.slane %v12562_v20, %v12510_v9  ;;  %v4319_v56 = vsel %vm2930_vm3, %v4318_v6, %v4317_v1  ;;  %v4347_v3 = vperm.slane %v10647_v57, %v8797_v49  ;;  %v4236_v23 = vsel %vm11832_vm8, %v4235_v7, %v4234_v55  ;;  %v12570_v19 = vld [vmem:[#allocation201_spill] sm:$0xff]  ;;  %v12572_v20 = vld [vmem:[#allocation54_spill] sm:$0xff]  ;;  %v12573_v6 = vld [vmem:[#allocation131_spill] sm:$0xff] }
 0x920   :  { %v4346_v61 = vsel %vm2922_vm1, %v4345_v46, %v4344_v63  ;;  %v4259_v51 = vsel %vm2934_vm4, %v4258_v0, %v4257_v18  ;;  %v4262_v63 = vperm.slane %v12568_v52, %v12516_v16  ;;  %v4260_v4 = vperm.slane %v12569_v33, %v12512_v14  ;;  %v4102_v46 = vpop.permute.xlu0 %4101  ;;  %v12571_v7 = vld [vmem:[#allocation33_spill] sm:$0xff] }
 0x921   :  { %v4321_v41 = vsel %vm2934_vm4, %v4320_v53, %v4319_v56  ;;  %v4290_v25 = vsel %vm2934_vm4, %v4289_v54, %v4288_v36  ;;  %v4348_v57 = vsel %vm2926_vm2, %v4347_v3, %v4346_v61  ;;  %v4239_v1 = vperm.slane %v12571_v7, %v12531_v34  ;;  %v12574_v61 = vld [vmem:[#allocation116_spill] sm:$0xff]  ;;  %v12575_v62 = vld [vmem:[#allocation73_spill] sm:$0xff]  ;;  %v4105_v3 = vpop.permute.xlu2 %4104 }
 0x922   :  { %v4293_v28 = vperm.slane %v12572_v20, %v12516_v16  ;;  %v4292_v0 = vsel %vm2938_vm5, %v4291_v35, %v4290_v25  ;;  %v4261_v55 = vsel %vm2938_vm5, %v4260_v4, %v4259_v51  ;;  %v4351_v18 = vperm.slane %v4093_v42, %v12510_v9  ;;  %v12577_v51 = vld [vmem:[#allocation196_spill] sm:$0xff] }
 0x923   :  { %v4326_v36 = vperm.slane %v12573_v6, %v12519_v44  ;;  %v4264_v10 = vperm.slane %v12574_v61, %v12519_v44  ;;  %v4243_v54 = vperm.slane %v12575_v62, %v12536_v38  ;;  %v4263_v35 = vsel %vm2942_vm6, %v4262_v63, %v4261_v55  ;;  %v12580_v20 = vld [vmem:[#allocation52_spill] sm:$0xff]  ;;  %v12584_v6 = vld [vmem:[#allocation186_spill] sm:$0xff] }
 0x924   :  { %v4294_v42 = vsel %vm2942_vm6, %v4293_v28, %v4292_v0  ;;  %v4297_v52 = vperm.slane %v12577_v51, %v12526_v45  ;;  %vm12578_vm12 = vcmask 654912   ;;  %v4353_v25 = vperm.slane %v10713_v39, %v12512_v14  ;;  %v12583_v39 = vld [vmem:[#allocation59_spill] sm:$0xff] }
 0x925   :  { %v4090_v24 = vpop.permute.xlu1 %4089  ;;  %v4238_v4 = vsel %vm12578_vm12, %v4237_v32, %v4236_v23  ;;  %v4265_v7 = vsel %vm11831_vm7, %v4264_v10, %v4263_v35  ;;  %v4268_v28 = vperm.slane %v12580_v20, %v12524_v13  ;;  %v12582_v23 = vld [vmem:[#allocation203_spill] sm:$0xff]  ;;  %v4357_v62 = vperm.slane %v4102_v46, %v12519_v44  ;;  %vm12586_vm14 = vmmov %vm12578_vm12 }
 0x926   :  { %v4349_v37 = vperm.slane %v4090_v24, %v8814_v48  ;;  %v4322_v24 = vperm.slane %v12570_v19, %v12512_v14  ;;  %v12579_v19 = vld [vmem:[#allocation69_spill] sm:$0xff]  ;;  %v4328_v55 = vperm.slane %v12582_v23, %v12526_v45  ;;  %vm12588_vm15 = vmmov %vm12578_vm12 }
 0x928   :  { %v4350_v53 = vsel %vm2930_vm3, %v4349_v37, %v4348_v57  ;;  %v4323_v47 = vsel %vm2938_vm5, %v4322_v24, %v4321_v41  ;;  %v12576_v37 = vld [vmem:[#allocation202_spill] sm:$0xff]  ;;  %v4295_v24 = vperm.slane %v12579_v19, %v12519_v44  ;;  %v4240_v57 = vsel %vm12553_vm13, %v4239_v1, %v4238_v4  ;;  %v4111_v4 = vpop.permute.xlu0 %4110 }
 0x929   :  { %v4324_v56 = vperm.slane %v12576_v37, %v12516_v16  ;;  %v4352_v41 = vsel %vm2934_vm4, %v4351_v18, %v4350_v53  ;;  %v12581_v53 = vld [vmem:[#allocation48_spill] sm:$0xff]  ;;  %v4270_v1 = vperm.slane %v12583_v39, %v12531_v34  ;;  %v4332_v37 = vperm.slane %v10580_v29, %v12531_v34 }
 0x92a   :  { %v4266_v32 = vperm.slane %v12581_v53, %v12526_v45  ;;  %v4296_v18 = vsel %vm11831_vm7, %v4295_v24, %v4294_v42  ;;  %v12585_v42 = vld [vmem:[#allocation46_spill] sm:$0xff]  ;;  %vm12592_vm13 = vcmask 851712  }
 0x92b   :  { %v4325_v63 = vsel %vm2942_vm6, %v4324_v56, %v4323_v47  ;;  %v4354_v47 = vsel %vm2938_vm5, %v4353_v25, %v4352_v41  ;;  %v4298_v61 = vsel %vm11832_vm8, %v4297_v52, %v4296_v18  ;;  %v4242_v56 = vsel %vm11833_vm11, %v4241_v2, %v4240_v57  ;;  %v12587_v41 = vld [vmem:[#allocation204_spill] sm:$0xff]  ;;  %v12589_v24 = vld [vmem:[#allocation198_spill] sm:$0xff]  ;;  %v12590_v2 = vld [vmem:[#allocation53_spill] sm:$0xff]  ;;  %v4114_v18 = vpop.permute.xlu2 %4113 }
 0x92c   :  { %v4327_v0 = vsel %vm11831_vm7, %v4326_v36, %v4325_v63  ;;  %v4267_v10 = vsel %vm11832_vm8, %v4266_v32, %v4265_v7  ;;  %v4245_v51 = vperm.slane %v12585_v42, %v12541_v30  ;;  %v4303_v29 = vperm.slane %v12589_v24, %v12529_v17  ;;  %v12591_v57 = vld [vmem:[#allocation189_spill] sm:$0xff]  ;;  %v12594_v32 = vld [vmem:[#allocation182_spill] sm:$0xff] }
 0x92d   :  { %v4099_v12 = vpop.permute.xlu1 %4098  ;;  %v4329_v35 = vsel %vm11832_vm8, %v4328_v55, %v4327_v0  ;;  %v4269_v52 = vsel %vm12586_vm14, %v4268_v28, %v4267_v10  ;;  %v4216_v25 = vperm.slane %v12590_v2, %v12540_v21  ;;  %v4301_v7 = vperm.slane %v12591_v57, %v12531_v34 }
 0x92e   :  { %v4355_v33 = vperm.slane %v4099_v12, %v12516_v16  ;;  %v4299_v12 = vperm.slane %v12584_v6, %v12524_v13  ;;  %v4359_v28 = vperm.slane %v4105_v3, %v12526_v45  ;;  %v4244_v0 = vsel %vm12592_vm13, %v4243_v54, %v4242_v56  ;;  %v12597_v6 = vld [vmem:[#allocation45_spill] sm:$0xff] }
 0x92f   :  { %vm12593_vm14 = vcmask 720512   ;;  %v4274_v23 = vperm.slane %v12594_v32, %v12536_v38  ;;  %vm12601_vm13 = vcmask 654912   ;;  %v4338_v42 = vperm.slane %v10616_v31, %v12541_v30  ;;  %v12608_v31 = vld [vmem:[#allocation200_spill] sm:$0xff] }
 0x930   :  { %v4356_v36 = vsel %vm2942_vm6, %v4355_v33, %v4354_v47  ;;  %v4330_v33 = vperm.slane %v12587_v41, %v12524_v13  ;;  %v4300_v19 = vsel %vm12588_vm15, %v4299_v12, %v4298_v61  ;;  %v4271_v53 = vsel %vm12593_vm14, %v4270_v1, %v4269_v52  ;;  %vm12595_vm15 = vmmov %vm12593_vm14  ;;  %v12596_v47 = vld [vmem:[#allocation50_spill] sm:$0xff] }
 0x931   :  { %v4358_v63 = vsel %vm11831_vm7, %v4357_v62, %v4356_v36  ;;  %v4272_v39 = vperm.slane %v12596_v47, %v12529_v17  ;;  %v4334_v12 = vperm.slane %v12597_v6, %v12529_v17  ;;  %vm12598_vm7 = vmmov %vm12593_vm14  ;;  %v12600_v1 = vld [vmem:[#allocation190_spill] sm:$0xff]  ;;  %vm12604_vm14 = vcmask 851712  }
 0x932   :  { %v4331_v20 = vsel %vm12578_vm12, %v4330_v33, %v4329_v35  ;;  %v4302_v61 = vsel %vm12598_vm7, %v4301_v7, %v4300_v19  ;;  %v4360_v3 = vsel %vm11832_vm8, %v4359_v28, %v4358_v63  ;;  %vm12599_vm12 = vcmask 917312   ;;  %v12614_v28 = vld [vmem:[#allocation185_spill] sm:$0xff] }
 0x933   :  { %v4333_v55 = vsel %vm12595_vm15, %v4332_v37, %v4331_v20  ;;  %v4246_v54 = vsel %vm12599_vm12, %v4245_v51, %v4244_v0  ;;  %v4305_v36 = vperm.slane %v12600_v1, %v12536_v38  ;;  %v4304_v10 = vsel %vm11833_vm11, %v4303_v29, %v4302_v61  ;;  %v12603_v51 = vld [vmem:[#allocation63_spill] sm:$0xff]  ;;  %vm12607_vm12 = vmmov %vm12604_vm14 }
 0x934   :  { %v4273_v35 = vsel %vm11833_vm11, %v4272_v39, %v4271_v53  ;;  %v4363_v37 = vperm.slane %v4111_v4, %v12531_v34  ;;  %v4335_v56 = vsel %vm11833_vm11, %v4334_v12, %v4333_v55  ;;  %vm12602_vm7 = vcmask 982912   ;;  %v4120_v53 = vpop.permute.xlu0 %4119 }
 0x935   :  { %v4108_v46 = vpop.permute.xlu1 %4107  ;;  %v4217_v52 = vsel %vm12602_vm7, %v4216_v25, %v10717_v15  ;;  %v4276_v41 = vperm.slane %v12603_v51, %v12541_v30  ;;  %v4275_v33 = vsel %vm12604_vm14, %v4274_v23, %v4273_v35  ;;  %vm12606_vm15 = vmmov %vm12602_vm7  ;;  %v4306_v24 = vsel %vm12607_vm12, %v4305_v36, %v4304_v10  ;;  %v12616_v23 = vld [vmem:[#allocation177_spill] sm:$0xff]  ;;  %v4123_v10 = vpop.permute.xlu2 %4122 }
 0x936   :  { %v4361_v43 = vperm.slane %v4108_v46, %v12524_v13  ;;  %v12605_v46 = vld [vmem:[#allocation160_spill] sm:$0xff]  ;;  %v4248_v4 = vsel %vm12606_vm15, %v4247_v50, %v4246_v54  ;;  %v4309_v29 = vperm.slane %v12608_v31, %v12540_v21  ;;  %vm12611_vm7 = vmmov %vm12607_vm12  ;;  %v4365_v57 = vperm.slane %v4114_v18, %v12529_v17  ;;  %v12622_v54 = vld [vmem:[#allocation195_spill] sm:$0xff] }
 0x937   :  { %v4336_v19 = vperm.slane %v12605_v46, %v12536_v38  ;;  %v4249_v50 = vperm.slane %v12612_v11, %v12545_v22  ;;  %vm12613_vm14 = vcmask 917312   ;;  %v4280_v0 = vperm.slane %v12614_v28, %v12545_v22 }
 0x938   :  { %v4362_v62 = vsel %vm12601_vm13, %v4361_v43, %v4360_v3  ;;  %vm12609_vm13 = vcmask 720512   ;;  %v12610_v43 = vld [vmem:[#allocation194_spill] sm:$0xff]  ;;  %v4277_v20 = vsel %vm12613_vm14, %v4276_v41, %v4275_v33  ;;  %vm12615_vm15 = vmmov %vm12613_vm14  ;;  %v4278_v55 = vperm.slane %v12616_v23, %v12540_v21 }
 0x939   :  { %v4364_v15 = vsel %vm12609_vm13, %v4363_v37, %v4362_v62  ;;  %v4307_v2 = vperm.slane %v12610_v43, %v12541_v30  ;;  %v4337_v25 = vsel %vm12611_vm7, %v4336_v19, %v4335_v56  ;;  %v4340_v47 = vperm.slane %v10578_v26, %v12540_v21  ;;  %vm12617_vm12 = vmmov %vm12613_vm14 }
 0x93a   :  { %v4339_v32 = vsel %vm12615_vm15, %v4338_v42, %v4337_v25  ;;  %v4366_v39 = vsel %vm11833_vm11, %v4365_v57, %v4364_v15  ;;  %vm12618_vm13 = vcmask 1048512   ;;  %vm12620_vm14 = vcmask 982912  }
 0x93b   :  { %v4308_v18 = vsel %vm12617_vm12, %v4307_v2, %v4306_v24  ;;  %v4219_v6 = vsel %vm12618_vm13, %v4218_v40, %v4217_v52  ;;  %vm12619_vm7 = vmmov %vm12618_vm13  ;;  %vm12621_vm15 = vcmask 851712   ;;  %v4311_v1 = vperm.slane %v12622_v54, %v12545_v22 }
 0x93c   :  { %v4250_v12 = vsel %vm12619_vm7, %v4249_v50, %v4248_v4  ;;  %v4310_v61 = vsel %vm12620_vm14, %v4309_v29, %v4308_v18  ;;  %vm12623_vm8 = vmmov %vm12620_vm14  ;;  %v4369_v36 = vperm.slane %v4120_v53, %v12541_v30  ;;  %vm12625_vm11 = vcmask 1041409  }
 0x93d   :  { %v4117_v63 = vpop.permute.xlu1 %4116  ;;  %v4279_v26 = vsel %vm12623_vm8, %v4278_v55, %v4277_v20  ;;  %vm12624_vm12 = vmmov %vm12623_vm8  ;;  %v4375_v5 = vsel %vm12625_vm11, %v10668_v8, %v10660_v59  ;;  %v4342_v35 = vperm.slane %v10593_v27, %v12545_v22  ;;  %vm12628_vm14 = vcmask 917312  }
 0x93e   :  { %v4367_v7 = vperm.slane %v4117_v63, %v12536_v38  ;;  %v4341_v62 = vsel %vm12624_vm12, %v4340_v47, %v4339_v32  ;;  %vm12626_vm13 = vmmov %vm12619_vm7  ;;  %vm12627_vm7 = vcmask 1042434   ;;  %v4371_v52 = vperm.slane %v4123_v10, %v12540_v21  ;;  %v12638_v10 = vld [vmem:[#allocation74_spill] sm:$0xff] }
 0x93f   :  { %v4281_v40 = vsel %vm12626_vm13, %v4280_v0, %v4279_v26  ;;  %v4376_v37 = vsel %vm12627_vm7, %v4219_v6, %v4375_v5  ;;  %vm12630_vm8 = vmmov %vm12626_vm13  ;;  %vm12631_vm12 = vcmask 1043459   ;;  %vm12632_vm11 = vcmask 1044484   ;;  %v12639_v5 = vld [vmem:[#allocation115_spill] sm:$0xff] }
 0x940   :  { %v4368_v3 = vsel %vm12621_vm15, %v4367_v7, %v4366_v39  ;;  %vm12629_vm15 = vmmov %vm12626_vm13  ;;  %v4343_v41 = vsel %vm12630_vm8, %v4342_v35, %v4341_v62  ;;  %v4377_v33 = vsel %vm12631_vm12, %v4250_v12, %v4376_v37  ;;  %vm12633_vm13 = vcmask 982912   ;;  %v12635_v39 = vld [vmem:[#allocation70_spill] sm:$0xff]  ;;  %v12636_v12 = vld [vmem:[#allocation71_spill] sm:$0xff] }
 0x941   :  { %v4370_v56 = vsel %vm12628_vm14, %v4369_v36, %v4368_v3  ;;  %v4312_v42 = vsel %vm12629_vm15, %v4311_v1, %v4310_v61  ;;  %v4378_v8 = vsel %vm12632_vm11, %v4281_v40, %v4377_v33  ;;  %vm12634_vm7 = vmmov %vm12630_vm8  ;;  %v12637_v3 = vld [vmem:[#allocation58_spill] sm:$0xff]  ;;  %v12640_v35 = vld [vmem:[#allocation60_spill] sm:$0xff] }
 0x942   :  { %v4372_v46 = vsel %vm12633_vm13, %v4371_v52, %v4370_v56  ;;  %v4379_v27 = vsel %vm3205_vm0, %v4312_v42, %v4378_v8  ;;  %v12641_v42 = vld [vmem:[#allocation77_spill] sm:$0xff]  ;;  %v12643_v33 = vld [vmem:[#allocation80_spill] sm:$0xff] }
 0x943   :  { %v4380_v4 = vsel %vm3207_vm9, %v4343_v41, %v4379_v27 }
 0x945   :  { %v4126_v51 = vpop.permute.xlu1 %4125 }
 0x946   :  { %v4373_v59 = vperm.slane %v4126_v51, %v12545_v22  ;;  %v12642_v51 = vld [vmem:[#allocation62_spill] sm:$0xff] }
 0x948   :  { %v4374_v19 = vsel %vm12634_vm7, %v4373_v59, %v4372_v46  ;;  %v12644_v46 = vld [vmem:[#allocation64_spill] sm:$0xff] }
 0x949   :  { %v4381_v24 = vsel %vm3209_vm10, %v4374_v19, %v4380_v4  ;;  %v12645_v19 = vld [vmem:[#allocation121_spill] sm:$0xff] }
 0x94a   :  { %4383 = vadd.xlane.f32.xlu0 %v4381_v24  ;;  %v12646_v24 = vld [vmem:[#allocation83_spill] sm:$0xff] }
 0x9bd   :  { %v10913_v31 = vpop.xlane.xlu0 %4383 }
 0x9be   :  { %v4386_v29 = vperm.slane %v10913_v31, 0  ;;  %v4387_v15 = vperm.slane %v10913_v31, 1  ;;  %v4388_v56 = vperm.slane %v10913_v31, 2 }
 0x9c0   :  { %6913 = vrcp.f32 %v4386_v29  ;;  %v4413_v20 = vand.u32 2147483648, %v4386_v29  ;;  %vm4407_vm15 = vweird.f32 %v4386_v29  ;;  %v4411_v28 = vand.u32 2147483647, %v4386_v29 }
 0x9c1   :  { %6915 = vrcp.f32 %v4387_v15  ;;  %v4443_v47 = vand.u32 2147483648, %v4387_v15  ;;  %vm4437_vm13 = vweird.f32 %v4387_v15  ;;  %v4441_v18 = vand.u32 2147483647, %v4387_v15 }
 0x9c2   :  { %v4414_v32 = vor.u32 1.1754944e-38, %v4413_v20  ;;  %vm4412_vm12 = vcmp.eq.f32.partialorder %v4411_v28, 8.507059e+37  ;;  %6917 = vrcp.f32 %v4388_v56  ;;  %v4473_v28 = vand.u32 2147483648, %v4388_v56 }
 0x9c3   :  { %v4444_v26 = vor.u32 1.1754944e-38, %v4443_v47 }
 0x9c6   :  { %v6914_v63 = vpop.eup %6913 }
 0x9c7   :  { %v6916_v43 = vpop.eup %6915  ;;  %v4403_v2 = vmul.f32 %v6914_v63, %v4386_v29  ;;  %vm4408_vm14 = vweird.f32 %v6914_v63 }
 0x9c8   :  { %v4433_v25 = vmul.f32 %v6916_v43, %v4387_v15  ;;  %vm4409_vm8 = vmor %vm4407_vm15, %vm4408_vm14  ;;  %vm4438_vm11 = vweird.f32 %v6916_v43  ;;  %vm4442_vm14 = vcmp.eq.f32.partialorder %v4441_v18, 8.507059e+37  ;;  %v6918_v8 = vpop.eup %6917  ;;  %v12652_v18 = vld [vmem:[#allocation129_spill] sm:$0xff] }
 0x9c9   :  { %v4404_v57 = vsub.f32 1.0, %v4403_v2  ;;  %vm4439_vm7 = vmor %vm4437_vm13, %vm4438_vm11  ;;  %v4463_v15 = vmul.f32 %v6918_v8, %v4388_v56  ;;  %vm4468_vm15 = vweird.f32 %v6918_v8 }
 0x9ca   :  { %v4434_v11 = vsub.f32 1.0, %v4433_v25  ;;  %v12648_v25 = vld [vmem:[#allocation86_spill] sm:$0xff] }
 0x9cb   :  { %v4405_v7 = vmul.f32 %v6914_v63, %v4404_v57 }
 0x9cc   :  { %v4435_v53 = vmul.f32 %v6916_v43, %v4434_v11 }
 0x9cd   :  { %v4406_v50 = vadd.f32 %v6914_v63, %v4405_v7  ;;  %v12649_v7 = vld [vmem:[#allocation68_spill] sm:$0xff] }
 0x9ce   :  { %v4436_v55 = vadd.f32 %v6916_v43, %v4435_v53  ;;  %v12650_v53 = vld [vmem:[#allocation89_spill] sm:$0xff] }
 0x9cf   :  { %v4410_v0 = vsel %vm4409_vm8, %v6914_v63, %v4406_v50  ;;  %v4464_v63 = vsub.f32 1.0, %v4463_v15  ;;  %vm4467_vm8 = vweird.f32 %v4388_v56 }
 0x9d0   :  { %v10917_v23 = vsel %vm4412_vm12, %v4414_v32, %v4410_v0  ;;  %v4440_v1 = vsel %vm4439_vm7, %v6916_v43, %v4436_v55  ;;  %v12647_v43 = vld [vmem:[#allocation66_spill] sm:$0xff]  ;;  %v4471_v0 = vand.u32 2147483647, %v4388_v56  ;;  %vm4469_vm12 = vmor %vm4467_vm8, %vm4468_vm15  ;;  %v12651_v55 = vld [vmem:[#allocation56_spill] sm:$0xff] }
 0x9d1   :  { %v4426_v6 = vmul.f32 %v12635_v39, %v10917_v23  ;;  %v4417_v61 = vmul.f32 %v12636_v12, %v10917_v23  ;;  %v4416_v54 = vmul.f32 %v12637_v3, %v10917_v23  ;;  %v10925_v36 = vsel %vm4442_vm14, %v4444_v26, %v4440_v1  ;;  %v12653_v3 = vld [vmem:[#allocation92_spill] sm:$0xff]  ;;  %v12658_v56 = vld [vmem:[#allocation75_spill] sm:$0xff] }
 0x9d2   :  { %v4447_v62 = vmul.f32 %v12638_v10, %v10925_v36  ;;  %v4419_v40 = vmul.f32 %v12639_v5, %v10917_v23  ;;  %v4418_v37 = vmul.f32 %v12640_v35, %v10917_v23  ;;  %v4450_v52 = vmul.f32 %v12641_v42, %v10925_v36  ;;  %v12654_v1 = vld [vmem:[#allocation72_spill] sm:$0xff]  ;;  %v12655_v10 = vld [vmem:[#allocation159_spill] sm:$0xff]  ;;  %v12657_v35 = vld [vmem:[#allocation113_spill] sm:$0xff] }
 0x9d3   :  { %4993 = vperm.xlu0 %6396, %v4426_v6   ;;  %4966 = vperm.xlu1 %6398, %v4417_v61   ;;  %v4421_v41 = vmul.f32 %v12642_v51, %v10917_v23  ;;  %v4420_v59 = vmul.f32 %v12643_v33, %v10917_v23  ;;  %v4453_v27 = vmul.f32 %v12644_v46, %v10925_v36  ;;  %v4474_v12 = vor.u32 1.1754944e-38, %v4473_v28  ;;  %v12656_v5 = vld [vmem:[#allocation95_spill] sm:$0xff]  ;;  %v12659_v51 = vld [vmem:[#allocation134_spill] sm:$0xff] }
 0x9d4   :  { %4963 = vperm.xlu2 %6397, %v4416_v54   ;;  %v4423_v4 = vmul.f32 %v12645_v19, %v10917_v23  ;;  %v4422_v29 = vmul.f32 %v12646_v24, %v10917_v23  ;;  %v4456_v2 = vmul.f32 %v12647_v43, %v10925_v36  ;;  %v4425_v57 = vmul.f32 %v12648_v25, %v10917_v23  ;;  %v12660_v33 = vld [vmem:[#allocation98_spill] sm:$0xff] }
 0x9d5   :  { %v4424_v11 = vmul.f32 %v12649_v7, %v10917_v23  ;;  %v4465_v50 = vmul.f32 %v6918_v8, %v4464_v63  ;;  %v4459_v32 = vmul.f32 %v12650_v53, %v10925_v36  ;;  %v4428_v47 = vmul.f32 %v12651_v55, %v10917_v23 }
 0x9d6   :  { %v4427_v39 = vmul.f32 %v12652_v18, %v10917_v23  ;;  %vm4472_vm11 = vcmp.eq.f32.partialorder %v4471_v0, 8.507059e+37  ;;  %v4430_v26 = vmul.f32 %v12654_v1, %v10917_v23  ;;  %v4431_v42 = vmul.f32 %v12658_v56, %v10917_v23 }
 0x9d7   :  { %v4466_v20 = vadd.f32 %v6918_v8, %v4465_v50 }
 0x9d9   :  { %v4470_v6 = vsel %vm4469_vm12, %v6918_v8, %v4466_v20  ;;  %v12661_v8 = vld [vmem:[#allocation118_spill] sm:$0xff] }
 0x9da   :  { %v10958_v61 = vsel %vm4472_vm11, %v4474_v12, %v4470_v6  ;;  %v4448_v46 = vmul.f32 %v12661_v8, %v10925_v36 }
 0x9db   :  { %5014 = vperm.xlu0 %6396, %v4447_v62   ;;  %4972 = vperm.xlu1 %6398, %v4419_v40   ;;  %v4476_v54 = vmul.f32 %v12653_v3, %v10958_v61  ;;  %v4429_v62 = vmul.f32 %v12655_v10, %v10917_v23  ;;  %v4479_v40 = vmul.f32 %v12656_v5, %v10958_v61  ;;  %v12662_v23 = vld [vmem:[#allocation78_spill] sm:$0xff] }
 0x9dc   :  { %4969 = vperm.xlu2 %6397, %v4418_v37   ;;  %v4446_v37 = vmul.f32 %v12657_v35, %v10925_v36  ;;  %v4485_v19 = vmul.f32 %v12662_v23, %v10958_v61  ;;  %v12678_v23 = vld [vmem:[#allocation14_spill] sm:$0xff] }
 0x9e3   :  { %5023 = vperm.xlu0 %6396, %v4450_v52   ;;  %4978 = vperm.xlu1 %6398, %v4421_v41   ;;  %v4389_v52 = vperm.slane %v10913_v31, 3  ;;  %v4482_v41 = vmul.f32 %v12659_v51, %v10958_v61  ;;  %v12675_v51 = vld [vmem:[#allocation16_spill] sm:$0xff] }
 0x9e4   :  { %4975 = vperm.xlu2 %6397, %v4420_v59   ;;  %v4449_v59 = vmul.f32 %v12660_v33, %v10925_v36  ;;  %v12676_v33 = vld [vmem:[#allocation108_spill] sm:$0xff] }
 0x9e5   :  { %6919 = vrcp.f32 %v4389_v52  ;;  %v4503_v0 = vand.u32 2147483648, %v4389_v52  ;;  %vm4497_vm7 = vweird.f32 %v4389_v52  ;;  %v4501_v53 = vand.u32 2147483647, %v4389_v52 }
 0x9e7   :  { %v4504_v3 = vor.u32 1.1754944e-38, %v4503_v0  ;;  %vm4502_vm15 = vcmp.eq.f32.partialorder %v4501_v53, 8.507059e+37  ;;  %v12682_v53 = vld [vmem:[#allocation8_spill] sm:$0xff] }
 0x9eb   :  { %5032 = vperm.xlu0 %6396, %v4453_v27   ;;  %4984 = vperm.xlu1 %6398, %v4423_v4   ;;  %v6920_v27 = vpop.eup %6919  ;;  %v12663_v4 = vld [vmem:[#allocation112_spill] sm:$0xff] }
 0x9ec   :  { %4981 = vperm.xlu2 %6397, %v4422_v29   ;;  %v4452_v24 = vmul.f32 %v12663_v4, %v10925_v36  ;;  %v12664_v29 = vld [vmem:[#allocation100_spill] sm:$0xff]  ;;  %v4493_v63 = vmul.f32 %v6920_v27, %v4389_v52  ;;  %vm4498_vm13 = vweird.f32 %v6920_v27  ;;  %v12679_v4 = vld [vmem:[#allocation111_spill] sm:$0xff] }
 0x9ed   :  { %v4451_v15 = vmul.f32 %v12664_v29, %v10925_v36  ;;  %vm4499_vm14 = vmor %vm4497_vm7, %vm4498_vm13  ;;  %vm12689_vm7 = vcmask 523712  }
 0x9ee   :  { %v4494_v43 = vsub.f32 1.0, %v4493_v63 }
 0x9f0   :  { %v4495_v20 = vmul.f32 %v6920_v27, %v4494_v43 }
 0x9f2   :  { %v4496_v28 = vadd.f32 %v6920_v27, %v4495_v20 }
 0x9f3   :  { %5041 = vperm.xlu0 %6396, %v4456_v2   ;;  %4990 = vperm.xlu1 %6398, %v4425_v57   ;;  %v12665_v2 = vld [vmem:[#allocation99_spill] sm:$0xff]  ;;  %v12666_v57 = vld [vmem:[#allocation81_spill] sm:$0xff] }
 0x9f4   :  { %4987 = vperm.xlu2 %6397, %v4424_v11   ;;  %v4488_v25 = vmul.f32 %v12665_v2, %v10958_v61  ;;  %v4455_v7 = vmul.f32 %v12666_v57, %v10925_v36  ;;  %v12667_v11 = vld [vmem:[#allocation19_spill] sm:$0xff]  ;;  %v4500_v12 = vsel %vm4499_vm14, %v6920_v27, %v4496_v28  ;;  %v12681_v28 = vld [vmem:[#allocation97_spill] sm:$0xff]  ;;  %vm12693_vm14 = vcmask 589312  }
 0x9f5   :  { %v4454_v50 = vmul.f32 %v12667_v11, %v10925_v36  ;;  %v4484_v0 = vmul.f32 %v12681_v28, %v10958_v61 }
 0x9fb   :  { %5050 = vperm.xlu0 %6396, %v4459_v32   ;;  %4999 = vperm.xlu1 %6398, %v4428_v47   ;;  %v12668_v32 = vld [vmem:[#allocation103_spill] sm:$0xff] }
 0x9fc   :  { %4996 = vperm.xlu2 %6397, %v4427_v39   ;;  %v4491_v55 = vmul.f32 %v12668_v32, %v10958_v61  ;;  %v12669_v47 = vld [vmem:[#allocation23_spill] sm:$0xff]  ;;  %v12670_v39 = vld [vmem:[#allocation84_spill] sm:$0xff]  ;;  %v4483_v32 = vmul.f32 %v12682_v53, %v10958_v61  ;;  %v12691_v53 = vld [vmem:[#allocation126_spill] sm:$0xff] }
 0x9fd   :  { %v4458_v18 = vmul.f32 %v12669_v47, %v10925_v36  ;;  %v4457_v6 = vmul.f32 %v12670_v39, %v10925_v36 }
 0xa03   :  { %5059 = vperm.xlu0 %6396, %v4476_v54   ;;  %5005 = vperm.xlu1 %6398, %v4430_v26   ;;  %v10997_v54 = vsel %vm4502_vm15, %v4504_v3, %v4500_v12  ;;  %v12671_v26 = vld [vmem:[#allocation125_spill] sm:$0xff]  ;;  %vm12694_vm15 = vcmask 654912  }
 0xa04   :  { %5002 = vperm.xlu2 %6397, %v4429_v62   ;;  %v4508_v10 = vmul.f32 %v12671_v26, %v10997_v54  ;;  %v12672_v62 = vld [vmem:[#allocation106_spill] sm:$0xff] }
 0xa05   :  { %v4461_v5 = vmul.f32 %v12672_v62, %v10925_v36 }
 0xa0b   :  { %5068 = vperm.xlu0 %6396, %v4479_v40   ;;  %5011 = vperm.xlu1 %6398, %v4446_v37   ;;  %v12673_v40 = vld [vmem:[#allocation128_spill] sm:$0xff]  ;;  %v4390_v37 = vperm.slane %v10913_v31, 4 }
 0xa0c   :  { %5008 = vperm.xlu2 %6397, %v4431_v42   ;;  %v4460_v35 = vmul.f32 %v12673_v40, %v10925_v36  ;;  %v12674_v42 = vld [vmem:[#allocation87_spill] sm:$0xff] }
 0xa0d   :  { %v4511_v52 = vmul.f32 %v12674_v42, %v10997_v54  ;;  %6921 = vrcp.f32 %v4390_v37  ;;  %vm4527_vm12 = vweird.f32 %v4390_v37  ;;  %v12685_v42 = vld [vmem:[#allocation15_spill] sm:$0xff] }
 0xa13   :  { %5077 = vperm.xlu0 %6396, %v4482_v41   ;;  %5020 = vperm.xlu1 %6398, %v4449_v59   ;;  %v4478_v41 = vmul.f32 %v12675_v51, %v10958_v61  ;;  %v4477_v59 = vmul.f32 %v12676_v33, %v10958_v61  ;;  %v6922_v8 = vpop.eup %6921 }
 0xa14   :  { %5017 = vperm.xlu2 %6397, %v4448_v46   ;;  %v12677_v46 = vld [vmem:[#allocation90_spill] sm:$0xff]  ;;  %v4523_v29 = vmul.f32 %v6922_v8, %v4390_v37  ;;  %vm4528_vm8 = vweird.f32 %v6922_v8 }
 0xa15   :  { %v4514_v27 = vmul.f32 %v12677_v46, %v10997_v54  ;;  %vm4529_vm11 = vmor %vm4527_vm12, %vm4528_vm8  ;;  %vm12696_vm8 = vcmask 720512   ;;  %vm12699_vm12 = vcmask 786112  }
 0xa16   :  { %v4524_v2 = vsub.f32 1.0, %v4523_v29 }
 0xa18   :  { %v4525_v47 = vmul.f32 %v6922_v8, %v4524_v2 }
 0xa1a   :  { %v4526_v12 = vadd.f32 %v6922_v8, %v4525_v47 }
 0xa1b   :  { %5086 = vperm.xlu0 %6396, %v4485_v19   ;;  %5029 = vperm.xlu1 %6398, %v4452_v24   ;;  %v4481_v19 = vmul.f32 %v12678_v23, %v10958_v61  ;;  %v4480_v24 = vmul.f32 %v12679_v4, %v10958_v61  ;;  %v12686_v4 = vld [vmem:[#allocation133_spill] sm:$0xff] }
 0xa1c   :  { %5026 = vperm.xlu2 %6397, %v4451_v15  }
 0xa23   :  { %5095 = vperm.xlu0 %6396, %v4488_v25   ;;  %5038 = vperm.xlu1 %6398, %v4455_v7  }
 0xa24   :  { %5035 = vperm.xlu2 %6397, %v4454_v50   ;;  %v12680_v50 = vld [vmem:[#allocation37_spill] sm:$0xff] }
 0xa25   :  { %v4517_v20 = vmul.f32 %v12680_v50, %v10997_v54 }
 0xa2b   :  { %5104 = vperm.xlu0 %6396, %v4491_v55   ;;  %5047 = vperm.xlu1 %6398, %v4458_v18  }
 0xa2c   :  { %5044 = vperm.xlu2 %6397, %v4457_v6  }
 0xa2e   :  { %v4964_v1 = vpop.permute.xlu2 %4963 }
 0xa2f   :  { %v5346_v25 = vperm.slane %v4964_v1, %v8780_v58  ;;  %v4533_v1 = vand.u32 2147483648, %v4390_v37 }
 0xa31   :  { %v4534_v33 = vor.u32 1.1754944e-38, %v4533_v1 }
 0xa33   :  { %5113 = vperm.xlu0 %6396, %v4508_v10   ;;  %5056 = vperm.xlu1 %6398, %v4461_v5   ;;  %v4531_v10 = vand.u32 2147483647, %v4390_v37  ;;  %v12683_v5 = vld [vmem:[#allocation130_spill] sm:$0xff] }
 0xa34   :  { %5053 = vperm.xlu2 %6397, %v4460_v35   ;;  %v4520_v40 = vmul.f32 %v12683_v5, %v10997_v54  ;;  %v12684_v35 = vld [vmem:[#allocation17_spill] sm:$0xff] }
 0xa35   :  { %vm4532_vm13 = vcmp.eq.f32.partialorder %v4531_v10, 8.507059e+37 }
 0xa36   :  { %v4970_v56 = vpop.permute.xlu2 %4969 }
 0xa37   :  { %v5349_v7 = vperm.slane %v4970_v56, %v8797_v49  ;;  %v4487_v56 = vmul.f32 %v12684_v35, %v10958_v61 }
 0xa3b   :  { %5122 = vperm.xlu0 %6396, %v4511_v52   ;;  %5065 = vperm.xlu1 %6398, %v4478_v41   ;;  %v4486_v52 = vmul.f32 %v12685_v42, %v10958_v61  ;;  %v4530_v41 = vsel %vm4529_vm11, %v6922_v8, %v4526_v12  ;;  %v12697_v42 = vld [vmem:[#allocation10_spill] sm:$0xff]  ;;  %vm12700_vm11 = vcmask 851712  }
 0xa3c   :  { %5062 = vperm.xlu2 %6397, %v4477_v59   ;;  %v11045_v59 = vsel %vm4532_vm13, %v4534_v33, %v4530_v41  ;;  %vm12704_vm13 = vcmask 917312  }
 0xa3d   :  { %v4537_v8 = vmul.f32 %v12686_v4, %v11045_v59 }
 0xa3e   :  { %v4976_v36 = vpop.permute.xlu2 %4975 }
 0xa3f   :  { %v5353_v26 = vperm.slane %v4976_v36, %v12510_v9 }
 0xa43   :  { %5131 = vperm.xlu0 %6396, %v4514_v27   ;;  %5074 = vperm.xlu1 %6398, %v4481_v19  }
 0xa44   :  { %5071 = vperm.xlu2 %6397, %v4480_v24   ;;  %v12687_v24 = vld [vmem:[#allocation110_spill] sm:$0xff] }
 0xa45   :  { %v11018_v15 = vpop.permute.xlu0 %4993  ;;  %v4967_v63 = vpop.permute.xlu1 %4966  ;;  %v4490_v29 = vmul.f32 %v12687_v24, %v10958_v61  ;;  %v12701_v24 = vld [vmem:[#allocation12_spill] sm:$0xff] }
 0xa46   :  { %v4982_v43 = vpop.permute.xlu2 %4981  ;;  %v5347_v57 = vperm.slane %v4967_v63, %v8790_v60  ;;  %v12688_v63 = vld [vmem:[#allocation117_spill] sm:$0xff]  ;;  %v5365_v10 = vperm.slane %v11018_v15, %v12531_v34 }
 0xa47   :  { %v5357_v23 = vperm.slane %v4982_v43, %v12516_v16  ;;  %v4489_v2 = vmul.f32 %v12688_v63, %v10958_v61  ;;  %v11060_v43 = vperm.slane %v10913_v31, 5  ;;  %v12690_v61 = vld [vmem:[#allocation136_spill] sm:$0xff]  ;;  %v12702_v63 = vld [vmem:[#allocation142_spill] sm:$0xff] }
 0xa48   :  { %v5348_v11 = vsel %vm2922_vm1, %v5347_v57, %v5346_v25 }
 0xa49   :  { %v5350_v55 = vsel %vm2926_vm2, %v5349_v7, %v5348_v11  ;;  %6923 = vrcp.f32 %v11060_v43 }
 0xa4b   :  { %5140 = vperm.xlu0 %6396, %v4517_v20   ;;  %5083 = vperm.xlu1 %6398, %v4484_v0   ;;  %v4540_v0 = vmul.f32 %v12690_v61, %v11045_v59 }
 0xa4c   :  { %5080 = vperm.xlu2 %6397, %v4483_v32   ;;  %v4507_v32 = vmul.f32 %v12691_v53, %v10997_v54 }
 0xa4d   :  { %v11031_v18 = vpop.permute.xlu0 %5014  ;;  %v4973_v39 = vpop.permute.xlu1 %4972 }
 0xa4e   :  { %v4988_v6 = vpop.permute.xlu2 %4987  ;;  %v5351_v3 = vperm.slane %v4973_v39, %v8814_v48 }
 0xa4f   :  { %v5361_v20 = vperm.slane %v4988_v6, %v12526_v45 }
 0xa50   :  { %v5352_v62 = vsel %vm2930_vm3, %v5351_v3, %v5350_v55  ;;  %v12692_v55 = vld [vmem:[#allocation9_spill] sm:$0xff] }
 0xa51   :  { %v5354_v51 = vsel %vm2934_vm4, %v5353_v26, %v5352_v62  ;;  %v4506_v47 = vmul.f32 %v12692_v55, %v10997_v54  ;;  %v6924_v26 = vpop.eup %6923 }
 0xa52   :  { %v4553_v33 = vmul.f32 %v6924_v26, %v11060_v43 }
 0xa53   :  { %5149 = vperm.xlu0 %6396, %v4520_v40   ;;  %5092 = vperm.xlu1 %6398, %v4487_v56   ;;  %v12695_v40 = vld [vmem:[#allocation140_spill] sm:$0xff] }
 0xa54   :  { %5089 = vperm.xlu2 %6397, %v4486_v52   ;;  %v4543_v35 = vmul.f32 %v12695_v40, %v11045_v59  ;;  %v4510_v52 = vmul.f32 %v12697_v42, %v10997_v54  ;;  %v12709_v40 = vld [vmem:[#allocation31_spill] sm:$0xff] }
 0xa55   :  { %v11043_v37 = vpop.permute.xlu0 %5023  ;;  %v4979_v36 = vpop.permute.xlu1 %4978 }
 0xa56   :  { %v4997_v46 = vpop.permute.xlu2 %4996  ;;  %v5355_v27 = vperm.slane %v4979_v36, %v12512_v14 }
 0xa57   :  { %v5367_v62 = vperm.slane %v4997_v46, %v12529_v17 }
 0xa58   :  { %v5356_v19 = vsel %vm2938_vm5, %v5355_v27, %v5354_v51  ;;  %v12698_v51 = vld [vmem:[#allocation11_spill] sm:$0xff] }
 0xa59   :  { %v5358_v25 = vsel %vm2942_vm6, %v5357_v23, %v5356_v19  ;;  %v4509_v41 = vmul.f32 %v12698_v51, %v10997_v54  ;;  %v4554_v23 = vsub.f32 1.0, %v4553_v33 }
 0xa5b   :  { %5158 = vperm.xlu0 %6396, %v4537_v8   ;;  %5101 = vperm.xlu1 %6398, %v4490_v29   ;;  %v4546_v29 = vmul.f32 %v12701_v24, %v11045_v59 }
 0xa5c   :  { %5098 = vperm.xlu2 %6397, %v4489_v2   ;;  %v4513_v2 = vmul.f32 %v12702_v63, %v10997_v54 }
 0xa5d   :  { %v11057_v57 = vpop.permute.xlu0 %5032  ;;  %v4985_v7 = vpop.permute.xlu1 %4984 }
 0xa5e   :  { %v5003_v11 = vpop.permute.xlu2 %5002  ;;  %v5359_v50 = vperm.slane %v4985_v7, %v12519_v44 }
 0xa5f   :  { %v5371_v4 = vperm.slane %v5003_v11, %v12541_v30 }
 0xa60   :  { %v5360_v28 = vsel %vm12689_vm7, %v5359_v50, %v5358_v25  ;;  %v12703_v25 = vld [vmem:[#allocation27_spill] sm:$0xff]  ;;  %vm4558_vm7 = vweird.f32 %v6924_v26 }
 0xa61   :  { %v5362_v39 = vsel %vm12693_vm14, %v5361_v20, %v5360_v28  ;;  %v4512_v7 = vmul.f32 %v12703_v25, %v10997_v54  ;;  %v4555_v20 = vmul.f32 %v6924_v26, %v4554_v23  ;;  %vm4557_vm14 = vweird.f32 %v11060_v43 }
 0xa62   :  { %v5384_v25 = vperm.slane %v11043_v37, %v12510_v9 }
 0xa63   :  { %5167 = vperm.xlu0 %6396, %v4540_v0   ;;  %5110 = vperm.xlu1 %6398, %v4507_v32   ;;  %v4556_v0 = vadd.f32 %v6924_v26, %v4555_v20  ;;  %v4563_v32 = vand.u32 2147483648, %v11060_v43  ;;  %v12713_v20 = vld [vmem:[#allocation145_spill] sm:$0xff] }
 0xa64   :  { %5107 = vperm.xlu2 %6397, %v4506_v47   ;;  %v4561_v47 = vand.u32 2147483647, %v11060_v43 }
 0xa65   :  { %v11073_v12 = vpop.permute.xlu0 %5041  ;;  %v4991_v6 = vpop.permute.xlu1 %4990 }
 0xa66   :  { %v5009_v3 = vpop.permute.xlu2 %5008  ;;  %v5363_v1 = vperm.slane %v4991_v6, %v12524_v13  ;;  %v12706_v6 = vld [vmem:[#allocation143_spill] sm:$0xff] }
 0xa67   :  { %v5375_v55 = vperm.slane %v5009_v3, %v12545_v22 }
 0xa68   :  { %v5364_v5 = vsel %vm12694_vm15, %v5363_v1, %v5362_v39  ;;  %vm12705_vm15 = vcmask 982912   ;;  %v4549_v1 = vmul.f32 %v12706_v6, %v11045_v59 }
 0xa69   :  { %v5366_v56 = vsel %vm12696_vm8, %v5365_v10, %v5364_v5  ;;  %vm4559_vm8 = vmor %vm4557_vm14, %vm4558_vm7  ;;  %vm12720_vm7 = vcmask 589312   ;;  %vm12721_vm14 = vcmask 654912  }
 0xa6a   :  { %v5368_v15 = vsel %vm12699_vm12, %v5367_v62, %v5366_v56  ;;  %vm12707_vm12 = vcmask 1048512   ;;  %v12708_v62 = vld [vmem:[#allocation29_spill] sm:$0xff]  ;;  %v4560_v3 = vsel %vm4559_vm8, %v6924_v26, %v4556_v0  ;;  %v4564_v56 = vor.u32 1.1754944e-38, %v4563_v32 }
 0xa6b   :  { %5176 = vperm.xlu0 %6396, %v4543_v35   ;;  %5119 = vperm.xlu1 %6398, %v4510_v52   ;;  %v4516_v5 = vmul.f32 %v12708_v62, %v10997_v54  ;;  %v4515_v35 = vmul.f32 %v12709_v40, %v10997_v54  ;;  %vm12726_vm8 = vcmask 786112  }
 0xa6c   :  { %5116 = vperm.xlu2 %6397, %v4509_v41   ;;  %v5378_v41 = vperm.slane %v11031_v18, %v8790_v60 }
 0xa6d   :  { %v11089_v36 = vpop.permute.xlu0 %5050  ;;  %v5000_v46 = vpop.permute.xlu1 %4999 }
 0xa6e   :  { %v5018_v27 = vpop.permute.xlu2 %5017  ;;  %v5369_v19 = vperm.slane %v5000_v46, %v12536_v38  ;;  %v12710_v46 = vld [vmem:[#allocation144_spill] sm:$0xff] }
 0xa70   :  { %v5370_v8 = vsel %vm12700_vm11, %v5369_v19, %v5368_v15  ;;  %vm4562_vm11 = vcmp.eq.f32.partialorder %v4561_v47, 8.507059e+37  ;;  %v5380_v15 = vperm.slane %v5018_v27, %v8797_v49  ;;  %v12711_v19 = vld [vmem:[#allocation18_spill] sm:$0xff] }
 0xa71   :  { %v5372_v50 = vsel %vm12704_vm13, %v5371_v4, %v5370_v8  ;;  %v11120_v42 = vsel %vm4562_vm11, %v4564_v56, %v4560_v3  ;;  %v4519_v4 = vmul.f32 %v12711_v19, %v10997_v54  ;;  %v12712_v8 = vld [vmem:[#allocation102_spill] sm:$0xff]  ;;  %vm12717_vm13 = vcmask 523712  }
 0xa72   :  { %v4566_v23 = vmul.f32 %v12710_v46, %v11120_v42  ;;  %v4518_v24 = vmul.f32 %v12712_v8, %v10997_v54  ;;  %vm12729_vm11 = vcmask 917312  }
 0xa73   :  { %5185 = vperm.xlu0 %6396, %v4546_v29   ;;  %5128 = vperm.xlu1 %6398, %v4513_v2  }
 0xa74   :  { %5125 = vperm.xlu2 %6397, %v4512_v7  }
 0xa75   :  { %v11101_v28 = vpop.permute.xlu0 %5059  ;;  %v5006_v11 = vpop.permute.xlu1 %5005 }
 0xa76   :  { %v5027_v61 = vpop.permute.xlu2 %5026  ;;  %v5373_v53 = vperm.slane %v5006_v11, %v12540_v21  ;;  %v4569_v11 = vmul.f32 %v12713_v20, %v11120_v42 }
 0xa77   :  { %v5386_v7 = vperm.slane %v5027_v61, %v12512_v14  ;;  %v11152_v61 = vperm.slane %v10913_v31, 6 }
 0xa78   :  { %v5374_v39 = vsel %vm12705_vm15, %v5373_v53, %v5372_v50  ;;  %v12714_v53 = vld [vmem:[#allocation20_spill] sm:$0xff]  ;;  %vm12723_vm15 = vcmask 720512  }
 0xa79   :  { %v11112_v10 = vsel %vm12707_vm12, %v5375_v55, %v5374_v39  ;;  %v4536_v32 = vmul.f32 %v12714_v53, %v11045_v59  ;;  %v12715_v55 = vld [vmem:[#allocation35_spill] sm:$0xff]  ;;  %6925 = vrcp.f32 %v11152_v61  ;;  %vm12727_vm12 = vcmask 851712  }
 0xa7a   :  { %v4521_v47 = vmul.f32 %v12715_v55, %v10997_v54 }
 0xa7b   :  { %5194 = vperm.xlu0 %6396, %v4549_v1   ;;  %5137 = vperm.xlu1 %6398, %v4516_v5   ;;  %v5390_v5 = vperm.slane %v11057_v57, %v12519_v44 }
 0xa7c   :  { %5134 = vperm.xlu2 %6397, %v4515_v35   ;;  %v12716_v35 = vld [vmem:[#allocation146_spill] sm:$0xff] }
 0xa7d   :  { %v11118_v43 = vpop.permute.xlu0 %5068  ;;  %v5012_v52 = vpop.permute.xlu1 %5011  ;;  %v4572_v3 = vmul.f32 %v12716_v35, %v11120_v42 }
 0xa7e   :  { %v5036_v51 = vpop.permute.xlu2 %5035  ;;  %v5377_v33 = vperm.slane %v5012_v52, %v8780_v58  ;;  %v12718_v52 = vld [vmem:[#allocation22_spill] sm:$0xff] }
 0xa7f   :  { %v5392_v40 = vperm.slane %v5036_v51, %v12526_v45  ;;  %v6926_v8 = vpop.eup %6925 }
 0xa80   :  { %v5379_v26 = vsel %vm2922_vm1, %v5378_v41, %v5377_v33  ;;  %v4539_v41 = vmul.f32 %v12718_v52, %v11045_v59  ;;  %v12719_v33 = vld [vmem:[#allocation24_spill] sm:$0xff]  ;;  %v4583_v53 = vmul.f32 %v6926_v8, %v11152_v61 }
 0xa81   :  { %v5381_v29 = vsel %vm2926_vm2, %v5380_v15, %v5379_v26  ;;  %v4538_v15 = vmul.f32 %v12719_v33, %v11045_v59  ;;  %v12731_v52 = vld [vmem:[#allocation28_spill] sm:$0xff] }
 0xa83   :  { %5203 = vperm.xlu0 %6396, %v4566_v23   ;;  %5146 = vperm.xlu1 %6398, %v4519_v4   ;;  %v5408_v23 = vperm.slane %v11101_v28, %v8780_v58  ;;  %v12724_v28 = vld [vmem:[#allocation39_spill] sm:$0xff] }
 0xa84   :  { %5143 = vperm.xlu2 %6397, %v4518_v24   ;;  %v5396_v24 = vperm.slane %v11073_v12, %v12531_v34  ;;  %v4542_v20 = vmul.f32 %v12724_v28, %v11045_v59 }
 0xa85   :  { %v11134_v18 = vpop.permute.xlu0 %5077  ;;  %v5021_v63 = vpop.permute.xlu1 %5020 }
 0xa86   :  { %v5045_v27 = vpop.permute.xlu2 %5044  ;;  %v5382_v2 = vperm.slane %v5021_v63, %v8814_v48 }
 0xa88   :  { %v5383_v50 = vsel %vm2930_vm3, %v5382_v2, %v5381_v29  ;;  %v5398_v29 = vperm.slane %v5045_v27, %v12529_v17 }
 0xa89   :  { %v5385_v0 = vsel %vm2934_vm4, %v5384_v25, %v5383_v50  ;;  %v12722_v25 = vld [vmem:[#allocation147_spill] sm:$0xff] }
 0xa8a   :  { %v5387_v39 = vsel %vm2938_vm5, %v5386_v7, %v5385_v0  ;;  %v4575_v7 = vmul.f32 %v12722_v25, %v11120_v42  ;;  %v12736_v25 = vld [vmem:[#allocation139_spill] sm:$0xff] }
 0xa8b   :  { %5212 = vperm.xlu0 %6396, %v4569_v11   ;;  %5155 = vperm.xlu1 %6398, %v4536_v32   ;;  %v12725_v11 = vld [vmem:[#allocation26_spill] sm:$0xff] }
 0xa8c   :  { %5152 = vperm.xlu2 %6397, %v4521_v47   ;;  %v4541_v0 = vmul.f32 %v12725_v11, %v11045_v59  ;;  %v4584_v47 = vsub.f32 1.0, %v4583_v53 }
 0xa8d   :  { %v11149_v37 = vpop.permute.xlu0 %5086  ;;  %v5030_v6 = vpop.permute.xlu1 %5029 }
 0xa8e   :  { %v5054_v1 = vpop.permute.xlu2 %5053  ;;  %v5388_v62 = vperm.slane %v5030_v6, %v12516_v16  ;;  %v5402_v6 = vperm.slane %v11089_v36, %v12541_v30  ;;  %v4585_v33 = vmul.f32 %v6926_v8, %v4584_v47 }
 0xa90   :  { %v5389_v54 = vsel %vm2942_vm6, %v5388_v62, %v5387_v39  ;;  %v5404_v62 = vperm.slane %v5054_v1, %v12540_v21 }
 0xa91   :  { %v5391_v56 = vsel %vm12717_vm13, %v5390_v5, %v5389_v54  ;;  %vm12732_vm13 = vcmask 982912  }
 0xa92   :  { %v5393_v57 = vsel %vm12720_vm7, %v5392_v40, %v5391_v56  ;;  %v12728_v40 = vld [vmem:[#allocation148_spill] sm:$0xff]  ;;  %vm4588_vm7 = vweird.f32 %v6926_v8 }
 0xa93   :  { %5221 = vperm.xlu0 %6396, %v4572_v3   ;;  %5164 = vperm.xlu1 %6398, %v4539_v41   ;;  %v4578_v54 = vmul.f32 %v12728_v40, %v11120_v42  ;;  %v12730_v3 = vld [vmem:[#allocation137_spill] sm:$0xff]  ;;  %v4544_v41 = vmul.f32 %v12731_v52, %v11045_v59  ;;  %v5419_v52 = vperm.slane %v11134_v18, %v12516_v16 }
 0xa94   :  { %5161 = vperm.xlu2 %6397, %v4538_v15   ;;  %v4545_v56 = vmul.f32 %v12730_v3, %v11045_v59 }
 0xa95   :  { %v11168_v51 = vpop.permute.xlu0 %5095  ;;  %v5039_v26 = vpop.permute.xlu1 %5038 }
 0xa96   :  { %v5063_v46 = vpop.permute.xlu2 %5062  ;;  %v5394_v19 = vperm.slane %v5039_v26, %v12524_v13  ;;  %v4586_v26 = vadd.f32 %v6926_v8, %v4585_v33 }
 0xa97   :  { %v5409_v4 = vperm.slane %v5063_v46, %v8790_v60 }
 0xa98   :  { %v5395_v63 = vsel %vm12721_vm14, %v5394_v19, %v5393_v57  ;;  %vm4587_vm14 = vweird.f32 %v11152_v61  ;;  %v4591_v19 = vand.u32 2147483647, %v11152_v61 }
 0xa99   :  { %v5410_v2 = vsel %vm2922_vm1, %v5409_v4, %v5408_v23  ;;  %v5397_v50 = vsel %vm12723_vm15, %v5396_v24, %v5395_v63  ;;  %v4593_v23 = vand.u32 2147483648, %v11152_v61  ;;  %vm12733_vm15 = vcmask 1048512   ;;  %v12734_v24 = vld [vmem:[#allocation149_spill] sm:$0xff] }
 0xa9a   :  { %v5399_v12 = vsel %vm12726_vm8, %v5398_v29, %v5397_v50  ;;  %v4581_v29 = vmul.f32 %v12734_v24, %v11120_v42  ;;  %vm4589_vm8 = vmor %vm4587_vm14, %vm4588_vm7  ;;  %v12737_v50 = vld [vmem:[#allocation43_spill] sm:$0xff]  ;;  %vm12745_vm7 = vcmask 589312   ;;  %vm12747_vm14 = vcmask 654912  }
 0xa9b   :  { %5230 = vperm.xlu0 %6396, %v4575_v7   ;;  %5173 = vperm.xlu1 %6398, %v4542_v20   ;;  %v4548_v7 = vmul.f32 %v12736_v25, %v11045_v59  ;;  %v4547_v28 = vmul.f32 %v12737_v50, %v11045_v59  ;;  %v4590_v20 = vsel %vm4589_vm8, %v6926_v8, %v4586_v26  ;;  %v4594_v11 = vor.u32 1.1754944e-38, %v4593_v23  ;;  %v12742_v26 = vld [vmem:[#allocation47_spill] sm:$0xff]  ;;  %v12743_v23 = vld [vmem:[#allocation34_spill] sm:$0xff] }
 0xa9c   :  { %5170 = vperm.xlu2 %6397, %v4541_v0   ;;  %v5425_v25 = vperm.slane %v11149_v37, %v12524_v13  ;;  %vm12751_vm8 = vcmask 786112  }
 0xa9d   :  { %v11188_v27 = vpop.permute.xlu0 %5104  ;;  %v5048_v32 = vpop.permute.xlu1 %5047 }
 0xa9e   :  { %v5072_v55 = vpop.permute.xlu2 %5071  ;;  %v5400_v39 = vperm.slane %v5048_v32, %v12536_v38  ;;  %v5413_v32 = vperm.slane %v11118_v43, %v8814_v48  ;;  %v11238_v43 = vperm.slane %v10913_v31, 7 }
 0xa9f   :  { %v5415_v47 = vperm.slane %v5072_v55, %v12510_v9 }
 0xaa0   :  { %v5401_v5 = vsel %vm12727_vm12, %v5400_v39, %v5399_v12  ;;  %vm12735_vm12 = vcmask 1041409   ;;  %v12738_v39 = vld [vmem:[#allocation150_spill] sm:$0xff]  ;;  %6927 = vrcp.f32 %v11238_v43 }
 0xaa1   :  { %v5403_v35 = vsel %vm12729_vm11, %v5402_v6, %v5401_v5  ;;  %vm4592_vm11 = vcmp.eq.f32.partialorder %v4591_v19, 8.507059e+37  ;;  %v12739_v5 = vld [vmem:[#allocation30_spill] sm:$0xff]  ;;  %v4567_v19 = vmul.f32 %v12743_v23, %v11120_v42 }
 0xaa2   :  { %v5405_v15 = vsel %vm12732_vm13, %v5404_v62, %v5403_v35  ;;  %v11220_v61 = vsel %vm4592_vm11, %v4594_v11, %v4590_v20  ;;  %v4551_v40 = vmul.f32 %v12739_v5, %v11045_v59  ;;  %vm12744_vm13 = vcmask 523712  }
 0xaa3   :  { %5239 = vperm.xlu0 %6396, %v4578_v54   ;;  %5182 = vperm.xlu1 %6398, %v4545_v56   ;;  %v4598_v6 = vmul.f32 %v12738_v39, %v11220_v61  ;;  %v12740_v54 = vld [vmem:[#allocation32_spill] sm:$0xff]  ;;  %vm12756_vm11 = vcmask 917312  }
 0xaa4   :  { %5179 = vperm.xlu2 %6397, %v4544_v41   ;;  %v4550_v35 = vmul.f32 %v12740_v54, %v11045_v59 }
 0xaa5   :  { %v11203_v36 = vpop.permute.xlu0 %5113  ;;  %v5057_v1 = vpop.permute.xlu1 %5056 }
 0xaa6   :  { %v5081_v57 = vpop.permute.xlu2 %5080  ;;  %v5406_v46 = vperm.slane %v5057_v1, %v12545_v22 }
 0xaa7   :  { %v5421_v41 = vperm.slane %v5081_v57, %v12519_v44 }
 0xaa8   :  { %v5407_v4 = vsel %vm12733_vm15, %v5406_v46, %v5405_v15  ;;  %v12741_v15 = vld [vmem:[#allocation151_spill] sm:$0xff]  ;;  %v4568_v46 = vmul.f32 %v12742_v26, %v11120_v42  ;;  %vm12750_vm15 = vcmask 720512  }
 0xaa9   :  { %v11214_v63 = vsel %vm12735_vm12, %v5407_v4, %v11112_v10  ;;  %v4601_v1 = vmul.f32 %v12741_v15, %v11220_v61  ;;  %vm12753_vm12 = vcmask 851712  }
 0xaab   :  { %5248 = vperm.xlu0 %6396, %v4581_v29   ;;  %5191 = vperm.xlu1 %6398, %v4548_v7   ;;  %v6928_v29 = vpop.eup %6927 }
 0xaac   :  { %5188 = vperm.xlu2 %6397, %v4547_v28   ;;  %v12746_v28 = vld [vmem:[#allocation152_spill] sm:$0xff] }
 0xaad   :  { %v5066_v0 = vpop.permute.xlu1 %5065  ;;  %v11222_v12 = vpop.permute.xlu0 %5122  ;;  %v4604_v20 = vmul.f32 %v12746_v28, %v11220_v61  ;;  %v12760_v28 = vld [vmem:[#allocation155_spill] sm:$0xff] }
 0xaae   :  { %v5090_v53 = vpop.permute.xlu2 %5089  ;;  %v5411_v10 = vperm.slane %v5066_v0, %v8797_v49  ;;  %v12748_v0 = vld [vmem:[#allocation49_spill] sm:$0xff] }
 0xaaf   :  { %v5427_v7 = vperm.slane %v5090_v53, %v12531_v34 }
 0xab0   :  { %v5412_v8 = vsel %vm2926_vm2, %v5411_v10, %v5410_v2  ;;  %v4571_v10 = vmul.f32 %v12748_v0, %v11120_v42 }
 0xab1   :  { %v5414_v62 = vsel %vm2930_vm3, %v5413_v32, %v5412_v8  ;;  %v12749_v32 = vld [vmem:[#allocation36_spill] sm:$0xff]  ;;  %v4613_v8 = vmul.f32 %v6928_v29, %v11238_v43 }
 0xab2   :  { %v5416_v3 = vsel %vm2934_vm4, %v5415_v47, %v5414_v62  ;;  %v4570_v47 = vmul.f32 %v12749_v32, %v11120_v42 }
 0xab3   :  { %5257 = vperm.xlu0 %6396, %v4598_v6   ;;  %5200 = vperm.xlu1 %6398, %v4551_v40   ;;  %v4614_v62 = vsub.f32 1.0, %v4613_v8  ;;  %v5431_v40 = vperm.slane %v11168_v51, %v12536_v38 }
 0xab4   :  { %5197 = vperm.xlu2 %6397, %v4550_v35  }
 0xab5   :  { %v5075_v2 = vpop.permute.xlu1 %5074  ;;  %v11244_v33 = vpop.permute.xlu0 %5131 }
 0xab6   :  { %v5099_v55 = vpop.permute.xlu2 %5098  ;;  %v5417_v56 = vperm.slane %v5075_v2, %v12512_v14 }
 0xab7   :  { %v5433_v54 = vperm.slane %v5099_v55, %v12541_v30 }
 0xab8   :  { %v5418_v59 = vsel %vm2938_vm5, %v5417_v56, %v5416_v3  ;;  %v12752_v3 = vld [vmem:[#allocation51_spill] sm:$0xff] }
 0xab9   :  { %v5420_v31 = vsel %vm2942_vm6, %v5419_v52, %v5418_v59  ;;  %v4607_v2 = vmul.f32 %v12752_v3, %v11220_v61  ;;  %v12754_v52 = vld [vmem:[#allocation38_spill] sm:$0xff] }
 0xaba   :  { %v5422_v18 = vsel %vm12744_vm13, %v5421_v41, %v5420_v31  ;;  %v4574_v41 = vmul.f32 %v12754_v52, %v11120_v42  ;;  %v12755_v59 = vld [vmem:[#allocation154_spill] sm:$0xff]  ;;  %vm4618_vm13 = vweird.f32 %v6928_v29 }
 0xabb   :  { %5266 = vperm.xlu0 %6396, %v4601_v1   ;;  %5209 = vperm.xlu1 %6398, %v4568_v46   ;;  %v4573_v15 = vmul.f32 %v12755_v59, %v11120_v42  ;;  %v4615_v1 = vmul.f32 %v6928_v29, %v4614_v62  ;;  %v12764_v3 = vld [vmem:[#allocation158_spill] sm:$0xff]  ;;  %v5448_v59 = vperm.slane %v11222_v12, %v12512_v14 }
 0xabc   :  { %5206 = vperm.xlu2 %6397, %v4567_v19   ;;  %v4623_v19 = vand.u32 2147483648, %v11238_v43 }
 0xabd   :  { %v5084_v57 = vpop.permute.xlu1 %5083  ;;  %v11271_v39 = vpop.permute.xlu0 %5140  ;;  %v4616_v46 = vadd.f32 %v6928_v29, %v4615_v1 }
 0xabe   :  { %v11256_v4 = vpop.permute.xlu2 %5107  ;;  %v5423_v24 = vperm.slane %v5084_v57, %v12526_v45  ;;  %v4621_v57 = vand.u32 2147483647, %v11238_v43 }
 0xac0   :  { %v5424_v50 = vsel %vm12745_vm7, %v5423_v24, %v5422_v18  ;;  %v5437_v18 = vperm.slane %v11188_v27, %v12545_v22  ;;  %vm4617_vm7 = vweird.f32 %v11238_v43  ;;  %v4624_v43 = vor.u32 1.1754944e-38, %v4623_v19 }
 0xac1   :  { %v5426_v11 = vsel %vm12747_vm14, %v5425_v25, %v5424_v50  ;;  %vm12757_vm14 = vcmask 982912   ;;  %v12758_v25 = vld [vmem:[#allocation101_spill] sm:$0xff] }
 0xac2   :  { %v5428_v37 = vsel %vm12750_vm15, %v5427_v7, %v5426_v11  ;;  %v4610_v7 = vmul.f32 %v12758_v25, %v11220_v61  ;;  %vm4619_vm15 = vmor %vm4617_vm7, %vm4618_vm13  ;;  %v12761_v11 = vld [vmem:[#allocation40_spill] sm:$0xff]  ;;  %vm12769_vm13 = vcmask 523712   ;;  %vm12771_vm7 = vcmask 589312  }
 0xac3   :  { %5275 = vperm.xlu0 %6396, %v4604_v20   ;;  %5218 = vperm.xlu1 %6398, %v4571_v10   ;;  %v4577_v20 = vmul.f32 %v12760_v28, %v11120_v42  ;;  %v4576_v0 = vmul.f32 %v12761_v11, %v11120_v42  ;;  %v4620_v10 = vsel %vm4619_vm15, %v6928_v29, %v4616_v46  ;;  %vm12775_vm15 = vcmask 720512  }
 0xac4   :  { %5215 = vperm.xlu2 %6397, %v4570_v47  }
 0xac5   :  { %v5093_v53 = vpop.permute.xlu1 %5092  ;;  %v11287_v51 = vpop.permute.xlu0 %5149 }
 0xac6   :  { %v5117_v6 = vpop.permute.xlu2 %5116  ;;  %v5429_v5 = vperm.slane %v5093_v53, %v12529_v17 }
 0xac7   :  { %v5444_v62 = vperm.slane %v5117_v6, %v8814_v48 }
 0xac8   :  { %v5430_v35 = vsel %vm12751_vm8, %v5429_v5, %v5428_v37  ;;  %vm12759_vm8 = vcmask 1048512   ;;  %v5439_v37 = vperm.slane %v11256_v4, %v8780_v58  ;;  %v12765_v4 = vld [vmem:[#allocation55_spill] sm:$0xff] }
 0xac9   :  { %v5432_v56 = vsel %vm12753_vm12, %v5431_v40, %v5430_v35  ;;  %vm12762_vm12 = vcmask 1042434   ;;  %v12763_v40 = vld [vmem:[#allocation157_spill] sm:$0xff] }
 0xaca   :  { %v5434_v31 = vsel %vm12756_vm11, %v5433_v54, %v5432_v56  ;;  %vm4622_vm11 = vcmp.eq.f32.partialorder %v4621_v57, 8.507059e+37  ;;  %v4579_v56 = vmul.f32 %v12765_v4, %v11120_v42  ;;  %v12778_v4 = vld [vmem:[#allocation105_spill] sm:$0xff] }
 0xacb   :  { %5284 = vperm.xlu0 %6396, %v4607_v2   ;;  %5227 = vperm.xlu1 %6398, %v4574_v41   ;;  %v11307_v32 = vsel %vm4622_vm11, %v4624_v43, %v4620_v10  ;;  %v4580_v2 = vmul.f32 %v12764_v3, %v11120_v42  ;;  %v12766_v42 = vld [vmem:[#allocation76_spill] sm:$0xff]  ;;  %v12772_v10 = vld [vmem:[#allocation94_spill] sm:$0xff]  ;;  %vm12781_vm11 = vcmask 917312  }
 0xacc   :  { %5224 = vperm.xlu2 %6397, %v4573_v15   ;;  %v4627_v54 = vmul.f32 %v12763_v40, %v11307_v32  ;;  %v4600_v43 = vmul.f32 %v12772_v10, %v11220_v61 }
 0xacd   :  { %v5102_v55 = vpop.permute.xlu1 %5101  ;;  %v11311_v53 = vpop.permute.xlu0 %5158 }
 0xace   :  { %v5126_v26 = vpop.permute.xlu2 %5125  ;;  %v5435_v23 = vperm.slane %v5102_v55, %v12540_v21  ;;  %v4630_v55 = vmul.f32 %v12766_v42, %v11307_v32 }
 0xacf   :  { %v5450_v15 = vperm.slane %v5126_v26, %v12516_v16 }
 0xad0   :  { %v5436_v24 = vsel %vm12757_vm14, %v5435_v23, %v5434_v31  ;;  %v12767_v23 = vld [vmem:[#allocation82_spill] sm:$0xff]  ;;  %vm12774_vm14 = vcmask 654912  }
 0xad1   :  { %v5438_v50 = vsel %vm12759_vm8, %v5437_v18, %v5436_v24  ;;  %v4597_v19 = vmul.f32 %v12767_v23, %v11220_v61  ;;  %v12768_v18 = vld [vmem:[#allocation85_spill] sm:$0xff]  ;;  %vm12777_vm8 = vcmask 786112  }
 0xad2   :  { %v11305_v27 = vsel %vm12762_vm12, %v5438_v50, %v11214_v63  ;;  %v5442_v63 = vperm.slane %v11203_v36, %v8797_v49  ;;  %v4596_v57 = vmul.f32 %v12768_v18, %v11220_v61  ;;  %vm12780_vm12 = vcmask 851712   ;;  %v12784_v18 = vld [vmem:[#allocation171_spill] sm:$0xff] }
 0xad3   :  { %5293 = vperm.xlu0 %6396, %v4610_v7   ;;  %5236 = vperm.xlu1 %6398, %v4577_v20   ;;  %v5454_v7 = vperm.slane %v11244_v33, %v12526_v45  ;;  %v12770_v20 = vld [vmem:[#allocation91_spill] sm:$0xff] }
 0xad4   :  { %5233 = vperm.xlu2 %6397, %v4576_v0   ;;  %v4633_v11 = vmul.f32 %v12770_v20, %v11307_v32 }
 0xad5   :  { %v5111_v47 = vpop.permute.xlu1 %5110  ;;  %v11330_v1 = vpop.permute.xlu0 %5167 }
 0xad6   :  { %v5135_v8 = vpop.permute.xlu2 %5134  ;;  %v5440_v29 = vperm.slane %v5111_v47, %v8790_v60  ;;  %v12773_v47 = vld [vmem:[#allocation114_spill] sm:$0xff] }
 0xad7   :  { %v5456_v50 = vperm.slane %v5135_v8, %v12524_v13 }
 0xad8   :  { %v5441_v5 = vsel %vm2922_vm1, %v5440_v29, %v5439_v37  ;;  %v4599_v37 = vmul.f32 %v12773_v47, %v11220_v61 }
 0xad9   :  { %v5443_v35 = vsel %vm2926_vm2, %v5442_v63, %v5441_v5  ;;  %v5460_v5 = vperm.slane %v11271_v39, %v12529_v17 }
 0xada   :  { %v5445_v52 = vsel %vm2930_vm3, %v5444_v62, %v5443_v35  ;;  %v12776_v35 = vld [vmem:[#allocation44_spill] sm:$0xff] }
 0xadb   :  { %5302 = vperm.xlu0 %6396, %v4627_v54   ;;  %5245 = vperm.xlu1 %6398, %v4580_v2   ;;  %v4636_v3 = vmul.f32 %v12776_v35, %v11307_v32 }
 0xadc   :  { %5242 = vperm.xlu2 %6397, %v4579_v56   ;;  %v4603_v56 = vmul.f32 %v12778_v4, %v11220_v61  ;;  %v12791_v4 = vld [vmem:[#allocation176_spill] sm:$0xff] }
 0xadd   :  { %v5120_v36 = vpop.permute.xlu1 %5119  ;;  %v11353_v29 = vpop.permute.xlu0 %5176 }
 0xade   :  { %v5144_v6 = vpop.permute.xlu2 %5143  ;;  %v5446_v41 = vperm.slane %v5120_v36, %v12510_v9 }
 0xadf   :  { %v5462_v40 = vperm.slane %v5144_v6, %v12536_v38 }
 0xae0   :  { %v5447_v31 = vsel %vm2934_vm4, %v5446_v41, %v5445_v52  ;;  %v12779_v52 = vld [vmem:[#allocation104_spill] sm:$0xff] }
 0xae1   :  { %v5449_v46 = vsel %vm2938_vm5, %v5448_v59, %v5447_v31  ;;  %v4602_v36 = vmul.f32 %v12779_v52, %v11220_v61  ;;  %v5466_v31 = vperm.slane %v11287_v51, %v12540_v21 }
 0xae2   :  { %v5451_v12 = vsel %vm2942_vm6, %v5450_v15, %v5449_v46  ;;  %v12782_v46 = vld [vmem:[#allocation170_spill] sm:$0xff] }
 0xae3   :  { %5311 = vperm.xlu0 %6396, %v4630_v55   ;;  %5254 = vperm.xlu1 %6398, %v4597_v19   ;;  %v4639_v23 = vmul.f32 %v12782_v46, %v11307_v32 }
 0xae4   :  { %5251 = vperm.xlu2 %6397, %v4596_v57   ;;  %v4606_v57 = vmul.f32 %v12784_v18, %v11220_v61 }
 0xae5   :  { %v5129_v26 = vpop.permute.xlu1 %5128  ;;  %v11369_v39 = vpop.permute.xlu0 %5185 }
 0xae6   :  { %v5153_v24 = vpop.permute.xlu2 %5152  ;;  %v5452_v25 = vperm.slane %v5129_v26, %v12519_v44 }
 0xae7   :  { %v5468_v42 = vperm.slane %v5153_v24, %v12545_v22 }
 0xae8   :  { %v5453_v28 = vsel %vm12769_vm13, %v5452_v25, %v5451_v12  ;;  %vm12783_vm13 = vcmask 982912   ;;  %v12785_v12 = vld [vmem:[#allocation172_spill] sm:$0xff] }
 0xae9   :  { %v5455_v0 = vsel %vm12771_vm7, %v5454_v7, %v5453_v28  ;;  %v4605_v26 = vmul.f32 %v12785_v12, %v11220_v61  ;;  %vm12786_vm7 = vcmask 1048512   ;;  %v5471_v7 = vperm.slane %v11311_v53, %v8790_v60 }
 0xaea   :  { %v5457_v33 = vsel %vm12774_vm14, %v5456_v50, %v5455_v0  ;;  %v12787_v0 = vld [vmem:[#allocation173_spill] sm:$0xff]  ;;  %vm12789_vm14 = vcmask 1043459  }
 0xaeb   :  { %5320 = vperm.xlu0 %6396, %v4633_v11   ;;  %5263 = vperm.xlu1 %6398, %v4600_v43   ;;  %v4609_v10 = vmul.f32 %v12787_v0, %v11220_v61  ;;  %v12788_v43 = vld [vmem:[#allocation174_spill] sm:$0xff] }
 0xaec   :  { %5260 = vperm.xlu2 %6397, %v4599_v37   ;;  %v4608_v47 = vmul.f32 %v12788_v43, %v11220_v61 }
 0xaed   :  { %v5138_v8 = vpop.permute.xlu1 %5137  ;;  %v5195_v50 = vpop.permute.xlu0 %5194 }
 0xaee   :  { %v5162_v63 = vpop.permute.xlu2 %5161  ;;  %v5458_v62 = vperm.slane %v5138_v8, %v12531_v34 }
 0xaef   :  { %v5473_v20 = vperm.slane %v5162_v63, %v8797_v49 }
 0xaf0   :  { %v5459_v54 = vsel %vm12775_vm15, %v5458_v62, %v5457_v33  ;;  %v5477_v62 = vperm.slane %v11330_v1, %v12510_v9  ;;  %vm12792_vm15 = vcmask 523712  }
 0xaf1   :  { %v5461_v2 = vsel %vm12777_vm8, %v5460_v5, %v5459_v54  ;;  %vm12795_vm8 = vcmask 589312  }
 0xaf2   :  { %v5463_v41 = vsel %vm12780_vm12, %v5462_v40, %v5461_v2  ;;  %vm12796_vm12 = vcmask 654912  }
 0xaf3   :  { %5329 = vperm.xlu0 %6396, %v4636_v3   ;;  %5272 = vperm.xlu1 %6398, %v4603_v56   ;;  %v12790_v3 = vld [vmem:[#allocation175_spill] sm:$0xff]  ;;  %v4611_v56 = vmul.f32 %v12791_v4, %v11220_v61 }
 0xaf4   :  { %5269 = vperm.xlu2 %6397, %v4602_v36   ;;  %v4626_v2 = vmul.f32 %v12790_v3, %v11307_v32 }
 0xaf5   :  { %v5147_v6 = vpop.permute.xlu1 %5146  ;;  %v5204_v63 = vpop.permute.xlu0 %5203 }
 0xaf6   :  { %v5171_v59 = vpop.permute.xlu2 %5170  ;;  %v5464_v15 = vperm.slane %v5147_v6, %v12541_v30  ;;  %v5483_v6 = vperm.slane %v11353_v29, %v12519_v44  ;;  %v5501_v29 = vperm.slane %v5204_v63, %v8780_v58  ;;  %v12803_v63 = vld [vmem:[#allocation183_spill] sm:$0xff] }
 0xaf7   :  { %v5479_v5 = vperm.slane %v5171_v59, %v12512_v14 }
 0xaf8   :  { %v5465_v55 = vsel %vm12781_vm11, %v5464_v15, %v5463_v41  ;;  %vm12797_vm11 = vcmask 720512  }
 0xaf9   :  { %v5467_v19 = vsel %vm12783_vm13, %v5466_v31, %v5465_v55  ;;  %v12793_v31 = vld [vmem:[#allocation178_spill] sm:$0xff]  ;;  %vm12800_vm13 = vcmask 786112  }
 0xafa   :  { %v5469_v25 = vsel %vm12786_vm7, %v5468_v42, %v5467_v19  ;;  %v4629_v61 = vmul.f32 %v12793_v31, %v11307_v32  ;;  %v12794_v42 = vld [vmem:[#allocation179_spill] sm:$0xff]  ;;  %vm12801_vm7 = vcmask 851712  }
 0xafb   :  { %5338 = vperm.xlu0 %6396, %v4639_v23   ;;  %5281 = vperm.xlu1 %6398, %v4606_v57   ;;  %v5596_v54 = vsel %vm12789_vm14, %v5469_v25, %v11305_v27  ;;  %v4628_v55 = vmul.f32 %v12794_v42, %v11307_v32  ;;  %vm12802_vm14 = vcmask 917312  }
 0xafc   :  { %5278 = vperm.xlu2 %6397, %v4605_v26   ;;  %v5489_v26 = vperm.slane %v11369_v39, %v12531_v34 }
 0xafd   :  { %v5156_v51 = vpop.permute.xlu1 %5155  ;;  %v5213_v46 = vpop.permute.xlu0 %5212 }
 0xafe   :  { %v5180_v24 = vpop.permute.xlu2 %5179  ;;  %v5470_v28 = vperm.slane %v5156_v51, %v8780_v58 }
 0xaff   :  { %v5485_v27 = vperm.slane %v5180_v24, %v12526_v45 }
 0xb00   :  { %v5472_v11 = vsel %vm2922_vm1, %v5471_v7, %v5470_v28  ;;  %v12798_v28 = vld [vmem:[#allocation67_spill] sm:$0xff] }
 0xb01   :  { %v5474_v37 = vsel %vm2926_vm2, %v5473_v20, %v5472_v11  ;;  %v4632_v20 = vmul.f32 %v12798_v28, %v11307_v32  ;;  %v12799_v11 = vld [vmem:[#allocation181_spill] sm:$0xff] }
 0xb02   :  { %v4631_v0 = vmul.f32 %v12799_v11, %v11307_v32 }
 0xb03   :  { %5290 = vperm.xlu1 %6398, %v4609_v10  }
 0xb04   :  { %5287 = vperm.xlu2 %6397, %v4608_v47  }
 0xb05   :  { %v5165_v33 = vpop.permute.xlu1 %5164  ;;  %v5222_v43 = vpop.permute.xlu0 %5221 }
 0xb06   :  { %v5189_v8 = vpop.permute.xlu2 %5188  ;;  %v5475_v53 = vperm.slane %v5165_v33, %v8814_v48  ;;  %v5495_v33 = vperm.slane %v5195_v50, %v12541_v30 }
 0xb07   :  { %v5491_v25 = vperm.slane %v5189_v8, %v12529_v17 }
 0xb08   :  { %v5476_v40 = vsel %vm2930_vm3, %v5475_v53, %v5474_v37 }
 0xb09   :  { %v5478_v35 = vsel %vm2934_vm4, %v5477_v62, %v5476_v40  ;;  %v12804_v40 = vld [vmem:[#allocation184_spill] sm:$0xff] }
 0xb0a   :  { %v5480_v52 = vsel %vm2938_vm5, %v5479_v5, %v5478_v35  ;;  %v4635_v5 = vmul.f32 %v12803_v63, %v11307_v32  ;;  %v4634_v35 = vmul.f32 %v12804_v40, %v11307_v32 }
 0xb0b   :  { %5299 = vperm.xlu1 %6398, %v4626_v2  }
 0xb0c   :  { %5296 = vperm.xlu2 %6397, %v4611_v56  }
 0xb0d   :  { %v5174_v1 = vpop.permute.xlu1 %5173  ;;  %v5231_v56 = vpop.permute.xlu0 %5230 }
 0xb0e   :  { %v5198_v36 = vpop.permute.xlu2 %5197  ;;  %v5481_v41 = vperm.slane %v5174_v1, %v12516_v16 }
 0xb0f   :  { %v5497_v8 = vperm.slane %v5198_v36, %v12540_v21  ;;  %v12808_v36 = vld [vmem:[#allocation187_spill] sm:$0xff] }
 0xb10   :  { %v5482_v59 = vsel %vm2942_vm6, %v5481_v41, %v5480_v52  ;;  %v4638_v41 = vmul.f32 %v12808_v36, %v11307_v32 }
 0xb11   :  { %v5484_v15 = vsel %vm12792_vm15, %v5483_v6, %v5482_v59  ;;  %vm12805_vm15 = vcmask 982912   ;;  %v12809_v6 = vld [vmem:[#allocation188_spill] sm:$0xff] }
 0xb12   :  { %v5486_v23 = vsel %vm12795_vm8, %v5485_v27, %v5484_v15  ;;  %vm12806_vm8 = vcmask 1048512   ;;  %v4637_v27 = vmul.f32 %v12809_v6, %v11307_v32 }
 0xb13   :  { %5308 = vperm.xlu1 %6398, %v4629_v61  }
 0xb14   :  { %5305 = vperm.xlu2 %6397, %v4628_v55  }
 0xb15   :  { %v5183_v19 = vpop.permute.xlu1 %5182  ;;  %v5240_v55 = vpop.permute.xlu0 %5239 }
 0xb16   :  { %v5207_v18 = vpop.permute.xlu2 %5206  ;;  %v5487_v57 = vperm.slane %v5183_v19, %v12524_v13  ;;  %v12810_v19 = vld [vmem:[#allocation191_spill] sm:$0xff]  ;;  %v5524_v63 = vperm.slane %v5240_v55, %v12536_v38 }
 0xb17   :  { %v5502_v12 = vperm.slane %v5207_v18, %v8790_v60  ;;  %v4641_v18 = vmul.f32 %v12810_v19, %v11307_v32 }
 0xb18   :  { %v5488_v51 = vsel %vm12796_vm12, %v5487_v57, %v5486_v23  ;;  %vm12807_vm12 = vcmask 1044484  }
 0xb19   :  { %v5503_v24 = vsel %vm2922_vm1, %v5502_v12, %v5501_v29  ;;  %v5490_v7 = vsel %vm12797_vm11, %v5489_v26, %v5488_v51  ;;  %v12811_v29 = vld [vmem:[#allocation192_spill] sm:$0xff]  ;;  %v5512_v51 = vperm.slane %v5222_v43, %v12516_v16  ;;  %vm12812_vm11 = vcmask 523712  }
 0xb1a   :  { %v5492_v10 = vsel %vm12800_vm13, %v5491_v25, %v5490_v7  ;;  %v4640_v57 = vmul.f32 %v12811_v29, %v11307_v32  ;;  %vm12813_vm13 = vcmask 589312  }
 0xb1b   :  { %5317 = vperm.xlu1 %6398, %v4632_v20  }
 0xb1c   :  { %5314 = vperm.xlu2 %6397, %v4631_v0  }
 0xb1d   :  { %v5192_v39 = vpop.permute.xlu1 %5191  ;;  %v5249_v11 = vpop.permute.xlu0 %5248 }
 0xb1e   :  { %v5216_v47 = vpop.permute.xlu2 %5215  ;;  %v5493_v37 = vperm.slane %v5192_v39, %v12536_v38  ;;  %v5518_v39 = vperm.slane %v5231_v56, %v12524_v13  ;;  %v5530_v56 = vperm.slane %v5249_v11, %v12545_v22 }
 0xb1f   :  { %v5508_v61 = vperm.slane %v5216_v47, %v12510_v9 }
 0xb20   :  { %v5494_v53 = vsel %vm12801_vm7, %v5493_v37, %v5492_v10  ;;  %vm12814_vm7 = vcmask 654912  }
 0xb21   :  { %v5496_v62 = vsel %vm12802_vm14, %v5495_v33, %v5494_v53  ;;  %vm12815_vm14 = vcmask 720512  }
 0xb22   :  { %v5498_v3 = vsel %vm12805_vm15, %v5497_v8, %v5496_v62  ;;  %vm12816_vm15 = vcmask 786112  }
 0xb23   :  { %5326 = vperm.xlu1 %6398, %v4635_v5  }
 0xb24   :  { %5323 = vperm.xlu2 %6397, %v4634_v35  }
 0xb25   :  { %v5201_v2 = vpop.permute.xlu1 %5200  ;;  %v5258_v8 = vpop.permute.xlu0 %5257 }
 0xb26   :  { %v5225_v4 = vpop.permute.xlu2 %5224  ;;  %v5499_v50 = vperm.slane %v5201_v2, %v12545_v22 }
 0xb28   :  { %v5500_v52 = vsel %vm12806_vm8, %v5499_v50, %v5498_v3  ;;  %vm12817_vm8 = vcmask 851712  }
 0xb29   :  { %v11448_v1 = vsel %vm12807_vm12, %v5500_v52, %v5596_v54  ;;  %v5506_v54 = vperm.slane %v5213_v46, %v8814_v48  ;;  %vm12818_vm12 = vcmask 917312  }
 0xb2b   :  { %5335 = vperm.xlu1 %6398, %v4638_v41  }
 0xb2c   :  { %5332 = vperm.xlu2 %6397, %v4637_v27  }
 0xb2d   :  { %v5210_v59 = vpop.permute.xlu1 %5209  ;;  %v5267_v52 = vpop.permute.xlu0 %5266 }
 0xb2e   :  { %v5234_v15 = vpop.permute.xlu2 %5233  ;;  %v5504_v31 = vperm.slane %v5210_v59, %v8797_v49 }
 0xb2f   :  { %v5520_v47 = vperm.slane %v5234_v15, %v12531_v34 }
 0xb30   :  { %v5505_v42 = vsel %vm2926_vm2, %v5504_v31, %v5503_v24  ;;  %v5514_v24 = vperm.slane %v5225_v4, %v12519_v44 }
 0xb31   :  { %v5507_v23 = vsel %vm2930_vm3, %v5506_v54, %v5505_v42 }
 0xb32   :  { %v5509_v12 = vsel %vm2934_vm4, %v5508_v61, %v5507_v23 }
 0xb33   :  { %5344 = vperm.xlu1 %6398, %v4641_v18   ;;  %v5535_v18 = vperm.slane %v5258_v8, %v8797_v49 }
 0xb34   :  { %5341 = vperm.xlu2 %6397, %v4640_v57  }
 0xb35   :  { %v5219_v26 = vpop.permute.xlu1 %5218  ;;  %v5276_v54 = vpop.permute.xlu0 %5275 }
 0xb36   :  { %v5243_v25 = vpop.permute.xlu2 %5242  ;;  %v5510_v46 = vperm.slane %v5219_v26, %v12512_v14 }
 0xb37   :  { %v5526_v5 = vperm.slane %v5243_v25, %v12541_v30 }
 0xb38   :  { %v5511_v7 = vsel %vm2938_vm5, %v5510_v46, %v5509_v12 }
 0xb39   :  { %v5513_v28 = vsel %vm2942_vm6, %v5512_v51, %v5511_v7 }
 0xb3a   :  { %v5515_v20 = vsel %vm12812_vm11, %v5514_v24, %v5513_v28  ;;  %vm12819_vm11 = vcmask 982912   ;;  %v5541_v24 = vperm.slane %v5267_v52, %v12512_v14 }
 0xb3d   :  { %v5228_v32 = vpop.permute.xlu1 %5227  ;;  %v5285_v55 = vpop.permute.xlu0 %5284 }
 0xb3e   :  { %v5516_v0 = vperm.slane %v5228_v32, %v12526_v45  ;;  %v5252_v10 = vpop.permute.xlu2 %5251 }
 0xb3f   :  { %v5532_v59 = vperm.slane %v5252_v10, %v8780_v58  ;;  %v5547_v10 = vperm.slane %v5276_v54, %v12526_v45 }
 0xb40   :  { %v5517_v37 = vsel %vm12813_vm13, %v5516_v0, %v5515_v20  ;;  %vm12820_vm13 = vcmask 1048512  }
 0xb41   :  { %v5519_v43 = vsel %vm12814_vm7, %v5518_v39, %v5517_v37  ;;  %vm12821_vm7 = vcmask 523712  }
 0xb42   :  { %v5521_v33 = vsel %vm12815_vm14, %v5520_v47, %v5519_v43  ;;  %vm12822_vm14 = vcmask 589312  }
 0xb45   :  { %v5237_v53 = vpop.permute.xlu1 %5236  ;;  %v5294_v25 = vpop.permute.xlu0 %5293 }
 0xb46   :  { %v5522_v62 = vperm.slane %v5237_v53, %v12529_v17  ;;  %v5261_v35 = vpop.permute.xlu2 %5260 }
 0xb47   :  { %v5537_v12 = vperm.slane %v5261_v35, %v8814_v48 }
 0xb48   :  { %v5523_v40 = vsel %vm12816_vm15, %v5522_v62, %v5521_v33  ;;  %vm12823_vm15 = vcmask 654912  }
 0xb49   :  { %v5525_v3 = vsel %vm12817_vm8, %v5524_v63, %v5523_v40  ;;  %vm12824_vm8 = vcmask 720512   ;;  %v5553_v63 = vperm.slane %v5285_v55, %v12529_v17 }
 0xb4a   :  { %v5527_v2 = vsel %vm12818_vm12, %v5526_v5, %v5525_v3  ;;  %vm12825_vm12 = vcmask 786112  }
 0xb4d   :  { %v5246_v4 = vpop.permute.xlu1 %5245  ;;  %v5303_v47 = vpop.permute.xlu0 %5302 }
 0xb4e   :  { %v5528_v50 = vperm.slane %v5246_v4, %v12540_v21  ;;  %v5270_v6 = vpop.permute.xlu2 %5269 }
 0xb4f   :  { %v5543_v11 = vperm.slane %v5270_v6, %v12516_v16 }
 0xb50   :  { %v5529_v36 = vsel %vm12819_vm11, %v5528_v50, %v5527_v2  ;;  %vm12826_vm11 = vcmask 851712  }
 0xb51   :  { %v5531_v41 = vsel %vm12820_vm13, %v5530_v56, %v5529_v36  ;;  %vm12827_vm13 = vcmask 917312   ;;  %v5559_v56 = vperm.slane %v5294_v25, %v12540_v21 }
 0xb55   :  { %v5255_v27 = vpop.permute.xlu1 %5254  ;;  %v5312_v2 = vpop.permute.xlu0 %5311 }
 0xb56   :  { %v5533_v15 = vperm.slane %v5255_v27, %v8790_v60  ;;  %v5279_v61 = vpop.permute.xlu2 %5278 }
 0xb57   :  { %v5549_v33 = vperm.slane %v5279_v61, %v12524_v13 }
 0xb58   :  { %v5534_v31 = vsel %vm2922_vm1, %v5533_v15, %v5532_v59  ;;  %v5564_v59 = vperm.slane %v5303_v47, %v8790_v60 }
 0xb59   :  { %v5536_v29 = vsel %vm2926_vm2, %v5535_v18, %v5534_v31  ;;  %v5570_v18 = vperm.slane %v5312_v2, %v12510_v9 }
 0xb5a   :  { %v5538_v26 = vsel %vm2930_vm3, %v5537_v12, %v5536_v29 }
 0xb5d   :  { %v5264_v42 = vpop.permute.xlu1 %5263 }
 0xb5e   :  { %v5288_v19 = vpop.permute.xlu2 %5287  ;;  %v5539_v57 = vperm.slane %v5264_v42, %v12510_v9  ;;  %v5598_v42 = vsel %vm3205_vm0, %v5531_v41, %v11448_v1 }
 0xb5f   :  { %v5555_v3 = vperm.slane %v5288_v19, %v12536_v38 }
 0xb60   :  { %v5540_v46 = vsel %vm2934_vm4, %v5539_v57, %v5538_v26 }
 0xb61   :  { %v5542_v7 = vsel %vm2938_vm5, %v5541_v24, %v5540_v46 }
 0xb62   :  { %v5544_v32 = vsel %vm2942_vm6, %v5543_v11, %v5542_v7 }
 0xb65   :  { %v5273_v23 = vpop.permute.xlu1 %5272 }
 0xb66   :  { %v5545_v28 = vperm.slane %v5273_v23, %v12519_v44  ;;  %v5297_v20 = vpop.permute.xlu2 %5296  ;;  %v5321_v23 = vpop.permute.xlu0 %5320 }
 0xb67   :  { %v5561_v15 = vperm.slane %v5297_v20, %v12545_v22  ;;  %v5576_v41 = vperm.slane %v5321_v23, %v12519_v44 }
 0xb68   :  { %v5546_v0 = vsel %vm12821_vm7, %v5545_v28, %v5544_v32  ;;  %vm12828_vm7 = vcmask 982912  }
 0xb69   :  { %v5548_v37 = vsel %vm12822_vm14, %v5547_v10, %v5546_v0  ;;  %vm12829_vm14 = vcmask 1048512   ;;  %vm12837_vm0 = vmmov %vm12828_vm7 }
 0xb6a   :  { %v5550_v8 = vsel %vm12823_vm15, %v5549_v33, %v5548_v37 }
 0xb6d   :  { %v5282_v51 = vpop.permute.xlu1 %5281 }
 0xb6e   :  { %v5551_v43 = vperm.slane %v5282_v51, %v12531_v34  ;;  %v5306_v53 = vpop.permute.xlu2 %5305  ;;  %v5330_v25 = vpop.permute.xlu0 %5329 }
 0xb6f   :  { %v5566_v55 = vperm.slane %v5306_v53, %v8797_v49 }
 0xb70   :  { %v5552_v62 = vsel %vm12824_vm8, %v5551_v43, %v5550_v8 }
 0xb71   :  { %v5554_v40 = vsel %vm12825_vm12, %v5553_v63, %v5552_v62 }
 0xb72   :  { %v5556_v4 = vsel %vm12826_vm11, %v5555_v3, %v5554_v40 }
 0xb75   :  { %v5291_v39 = vpop.permute.xlu1 %5290 }
 0xb76   :  { %v5557_v35 = vperm.slane %v5291_v39, %v12541_v30  ;;  %v5315_v52 = vpop.permute.xlu2 %5314  ;;  %v5339_v0 = vpop.permute.xlu0 %5338 }
 0xb77   :  { %v5572_v26 = vperm.slane %v5315_v52, %v12512_v14  ;;  %v5582_v14 = vperm.slane %v5330_v25, %v12531_v34 }
 0xb78   :  { %v5558_v50 = vsel %vm12827_vm13, %v5557_v35, %v5556_v4 }
 0xb79   :  { %v5560_v6 = vsel %vm12828_vm7, %v5559_v56, %v5558_v50 }
 0xb7a   :  { %v5562_v61 = vsel %vm12829_vm14, %v5561_v15, %v5560_v6 }
 0xb7d   :  { %v5300_v5 = vpop.permute.xlu1 %5299 }
 0xb7e   :  { %v5563_v36 = vperm.slane %v5300_v5, %v8780_v58  ;;  %v5599_v58 = vsel %vm3207_vm9, %v5562_v61, %v5598_v42  ;;  %v5324_v57 = vpop.permute.xlu2 %5323  ;;  %vm12836_vm9 = vmmov %vm12827_vm13 }
 0xb7f   :  { %v5578_v24 = vperm.slane %v5324_v57, %v12526_v45  ;;  %v5588_v45 = vperm.slane %v5339_v0, %v12541_v30 }
 0xb80   :  { %v5565_v31 = vsel %vm2922_vm1, %v5564_v59, %v5563_v36  ;;  %vm12830_vm1 = vcmask 523712  }
 0xb81   :  { %v5567_v19 = vsel %vm2926_vm2, %v5566_v55, %v5565_v31  ;;  %vm12831_vm2 = vcmask 589312  }
 0xb85   :  { %v5309_v27 = vpop.permute.xlu1 %5308 }
 0xb86   :  { %v5568_v54 = vperm.slane %v5309_v27, %v8814_v48  ;;  %v5333_v7 = vpop.permute.xlu2 %5332 }
 0xb87   :  { %v5584_v44 = vperm.slane %v5333_v7, %v12529_v17 }
 0xb88   :  { %v5569_v60 = vsel %vm2930_vm3, %v5568_v54, %v5567_v19  ;;  %vm12832_vm3 = vmmov %vm12823_vm15 }
 0xb89   :  { %v5571_v48 = vsel %vm2934_vm4, %v5570_v18, %v5569_v60  ;;  %vm12833_vm4 = vmmov %vm12824_vm8 }
 0xb8a   :  { %v5573_v1 = vsel %vm2938_vm5, %v5572_v26, %v5571_v48  ;;  %vm12834_vm5 = vmmov %vm12825_vm12 }
 0xb8b   :  { %vm12838_vm15 = vmmov %vm12829_vm14 }
 0xb8d   :  { %v5318_v29 = vpop.permute.xlu1 %5317 }
 0xb8e   :  { %v5574_v12 = vperm.slane %v5318_v29, %v12516_v16  ;;  %v5342_v39 = vpop.permute.xlu2 %5341 }
 0xb8f   :  { %v5590_v37 = vperm.slane %v5342_v39, %v12540_v21 }
 0xb90   :  { %v5575_v49 = vsel %vm2942_vm6, %v5574_v12, %v5573_v1  ;;  %vm12835_vm6 = vmmov %vm12826_vm11 }
 0xb91   :  { %v5577_v51 = vsel %vm12830_vm1, %v5576_v41, %v5575_v49 }
 0xb92   :  { %v5579_v28 = vsel %vm12831_vm2, %v5578_v24, %v5577_v51 }
 0xb95   :  { %v5327_v46 = vpop.permute.xlu1 %5326 }
 0xb96   :  { %v5580_v9 = vperm.slane %v5327_v46, %v12524_v13 }
 0xb98   :  { %v5581_v16 = vsel %vm12832_vm3, %v5580_v9, %v5579_v28 }
 0xb99   :  { %v5583_v20 = vsel %vm12833_vm4, %v5582_v14, %v5581_v16 }
 0xb9a   :  { %v5585_v10 = vsel %vm12834_vm5, %v5584_v44, %v5583_v20 }
 0xb9d   :  { %v5336_v11 = vpop.permute.xlu1 %5335 }
 0xb9e   :  { %v5586_v32 = vperm.slane %v5336_v11, %v12536_v38 }
 0xba0   :  { %v5587_v13 = vsel %vm12835_vm6, %v5586_v32, %v5585_v10 }
 0xba1   :  { %v5589_v47 = vsel %vm12836_vm9, %v5588_v45, %v5587_v13 }
 0xba2   :  { %v5591_v38 = vsel %vm12837_vm0, %v5590_v37, %v5589_v47 }
 0xba5   :  { %v5345_v34 = vpop.permute.xlu1 %5344 }
 0xba6   :  { %v5592_v17 = vperm.slane %v5345_v34, %v12545_v22 }
 0xba8   :  { %v5593_v43 = vsel %vm12838_vm15, %v5592_v17, %v5591_v38 }
 0xba9   :  { %v5600_v30 = vsel %vm3209_vm10, %v5593_v43, %v5599_v58 }
 0xbaa   :  { %5602 = vst [vmem:[#allocation4] sm:$0xff] %v5600_v30 }
 0xbab   :  { %5624 = dma.vmem_to_hbm [thread:$0]  %s5620_s16, 128, %s5622_s19, [#allocation5]  }
 0xbac   :  { %6978 = dma.done.wait [#allocation3], 128  }
 0xbad   :  { %6979 = vsyncadd [#allocation3], 4294967168 }
 0xbae   :  { %6980 = dma.done.wait [#allocation5], 128  }
 0xbaf   :  { %6981 = vsyncadd [#allocation5], 4294967168 }
 0xbb0   :  { %5633 = vsyncpa [#allocation3], 1 }
 0xbb1   :  { %5634 = vsyncpa [#allocation5], 1 }

</bundles_post_ra>
